<compile_context>
chip_gen: v7x
topology: tpu7x:2x2x1
jax: 0.10.0
libtpu: 0.0.40
codegen_flags: <defaults>
</compile_context>

<pallas_src>
import jax
import jax.numpy as jnp
from jax.experimental import pallas as pl
from jax.experimental.pallas import tpu as pltpu

D_MODEL = 32          # n_attn_hidden
N_HEAD = 2
HEAD_DIM = D_MODEL // N_HEAD
D_FF = 512
N_LAYERS = 3
NEG_INF = -1e30       # additive mask value for padded keys (finite to avoid NaN corner cases)

# dtype fed to the MXU (weights + matmul activations). f32 accumulation everywhere.
# Set to jnp.float32 to recover bit-exact f32 semantics (e.g. when validating vs PyTorch).
MXU_DTYPE = jnp.bfloat16


def _round_up(x, m):
    return ((x + m - 1) // m) * m


def _layer_norm(x, w, b, eps=1e-5):
    mu = jnp.mean(x, axis=-1, keepdims=True)
    var = jnp.mean((x - mu) ** 2, axis=-1, keepdims=True)
    return (x - mu) * jax.lax.rsqrt(var + eps) * w + b


def interaction_kernel(mask_ref, h_ref,
                       q_w_ref, k_w_ref, v_w_ref, q_b_ref, k_b_ref, v_b_ref,
                       out_w_ref, out_b_ref,
                       lin1_w_ref, lin1_b_ref, lin2_w_ref, lin2_b_ref,
                       n1_w_ref, n1_b_ref, n2_w_ref, n2_b_ref,
                       o_ref):
    tb, ne, d = h_ref.shape
    # Running activations kept in f32; flattened to (TB*ne, d) for all row-independent matmuls.
    h2 = h_ref[...].astype(jnp.float32).reshape(tb * ne, d)
    bias = mask_ref[...].astype(jnp.float32)                 # (TB, 1, ne) additive key bias
    scale = 1.0 / float(HEAD_DIM) ** 0.5

    for l in range(N_LAYERS):                                # static unroll over encoder layers
        h_mx = h2.astype(MXU_DTYPE)

        # --- multi-head self-attention (per-head weights pre-split at trace time) ---
        attn = out_b_ref[l]                                  # (1, d) out_proj bias, broadcasts
        for hh in range(N_HEAD):                             # static unroll, N_HEAD == 2
            q = jnp.dot(h_mx, q_w_ref[l, hh], preferred_element_type=jnp.float32) + q_b_ref[l, hh]
            k = jnp.dot(h_mx, k_w_ref[l, hh], preferred_element_type=jnp.float32) + k_b_ref[l, hh]
            v = jnp.dot(h_mx, v_w_ref[l, hh], preferred_element_type=jnp.float32) + v_b_ref[l, hh]
            q3 = q.reshape(tb, ne, HEAD_DIM)
            k3 = k.reshape(tb, ne, HEAD_DIM)
            v3 = v.reshape(tb, ne, HEAD_DIM)

            s = jnp.einsum('bqd,bkd->bqk', q3, k3,
                           preferred_element_type=jnp.float32) * scale      # (TB, ne, ne)
            s = s + bias                                                     # mask padded keys
            m = jnp.max(s, axis=-1, keepdims=True)
            e = jnp.exp(s - m)
            p = e * pl.reciprocal(jnp.sum(e, axis=-1, keepdims=True), approx=True)

            o_h = jnp.einsum('bqk,bkd->bqd', p, v3,
                             preferred_element_type=jnp.float32)             # (TB, ne, hd)
            attn = attn + jnp.dot(o_h.reshape(tb * ne, HEAD_DIM).astype(MXU_DTYPE),
                                  out_w_ref[l, hh],
                                  preferred_element_type=jnp.float32)

        # post-norm residual 1
        h2 = _layer_norm(h2 + attn, n1_w_ref[l], n1_b_ref[l])

        # --- feed-forward (ReLU) ---
        ff = jnp.dot(h2.astype(MXU_DTYPE), lin1_w_ref[l],
                     preferred_element_type=jnp.float32) + lin1_b_ref[l]
        ff = jnp.maximum(ff, 0.0)
        ff = jnp.dot(ff.astype(MXU_DTYPE), lin2_w_ref[l],
                     preferred_element_type=jnp.float32) + lin2_b_ref[l]

        # post-norm residual 2
        h2 = _layer_norm(h2 + ff, n2_w_ref[l], n2_b_ref[l])

    # h.max(dim=2)[0] in the PyTorch module == max over the entity axis; one (TB, d) slab store.
    o_ref[...] = jnp.max(h2.reshape(tb, ne, d), axis=1).astype(o_ref.dtype)


def init_params(key):
    """PyTorch-layout parameters (nn.Linear weights are (out_features, in_features))."""
    keys = jax.random.split(key, 8)

    def rnd(k, shape, scale=0.05):
        return jax.random.normal(k, shape, jnp.float32) * scale

    return dict(
        in_w=rnd(keys[0], (N_LAYERS, 3 * D_MODEL, D_MODEL)),   # self_attn.in_proj_weight
        in_b=rnd(keys[1], (N_LAYERS, 3 * D_MODEL)),            # self_attn.in_proj_bias
        out_w=rnd(keys[2], (N_LAYERS, D_MODEL, D_MODEL)),      # self_attn.out_proj.weight
        out_b=rnd(keys[3], (N_LAYERS, D_MODEL)),               # self_attn.out_proj.bias
        lin1_w=rnd(keys[4], (N_LAYERS, D_FF, D_MODEL)),        # linear1.weight
        lin1_b=rnd(keys[5], (N_LAYERS, D_FF)),                 # linear1.bias
        lin2_w=rnd(keys[6], (N_LAYERS, D_MODEL, D_FF)),        # linear2.weight
        lin2_b=rnd(keys[7], (N_LAYERS, D_MODEL)),              # linear2.bias
        n1_w=jnp.ones((N_LAYERS, D_MODEL), jnp.float32),
        n1_b=jnp.zeros((N_LAYERS, D_MODEL), jnp.float32),
        n2_w=jnp.ones((N_LAYERS, D_MODEL), jnp.float32),
        n2_b=jnp.zeros((N_LAYERS, D_MODEL), jnp.float32),
    )


def prepare_kernel_params(p, mxu_dtype=MXU_DTYPE):
    """Trace-time weight re-layout: transpose to (in, out) order and split per attention head,
    so the kernel never transposes, slices, or concatenates along the 16-lane head boundary."""
    L, H, hd, d, dff = N_LAYERS, N_HEAD, HEAD_DIM, D_MODEL, D_FF

    def split_heads_w(w):       # (L, d, d) torch rows = out features -> (L, H, d_in, hd)
        return w.reshape(L, H, hd, d).transpose(0, 1, 3, 2)

    def split_heads_b(b):       # (L, d) -> (L, H, 1, hd)
        return b.reshape(L, H, 1, hd)

    in_w, in_b = p['in_w'], p['in_b']
    q_w = split_heads_w(in_w[:, 0 * d:1 * d, :]).astype(mxu_dtype)
    k_w = split_heads_w(in_w[:, 1 * d:2 * d, :]).astype(mxu_dtype)
    v_w = split_heads_w(in_w[:, 2 * d:3 * d, :]).astype(mxu_dtype)
    q_b = split_heads_b(in_b[:, 0 * d:1 * d])
    k_b = split_heads_b(in_b[:, 1 * d:2 * d])
    v_b = split_heads_b(in_b[:, 2 * d:3 * d])

    # out_proj: concat_h(o_h) @ W.T + b == sum_h o_h @ W[:, h*hd:(h+1)*hd].T + b
    out_w = p['out_w'].transpose(0, 2, 1).reshape(L, H, hd, d).astype(mxu_dtype)  # (L, H, hd, d)
    out_b = p['out_b'].reshape(L, 1, d)

    lin1_w = p['lin1_w'].transpose(0, 2, 1).astype(mxu_dtype)   # (L, d, dff)
    lin1_b = p['lin1_b'].reshape(L, 1, dff)
    lin2_w = p['lin2_w'].transpose(0, 2, 1).astype(mxu_dtype)   # (L, dff, d)
    lin2_b = p['lin2_b'].reshape(L, 1, d)

    n1_w = p['n1_w'].reshape(L, 1, d)
    n1_b = p['n1_b'].reshape(L, 1, d)
    n2_w = p['n2_w'].reshape(L, 1, d)
    n2_b = p['n2_b'].reshape(L, 1, d)

    return [q_w, k_w, v_w, q_b, k_b, v_b, out_w, out_b,
            lin1_w, lin1_b, lin2_w, lin2_b, n1_w, n1_b, n2_w, n2_b]


def _const_index_map(rank):
    return lambda b: (0,) * rank


def interaction_block(x, h_self, hs_other, params, tb=128):
    """Mirrors InteractionBlock.forward. `tb` = sequences processed per grid step.
    At tb=128 the in-kernel FFN intermediate is ~2 MiB f32, well inside the default scoped
    VMEM on v5e/v6e/v7x (raise tb + vmem_limit_bytes for more throughput on v5e/v6e)."""
    # h_self.unsqueeze(2)[:, :, :, :n_attn_hidden]
    h_self = h_self[:, :, None, :D_MODEL]                                # (bs, na, 1, d)
    h = jnp.concatenate([h_self, *hs_other], axis=2)                     # (bs, na, ne, d)
    bs, na, ne, nf = h.shape
    B = bs * na

    mask = jnp.concatenate([x['team_mask'], x['npc_mask'], x['enemy_mask']], axis=-1)
    mask = mask.astype(bool).reshape(B, ne)                              # True = padded key
    mask_bias = jnp.where(mask, NEG_INF, 0.0).astype(jnp.float32)[:, None, :]   # (B, 1, ne)

    h_flat = h.reshape(B, ne, nf).astype(MXU_DTYPE)                      # (B, ne, d)

    # Pick batch tile and pad B up to a multiple of it (padded rows are dropped at the end).
    tb = max(8, min(tb, _round_up(B, 8)))
    B_pad = _round_up(B, tb)
    if B_pad != B:
        h_flat = jnp.pad(h_flat, ((0, B_pad - B), (0, 0), (0, 0)))
        mask_bias = jnp.pad(mask_bias, ((0, B_pad - B), (0, 0), (0, 0)))

    weight_arrays = prepare_kernel_params(params)
    weight_specs = [pl.BlockSpec(w.shape, _const_index_map(w.ndim)) for w in weight_arrays]

    grid_spec = pltpu.PrefetchScalarGridSpec(
        num_scalar_prefetch=0,
        grid=(B_pad // tb,),
        in_specs=[
            pl.BlockSpec((tb, 1, ne), lambda b: (b, 0, 0)),              # mask bias slab
            pl.BlockSpec((tb, ne, nf), lambda b: (b, 0, 0)),             # h slab
            *weight_specs,                                               # resident weight slabs
        ],
        out_specs=pl.BlockSpec((tb, D_MODEL), lambda b: (b, 0)),         # pooled (TB, d) slab
    )

    out = pl.pallas_call(
        interaction_kernel,
        out_shape=jax.ShapeDtypeStruct((B_pad, D_MODEL), jnp.float32),
        grid_spec=grid_spec,
        compiler_params=pltpu.CompilerParams(
            dimension_semantics=("parallel",),   # batch axis splits across v7x's two TCs
        ),
    )(mask_bias, h_flat, *weight_arrays)

    return out[:B].reshape(bs, na, D_MODEL)


if __name__ == "__main__":
    key = jax.random.PRNGKey(0)
    bs, na = 2, 4
    n_team, n_npc, n_enemy = 1, 3, 4          # ne = 1 + 3 + 4 = 8 entities per agent
    k1, k2, k3, k4, k5, kp = jax.random.split(key, 6)

    # h_self carries extra features; the module slices the first n_attn_hidden of them.
    h_self = jax.random.normal(k1, (bs, na, D_MODEL + 8), jnp.float32)
    h_npc = jax.random.normal(k2, (bs, na, n_npc, D_MODEL), jnp.float32)
    h_enemy = jax.random.normal(k3, (bs, na, n_enemy, D_MODEL), jnp.float32)

    # Padding masks (1.0 = padded / ignore as attention key). Self entity is never padded.
    team_mask = jnp.zeros((bs, na, n_team), jnp.float32)
    npc_mask = (jax.random.uniform(k4, (bs, na, n_npc)) < 0.3).astype(jnp.float32)
    enemy_mask = (jax.random.uniform(k5, (bs, na, n_enemy)) < 0.3).astype(jnp.float32)
    x = {'team_mask': team_mask, 'npc_mask': npc_mask, 'enemy_mask': enemy_mask}

    params = init_params(kp)

    out = interaction_block(x, h_self, (h_npc, h_enemy), params)
    out = jax.block_until_ready(out)
    assert out.shape == (bs, na, D_MODEL), out.shape
    assert bool(jnp.all(jnp.isfinite(out)))
    print("KERNEL_OK")
</pallas_src>

<mosaic_0001>
module attributes {stable_mosaic.version = 11 : i64} {
  func.func @interaction_kernel(%arg0: i32, %arg1: memref<8x1x8xf32, #tpu.memory_space<vmem>>, %arg2: memref<8x8x32xbf16, #tpu.memory_space<vmem>>, %arg3: memref<3x2x32x16xbf16, #tpu.memory_space<vmem>>, %arg4: memref<3x2x32x16xbf16, #tpu.memory_space<vmem>>, %arg5: memref<3x2x32x16xbf16, #tpu.memory_space<vmem>>, %arg6: memref<3x2x1x16xf32, #tpu.memory_space<vmem>>, %arg7: memref<3x2x1x16xf32, #tpu.memory_space<vmem>>, %arg8: memref<3x2x1x16xf32, #tpu.memory_space<vmem>>, %arg9: memref<3x2x16x32xbf16, #tpu.memory_space<vmem>>, %arg10: memref<3x1x32xf32, #tpu.memory_space<vmem>>, %arg11: memref<3x32x512xbf16, #tpu.memory_space<vmem>>, %arg12: memref<3x1x512xf32, #tpu.memory_space<vmem>>, %arg13: memref<3x512x32xbf16, #tpu.memory_space<vmem>>, %arg14: memref<3x1x32xf32, #tpu.memory_space<vmem>>, %arg15: memref<3x1x32xf32, #tpu.memory_space<vmem>>, %arg16: memref<3x1x32xf32, #tpu.memory_space<vmem>>, %arg17: memref<3x1x32xf32, #tpu.memory_space<vmem>>, %arg18: memref<3x1x32xf32, #tpu.memory_space<vmem>>, %arg19: memref<8x32xf32, #tpu.memory_space<vmem>>) attributes {dimension_semantics = [#tpu.dimension_semantics<parallel>], iteration_bounds = array<i64: 1>, scalar_prefetch = 0 : i64, scratch_operands = 0 : i64, tpu.core_type = #tpu.core_type<tc>, window_params = [{transform_indices = @transform_0, window_bounds = array<i64: 8, 1, 8>}, {transform_indices = @transform_1, window_bounds = array<i64: 8, 8, 32>}, {pipeline_mode = #tpu.pipeline_mode<synchronous>, transform_indices = @transform_2, window_bounds = array<i64: 3, 2, 32, 16>}, {pipeline_mode = #tpu.pipeline_mode<synchronous>, transform_indices = @transform_3, window_bounds = array<i64: 3, 2, 32, 16>}, {pipeline_mode = #tpu.pipeline_mode<synchronous>, transform_indices = @transform_4, window_bounds = array<i64: 3, 2, 32, 16>}, {pipeline_mode = #tpu.pipeline_mode<synchronous>, transform_indices = @transform_5, window_bounds = array<i64: 3, 2, 1, 16>}, {pipeline_mode = #tpu.pipeline_mode<synchronous>, transform_indices = @transform_6, window_bounds = array<i64: 3, 2, 1, 16>}, {pipeline_mode = #tpu.pipeline_mode<synchronous>, transform_indices = @transform_7, window_bounds = array<i64: 3, 2, 1, 16>}, {pipeline_mode = #tpu.pipeline_mode<synchronous>, transform_indices = @transform_8, window_bounds = array<i64: 3, 2, 16, 32>}, {pipeline_mode = #tpu.pipeline_mode<synchronous>, transform_indices = @transform_9, window_bounds = array<i64: 3, 1, 32>}, {pipeline_mode = #tpu.pipeline_mode<synchronous>, transform_indices = @transform_10, window_bounds = array<i64: 3, 32, 512>}, {pipeline_mode = #tpu.pipeline_mode<synchronous>, transform_indices = @transform_11, window_bounds = array<i64: 3, 1, 512>}, {pipeline_mode = #tpu.pipeline_mode<synchronous>, transform_indices = @transform_12, window_bounds = array<i64: 3, 512, 32>}, {pipeline_mode = #tpu.pipeline_mode<synchronous>, transform_indices = @transform_13, window_bounds = array<i64: 3, 1, 32>}, {pipeline_mode = #tpu.pipeline_mode<synchronous>, transform_indices = @transform_14, window_bounds = array<i64: 3, 1, 32>}, {pipeline_mode = #tpu.pipeline_mode<synchronous>, transform_indices = @transform_15, window_bounds = array<i64: 3, 1, 32>}, {pipeline_mode = #tpu.pipeline_mode<synchronous>, transform_indices = @transform_16, window_bounds = array<i64: 3, 1, 32>}, {pipeline_mode = #tpu.pipeline_mode<synchronous>, transform_indices = @transform_17, window_bounds = array<i64: 3, 1, 32>}, {transform_indices = @transform_18, window_bounds = array<i64: 8, 32>}]} {
    %c0 = arith.constant 0 : index
    %c0_0 = arith.constant 0 : index
    %c0_1 = arith.constant 0 : index
    %0 = vector.load %arg2[%c0, %c0_0, %c0_1] : memref<8x8x32xbf16, #tpu.memory_space<vmem>>, vector<8x8x32xbf16>
    %1 = arith.extf %0 : vector<8x8x32xbf16> to vector<8x8x32xf32>
    %2 = vector.shape_cast %1 : vector<8x8x32xf32> to vector<64x32xf32>
    %c0_2 = arith.constant 0 : index
    %c0_3 = arith.constant 0 : index
    %c0_4 = arith.constant 0 : index
    %3 = vector.load %arg1[%c0_2, %c0_3, %c0_4] : memref<8x1x8xf32, #tpu.memory_space<vmem>>, vector<8x1x8xf32>
    %4 = arith.truncf %2 : vector<64x32xf32> to vector<64x32xbf16>
    %c0_5 = arith.constant 0 : index
    %c0_6 = arith.constant 0 : index
    %c0_7 = arith.constant 0 : index
    %5 = vector.load %arg10[%c0_5, %c0_6, %c0_7] : memref<3x1x32xf32, #tpu.memory_space<vmem>>, vector<1x1x32xf32>
    %6 = vector.shape_cast %5 : vector<1x1x32xf32> to vector<1x32xf32>
    %c0_8 = arith.constant 0 : index
    %c0_9 = arith.constant 0 : index
    %c0_10 = arith.constant 0 : index
    %c0_11 = arith.constant 0 : index
    %7 = vector.load %arg3[%c0_8, %c0_9, %c0_10, %c0_11] : memref<3x2x32x16xbf16, #tpu.memory_space<vmem>>, vector<1x1x32x16xbf16>
    %8 = vector.shape_cast %7 : vector<1x1x32x16xbf16> to vector<32x16xbf16>
    %cst = arith.constant dense<0.000000e+00> : vector<64x16xf32>
    %9 = tpu.matmul %4, %8, %cst {dimension_numbers = #tpu.dot_dimension_numbers<[1], [0], [0], [1], [0, 0, 1, 1], [], []>} : vector<64x32xbf16>, vector<32x16xbf16>, vector<64x16xf32> -> vector<64x16xf32>
    %c0_12 = arith.constant 0 : index
    %c0_13 = arith.constant 0 : index
    %c0_14 = arith.constant 0 : index
    %c0_15 = arith.constant 0 : index
    %10 = vector.load %arg6[%c0_12, %c0_13, %c0_14, %c0_15] : memref<3x2x1x16xf32, #tpu.memory_space<vmem>>, vector<1x1x1x16xf32>
    %11 = vector.shape_cast %10 : vector<1x1x1x16xf32> to vector<1x16xf32>
    %12 = vector.broadcast %11 : vector<1x16xf32> to vector<64x16xf32>
    %13 = arith.addf %9, %12 : vector<64x16xf32>
    %c0_16 = arith.constant 0 : index
    %c0_17 = arith.constant 0 : index
    %c0_18 = arith.constant 0 : index
    %c0_19 = arith.constant 0 : index
    %14 = vector.load %arg4[%c0_16, %c0_17, %c0_18, %c0_19] : memref<3x2x32x16xbf16, #tpu.memory_space<vmem>>, vector<1x1x32x16xbf16>
    %15 = vector.shape_cast %14 : vector<1x1x32x16xbf16> to vector<32x16xbf16>
    %cst_20 = arith.constant dense<0.000000e+00> : vector<64x16xf32>
    %16 = tpu.matmul %4, %15, %cst_20 {dimension_numbers = #tpu.dot_dimension_numbers<[1], [0], [0], [1], [0, 0, 1, 1], [], []>} : vector<64x32xbf16>, vector<32x16xbf16>, vector<64x16xf32> -> vector<64x16xf32>
    %c0_21 = arith.constant 0 : index
    %c0_22 = arith.constant 0 : index
    %c0_23 = arith.constant 0 : index
    %c0_24 = arith.constant 0 : index
    %17 = vector.load %arg7[%c0_21, %c0_22, %c0_23, %c0_24] : memref<3x2x1x16xf32, #tpu.memory_space<vmem>>, vector<1x1x1x16xf32>
    %18 = vector.shape_cast %17 : vector<1x1x1x16xf32> to vector<1x16xf32>
    %19 = vector.broadcast %18 : vector<1x16xf32> to vector<64x16xf32>
    %20 = arith.addf %16, %19 : vector<64x16xf32>
    %c0_25 = arith.constant 0 : index
    %c0_26 = arith.constant 0 : index
    %c0_27 = arith.constant 0 : index
    %c0_28 = arith.constant 0 : index
    %21 = vector.load %arg5[%c0_25, %c0_26, %c0_27, %c0_28] : memref<3x2x32x16xbf16, #tpu.memory_space<vmem>>, vector<1x1x32x16xbf16>
    %22 = vector.shape_cast %21 : vector<1x1x32x16xbf16> to vector<32x16xbf16>
    %cst_29 = arith.constant dense<0.000000e+00> : vector<64x16xf32>
    %23 = tpu.matmul %4, %22, %cst_29 {dimension_numbers = #tpu.dot_dimension_numbers<[1], [0], [0], [1], [0, 0, 1, 1], [], []>} : vector<64x32xbf16>, vector<32x16xbf16>, vector<64x16xf32> -> vector<64x16xf32>
    %c0_30 = arith.constant 0 : index
    %c0_31 = arith.constant 0 : index
    %c0_32 = arith.constant 0 : index
    %c0_33 = arith.constant 0 : index
    %24 = vector.load %arg8[%c0_30, %c0_31, %c0_32, %c0_33] : memref<3x2x1x16xf32, #tpu.memory_space<vmem>>, vector<1x1x1x16xf32>
    %25 = vector.shape_cast %24 : vector<1x1x1x16xf32> to vector<1x16xf32>
    %26 = vector.broadcast %25 : vector<1x16xf32> to vector<64x16xf32>
    %27 = arith.addf %23, %26 : vector<64x16xf32>
    %28 = vector.shape_cast %13 : vector<64x16xf32> to vector<8x8x16xf32>
    %29 = vector.shape_cast %20 : vector<64x16xf32> to vector<8x8x16xf32>
    %30 = vector.shape_cast %27 : vector<64x16xf32> to vector<8x8x16xf32>
    "tpu.trace_start"() <{level = 10 : i32, message = "bqd,bkd->bqk"}> : () -> ()
    %cst_34 = arith.constant dense<0.000000e+00> : vector<8x8x8xf32>
    %31 = tpu.matmul %28, %29, %cst_34 {dimension_numbers = #tpu.dot_dimension_numbers<[2], [2], [1], [1], [0, 0, 0, 1, 1, 1], [0], [0]>} : vector<8x8x16xf32>, vector<8x8x16xf32>, vector<8x8x8xf32> -> vector<8x8x8xf32>
    "tpu.trace_stop"() : () -> ()
    %cst_35 = arith.constant 2.500000e-01 : f32
    %32 = vector.broadcast %cst_35 : f32 to vector<8x8x8xf32>
    %33 = arith.mulf %31, %32 : vector<8x8x8xf32>
    %34 = vector.broadcast %3 : vector<8x1x8xf32> to vector<8x8x8xf32>
    %35 = arith.addf %33, %34 : vector<8x8x8xf32>
    %cst_36 = arith.constant dense<0xFF800000> : vector<8x8xf32>
    %36 = vector.multi_reduction <maximumf>, %35, %cst_36 [2] : vector<8x8x8xf32> to vector<8x8xf32>
    %37 = vector.shape_cast %36 : vector<8x8xf32> to vector<8x8x1xf32>
    %38 = vector.broadcast %37 : vector<8x8x1xf32> to vector<8x8x8xf32>
    %39 = arith.subf %35, %38 : vector<8x8x8xf32>
    %40 = math.exp %39 : vector<8x8x8xf32>
    %cst_37 = arith.constant dense<0.000000e+00> : vector<8x8xf32>
    %41 = vector.multi_reduction <add>, %40, %cst_37 [2] : vector<8x8x8xf32> to vector<8x8xf32>
    %42 = vector.shape_cast %41 : vector<8x8xf32> to vector<8x8x1xf32>
    %43 = tpu.reciprocal %42 {approx = true} : vector<8x8x1xf32> -> vector<8x8x1xf32>
    %44 = vector.broadcast %43 : vector<8x8x1xf32> to vector<8x8x8xf32>
    %45 = arith.mulf %40, %44 : vector<8x8x8xf32>
    "tpu.trace_start"() <{level = 10 : i32, message = "bqk,bkd->bqd"}> : () -> ()
    %cst_38 = arith.constant dense<0.000000e+00> : vector<8x8x16xf32>
    %46 = tpu.matmul %45, %30, %cst_38 {dimension_numbers = #tpu.dot_dimension_numbers<[2], [1], [1], [2], [0, 0, 0, 1, 1, 2], [0], [0]>} : vector<8x8x8xf32>, vector<8x8x16xf32>, vector<8x8x16xf32> -> vector<8x8x16xf32>
    "tpu.trace_stop"() : () -> ()
    %47 = vector.shape_cast %46 : vector<8x8x16xf32> to vector<64x16xf32>
    %48 = arith.truncf %47 : vector<64x16xf32> to vector<64x16xbf16>
    %c0_39 = arith.constant 0 : index
    %c0_40 = arith.constant 0 : index
    %c0_41 = arith.constant 0 : index
    %c0_42 = arith.constant 0 : index
    %49 = vector.load %arg9[%c0_39, %c0_40, %c0_41, %c0_42] : memref<3x2x16x32xbf16, #tpu.memory_space<vmem>>, vector<1x1x16x32xbf16>
    %50 = vector.shape_cast %49 : vector<1x1x16x32xbf16> to vector<16x32xbf16>
    %cst_43 = arith.constant dense<0.000000e+00> : vector<64x32xf32>
    %51 = tpu.matmul %48, %50, %cst_43 {dimension_numbers = #tpu.dot_dimension_numbers<[1], [0], [0], [1], [0, 0, 1, 1], [], []>} : vector<64x16xbf16>, vector<16x32xbf16>, vector<64x32xf32> -> vector<64x32xf32>
    %52 = vector.broadcast %6 : vector<1x32xf32> to vector<64x32xf32>
    %53 = arith.addf %52, %51 : vector<64x32xf32>
    %c0_44 = arith.constant 0 : index
    %c1 = arith.constant 1 : index
    %c0_45 = arith.constant 0 : index
    %c0_46 = arith.constant 0 : index
    %54 = vector.load %arg3[%c0_44, %c1, %c0_45, %c0_46] : memref<3x2x32x16xbf16, #tpu.memory_space<vmem>>, vector<1x1x32x16xbf16>
    %55 = vector.shape_cast %54 : vector<1x1x32x16xbf16> to vector<32x16xbf16>
    %cst_47 = arith.constant dense<0.000000e+00> : vector<64x16xf32>
    %56 = tpu.matmul %4, %55, %cst_47 {dimension_numbers = #tpu.dot_dimension_numbers<[1], [0], [0], [1], [0, 0, 1, 1], [], []>} : vector<64x32xbf16>, vector<32x16xbf16>, vector<64x16xf32> -> vector<64x16xf32>
    %c0_48 = arith.constant 0 : index
    %c1_49 = arith.constant 1 : index
    %c0_50 = arith.constant 0 : index
    %c0_51 = arith.constant 0 : index
    %57 = vector.load %arg6[%c0_48, %c1_49, %c0_50, %c0_51] : memref<3x2x1x16xf32, #tpu.memory_space<vmem>>, vector<1x1x1x16xf32>
    %58 = vector.shape_cast %57 : vector<1x1x1x16xf32> to vector<1x16xf32>
    %59 = vector.broadcast %58 : vector<1x16xf32> to vector<64x16xf32>
    %60 = arith.addf %56, %59 : vector<64x16xf32>
    %c0_52 = arith.constant 0 : index
    %c1_53 = arith.constant 1 : index
    %c0_54 = arith.constant 0 : index
    %c0_55 = arith.constant 0 : index
    %61 = vector.load %arg4[%c0_52, %c1_53, %c0_54, %c0_55] : memref<3x2x32x16xbf16, #tpu.memory_space<vmem>>, vector<1x1x32x16xbf16>
    %62 = vector.shape_cast %61 : vector<1x1x32x16xbf16> to vector<32x16xbf16>
    %cst_56 = arith.constant dense<0.000000e+00> : vector<64x16xf32>
    %63 = tpu.matmul %4, %62, %cst_56 {dimension_numbers = #tpu.dot_dimension_numbers<[1], [0], [0], [1], [0, 0, 1, 1], [], []>} : vector<64x32xbf16>, vector<32x16xbf16>, vector<64x16xf32> -> vector<64x16xf32>
    %c0_57 = arith.constant 0 : index
    %c1_58 = arith.constant 1 : index
    %c0_59 = arith.constant 0 : index
    %c0_60 = arith.constant 0 : index
    %64 = vector.load %arg7[%c0_57, %c1_58, %c0_59, %c0_60] : memref<3x2x1x16xf32, #tpu.memory_space<vmem>>, vector<1x1x1x16xf32>
    %65 = vector.shape_cast %64 : vector<1x1x1x16xf32> to vector<1x16xf32>
    %66 = vector.broadcast %65 : vector<1x16xf32> to vector<64x16xf32>
    %67 = arith.addf %63, %66 : vector<64x16xf32>
    %c0_61 = arith.constant 0 : index
    %c1_62 = arith.constant 1 : index
    %c0_63 = arith.constant 0 : index
    %c0_64 = arith.constant 0 : index
    %68 = vector.load %arg5[%c0_61, %c1_62, %c0_63, %c0_64] : memref<3x2x32x16xbf16, #tpu.memory_space<vmem>>, vector<1x1x32x16xbf16>
    %69 = vector.shape_cast %68 : vector<1x1x32x16xbf16> to vector<32x16xbf16>
    %cst_65 = arith.constant dense<0.000000e+00> : vector<64x16xf32>
    %70 = tpu.matmul %4, %69, %cst_65 {dimension_numbers = #tpu.dot_dimension_numbers<[1], [0], [0], [1], [0, 0, 1, 1], [], []>} : vector<64x32xbf16>, vector<32x16xbf16>, vector<64x16xf32> -> vector<64x16xf32>
    %c0_66 = arith.constant 0 : index
    %c1_67 = arith.constant 1 : index
    %c0_68 = arith.constant 0 : index
    %c0_69 = arith.constant 0 : index
    %71 = vector.load %arg8[%c0_66, %c1_67, %c0_68, %c0_69] : memref<3x2x1x16xf32, #tpu.memory_space<vmem>>, vector<1x1x1x16xf32>
    %72 = vector.shape_cast %71 : vector<1x1x1x16xf32> to vector<1x16xf32>
    %73 = vector.broadcast %72 : vector<1x16xf32> to vector<64x16xf32>
    %74 = arith.addf %70, %73 : vector<64x16xf32>
    %75 = vector.shape_cast %60 : vector<64x16xf32> to vector<8x8x16xf32>
    %76 = vector.shape_cast %67 : vector<64x16xf32> to vector<8x8x16xf32>
    %77 = vector.shape_cast %74 : vector<64x16xf32> to vector<8x8x16xf32>
    "tpu.trace_start"() <{level = 10 : i32, message = "bqd,bkd->bqk"}> : () -> ()
    %cst_70 = arith.constant dense<0.000000e+00> : vector<8x8x8xf32>
    %78 = tpu.matmul %75, %76, %cst_70 {dimension_numbers = #tpu.dot_dimension_numbers<[2], [2], [1], [1], [0, 0, 0, 1, 1, 1], [0], [0]>} : vector<8x8x16xf32>, vector<8x8x16xf32>, vector<8x8x8xf32> -> vector<8x8x8xf32>
    "tpu.trace_stop"() : () -> ()
    %cst_71 = arith.constant 2.500000e-01 : f32
    %79 = vector.broadcast %cst_71 : f32 to vector<8x8x8xf32>
    %80 = arith.mulf %78, %79 : vector<8x8x8xf32>
    %81 = vector.broadcast %3 : vector<8x1x8xf32> to vector<8x8x8xf32>
    %82 = arith.addf %80, %81 : vector<8x8x8xf32>
    %cst_72 = arith.constant dense<0xFF800000> : vector<8x8xf32>
    %83 = vector.multi_reduction <maximumf>, %82, %cst_72 [2] : vector<8x8x8xf32> to vector<8x8xf32>
    %84 = vector.shape_cast %83 : vector<8x8xf32> to vector<8x8x1xf32>
    %85 = vector.broadcast %84 : vector<8x8x1xf32> to vector<8x8x8xf32>
    %86 = arith.subf %82, %85 : vector<8x8x8xf32>
    %87 = math.exp %86 : vector<8x8x8xf32>
    %cst_73 = arith.constant dense<0.000000e+00> : vector<8x8xf32>
    %88 = vector.multi_reduction <add>, %87, %cst_73 [2] : vector<8x8x8xf32> to vector<8x8xf32>
    %89 = vector.shape_cast %88 : vector<8x8xf32> to vector<8x8x1xf32>
    %90 = tpu.reciprocal %89 {approx = true} : vector<8x8x1xf32> -> vector<8x8x1xf32>
    %91 = vector.broadcast %90 : vector<8x8x1xf32> to vector<8x8x8xf32>
    %92 = arith.mulf %87, %91 : vector<8x8x8xf32>
    "tpu.trace_start"() <{level = 10 : i32, message = "bqk,bkd->bqd"}> : () -> ()
    %cst_74 = arith.constant dense<0.000000e+00> : vector<8x8x16xf32>
    %93 = tpu.matmul %92, %77, %cst_74 {dimension_numbers = #tpu.dot_dimension_numbers<[2], [1], [1], [2], [0, 0, 0, 1, 1, 2], [0], [0]>} : vector<8x8x8xf32>, vector<8x8x16xf32>, vector<8x8x16xf32> -> vector<8x8x16xf32>
    "tpu.trace_stop"() : () -> ()
    %94 = vector.shape_cast %93 : vector<8x8x16xf32> to vector<64x16xf32>
    %95 = arith.truncf %94 : vector<64x16xf32> to vector<64x16xbf16>
    %c0_75 = arith.constant 0 : index
    %c1_76 = arith.constant 1 : index
    %c0_77 = arith.constant 0 : index
    %c0_78 = arith.constant 0 : index
    %96 = vector.load %arg9[%c0_75, %c1_76, %c0_77, %c0_78] : memref<3x2x16x32xbf16, #tpu.memory_space<vmem>>, vector<1x1x16x32xbf16>
    %97 = vector.shape_cast %96 : vector<1x1x16x32xbf16> to vector<16x32xbf16>
    %cst_79 = arith.constant dense<0.000000e+00> : vector<64x32xf32>
    %98 = tpu.matmul %95, %97, %cst_79 {dimension_numbers = #tpu.dot_dimension_numbers<[1], [0], [0], [1], [0, 0, 1, 1], [], []>} : vector<64x16xbf16>, vector<16x32xbf16>, vector<64x32xf32> -> vector<64x32xf32>
    %99 = arith.addf %53, %98 : vector<64x32xf32>
    %100 = arith.addf %2, %99 : vector<64x32xf32>
    %c0_80 = arith.constant 0 : index
    %c0_81 = arith.constant 0 : index
    %c0_82 = arith.constant 0 : index
    %101 = vector.load %arg15[%c0_80, %c0_81, %c0_82] : memref<3x1x32xf32, #tpu.memory_space<vmem>>, vector<1x1x32xf32>
    %102 = vector.shape_cast %101 : vector<1x1x32xf32> to vector<1x32xf32>
    %c0_83 = arith.constant 0 : index
    %c0_84 = arith.constant 0 : index
    %c0_85 = arith.constant 0 : index
    %103 = vector.load %arg16[%c0_83, %c0_84, %c0_85] : memref<3x1x32xf32, #tpu.memory_space<vmem>>, vector<1x1x32xf32>
    %104 = vector.shape_cast %103 : vector<1x1x32xf32> to vector<1x32xf32>
    %cst_86 = arith.constant dense<0.000000e+00> : vector<64xf32>
    %105 = vector.multi_reduction <add>, %100, %cst_86 [1] : vector<64x32xf32> to vector<64xf32>
    %106 = vector.shape_cast %105 : vector<64xf32> to vector<64x1xf32>
    %cst_87 = arith.constant 3.200000e+01 : f32
    %107 = vector.broadcast %cst_87 : f32 to vector<64x1xf32>
    %108 = arith.divf %106, %107 : vector<64x1xf32>
    %109 = vector.broadcast %108 : vector<64x1xf32> to vector<64x32xf32>
    %110 = arith.subf %100, %109 : vector<64x32xf32>
    %111 = arith.mulf %110, %110 : vector<64x32xf32>
    %cst_88 = arith.constant dense<0.000000e+00> : vector<64xf32>
    %112 = vector.multi_reduction <add>, %111, %cst_88 [1] : vector<64x32xf32> to vector<64xf32>
    %113 = vector.shape_cast %112 : vector<64xf32> to vector<64x1xf32>
    %cst_89 = arith.constant 3.200000e+01 : f32
    %114 = vector.broadcast %cst_89 : f32 to vector<64x1xf32>
    %115 = arith.divf %113, %114 : vector<64x1xf32>
    %116 = vector.broadcast %108 : vector<64x1xf32> to vector<64x32xf32>
    %117 = arith.subf %100, %116 : vector<64x32xf32>
    %cst_90 = arith.constant 9.99999974E-6 : f32
    %118 = vector.broadcast %cst_90 : f32 to vector<64x1xf32>
    %119 = arith.addf %115, %118 : vector<64x1xf32>
    %120 = math.rsqrt %119 : vector<64x1xf32>
    %121 = vector.broadcast %120 : vector<64x1xf32> to vector<64x32xf32>
    %122 = arith.mulf %117, %121 : vector<64x32xf32>
    %123 = vector.broadcast %102 : vector<1x32xf32> to vector<64x32xf32>
    %124 = arith.mulf %122, %123 : vector<64x32xf32>
    %125 = vector.broadcast %104 : vector<1x32xf32> to vector<64x32xf32>
    %126 = arith.addf %124, %125 : vector<64x32xf32>
    %127 = arith.truncf %126 : vector<64x32xf32> to vector<64x32xbf16>
    %c0_91 = arith.constant 0 : index
    %c0_92 = arith.constant 0 : index
    %c0_93 = arith.constant 0 : index
    %128 = vector.load %arg11[%c0_91, %c0_92, %c0_93] : memref<3x32x512xbf16, #tpu.memory_space<vmem>>, vector<1x32x512xbf16>
    %129 = vector.shape_cast %128 : vector<1x32x512xbf16> to vector<32x512xbf16>
    %cst_94 = arith.constant dense<0.000000e+00> : vector<64x512xf32>
    %130 = tpu.matmul %127, %129, %cst_94 {dimension_numbers = #tpu.dot_dimension_numbers<[1], [0], [0], [1], [0, 0, 1, 1], [], []>} : vector<64x32xbf16>, vector<32x512xbf16>, vector<64x512xf32> -> vector<64x512xf32>
    %c0_95 = arith.constant 0 : index
    %c0_96 = arith.constant 0 : index
    %c0_97 = arith.constant 0 : index
    %131 = vector.load %arg12[%c0_95, %c0_96, %c0_97] : memref<3x1x512xf32, #tpu.memory_space<vmem>>, vector<1x1x512xf32>
    %132 = vector.shape_cast %131 : vector<1x1x512xf32> to vector<1x512xf32>
    %133 = vector.broadcast %132 : vector<1x512xf32> to vector<64x512xf32>
    %134 = arith.addf %130, %133 : vector<64x512xf32>
    %cst_98 = arith.constant 0.000000e+00 : f32
    %135 = vector.broadcast %cst_98 : f32 to vector<64x512xf32>
    %136 = arith.maximumf %134, %135 : vector<64x512xf32>
    %137 = arith.truncf %136 : vector<64x512xf32> to vector<64x512xbf16>
    %c0_99 = arith.constant 0 : index
    %c0_100 = arith.constant 0 : index
    %c0_101 = arith.constant 0 : index
    %138 = vector.load %arg13[%c0_99, %c0_100, %c0_101] : memref<3x512x32xbf16, #tpu.memory_space<vmem>>, vector<1x512x32xbf16>
    %139 = vector.shape_cast %138 : vector<1x512x32xbf16> to vector<512x32xbf16>
    %cst_102 = arith.constant dense<0.000000e+00> : vector<64x32xf32>
    %140 = tpu.matmul %137, %139, %cst_102 {dimension_numbers = #tpu.dot_dimension_numbers<[1], [0], [0], [1], [0, 0, 1, 1], [], []>} : vector<64x512xbf16>, vector<512x32xbf16>, vector<64x32xf32> -> vector<64x32xf32>
    %c0_103 = arith.constant 0 : index
    %c0_104 = arith.constant 0 : index
    %c0_105 = arith.constant 0 : index
    %141 = vector.load %arg14[%c0_103, %c0_104, %c0_105] : memref<3x1x32xf32, #tpu.memory_space<vmem>>, vector<1x1x32xf32>
    %142 = vector.shape_cast %141 : vector<1x1x32xf32> to vector<1x32xf32>
    %143 = vector.broadcast %142 : vector<1x32xf32> to vector<64x32xf32>
    %144 = arith.addf %140, %143 : vector<64x32xf32>
    %145 = arith.addf %126, %144 : vector<64x32xf32>
    %c0_106 = arith.constant 0 : index
    %c0_107 = arith.constant 0 : index
    %c0_108 = arith.constant 0 : index
    %146 = vector.load %arg17[%c0_106, %c0_107, %c0_108] : memref<3x1x32xf32, #tpu.memory_space<vmem>>, vector<1x1x32xf32>
    %147 = vector.shape_cast %146 : vector<1x1x32xf32> to vector<1x32xf32>
    %c0_109 = arith.constant 0 : index
    %c0_110 = arith.constant 0 : index
    %c0_111 = arith.constant 0 : index
    %148 = vector.load %arg18[%c0_109, %c0_110, %c0_111] : memref<3x1x32xf32, #tpu.memory_space<vmem>>, vector<1x1x32xf32>
    %149 = vector.shape_cast %148 : vector<1x1x32xf32> to vector<1x32xf32>
    %cst_112 = arith.constant dense<0.000000e+00> : vector<64xf32>
    %150 = vector.multi_reduction <add>, %145, %cst_112 [1] : vector<64x32xf32> to vector<64xf32>
    %151 = vector.shape_cast %150 : vector<64xf32> to vector<64x1xf32>
    %cst_113 = arith.constant 3.200000e+01 : f32
    %152 = vector.broadcast %cst_113 : f32 to vector<64x1xf32>
    %153 = arith.divf %151, %152 : vector<64x1xf32>
    %154 = vector.broadcast %153 : vector<64x1xf32> to vector<64x32xf32>
    %155 = arith.subf %145, %154 : vector<64x32xf32>
    %156 = arith.mulf %155, %155 : vector<64x32xf32>
    %cst_114 = arith.constant dense<0.000000e+00> : vector<64xf32>
    %157 = vector.multi_reduction <add>, %156, %cst_114 [1] : vector<64x32xf32> to vector<64xf32>
    %158 = vector.shape_cast %157 : vector<64xf32> to vector<64x1xf32>
    %cst_115 = arith.constant 3.200000e+01 : f32
    %159 = vector.broadcast %cst_115 : f32 to vector<64x1xf32>
    %160 = arith.divf %158, %159 : vector<64x1xf32>
    %161 = vector.broadcast %153 : vector<64x1xf32> to vector<64x32xf32>
    %162 = arith.subf %145, %161 : vector<64x32xf32>
    %cst_116 = arith.constant 9.99999974E-6 : f32
    %163 = vector.broadcast %cst_116 : f32 to vector<64x1xf32>
    %164 = arith.addf %160, %163 : vector<64x1xf32>
    %165 = math.rsqrt %164 : vector<64x1xf32>
    %166 = vector.broadcast %165 : vector<64x1xf32> to vector<64x32xf32>
    %167 = arith.mulf %162, %166 : vector<64x32xf32>
    %168 = vector.broadcast %147 : vector<1x32xf32> to vector<64x32xf32>
    %169 = arith.mulf %167, %168 : vector<64x32xf32>
    %170 = vector.broadcast %149 : vector<1x32xf32> to vector<64x32xf32>
    %171 = arith.addf %169, %170 : vector<64x32xf32>
    %172 = arith.truncf %171 : vector<64x32xf32> to vector<64x32xbf16>
    %c1_117 = arith.constant 1 : index
    %c0_118 = arith.constant 0 : index
    %c0_119 = arith.constant 0 : index
    %173 = vector.load %arg10[%c1_117, %c0_118, %c0_119] : memref<3x1x32xf32, #tpu.memory_space<vmem>>, vector<1x1x32xf32>
    %174 = vector.shape_cast %173 : vector<1x1x32xf32> to vector<1x32xf32>
    %c1_120 = arith.constant 1 : index
    %c0_121 = arith.constant 0 : index
    %c0_122 = arith.constant 0 : index
    %c0_123 = arith.constant 0 : index
    %175 = vector.load %arg3[%c1_120, %c0_121, %c0_122, %c0_123] : memref<3x2x32x16xbf16, #tpu.memory_space<vmem>>, vector<1x1x32x16xbf16>
    %176 = vector.shape_cast %175 : vector<1x1x32x16xbf16> to vector<32x16xbf16>
    %cst_124 = arith.constant dense<0.000000e+00> : vector<64x16xf32>
    %177 = tpu.matmul %172, %176, %cst_124 {dimension_numbers = #tpu.dot_dimension_numbers<[1], [0], [0], [1], [0, 0, 1, 1], [], []>} : vector<64x32xbf16>, vector<32x16xbf16>, vector<64x16xf32> -> vector<64x16xf32>
    %c1_125 = arith.constant 1 : index
    %c0_126 = arith.constant 0 : index
    %c0_127 = arith.constant 0 : index
    %c0_128 = arith.constant 0 : index
    %178 = vector.load %arg6[%c1_125, %c0_126, %c0_127, %c0_128] : memref<3x2x1x16xf32, #tpu.memory_space<vmem>>, vector<1x1x1x16xf32>
    %179 = vector.shape_cast %178 : vector<1x1x1x16xf32> to vector<1x16xf32>
    %180 = vector.broadcast %179 : vector<1x16xf32> to vector<64x16xf32>
    %181 = arith.addf %177, %180 : vector<64x16xf32>
    %c1_129 = arith.constant 1 : index
    %c0_130 = arith.constant 0 : index
    %c0_131 = arith.constant 0 : index
    %c0_132 = arith.constant 0 : index
    %182 = vector.load %arg4[%c1_129, %c0_130, %c0_131, %c0_132] : memref<3x2x32x16xbf16, #tpu.memory_space<vmem>>, vector<1x1x32x16xbf16>
    %183 = vector.shape_cast %182 : vector<1x1x32x16xbf16> to vector<32x16xbf16>
    %cst_133 = arith.constant dense<0.000000e+00> : vector<64x16xf32>
    %184 = tpu.matmul %172, %183, %cst_133 {dimension_numbers = #tpu.dot_dimension_numbers<[1], [0], [0], [1], [0, 0, 1, 1], [], []>} : vector<64x32xbf16>, vector<32x16xbf16>, vector<64x16xf32> -> vector<64x16xf32>
    %c1_134 = arith.constant 1 : index
    %c0_135 = arith.constant 0 : index
    %c0_136 = arith.constant 0 : index
    %c0_137 = arith.constant 0 : index
    %185 = vector.load %arg7[%c1_134, %c0_135, %c0_136, %c0_137] : memref<3x2x1x16xf32, #tpu.memory_space<vmem>>, vector<1x1x1x16xf32>
    %186 = vector.shape_cast %185 : vector<1x1x1x16xf32> to vector<1x16xf32>
    %187 = vector.broadcast %186 : vector<1x16xf32> to vector<64x16xf32>
    %188 = arith.addf %184, %187 : vector<64x16xf32>
    %c1_138 = arith.constant 1 : index
    %c0_139 = arith.constant 0 : index
    %c0_140 = arith.constant 0 : index
    %c0_141 = arith.constant 0 : index
    %189 = vector.load %arg5[%c1_138, %c0_139, %c0_140, %c0_141] : memref<3x2x32x16xbf16, #tpu.memory_space<vmem>>, vector<1x1x32x16xbf16>
    %190 = vector.shape_cast %189 : vector<1x1x32x16xbf16> to vector<32x16xbf16>
    %cst_142 = arith.constant dense<0.000000e+00> : vector<64x16xf32>
    %191 = tpu.matmul %172, %190, %cst_142 {dimension_numbers = #tpu.dot_dimension_numbers<[1], [0], [0], [1], [0, 0, 1, 1], [], []>} : vector<64x32xbf16>, vector<32x16xbf16>, vector<64x16xf32> -> vector<64x16xf32>
    %c1_143 = arith.constant 1 : index
    %c0_144 = arith.constant 0 : index
    %c0_145 = arith.constant 0 : index
    %c0_146 = arith.constant 0 : index
    %192 = vector.load %arg8[%c1_143, %c0_144, %c0_145, %c0_146] : memref<3x2x1x16xf32, #tpu.memory_space<vmem>>, vector<1x1x1x16xf32>
    %193 = vector.shape_cast %192 : vector<1x1x1x16xf32> to vector<1x16xf32>
    %194 = vector.broadcast %193 : vector<1x16xf32> to vector<64x16xf32>
    %195 = arith.addf %191, %194 : vector<64x16xf32>
    %196 = vector.shape_cast %181 : vector<64x16xf32> to vector<8x8x16xf32>
    %197 = vector.shape_cast %188 : vector<64x16xf32> to vector<8x8x16xf32>
    %198 = vector.shape_cast %195 : vector<64x16xf32> to vector<8x8x16xf32>
    "tpu.trace_start"() <{level = 10 : i32, message = "bqd,bkd->bqk"}> : () -> ()
    %cst_147 = arith.constant dense<0.000000e+00> : vector<8x8x8xf32>
    %199 = tpu.matmul %196, %197, %cst_147 {dimension_numbers = #tpu.dot_dimension_numbers<[2], [2], [1], [1], [0, 0, 0, 1, 1, 1], [0], [0]>} : vector<8x8x16xf32>, vector<8x8x16xf32>, vector<8x8x8xf32> -> vector<8x8x8xf32>
    "tpu.trace_stop"() : () -> ()
    %cst_148 = arith.constant 2.500000e-01 : f32
    %200 = vector.broadcast %cst_148 : f32 to vector<8x8x8xf32>
    %201 = arith.mulf %199, %200 : vector<8x8x8xf32>
    %202 = vector.broadcast %3 : vector<8x1x8xf32> to vector<8x8x8xf32>
    %203 = arith.addf %201, %202 : vector<8x8x8xf32>
    %cst_149 = arith.constant dense<0xFF800000> : vector<8x8xf32>
    %204 = vector.multi_reduction <maximumf>, %203, %cst_149 [2] : vector<8x8x8xf32> to vector<8x8xf32>
    %205 = vector.shape_cast %204 : vector<8x8xf32> to vector<8x8x1xf32>
    %206 = vector.broadcast %205 : vector<8x8x1xf32> to vector<8x8x8xf32>
    %207 = arith.subf %203, %206 : vector<8x8x8xf32>
    %208 = math.exp %207 : vector<8x8x8xf32>
    %cst_150 = arith.constant dense<0.000000e+00> : vector<8x8xf32>
    %209 = vector.multi_reduction <add>, %208, %cst_150 [2] : vector<8x8x8xf32> to vector<8x8xf32>
    %210 = vector.shape_cast %209 : vector<8x8xf32> to vector<8x8x1xf32>
    %211 = tpu.reciprocal %210 {approx = true} : vector<8x8x1xf32> -> vector<8x8x1xf32>
    %212 = vector.broadcast %211 : vector<8x8x1xf32> to vector<8x8x8xf32>
    %213 = arith.mulf %208, %212 : vector<8x8x8xf32>
    "tpu.trace_start"() <{level = 10 : i32, message = "bqk,bkd->bqd"}> : () -> ()
    %cst_151 = arith.constant dense<0.000000e+00> : vector<8x8x16xf32>
    %214 = tpu.matmul %213, %198, %cst_151 {dimension_numbers = #tpu.dot_dimension_numbers<[2], [1], [1], [2], [0, 0, 0, 1, 1, 2], [0], [0]>} : vector<8x8x8xf32>, vector<8x8x16xf32>, vector<8x8x16xf32> -> vector<8x8x16xf32>
    "tpu.trace_stop"() : () -> ()
    %215 = vector.shape_cast %214 : vector<8x8x16xf32> to vector<64x16xf32>
    %216 = arith.truncf %215 : vector<64x16xf32> to vector<64x16xbf16>
    %c1_152 = arith.constant 1 : index
    %c0_153 = arith.constant 0 : index
    %c0_154 = arith.constant 0 : index
    %c0_155 = arith.constant 0 : index
    %217 = vector.load %arg9[%c1_152, %c0_153, %c0_154, %c0_155] : memref<3x2x16x32xbf16, #tpu.memory_space<vmem>>, vector<1x1x16x32xbf16>
    %218 = vector.shape_cast %217 : vector<1x1x16x32xbf16> to vector<16x32xbf16>
    %cst_156 = arith.constant dense<0.000000e+00> : vector<64x32xf32>
    %219 = tpu.matmul %216, %218, %cst_156 {dimension_numbers = #tpu.dot_dimension_numbers<[1], [0], [0], [1], [0, 0, 1, 1], [], []>} : vector<64x16xbf16>, vector<16x32xbf16>, vector<64x32xf32> -> vector<64x32xf32>
    %220 = vector.broadcast %174 : vector<1x32xf32> to vector<64x32xf32>
    %221 = arith.addf %220, %219 : vector<64x32xf32>
    %c1_157 = arith.constant 1 : index
    %c1_158 = arith.constant 1 : index
    %c0_159 = arith.constant 0 : index
    %c0_160 = arith.constant 0 : index
    %222 = vector.load %arg3[%c1_157, %c1_158, %c0_159, %c0_160] : memref<3x2x32x16xbf16, #tpu.memory_space<vmem>>, vector<1x1x32x16xbf16>
    %223 = vector.shape_cast %222 : vector<1x1x32x16xbf16> to vector<32x16xbf16>
    %cst_161 = arith.constant dense<0.000000e+00> : vector<64x16xf32>
    %224 = tpu.matmul %172, %223, %cst_161 {dimension_numbers = #tpu.dot_dimension_numbers<[1], [0], [0], [1], [0, 0, 1, 1], [], []>} : vector<64x32xbf16>, vector<32x16xbf16>, vector<64x16xf32> -> vector<64x16xf32>
    %c1_162 = arith.constant 1 : index
    %c1_163 = arith.constant 1 : index
    %c0_164 = arith.constant 0 : index
    %c0_165 = arith.constant 0 : index
    %225 = vector.load %arg6[%c1_162, %c1_163, %c0_164, %c0_165] : memref<3x2x1x16xf32, #tpu.memory_space<vmem>>, vector<1x1x1x16xf32>
    %226 = vector.shape_cast %225 : vector<1x1x1x16xf32> to vector<1x16xf32>
    %227 = vector.broadcast %226 : vector<1x16xf32> to vector<64x16xf32>
    %228 = arith.addf %224, %227 : vector<64x16xf32>
    %c1_166 = arith.constant 1 : index
    %c1_167 = arith.constant 1 : index
    %c0_168 = arith.constant 0 : index
    %c0_169 = arith.constant 0 : index
    %229 = vector.load %arg4[%c1_166, %c1_167, %c0_168, %c0_169] : memref<3x2x32x16xbf16, #tpu.memory_space<vmem>>, vector<1x1x32x16xbf16>
    %230 = vector.shape_cast %229 : vector<1x1x32x16xbf16> to vector<32x16xbf16>
    %cst_170 = arith.constant dense<0.000000e+00> : vector<64x16xf32>
    %231 = tpu.matmul %172, %230, %cst_170 {dimension_numbers = #tpu.dot_dimension_numbers<[1], [0], [0], [1], [0, 0, 1, 1], [], []>} : vector<64x32xbf16>, vector<32x16xbf16>, vector<64x16xf32> -> vector<64x16xf32>
    %c1_171 = arith.constant 1 : index
    %c1_172 = arith.constant 1 : index
    %c0_173 = arith.constant 0 : index
    %c0_174 = arith.constant 0 : index
    %232 = vector.load %arg7[%c1_171, %c1_172, %c0_173, %c0_174] : memref<3x2x1x16xf32, #tpu.memory_space<vmem>>, vector<1x1x1x16xf32>
    %233 = vector.shape_cast %232 : vector<1x1x1x16xf32> to vector<1x16xf32>
    %234 = vector.broadcast %233 : vector<1x16xf32> to vector<64x16xf32>
    %235 = arith.addf %231, %234 : vector<64x16xf32>
    %c1_175 = arith.constant 1 : index
    %c1_176 = arith.constant 1 : index
    %c0_177 = arith.constant 0 : index
    %c0_178 = arith.constant 0 : index
    %236 = vector.load %arg5[%c1_175, %c1_176, %c0_177, %c0_178] : memref<3x2x32x16xbf16, #tpu.memory_space<vmem>>, vector<1x1x32x16xbf16>
    %237 = vector.shape_cast %236 : vector<1x1x32x16xbf16> to vector<32x16xbf16>
    %cst_179 = arith.constant dense<0.000000e+00> : vector<64x16xf32>
    %238 = tpu.matmul %172, %237, %cst_179 {dimension_numbers = #tpu.dot_dimension_numbers<[1], [0], [0], [1], [0, 0, 1, 1], [], []>} : vector<64x32xbf16>, vector<32x16xbf16>, vector<64x16xf32> -> vector<64x16xf32>
    %c1_180 = arith.constant 1 : index
    %c1_181 = arith.constant 1 : index
    %c0_182 = arith.constant 0 : index
    %c0_183 = arith.constant 0 : index
    %239 = vector.load %arg8[%c1_180, %c1_181, %c0_182, %c0_183] : memref<3x2x1x16xf32, #tpu.memory_space<vmem>>, vector<1x1x1x16xf32>
    %240 = vector.shape_cast %239 : vector<1x1x1x16xf32> to vector<1x16xf32>
    %241 = vector.broadcast %240 : vector<1x16xf32> to vector<64x16xf32>
    %242 = arith.addf %238, %241 : vector<64x16xf32>
    %243 = vector.shape_cast %228 : vector<64x16xf32> to vector<8x8x16xf32>
    %244 = vector.shape_cast %235 : vector<64x16xf32> to vector<8x8x16xf32>
    %245 = vector.shape_cast %242 : vector<64x16xf32> to vector<8x8x16xf32>
    "tpu.trace_start"() <{level = 10 : i32, message = "bqd,bkd->bqk"}> : () -> ()
    %cst_184 = arith.constant dense<0.000000e+00> : vector<8x8x8xf32>
    %246 = tpu.matmul %243, %244, %cst_184 {dimension_numbers = #tpu.dot_dimension_numbers<[2], [2], [1], [1], [0, 0, 0, 1, 1, 1], [0], [0]>} : vector<8x8x16xf32>, vector<8x8x16xf32>, vector<8x8x8xf32> -> vector<8x8x8xf32>
    "tpu.trace_stop"() : () -> ()
    %cst_185 = arith.constant 2.500000e-01 : f32
    %247 = vector.broadcast %cst_185 : f32 to vector<8x8x8xf32>
    %248 = arith.mulf %246, %247 : vector<8x8x8xf32>
    %249 = vector.broadcast %3 : vector<8x1x8xf32> to vector<8x8x8xf32>
    %250 = arith.addf %248, %249 : vector<8x8x8xf32>
    %cst_186 = arith.constant dense<0xFF800000> : vector<8x8xf32>
    %251 = vector.multi_reduction <maximumf>, %250, %cst_186 [2] : vector<8x8x8xf32> to vector<8x8xf32>
    %252 = vector.shape_cast %251 : vector<8x8xf32> to vector<8x8x1xf32>
    %253 = vector.broadcast %252 : vector<8x8x1xf32> to vector<8x8x8xf32>
    %254 = arith.subf %250, %253 : vector<8x8x8xf32>
    %255 = math.exp %254 : vector<8x8x8xf32>
    %cst_187 = arith.constant dense<0.000000e+00> : vector<8x8xf32>
    %256 = vector.multi_reduction <add>, %255, %cst_187 [2] : vector<8x8x8xf32> to vector<8x8xf32>
    %257 = vector.shape_cast %256 : vector<8x8xf32> to vector<8x8x1xf32>
    %258 = tpu.reciprocal %257 {approx = true} : vector<8x8x1xf32> -> vector<8x8x1xf32>
    %259 = vector.broadcast %258 : vector<8x8x1xf32> to vector<8x8x8xf32>
    %260 = arith.mulf %255, %259 : vector<8x8x8xf32>
    "tpu.trace_start"() <{level = 10 : i32, message = "bqk,bkd->bqd"}> : () -> ()
    %cst_188 = arith.constant dense<0.000000e+00> : vector<8x8x16xf32>
    %261 = tpu.matmul %260, %245, %cst_188 {dimension_numbers = #tpu.dot_dimension_numbers<[2], [1], [1], [2], [0, 0, 0, 1, 1, 2], [0], [0]>} : vector<8x8x8xf32>, vector<8x8x16xf32>, vector<8x8x16xf32> -> vector<8x8x16xf32>
    "tpu.trace_stop"() : () -> ()
    %262 = vector.shape_cast %261 : vector<8x8x16xf32> to vector<64x16xf32>
    %263 = arith.truncf %262 : vector<64x16xf32> to vector<64x16xbf16>
    %c1_189 = arith.constant 1 : index
    %c1_190 = arith.constant 1 : index
    %c0_191 = arith.constant 0 : index
    %c0_192 = arith.constant 0 : index
    %264 = vector.load %arg9[%c1_189, %c1_190, %c0_191, %c0_192] : memref<3x2x16x32xbf16, #tpu.memory_space<vmem>>, vector<1x1x16x32xbf16>
    %265 = vector.shape_cast %264 : vector<1x1x16x32xbf16> to vector<16x32xbf16>
    %cst_193 = arith.constant dense<0.000000e+00> : vector<64x32xf32>
    %266 = tpu.matmul %263, %265, %cst_193 {dimension_numbers = #tpu.dot_dimension_numbers<[1], [0], [0], [1], [0, 0, 1, 1], [], []>} : vector<64x16xbf16>, vector<16x32xbf16>, vector<64x32xf32> -> vector<64x32xf32>
    %267 = arith.addf %221, %266 : vector<64x32xf32>
    %268 = arith.addf %171, %267 : vector<64x32xf32>
    %c1_194 = arith.constant 1 : index
    %c0_195 = arith.constant 0 : index
    %c0_196 = arith.constant 0 : index
    %269 = vector.load %arg15[%c1_194, %c0_195, %c0_196] : memref<3x1x32xf32, #tpu.memory_space<vmem>>, vector<1x1x32xf32>
    %270 = vector.shape_cast %269 : vector<1x1x32xf32> to vector<1x32xf32>
    %c1_197 = arith.constant 1 : index
    %c0_198 = arith.constant 0 : index
    %c0_199 = arith.constant 0 : index
    %271 = vector.load %arg16[%c1_197, %c0_198, %c0_199] : memref<3x1x32xf32, #tpu.memory_space<vmem>>, vector<1x1x32xf32>
    %272 = vector.shape_cast %271 : vector<1x1x32xf32> to vector<1x32xf32>
    %cst_200 = arith.constant dense<0.000000e+00> : vector<64xf32>
    %273 = vector.multi_reduction <add>, %268, %cst_200 [1] : vector<64x32xf32> to vector<64xf32>
    %274 = vector.shape_cast %273 : vector<64xf32> to vector<64x1xf32>
    %cst_201 = arith.constant 3.200000e+01 : f32
    %275 = vector.broadcast %cst_201 : f32 to vector<64x1xf32>
    %276 = arith.divf %274, %275 : vector<64x1xf32>
    %277 = vector.broadcast %276 : vector<64x1xf32> to vector<64x32xf32>
    %278 = arith.subf %268, %277 : vector<64x32xf32>
    %279 = arith.mulf %278, %278 : vector<64x32xf32>
    %cst_202 = arith.constant dense<0.000000e+00> : vector<64xf32>
    %280 = vector.multi_reduction <add>, %279, %cst_202 [1] : vector<64x32xf32> to vector<64xf32>
    %281 = vector.shape_cast %280 : vector<64xf32> to vector<64x1xf32>
    %cst_203 = arith.constant 3.200000e+01 : f32
    %282 = vector.broadcast %cst_203 : f32 to vector<64x1xf32>
    %283 = arith.divf %281, %282 : vector<64x1xf32>
    %284 = vector.broadcast %276 : vector<64x1xf32> to vector<64x32xf32>
    %285 = arith.subf %268, %284 : vector<64x32xf32>
    %cst_204 = arith.constant 9.99999974E-6 : f32
    %286 = vector.broadcast %cst_204 : f32 to vector<64x1xf32>
    %287 = arith.addf %283, %286 : vector<64x1xf32>
    %288 = math.rsqrt %287 : vector<64x1xf32>
    %289 = vector.broadcast %288 : vector<64x1xf32> to vector<64x32xf32>
    %290 = arith.mulf %285, %289 : vector<64x32xf32>
    %291 = vector.broadcast %270 : vector<1x32xf32> to vector<64x32xf32>
    %292 = arith.mulf %290, %291 : vector<64x32xf32>
    %293 = vector.broadcast %272 : vector<1x32xf32> to vector<64x32xf32>
    %294 = arith.addf %292, %293 : vector<64x32xf32>
    %295 = arith.truncf %294 : vector<64x32xf32> to vector<64x32xbf16>
    %c1_205 = arith.constant 1 : index
    %c0_206 = arith.constant 0 : index
    %c0_207 = arith.constant 0 : index
    %296 = vector.load %arg11[%c1_205, %c0_206, %c0_207] : memref<3x32x512xbf16, #tpu.memory_space<vmem>>, vector<1x32x512xbf16>
    %297 = vector.shape_cast %296 : vector<1x32x512xbf16> to vector<32x512xbf16>
    %cst_208 = arith.constant dense<0.000000e+00> : vector<64x512xf32>
    %298 = tpu.matmul %295, %297, %cst_208 {dimension_numbers = #tpu.dot_dimension_numbers<[1], [0], [0], [1], [0, 0, 1, 1], [], []>} : vector<64x32xbf16>, vector<32x512xbf16>, vector<64x512xf32> -> vector<64x512xf32>
    %c1_209 = arith.constant 1 : index
    %c0_210 = arith.constant 0 : index
    %c0_211 = arith.constant 0 : index
    %299 = vector.load %arg12[%c1_209, %c0_210, %c0_211] : memref<3x1x512xf32, #tpu.memory_space<vmem>>, vector<1x1x512xf32>
    %300 = vector.shape_cast %299 : vector<1x1x512xf32> to vector<1x512xf32>
    %301 = vector.broadcast %300 : vector<1x512xf32> to vector<64x512xf32>
    %302 = arith.addf %298, %301 : vector<64x512xf32>
    %cst_212 = arith.constant 0.000000e+00 : f32
    %303 = vector.broadcast %cst_212 : f32 to vector<64x512xf32>
    %304 = arith.maximumf %302, %303 : vector<64x512xf32>
    %305 = arith.truncf %304 : vector<64x512xf32> to vector<64x512xbf16>
    %c1_213 = arith.constant 1 : index
    %c0_214 = arith.constant 0 : index
    %c0_215 = arith.constant 0 : index
    %306 = vector.load %arg13[%c1_213, %c0_214, %c0_215] : memref<3x512x32xbf16, #tpu.memory_space<vmem>>, vector<1x512x32xbf16>
    %307 = vector.shape_cast %306 : vector<1x512x32xbf16> to vector<512x32xbf16>
    %cst_216 = arith.constant dense<0.000000e+00> : vector<64x32xf32>
    %308 = tpu.matmul %305, %307, %cst_216 {dimension_numbers = #tpu.dot_dimension_numbers<[1], [0], [0], [1], [0, 0, 1, 1], [], []>} : vector<64x512xbf16>, vector<512x32xbf16>, vector<64x32xf32> -> vector<64x32xf32>
    %c1_217 = arith.constant 1 : index
    %c0_218 = arith.constant 0 : index
    %c0_219 = arith.constant 0 : index
    %309 = vector.load %arg14[%c1_217, %c0_218, %c0_219] : memref<3x1x32xf32, #tpu.memory_space<vmem>>, vector<1x1x32xf32>
    %310 = vector.shape_cast %309 : vector<1x1x32xf32> to vector<1x32xf32>
    %311 = vector.broadcast %310 : vector<1x32xf32> to vector<64x32xf32>
    %312 = arith.addf %308, %311 : vector<64x32xf32>
    %313 = arith.addf %294, %312 : vector<64x32xf32>
    %c1_220 = arith.constant 1 : index
    %c0_221 = arith.constant 0 : index
    %c0_222 = arith.constant 0 : index
    %314 = vector.load %arg17[%c1_220, %c0_221, %c0_222] : memref<3x1x32xf32, #tpu.memory_space<vmem>>, vector<1x1x32xf32>
    %315 = vector.shape_cast %314 : vector<1x1x32xf32> to vector<1x32xf32>
    %c1_223 = arith.constant 1 : index
    %c0_224 = arith.constant 0 : index
    %c0_225 = arith.constant 0 : index
    %316 = vector.load %arg18[%c1_223, %c0_224, %c0_225] : memref<3x1x32xf32, #tpu.memory_space<vmem>>, vector<1x1x32xf32>
    %317 = vector.shape_cast %316 : vector<1x1x32xf32> to vector<1x32xf32>
    %cst_226 = arith.constant dense<0.000000e+00> : vector<64xf32>
    %318 = vector.multi_reduction <add>, %313, %cst_226 [1] : vector<64x32xf32> to vector<64xf32>
    %319 = vector.shape_cast %318 : vector<64xf32> to vector<64x1xf32>
    %cst_227 = arith.constant 3.200000e+01 : f32
    %320 = vector.broadcast %cst_227 : f32 to vector<64x1xf32>
    %321 = arith.divf %319, %320 : vector<64x1xf32>
    %322 = vector.broadcast %321 : vector<64x1xf32> to vector<64x32xf32>
    %323 = arith.subf %313, %322 : vector<64x32xf32>
    %324 = arith.mulf %323, %323 : vector<64x32xf32>
    %cst_228 = arith.constant dense<0.000000e+00> : vector<64xf32>
    %325 = vector.multi_reduction <add>, %324, %cst_228 [1] : vector<64x32xf32> to vector<64xf32>
    %326 = vector.shape_cast %325 : vector<64xf32> to vector<64x1xf32>
    %cst_229 = arith.constant 3.200000e+01 : f32
    %327 = vector.broadcast %cst_229 : f32 to vector<64x1xf32>
    %328 = arith.divf %326, %327 : vector<64x1xf32>
    %329 = vector.broadcast %321 : vector<64x1xf32> to vector<64x32xf32>
    %330 = arith.subf %313, %329 : vector<64x32xf32>
    %cst_230 = arith.constant 9.99999974E-6 : f32
    %331 = vector.broadcast %cst_230 : f32 to vector<64x1xf32>
    %332 = arith.addf %328, %331 : vector<64x1xf32>
    %333 = math.rsqrt %332 : vector<64x1xf32>
    %334 = vector.broadcast %333 : vector<64x1xf32> to vector<64x32xf32>
    %335 = arith.mulf %330, %334 : vector<64x32xf32>
    %336 = vector.broadcast %315 : vector<1x32xf32> to vector<64x32xf32>
    %337 = arith.mulf %335, %336 : vector<64x32xf32>
    %338 = vector.broadcast %317 : vector<1x32xf32> to vector<64x32xf32>
    %339 = arith.addf %337, %338 : vector<64x32xf32>
    %340 = arith.truncf %339 : vector<64x32xf32> to vector<64x32xbf16>
    %c2 = arith.constant 2 : index
    %c0_231 = arith.constant 0 : index
    %c0_232 = arith.constant 0 : index
    %341 = vector.load %arg10[%c2, %c0_231, %c0_232] : memref<3x1x32xf32, #tpu.memory_space<vmem>>, vector<1x1x32xf32>
    %342 = vector.shape_cast %341 : vector<1x1x32xf32> to vector<1x32xf32>
    %c2_233 = arith.constant 2 : index
    %c0_234 = arith.constant 0 : index
    %c0_235 = arith.constant 0 : index
    %c0_236 = arith.constant 0 : index
    %343 = vector.load %arg3[%c2_233, %c0_234, %c0_235, %c0_236] : memref<3x2x32x16xbf16, #tpu.memory_space<vmem>>, vector<1x1x32x16xbf16>
    %344 = vector.shape_cast %343 : vector<1x1x32x16xbf16> to vector<32x16xbf16>
    %cst_237 = arith.constant dense<0.000000e+00> : vector<64x16xf32>
    %345 = tpu.matmul %340, %344, %cst_237 {dimension_numbers = #tpu.dot_dimension_numbers<[1], [0], [0], [1], [0, 0, 1, 1], [], []>} : vector<64x32xbf16>, vector<32x16xbf16>, vector<64x16xf32> -> vector<64x16xf32>
    %c2_238 = arith.constant 2 : index
    %c0_239 = arith.constant 0 : index
    %c0_240 = arith.constant 0 : index
    %c0_241 = arith.constant 0 : index
    %346 = vector.load %arg6[%c2_238, %c0_239, %c0_240, %c0_241] : memref<3x2x1x16xf32, #tpu.memory_space<vmem>>, vector<1x1x1x16xf32>
    %347 = vector.shape_cast %346 : vector<1x1x1x16xf32> to vector<1x16xf32>
    %348 = vector.broadcast %347 : vector<1x16xf32> to vector<64x16xf32>
    %349 = arith.addf %345, %348 : vector<64x16xf32>
    %c2_242 = arith.constant 2 : index
    %c0_243 = arith.constant 0 : index
    %c0_244 = arith.constant 0 : index
    %c0_245 = arith.constant 0 : index
    %350 = vector.load %arg4[%c2_242, %c0_243, %c0_244, %c0_245] : memref<3x2x32x16xbf16, #tpu.memory_space<vmem>>, vector<1x1x32x16xbf16>
    %351 = vector.shape_cast %350 : vector<1x1x32x16xbf16> to vector<32x16xbf16>
    %cst_246 = arith.constant dense<0.000000e+00> : vector<64x16xf32>
    %352 = tpu.matmul %340, %351, %cst_246 {dimension_numbers = #tpu.dot_dimension_numbers<[1], [0], [0], [1], [0, 0, 1, 1], [], []>} : vector<64x32xbf16>, vector<32x16xbf16>, vector<64x16xf32> -> vector<64x16xf32>
    %c2_247 = arith.constant 2 : index
    %c0_248 = arith.constant 0 : index
    %c0_249 = arith.constant 0 : index
    %c0_250 = arith.constant 0 : index
    %353 = vector.load %arg7[%c2_247, %c0_248, %c0_249, %c0_250] : memref<3x2x1x16xf32, #tpu.memory_space<vmem>>, vector<1x1x1x16xf32>
    %354 = vector.shape_cast %353 : vector<1x1x1x16xf32> to vector<1x16xf32>
    %355 = vector.broadcast %354 : vector<1x16xf32> to vector<64x16xf32>
    %356 = arith.addf %352, %355 : vector<64x16xf32>
    %c2_251 = arith.constant 2 : index
    %c0_252 = arith.constant 0 : index
    %c0_253 = arith.constant 0 : index
    %c0_254 = arith.constant 0 : index
    %357 = vector.load %arg5[%c2_251, %c0_252, %c0_253, %c0_254] : memref<3x2x32x16xbf16, #tpu.memory_space<vmem>>, vector<1x1x32x16xbf16>
    %358 = vector.shape_cast %357 : vector<1x1x32x16xbf16> to vector<32x16xbf16>
    %cst_255 = arith.constant dense<0.000000e+00> : vector<64x16xf32>
    %359 = tpu.matmul %340, %358, %cst_255 {dimension_numbers = #tpu.dot_dimension_numbers<[1], [0], [0], [1], [0, 0, 1, 1], [], []>} : vector<64x32xbf16>, vector<32x16xbf16>, vector<64x16xf32> -> vector<64x16xf32>
    %c2_256 = arith.constant 2 : index
    %c0_257 = arith.constant 0 : index
    %c0_258 = arith.constant 0 : index
    %c0_259 = arith.constant 0 : index
    %360 = vector.load %arg8[%c2_256, %c0_257, %c0_258, %c0_259] : memref<3x2x1x16xf32, #tpu.memory_space<vmem>>, vector<1x1x1x16xf32>
    %361 = vector.shape_cast %360 : vector<1x1x1x16xf32> to vector<1x16xf32>
    %362 = vector.broadcast %361 : vector<1x16xf32> to vector<64x16xf32>
    %363 = arith.addf %359, %362 : vector<64x16xf32>
    %364 = vector.shape_cast %349 : vector<64x16xf32> to vector<8x8x16xf32>
    %365 = vector.shape_cast %356 : vector<64x16xf32> to vector<8x8x16xf32>
    %366 = vector.shape_cast %363 : vector<64x16xf32> to vector<8x8x16xf32>
    "tpu.trace_start"() <{level = 10 : i32, message = "bqd,bkd->bqk"}> : () -> ()
    %cst_260 = arith.constant dense<0.000000e+00> : vector<8x8x8xf32>
    %367 = tpu.matmul %364, %365, %cst_260 {dimension_numbers = #tpu.dot_dimension_numbers<[2], [2], [1], [1], [0, 0, 0, 1, 1, 1], [0], [0]>} : vector<8x8x16xf32>, vector<8x8x16xf32>, vector<8x8x8xf32> -> vector<8x8x8xf32>
    "tpu.trace_stop"() : () -> ()
    %cst_261 = arith.constant 2.500000e-01 : f32
    %368 = vector.broadcast %cst_261 : f32 to vector<8x8x8xf32>
    %369 = arith.mulf %367, %368 : vector<8x8x8xf32>
    %370 = vector.broadcast %3 : vector<8x1x8xf32> to vector<8x8x8xf32>
    %371 = arith.addf %369, %370 : vector<8x8x8xf32>
    %cst_262 = arith.constant dense<0xFF800000> : vector<8x8xf32>
    %372 = vector.multi_reduction <maximumf>, %371, %cst_262 [2] : vector<8x8x8xf32> to vector<8x8xf32>
    %373 = vector.shape_cast %372 : vector<8x8xf32> to vector<8x8x1xf32>
    %374 = vector.broadcast %373 : vector<8x8x1xf32> to vector<8x8x8xf32>
    %375 = arith.subf %371, %374 : vector<8x8x8xf32>
    %376 = math.exp %375 : vector<8x8x8xf32>
    %cst_263 = arith.constant dense<0.000000e+00> : vector<8x8xf32>
    %377 = vector.multi_reduction <add>, %376, %cst_263 [2] : vector<8x8x8xf32> to vector<8x8xf32>
    %378 = vector.shape_cast %377 : vector<8x8xf32> to vector<8x8x1xf32>
    %379 = tpu.reciprocal %378 {approx = true} : vector<8x8x1xf32> -> vector<8x8x1xf32>
    %380 = vector.broadcast %379 : vector<8x8x1xf32> to vector<8x8x8xf32>
    %381 = arith.mulf %376, %380 : vector<8x8x8xf32>
    "tpu.trace_start"() <{level = 10 : i32, message = "bqk,bkd->bqd"}> : () -> ()
    %cst_264 = arith.constant dense<0.000000e+00> : vector<8x8x16xf32>
    %382 = tpu.matmul %381, %366, %cst_264 {dimension_numbers = #tpu.dot_dimension_numbers<[2], [1], [1], [2], [0, 0, 0, 1, 1, 2], [0], [0]>} : vector<8x8x8xf32>, vector<8x8x16xf32>, vector<8x8x16xf32> -> vector<8x8x16xf32>
    "tpu.trace_stop"() : () -> ()
    %383 = vector.shape_cast %382 : vector<8x8x16xf32> to vector<64x16xf32>
    %384 = arith.truncf %383 : vector<64x16xf32> to vector<64x16xbf16>
    %c2_265 = arith.constant 2 : index
    %c0_266 = arith.constant 0 : index
    %c0_267 = arith.constant 0 : index
    %c0_268 = arith.constant 0 : index
    %385 = vector.load %arg9[%c2_265, %c0_266, %c0_267, %c0_268] : memref<3x2x16x32xbf16, #tpu.memory_space<vmem>>, vector<1x1x16x32xbf16>
    %386 = vector.shape_cast %385 : vector<1x1x16x32xbf16> to vector<16x32xbf16>
    %cst_269 = arith.constant dense<0.000000e+00> : vector<64x32xf32>
    %387 = tpu.matmul %384, %386, %cst_269 {dimension_numbers = #tpu.dot_dimension_numbers<[1], [0], [0], [1], [0, 0, 1, 1], [], []>} : vector<64x16xbf16>, vector<16x32xbf16>, vector<64x32xf32> -> vector<64x32xf32>
    %388 = vector.broadcast %342 : vector<1x32xf32> to vector<64x32xf32>
    %389 = arith.addf %388, %387 : vector<64x32xf32>
    %c2_270 = arith.constant 2 : index
    %c1_271 = arith.constant 1 : index
    %c0_272 = arith.constant 0 : index
    %c0_273 = arith.constant 0 : index
    %390 = vector.load %arg3[%c2_270, %c1_271, %c0_272, %c0_273] : memref<3x2x32x16xbf16, #tpu.memory_space<vmem>>, vector<1x1x32x16xbf16>
    %391 = vector.shape_cast %390 : vector<1x1x32x16xbf16> to vector<32x16xbf16>
    %cst_274 = arith.constant dense<0.000000e+00> : vector<64x16xf32>
    %392 = tpu.matmul %340, %391, %cst_274 {dimension_numbers = #tpu.dot_dimension_numbers<[1], [0], [0], [1], [0, 0, 1, 1], [], []>} : vector<64x32xbf16>, vector<32x16xbf16>, vector<64x16xf32> -> vector<64x16xf32>
    %c2_275 = arith.constant 2 : index
    %c1_276 = arith.constant 1 : index
    %c0_277 = arith.constant 0 : index
    %c0_278 = arith.constant 0 : index
    %393 = vector.load %arg6[%c2_275, %c1_276, %c0_277, %c0_278] : memref<3x2x1x16xf32, #tpu.memory_space<vmem>>, vector<1x1x1x16xf32>
    %394 = vector.shape_cast %393 : vector<1x1x1x16xf32> to vector<1x16xf32>
    %395 = vector.broadcast %394 : vector<1x16xf32> to vector<64x16xf32>
    %396 = arith.addf %392, %395 : vector<64x16xf32>
    %c2_279 = arith.constant 2 : index
    %c1_280 = arith.constant 1 : index
    %c0_281 = arith.constant 0 : index
    %c0_282 = arith.constant 0 : index
    %397 = vector.load %arg4[%c2_279, %c1_280, %c0_281, %c0_282] : memref<3x2x32x16xbf16, #tpu.memory_space<vmem>>, vector<1x1x32x16xbf16>
    %398 = vector.shape_cast %397 : vector<1x1x32x16xbf16> to vector<32x16xbf16>
    %cst_283 = arith.constant dense<0.000000e+00> : vector<64x16xf32>
    %399 = tpu.matmul %340, %398, %cst_283 {dimension_numbers = #tpu.dot_dimension_numbers<[1], [0], [0], [1], [0, 0, 1, 1], [], []>} : vector<64x32xbf16>, vector<32x16xbf16>, vector<64x16xf32> -> vector<64x16xf32>
    %c2_284 = arith.constant 2 : index
    %c1_285 = arith.constant 1 : index
    %c0_286 = arith.constant 0 : index
    %c0_287 = arith.constant 0 : index
    %400 = vector.load %arg7[%c2_284, %c1_285, %c0_286, %c0_287] : memref<3x2x1x16xf32, #tpu.memory_space<vmem>>, vector<1x1x1x16xf32>
    %401 = vector.shape_cast %400 : vector<1x1x1x16xf32> to vector<1x16xf32>
    %402 = vector.broadcast %401 : vector<1x16xf32> to vector<64x16xf32>
    %403 = arith.addf %399, %402 : vector<64x16xf32>
    %c2_288 = arith.constant 2 : index
    %c1_289 = arith.constant 1 : index
    %c0_290 = arith.constant 0 : index
    %c0_291 = arith.constant 0 : index
    %404 = vector.load %arg5[%c2_288, %c1_289, %c0_290, %c0_291] : memref<3x2x32x16xbf16, #tpu.memory_space<vmem>>, vector<1x1x32x16xbf16>
    %405 = vector.shape_cast %404 : vector<1x1x32x16xbf16> to vector<32x16xbf16>
    %cst_292 = arith.constant dense<0.000000e+00> : vector<64x16xf32>
    %406 = tpu.matmul %340, %405, %cst_292 {dimension_numbers = #tpu.dot_dimension_numbers<[1], [0], [0], [1], [0, 0, 1, 1], [], []>} : vector<64x32xbf16>, vector<32x16xbf16>, vector<64x16xf32> -> vector<64x16xf32>
    %c2_293 = arith.constant 2 : index
    %c1_294 = arith.constant 1 : index
    %c0_295 = arith.constant 0 : index
    %c0_296 = arith.constant 0 : index
    %407 = vector.load %arg8[%c2_293, %c1_294, %c0_295, %c0_296] : memref<3x2x1x16xf32, #tpu.memory_space<vmem>>, vector<1x1x1x16xf32>
    %408 = vector.shape_cast %407 : vector<1x1x1x16xf32> to vector<1x16xf32>
    %409 = vector.broadcast %408 : vector<1x16xf32> to vector<64x16xf32>
    %410 = arith.addf %406, %409 : vector<64x16xf32>
    %411 = vector.shape_cast %396 : vector<64x16xf32> to vector<8x8x16xf32>
    %412 = vector.shape_cast %403 : vector<64x16xf32> to vector<8x8x16xf32>
    %413 = vector.shape_cast %410 : vector<64x16xf32> to vector<8x8x16xf32>
    "tpu.trace_start"() <{level = 10 : i32, message = "bqd,bkd->bqk"}> : () -> ()
    %cst_297 = arith.constant dense<0.000000e+00> : vector<8x8x8xf32>
    %414 = tpu.matmul %411, %412, %cst_297 {dimension_numbers = #tpu.dot_dimension_numbers<[2], [2], [1], [1], [0, 0, 0, 1, 1, 1], [0], [0]>} : vector<8x8x16xf32>, vector<8x8x16xf32>, vector<8x8x8xf32> -> vector<8x8x8xf32>
    "tpu.trace_stop"() : () -> ()
    %cst_298 = arith.constant 2.500000e-01 : f32
    %415 = vector.broadcast %cst_298 : f32 to vector<8x8x8xf32>
    %416 = arith.mulf %414, %415 : vector<8x8x8xf32>
    %417 = vector.broadcast %3 : vector<8x1x8xf32> to vector<8x8x8xf32>
    %418 = arith.addf %416, %417 : vector<8x8x8xf32>
    %cst_299 = arith.constant dense<0xFF800000> : vector<8x8xf32>
    %419 = vector.multi_reduction <maximumf>, %418, %cst_299 [2] : vector<8x8x8xf32> to vector<8x8xf32>
    %420 = vector.shape_cast %419 : vector<8x8xf32> to vector<8x8x1xf32>
    %421 = vector.broadcast %420 : vector<8x8x1xf32> to vector<8x8x8xf32>
    %422 = arith.subf %418, %421 : vector<8x8x8xf32>
    %423 = math.exp %422 : vector<8x8x8xf32>
    %cst_300 = arith.constant dense<0.000000e+00> : vector<8x8xf32>
    %424 = vector.multi_reduction <add>, %423, %cst_300 [2] : vector<8x8x8xf32> to vector<8x8xf32>
    %425 = vector.shape_cast %424 : vector<8x8xf32> to vector<8x8x1xf32>
    %426 = tpu.reciprocal %425 {approx = true} : vector<8x8x1xf32> -> vector<8x8x1xf32>
    %427 = vector.broadcast %426 : vector<8x8x1xf32> to vector<8x8x8xf32>
    %428 = arith.mulf %423, %427 : vector<8x8x8xf32>
    "tpu.trace_start"() <{level = 10 : i32, message = "bqk,bkd->bqd"}> : () -> ()
    %cst_301 = arith.constant dense<0.000000e+00> : vector<8x8x16xf32>
    %429 = tpu.matmul %428, %413, %cst_301 {dimension_numbers = #tpu.dot_dimension_numbers<[2], [1], [1], [2], [0, 0, 0, 1, 1, 2], [0], [0]>} : vector<8x8x8xf32>, vector<8x8x16xf32>, vector<8x8x16xf32> -> vector<8x8x16xf32>
    "tpu.trace_stop"() : () -> ()
    %430 = vector.shape_cast %429 : vector<8x8x16xf32> to vector<64x16xf32>
    %431 = arith.truncf %430 : vector<64x16xf32> to vector<64x16xbf16>
    %c2_302 = arith.constant 2 : index
    %c1_303 = arith.constant 1 : index
    %c0_304 = arith.constant 0 : index
    %c0_305 = arith.constant 0 : index
    %432 = vector.load %arg9[%c2_302, %c1_303, %c0_304, %c0_305] : memref<3x2x16x32xbf16, #tpu.memory_space<vmem>>, vector<1x1x16x32xbf16>
    %433 = vector.shape_cast %432 : vector<1x1x16x32xbf16> to vector<16x32xbf16>
    %cst_306 = arith.constant dense<0.000000e+00> : vector<64x32xf32>
    %434 = tpu.matmul %431, %433, %cst_306 {dimension_numbers = #tpu.dot_dimension_numbers<[1], [0], [0], [1], [0, 0, 1, 1], [], []>} : vector<64x16xbf16>, vector<16x32xbf16>, vector<64x32xf32> -> vector<64x32xf32>
    %435 = arith.addf %389, %434 : vector<64x32xf32>
    %436 = arith.addf %339, %435 : vector<64x32xf32>
    %c2_307 = arith.constant 2 : index
    %c0_308 = arith.constant 0 : index
    %c0_309 = arith.constant 0 : index
    %437 = vector.load %arg15[%c2_307, %c0_308, %c0_309] : memref<3x1x32xf32, #tpu.memory_space<vmem>>, vector<1x1x32xf32>
    %438 = vector.shape_cast %437 : vector<1x1x32xf32> to vector<1x32xf32>
    %c2_310 = arith.constant 2 : index
    %c0_311 = arith.constant 0 : index
    %c0_312 = arith.constant 0 : index
    %439 = vector.load %arg16[%c2_310, %c0_311, %c0_312] : memref<3x1x32xf32, #tpu.memory_space<vmem>>, vector<1x1x32xf32>
    %440 = vector.shape_cast %439 : vector<1x1x32xf32> to vector<1x32xf32>
    %cst_313 = arith.constant dense<0.000000e+00> : vector<64xf32>
    %441 = vector.multi_reduction <add>, %436, %cst_313 [1] : vector<64x32xf32> to vector<64xf32>
    %442 = vector.shape_cast %441 : vector<64xf32> to vector<64x1xf32>
    %cst_314 = arith.constant 3.200000e+01 : f32
    %443 = vector.broadcast %cst_314 : f32 to vector<64x1xf32>
    %444 = arith.divf %442, %443 : vector<64x1xf32>
    %445 = vector.broadcast %444 : vector<64x1xf32> to vector<64x32xf32>
    %446 = arith.subf %436, %445 : vector<64x32xf32>
    %447 = arith.mulf %446, %446 : vector<64x32xf32>
    %cst_315 = arith.constant dense<0.000000e+00> : vector<64xf32>
    %448 = vector.multi_reduction <add>, %447, %cst_315 [1] : vector<64x32xf32> to vector<64xf32>
    %449 = vector.shape_cast %448 : vector<64xf32> to vector<64x1xf32>
    %cst_316 = arith.constant 3.200000e+01 : f32
    %450 = vector.broadcast %cst_316 : f32 to vector<64x1xf32>
    %451 = arith.divf %449, %450 : vector<64x1xf32>
    %452 = vector.broadcast %444 : vector<64x1xf32> to vector<64x32xf32>
    %453 = arith.subf %436, %452 : vector<64x32xf32>
    %cst_317 = arith.constant 9.99999974E-6 : f32
    %454 = vector.broadcast %cst_317 : f32 to vector<64x1xf32>
    %455 = arith.addf %451, %454 : vector<64x1xf32>
    %456 = math.rsqrt %455 : vector<64x1xf32>
    %457 = vector.broadcast %456 : vector<64x1xf32> to vector<64x32xf32>
    %458 = arith.mulf %453, %457 : vector<64x32xf32>
    %459 = vector.broadcast %438 : vector<1x32xf32> to vector<64x32xf32>
    %460 = arith.mulf %458, %459 : vector<64x32xf32>
    %461 = vector.broadcast %440 : vector<1x32xf32> to vector<64x32xf32>
    %462 = arith.addf %460, %461 : vector<64x32xf32>
    %463 = arith.truncf %462 : vector<64x32xf32> to vector<64x32xbf16>
    %c2_318 = arith.constant 2 : index
    %c0_319 = arith.constant 0 : index
    %c0_320 = arith.constant 0 : index
    %464 = vector.load %arg11[%c2_318, %c0_319, %c0_320] : memref<3x32x512xbf16, #tpu.memory_space<vmem>>, vector<1x32x512xbf16>
    %465 = vector.shape_cast %464 : vector<1x32x512xbf16> to vector<32x512xbf16>
    %cst_321 = arith.constant dense<0.000000e+00> : vector<64x512xf32>
    %466 = tpu.matmul %463, %465, %cst_321 {dimension_numbers = #tpu.dot_dimension_numbers<[1], [0], [0], [1], [0, 0, 1, 1], [], []>} : vector<64x32xbf16>, vector<32x512xbf16>, vector<64x512xf32> -> vector<64x512xf32>
    %c2_322 = arith.constant 2 : index
    %c0_323 = arith.constant 0 : index
    %c0_324 = arith.constant 0 : index
    %467 = vector.load %arg12[%c2_322, %c0_323, %c0_324] : memref<3x1x512xf32, #tpu.memory_space<vmem>>, vector<1x1x512xf32>
    %468 = vector.shape_cast %467 : vector<1x1x512xf32> to vector<1x512xf32>
    %469 = vector.broadcast %468 : vector<1x512xf32> to vector<64x512xf32>
    %470 = arith.addf %466, %469 : vector<64x512xf32>
    %cst_325 = arith.constant 0.000000e+00 : f32
    %471 = vector.broadcast %cst_325 : f32 to vector<64x512xf32>
    %472 = arith.maximumf %470, %471 : vector<64x512xf32>
    %473 = arith.truncf %472 : vector<64x512xf32> to vector<64x512xbf16>
    %c2_326 = arith.constant 2 : index
    %c0_327 = arith.constant 0 : index
    %c0_328 = arith.constant 0 : index
    %474 = vector.load %arg13[%c2_326, %c0_327, %c0_328] : memref<3x512x32xbf16, #tpu.memory_space<vmem>>, vector<1x512x32xbf16>
    %475 = vector.shape_cast %474 : vector<1x512x32xbf16> to vector<512x32xbf16>
    %cst_329 = arith.constant dense<0.000000e+00> : vector<64x32xf32>
    %476 = tpu.matmul %473, %475, %cst_329 {dimension_numbers = #tpu.dot_dimension_numbers<[1], [0], [0], [1], [0, 0, 1, 1], [], []>} : vector<64x512xbf16>, vector<512x32xbf16>, vector<64x32xf32> -> vector<64x32xf32>
    %c2_330 = arith.constant 2 : index
    %c0_331 = arith.constant 0 : index
    %c0_332 = arith.constant 0 : index
    %477 = vector.load %arg14[%c2_330, %c0_331, %c0_332] : memref<3x1x32xf32, #tpu.memory_space<vmem>>, vector<1x1x32xf32>
    %478 = vector.shape_cast %477 : vector<1x1x32xf32> to vector<1x32xf32>
    %479 = vector.broadcast %478 : vector<1x32xf32> to vector<64x32xf32>
    %480 = arith.addf %476, %479 : vector<64x32xf32>
    %481 = arith.addf %462, %480 : vector<64x32xf32>
    %c2_333 = arith.constant 2 : index
    %c0_334 = arith.constant 0 : index
    %c0_335 = arith.constant 0 : index
    %482 = vector.load %arg17[%c2_333, %c0_334, %c0_335] : memref<3x1x32xf32, #tpu.memory_space<vmem>>, vector<1x1x32xf32>
    %483 = vector.shape_cast %482 : vector<1x1x32xf32> to vector<1x32xf32>
    %c2_336 = arith.constant 2 : index
    %c0_337 = arith.constant 0 : index
    %c0_338 = arith.constant 0 : index
    %484 = vector.load %arg18[%c2_336, %c0_337, %c0_338] : memref<3x1x32xf32, #tpu.memory_space<vmem>>, vector<1x1x32xf32>
    %485 = vector.shape_cast %484 : vector<1x1x32xf32> to vector<1x32xf32>
    %cst_339 = arith.constant dense<0.000000e+00> : vector<64xf32>
    %486 = vector.multi_reduction <add>, %481, %cst_339 [1] : vector<64x32xf32> to vector<64xf32>
    %487 = vector.shape_cast %486 : vector<64xf32> to vector<64x1xf32>
    %cst_340 = arith.constant 3.200000e+01 : f32
    %488 = vector.broadcast %cst_340 : f32 to vector<64x1xf32>
    %489 = arith.divf %487, %488 : vector<64x1xf32>
    %490 = vector.broadcast %489 : vector<64x1xf32> to vector<64x32xf32>
    %491 = arith.subf %481, %490 : vector<64x32xf32>
    %492 = arith.mulf %491, %491 : vector<64x32xf32>
    %cst_341 = arith.constant dense<0.000000e+00> : vector<64xf32>
    %493 = vector.multi_reduction <add>, %492, %cst_341 [1] : vector<64x32xf32> to vector<64xf32>
    %494 = vector.shape_cast %493 : vector<64xf32> to vector<64x1xf32>
    %cst_342 = arith.constant 3.200000e+01 : f32
    %495 = vector.broadcast %cst_342 : f32 to vector<64x1xf32>
    %496 = arith.divf %494, %495 : vector<64x1xf32>
    %497 = vector.broadcast %489 : vector<64x1xf32> to vector<64x32xf32>
    %498 = arith.subf %481, %497 : vector<64x32xf32>
    %cst_343 = arith.constant 9.99999974E-6 : f32
    %499 = vector.broadcast %cst_343 : f32 to vector<64x1xf32>
    %500 = arith.addf %496, %499 : vector<64x1xf32>
    %501 = math.rsqrt %500 : vector<64x1xf32>
    %502 = vector.broadcast %501 : vector<64x1xf32> to vector<64x32xf32>
    %503 = arith.mulf %498, %502 : vector<64x32xf32>
    %504 = vector.broadcast %483 : vector<1x32xf32> to vector<64x32xf32>
    %505 = arith.mulf %503, %504 : vector<64x32xf32>
    %506 = vector.broadcast %485 : vector<1x32xf32> to vector<64x32xf32>
    %507 = arith.addf %505, %506 : vector<64x32xf32>
    %508 = vector.shape_cast %507 : vector<64x32xf32> to vector<8x8x32xf32>
    %cst_344 = arith.constant dense<0xFF800000> : vector<8x32xf32>
    %509 = vector.multi_reduction <maximumf>, %508, %cst_344 [1] : vector<8x8x32xf32> to vector<8x32xf32>
    %c0_345 = arith.constant 0 : index
    %c0_346 = arith.constant 0 : index
    %510 = vector.load %arg19[%c0_345, %c0_346] : memref<8x32xf32, #tpu.memory_space<vmem>>, vector<8x32xf32>
    tpu.vector_store %arg19[%c0_345, %c0_346], %509 {strides = array<i32>} : memref<8x32xf32, #tpu.memory_space<vmem>>, vector<8x32xf32>,
    return
  }
  func.func @transform_0(%arg0: i32) -> (i32, i32, i32) {
    %c0_i32 = arith.constant 0 : i32
    %c0_i32_0 = arith.constant 0 : i32
    %c0_i32_1 = arith.constant 0 : i32
    return %arg0, %c0_i32, %c0_i32_0 : i32, i32, i32
  }
  func.func @transform_1(%arg0: i32) -> (i32, i32, i32) {
    %c0_i32 = arith.constant 0 : i32
    %c0_i32_0 = arith.constant 0 : i32
    %c0_i32_1 = arith.constant 0 : i32
    return %arg0, %c0_i32, %c0_i32_0 : i32, i32, i32
  }
  func.func @transform_2(%arg0: i32) -> (i32, i32, i32, i32) {
    %c0_i32 = arith.constant 0 : i32
    %c0_i32_0 = arith.constant 0 : i32
    %c0_i32_1 = arith.constant 0 : i32
    %c0_i32_2 = arith.constant 0 : i32
    %c0_i32_3 = arith.constant 0 : i32
    return %c0_i32, %c0_i32_0, %c0_i32_1, %c0_i32_2 : i32, i32, i32, i32
  }
  func.func @transform_3(%arg0: i32) -> (i32, i32, i32, i32) {
    %c0_i32 = arith.constant 0 : i32
    %c0_i32_0 = arith.constant 0 : i32
    %c0_i32_1 = arith.constant 0 : i32
    %c0_i32_2 = arith.constant 0 : i32
    %c0_i32_3 = arith.constant 0 : i32
    return %c0_i32, %c0_i32_0, %c0_i32_1, %c0_i32_2 : i32, i32, i32, i32
  }
  func.func @transform_4(%arg0: i32) -> (i32, i32, i32, i32) {
    %c0_i32 = arith.constant 0 : i32
    %c0_i32_0 = arith.constant 0 : i32
    %c0_i32_1 = arith.constant 0 : i32
    %c0_i32_2 = arith.constant 0 : i32
    %c0_i32_3 = arith.constant 0 : i32
    return %c0_i32, %c0_i32_0, %c0_i32_1, %c0_i32_2 : i32, i32, i32, i32
  }
  func.func @transform_5(%arg0: i32) -> (i32, i32, i32, i32) {
    %c0_i32 = arith.constant 0 : i32
    %c0_i32_0 = arith.constant 0 : i32
    %c0_i32_1 = arith.constant 0 : i32
    %c0_i32_2 = arith.constant 0 : i32
    %c0_i32_3 = arith.constant 0 : i32
    return %c0_i32, %c0_i32_0, %c0_i32_1, %c0_i32_2 : i32, i32, i32, i32
  }
  func.func @transform_6(%arg0: i32) -> (i32, i32, i32, i32) {
    %c0_i32 = arith.constant 0 : i32
    %c0_i32_0 = arith.constant 0 : i32
    %c0_i32_1 = arith.constant 0 : i32
    %c0_i32_2 = arith.constant 0 : i32
    %c0_i32_3 = arith.constant 0 : i32
    return %c0_i32, %c0_i32_0, %c0_i32_1, %c0_i32_2 : i32, i32, i32, i32
  }
  func.func @transform_7(%arg0: i32) -> (i32, i32, i32, i32) {
    %c0_i32 = arith.constant 0 : i32
    %c0_i32_0 = arith.constant 0 : i32
    %c0_i32_1 = arith.constant 0 : i32
    %c0_i32_2 = arith.constant 0 : i32
    %c0_i32_3 = arith.constant 0 : i32
    return %c0_i32, %c0_i32_0, %c0_i32_1, %c0_i32_2 : i32, i32, i32, i32
  }
  func.func @transform_8(%arg0: i32) -> (i32, i32, i32, i32) {
    %c0_i32 = arith.constant 0 : i32
    %c0_i32_0 = arith.constant 0 : i32
    %c0_i32_1 = arith.constant 0 : i32
    %c0_i32_2 = arith.constant 0 : i32
    %c0_i32_3 = arith.constant 0 : i32
    return %c0_i32, %c0_i32_0, %c0_i32_1, %c0_i32_2 : i32, i32, i32, i32
  }
  func.func @transform_9(%arg0: i32) -> (i32, i32, i32) {
    %c0_i32 = arith.constant 0 : i32
    %c0_i32_0 = arith.constant 0 : i32
    %c0_i32_1 = arith.constant 0 : i32
    %c0_i32_2 = arith.constant 0 : i32
    return %c0_i32, %c0_i32_0, %c0_i32_1 : i32, i32, i32
  }
  func.func @transform_10(%arg0: i32) -> (i32, i32, i32) {
    %c0_i32 = arith.constant 0 : i32
    %c0_i32_0 = arith.constant 0 : i32
    %c0_i32_1 = arith.constant 0 : i32
    %c0_i32_2 = arith.constant 0 : i32
    return %c0_i32, %c0_i32_0, %c0_i32_1 : i32, i32, i32
  }
  func.func @transform_11(%arg0: i32) -> (i32, i32, i32) {
    %c0_i32 = arith.constant 0 : i32
    %c0_i32_0 = arith.constant 0 : i32
    %c0_i32_1 = arith.constant 0 : i32
    %c0_i32_2 = arith.constant 0 : i32
    return %c0_i32, %c0_i32_0, %c0_i32_1 : i32, i32, i32
  }
  func.func @transform_12(%arg0: i32) -> (i32, i32, i32) {
    %c0_i32 = arith.constant 0 : i32
    %c0_i32_0 = arith.constant 0 : i32
    %c0_i32_1 = arith.constant 0 : i32
    %c0_i32_2 = arith.constant 0 : i32
    return %c0_i32, %c0_i32_0, %c0_i32_1 : i32, i32, i32
  }
  func.func @transform_13(%arg0: i32) -> (i32, i32, i32) {
    %c0_i32 = arith.constant 0 : i32
    %c0_i32_0 = arith.constant 0 : i32
    %c0_i32_1 = arith.constant 0 : i32
    %c0_i32_2 = arith.constant 0 : i32
    return %c0_i32, %c0_i32_0, %c0_i32_1 : i32, i32, i32
  }
  func.func @transform_14(%arg0: i32) -> (i32, i32, i32) {
    %c0_i32 = arith.constant 0 : i32
    %c0_i32_0 = arith.constant 0 : i32
    %c0_i32_1 = arith.constant 0 : i32
    %c0_i32_2 = arith.constant 0 : i32
    return %c0_i32, %c0_i32_0, %c0_i32_1 : i32, i32, i32
  }
  func.func @transform_15(%arg0: i32) -> (i32, i32, i32) {
    %c0_i32 = arith.constant 0 : i32
    %c0_i32_0 = arith.constant 0 : i32
    %c0_i32_1 = arith.constant 0 : i32
    %c0_i32_2 = arith.constant 0 : i32
    return %c0_i32, %c0_i32_0, %c0_i32_1 : i32, i32, i32
  }
  func.func @transform_16(%arg0: i32) -> (i32, i32, i32) {
    %c0_i32 = arith.constant 0 : i32
    %c0_i32_0 = arith.constant 0 : i32
    %c0_i32_1 = arith.constant 0 : i32
    %c0_i32_2 = arith.constant 0 : i32
    return %c0_i32, %c0_i32_0, %c0_i32_1 : i32, i32, i32
  }
  func.func @transform_17(%arg0: i32) -> (i32, i32, i32) {
    %c0_i32 = arith.constant 0 : i32
    %c0_i32_0 = arith.constant 0 : i32
    %c0_i32_1 = arith.constant 0 : i32
    %c0_i32_2 = arith.constant 0 : i32
    return %c0_i32, %c0_i32_0, %c0_i32_1 : i32, i32, i32
  }
  func.func @transform_18(%arg0: i32) -> (i32, i32) {
    %c0_i32 = arith.constant 0 : i32
    %c0_i32_0 = arith.constant 0 : i32
    return %arg0, %c0_i32 : i32, i32
  }
}

</mosaic_0001>

<bundles_post_ra>
// kernel: tpu_custom_call.1
= control target key start
LH: loop header
LB: loop body
LE: loop exit
PB: predicated region body
PF: predicated region fallthrough
CT: control target
= control target key end

     0   :  { %s18415_s0 = inlined_call_operand.vmem [shape: f32[8,1,8], index: 0, kind: input, shape index: {}]   ;;  %s18416_s1 = inlined_call_operand.vmem [shape: bf16[8,8,32], index: 1, kind: input, shape index: {}]   ;;  %s18417_s2 = inlined_call_operand.vmem [shape: bf16[3,2,32,16], index: 2, kind: input, shape index: {}]   ;;  %s18418_s3 = inlined_call_operand.vmem [shape: bf16[3,2,32,16], index: 3, kind: input, shape index: {}]   ;;  %s18419_s4 = inlined_call_operand.vmem [shape: bf16[3,2,32,16], index: 4, kind: input, shape index: {}]   ;;  %s18420_s5 = inlined_call_operand.vmem [shape: f32[3,2,1,16], index: 5, kind: input, shape index: {}]   ;;  %s18421_s6 = inlined_call_operand.vmem [shape: f32[3,2,1,16], index: 6, kind: input, shape index: {}]   ;;  %s18422_s7 = inlined_call_operand.vmem [shape: f32[3,2,1,16], index: 7, kind: input, shape index: {}]   ;;  %s18423_s8 = inlined_call_operand.vmem [shape: bf16[3,2,16,32], index: 8, kind: input, shape index: {}]   ;;  %s18424_s9 = inlined_call_operand.vmem [shape: f32[3,1,32], index: 9, kind: input, shape index: {}]   ;;  %s18425_s10 = inlined_call_operand.vmem [shape: bf16[3,32,512], index: 10, kind: input, shape index: {}]   ;;  %s18426_s11 = inlined_call_operand.vmem [shape: f32[3,1,512], index: 11, kind: input, shape index: {}]   ;;  %s18427_s12 = inlined_call_operand.vmem [shape: bf16[3,512,32], index: 12, kind: input, shape index: {}]   ;;  %s18428_s13 = inlined_call_operand.vmem [shape: f32[3,1,32], index: 13, kind: input, shape index: {}]   ;;  %s18429_s14 = inlined_call_operand.vmem [shape: f32[3,1,32], index: 14, kind: input, shape index: {}]   ;;  %s18430_s15 = inlined_call_operand.vmem [shape: f32[3,1,32], index: 15, kind: input, shape index: {}]   ;;  %s18431_s16 = inlined_call_operand.vmem [shape: f32[3,1,32], index: 16, kind: input, shape index: {}]   ;;  %s18432_s17 = inlined_call_operand.vmem [shape: f32[3,1,32], index: 17, kind: input, shape index: {}]   ;;  %s18433_s18 = inlined_call_operand.hbm [shape: f32[8,32], index: 18, kind: output, shape index: {}]  }
   0x1   :  { %18437 = sst [smem:[#allocation5_spill]] %s18415_s0 }
   0x2   :  { %18438 = sst [smem:[#allocation6_spill]] %s18416_s1 }
   0x3   :  { %18439 = sst [smem:[#allocation7_spill]] %s18417_s2 }
   0x4   :  { %s18440_s29 = sld [smem:[#allocation7_spill]]  ;;  %s18441_s20 = sld [smem:[#allocation6_spill]]  ;;  %vm113_vm0 = vcmask 261120   ;;  %v15269_v4 = vld [vmem:[%s18418_s3] sm:$0xff]   ;;  %v15270_v7 = vld [vmem:[%s18418_s3 + $0x8] sm:$0xff]   ;;  %v15779_v10 = vmov 0.0  }
   0x5   :  { %v15273_v8 = vld [vmem:[%s18419_s4] sm:$0xff]   ;;  %v15274_v9 = vld [vmem:[%s18419_s4 + $0x8] sm:$0xff]  }
   0xa   :  { %v15265_v0 = vld [vmem:[%s18440_s29] sm:$0xff]   ;;  %v15266_v1 = vld [vmem:[%s18440_s29 + $0x8] sm:$0xff]   ;;  %v15887_v2 = vld [vmem:[%s18441_s20 + $0x10] sm:$0xff]  }
   0xb   :  { %15209 = vmatprep.subr.bf16.mxu1 %v15265_v0  ;;  %14453 = vmatprep.subr.bf16.mxu0 %v15265_v0  ;;  %v15892_v3 = vld [vmem:[%s18441_s20 + $0x18] sm:$0xff]   ;;  %v15900_v5 = vld [vmem:[%s18441_s20] sm:$0xff]   ;;  %v15907_v6 = vld [vmem:[%s18441_s20 + $0x8] sm:$0xff]  }
   0xc   :  { %15211 = vmatpush3.bf16.msra.mxu1 %v15265_v0  ;;  %14454 = vmatpush3.bf16.msra.mxu0 %v15265_v0 }
   0xd   :  { %15210 = vmatprep.subr.bf16.mxu1 %v15266_v1  ;;  %14455 = vmatprep.subr.bf16.mxu0 %v15266_v1 }
   0xe   :  { %14461 = vmatprep.mubr.msk.bf16.mxu1 %vm113_vm0, %v15887_v2  ;;  %14457 = vmatprep.mubr.msk.bf16.mxu0 %vm113_vm0, %v15900_v5 }
  0x10   :  { %15212 = vmatpush3.bf16.msra.mxu1 %v15266_v1  ;;  %14456 = vmatpush3.bf16.msra.mxu0 %v15266_v1 }
  0x11   :  { %14465 = vmatprep.subr.bf16.mxu1 %v15269_v4  ;;  %14477 = vmatprep.subr.bf16.mxu0 %v15273_v8 }
  0x13   :  { %14462 = vmatmul.mubr.msk.bf16.vlgmr.msra.gmra.mrb[0].mxu1 %vm113_vm0, %v15892_v3  ;;  %14458 = vmatmul.mubr.msk.bf16.vlgmr.msra.gmra.mrb[0].mxu0 %vm113_vm0, %v15907_v6 }
  0x14   :  { %14466 = vmatpush3.bf16.msra.mxu1 %v15269_v4  ;;  %14469 = vmatprep.mubr.msk.bf16.mxu1 %vm113_vm0, %v15900_v5 }
  0x15   :  { %14467 = vmatprep.subr.bf16.mxu1 %v15270_v7  ;;  %14478 = vmatpush3.bf16.msra.mxu0 %v15273_v8 }
  0x16   :  { %14481 = vmatprep.mubr.msk.bf16.mxu0 %vm113_vm0, %v15900_v5  ;;  %14479 = vmatprep.subr.bf16.mxu0 %v15274_v9 }
  0x18   :  { %14468 = vmatpush3.bf16.msra.mxu1 %v15270_v7 }
  0x19   :  { %14480 = vmatpush3.bf16.msra.mxu0 %v15274_v9  ;;  %14489 = vmatprep.subr.mxu1 %v15779_v10 }
  0x1a   :  { %14509 = vmatprep.subr.mxu0 %v15779_v10 }
  0x1b   :  { %14470 = vmatmul.mubr.msk.bf16.vlgmr.msra.gmra.mrb[4].mxu1 %vm113_vm0, %v15907_v6 }
  0x1c   :  { %14473 = vmatprep.mubr.msk.bf16.mxu1 %vm113_vm0, %v15887_v2  ;;  %14482 = vmatmul.mubr.msk.bf16.vlgmr.msra.gmra.mrb[4].mxu0 %vm113_vm0, %v15907_v6 }
  0x1d   :  { %14485 = vmatprep.mubr.msk.bf16.mxu0 %vm113_vm0, %v15887_v2 }
  0x23   :  { %14474 = vmatmul.mubr.msk.bf16.gmra.mrb[8].mxu1 %vm113_vm0, %v15892_v3 }
  0x24   :  { %23 = vsyncpa [#allocation3], 0  ;;  %vm15780_vm1 = vmmov 0   ;;  %14486 = vmatmul.mubr.msk.bf16.gmra.mrb[8].mxu0 %vm113_vm0, %v15892_v3  ;;  %v13177_v19 = vld [vmem:[%s18421_s6] ss:$0 sm:$0xff]  ;;  %vm367_vm2 = vcmask 130048  }
  0x25   :  { %14491 = vmatprep.mubr.msk.f32.mxu1 %vm15780_vm1, %v15779_v10  ;;  %14511 = vmatprep.mubr.msk.f32.mxu0 %vm15780_vm1, %v15779_v10  ;;  %v13170_v22 = vld [vmem:[%s18420_s5] ss:$0 sm:$0xff]  ;;  %s18442_s30 = sld [smem:[#allocation5_spill]]  ;;  %vm1040_vm3 = vcmask 64512   ;;  %vm13136_vm4 = vcmask 1041409   ;;  %vm13138_vm5 = vcmask 1042434  }
  0x26   :  { %v13184_v45 = vld [vmem:[%s18422_s7] ss:$0 sm:$0xff]  ;;  %vm13140_vm6 = vcmask 1043459   ;;  %vm13142_vm7 = vcmask 1044484   ;;  %vm13144_vm8 = vcmask 1045509   ;;  %vm13146_vm9 = vcmask 1046534  }
  0x27   :  { %vm13148_vm10 = vcmask 1047559  }
  0x2b   :  { %v16012_v63 = vld [vmem:[%s18442_s30] ss:$0 sm:$0xff]  ;;  %v16018_v8 = vld [vmem:[%s18442_s30 + $0x1] ss:$0 sm:$0xff] }
  0xe6   :  { %v14463_v11 = vpop.f32.mrb[0].mxu1  ;;  %v14459_v12 = vpop.f32.mrb[0].mxu0 }
  0xe7   :  { %v176_v13 = vpop.f32.mrb[1].mxu1  ;;  %v160_v14 = vpop.f32.mrb[1].mxu0  ;;  %v169_v37 = vadd.f32 %v14459_v12, %v13170_v22  ;;  %v185_v39 = vadd.f32 %v14463_v11, %v13170_v22 }
  0xe8   :  { %v14464_v15 = vpop.f32.mrb[2].mxu1  ;;  %v14460_v16 = vpop.f32.mrb[2].mxu0  ;;  %v161_v25 = vadd.f32 %v13170_v22, %v160_v14  ;;  %v177_v36 = vadd.f32 %v13170_v22, %v176_v13 }
  0xe9   :  { %v179_v17 = vpop.f32.mrb[3].mxu1  ;;  %v163_v18 = vpop.f32.mrb[3].mxu0  ;;  %v172_v40 = vadd.f32 %v14460_v16, %v13170_v22  ;;  %v188_v44 = vadd.f32 %v14464_v15, %v13170_v22  ;;  %v16025_v16 = vld [vmem:[%s18442_s30 + $0x4] ss:$0 sm:$0xff] }
  0xea   :  { %v164_v29 = vadd.f32 %v13170_v22, %v163_v18  ;;  %v180_v42 = vadd.f32 %v13170_v22, %v179_v17  ;;  %v16030_v17 = vld [vmem:[%s18442_s30 + $0x2] ss:$0 sm:$0xff] }
  0xee   :  { %v14471_v20 = vpop.f32.mrb[4].mxu1 }
  0xef   :  { %v248_v21 = vpop.f32.mrb[5].mxu1  ;;  %v257_v31 = vadd.f32 %v14471_v20, %v13177_v19  ;;  %v14483_v46 = vpop.f32.mrb[4].mxu0 }
  0xf0   :  { %v249_v23 = vadd.f32 %v13177_v19, %v248_v21  ;;  %v14472_v24 = vpop.f32.mrb[6].mxu1  ;;  %v15995_v47 = vadd.f32 %v14483_v46, %v13184_v45  ;;  %v336_v48 = vpop.f32.mrb[5].mxu0 }
  0xf1   :  { %v251_v26 = vpop.f32.mrb[7].mxu1  ;;  %v260_v38 = vadd.f32 %v14472_v24, %v13177_v19  ;;  %v337_v49 = vadd.f32 %v13184_v45, %v336_v48  ;;  %v14484_v50 = vpop.f32.mrb[6].mxu0 }
  0xf2   :  { %14490 = vmatpush3.xpose.msk.msra.mxu1 %vm367_vm2, %v249_v23  ;;  %v252_v27 = vadd.f32 %v13177_v19, %v251_v26  ;;  %v15997_v51 = vadd.f32 %v14484_v50, %v13184_v45  ;;  %v339_v52 = vpop.f32.mrb[7].mxu0 }
  0xf3   :  { %14494 = vmatprep.subr.mxu1 %v15779_v10  ;;  %v340_v53 = vadd.f32 %v13184_v45, %v339_v52 }
  0xf5   :  { %14492 = vmatmul.mubr.msk.f32.vlgmr.msra.gmra.mrb[12].mxu1 %vm367_vm2, %v161_v25 }
  0xf6   :  { %v14475_v28 = vpop.f32.mrb[8].mxu1  ;;  %14495 = vmatpush3.xpose.msk.msra.mxu1 %vm367_vm2, %v252_v27  ;;  %14496 = vmatprep.mubr.msk.f32.mxu1 %vm15780_vm1, %v15779_v10  ;;  %v16038_v27 = vld [vmem:[%s18442_s30 + $0x6] ss:$0 sm:$0xff] }
  0xf7   :  { %v264_v30 = vpop.f32.mrb[9].mxu1  ;;  %14499 = vmatprep.subr.mxu1 %v15779_v10  ;;  %v273_v35 = vadd.f32 %v14475_v28, %v13177_v19  ;;  %v14487_v54 = vpop.f32.mrb[8].mxu0  ;;  %v16043_v28 = vld [vmem:[%s18442_s30 + $0x3] ss:$0 sm:$0xff] }
  0xf8   :  { %v265_v32 = vadd.f32 %v13177_v19, %v264_v30  ;;  %v14476_v33 = vpop.f32.mrb[10].mxu1  ;;  %v16001_v55 = vadd.f32 %v14487_v54, %v13184_v45  ;;  %v352_v56 = vpop.f32.mrb[9].mxu0 }
  0xf9   :  { %14497 = vmatmul.mubr.msk.f32.vlgmr.msra.gmra.mrb[14].mxu1 %vm367_vm2, %v164_v29  ;;  %v267_v34 = vpop.f32.mrb[11].mxu1  ;;  %v276_v43 = vadd.f32 %v14476_v33, %v13177_v19  ;;  %v16003_v57 = vadd.f32 %v13184_v45, %v352_v56  ;;  %v14488_v58 = vpop.f32.mrb[10].mxu0 }
  0xfa   :  { %14500 = vmatpush3.xpose.msk.msra.mxu1 %vm367_vm2, %v257_v31  ;;  %14510 = vmatpush3.xpose.msk.msra.mxu0 %vm367_vm2, %v265_v32  ;;  %v268_v41 = vadd.f32 %v13177_v19, %v267_v34  ;;  %v16005_v59 = vadd.f32 %v14488_v58, %v13184_v45  ;;  %v355_v60 = vpop.f32.mrb[11].mxu0 }
  0xfb   :  { %14501 = vmatprep.mubr.msk.f32.mxu1 %vm15780_vm1, %v15779_v10  ;;  %14504 = vmatprep.subr.mxu1 %v15779_v10  ;;  %v16007_v61 = vadd.f32 %v13184_v45, %v355_v60  ;;  %v16060_v45 = vld [vmem:[%s18442_s30 + $0x7] ss:$0 sm:$0xff] }
  0xfc   :  { %14519 = vmatprep.subr.mxu0 %v15779_v10 }
  0xfd   :  { %14502 = vmatmul.mubr.msk.f32.vlgmr.msra.gmra.mrb[16].mxu1 %vm367_vm2, %v169_v37  ;;  %14512 = vmatmul.mubr.msk.f32.vlgmr.msra.gmra.mrb[12].mxu0 %vm367_vm2, %v177_v36 }
  0xfe   :  { %14505 = vmatpush3.xpose.msk.msra.mxu1 %vm367_vm2, %v260_v38  ;;  %14520 = vmatpush3.xpose.msk.msra.mxu0 %vm367_vm2, %v273_v35  ;;  %v16052_v38 = vld [vmem:[%s18442_s30 + $0x5] ss:$0 sm:$0xff] }
  0xff   :  { %14506 = vmatprep.mubr.msk.f32.mxu1 %vm15780_vm1, %v15779_v10  ;;  %14521 = vmatprep.mubr.msk.f32.mxu0 %vm15780_vm1, %v15779_v10 }
 0x100   :  { %14514 = vmatprep.subr.mxu1 %v15779_v10  ;;  %14529 = vmatprep.subr.mxu0 %v15779_v10 }
 0x101   :  { %14507 = vmatmul.mubr.msk.f32.vlgmr.msra.gmra.mrb[18].mxu1 %vm367_vm2, %v172_v40  ;;  %14522 = vmatmul.mubr.msk.f32.vlgmr.msra.gmra.mrb[14].mxu0 %vm367_vm2, %v185_v39 }
 0x102   :  { %14515 = vmatpush3.xpose.msk.msra.mxu1 %vm367_vm2, %v268_v41  ;;  %14516 = vmatprep.mubr.msk.f32.mxu1 %vm15780_vm1, %v15779_v10 }
 0x103   :  { %14524 = vmatprep.subr.mxu1 %v15779_v10  ;;  %14531 = vmatprep.mubr.msk.f32.mxu0 %vm15780_vm1, %v15779_v10 }
 0x104   :  { %14530 = vmatpush3.msra.mxu0 %v337_v49 }
 0x105   :  { %14517 = vmatmul.mubr.msk.f32.vlgmr.msra.gmra.mrb[20].mxu1 %vm367_vm2, %v180_v42  ;;  %14539 = vmatprep.subr.mxu0 %v15779_v10 }
 0x106   :  { %14525 = vmatpush3.xpose.msk.msra.mxu1 %vm367_vm2, %v276_v43  ;;  %14526 = vmatprep.mubr.msk.f32.mxu1 %vm15780_vm1, %v15779_v10 }
 0x107   :  { %14534 = vmatprep.subr.mxu1 %v15779_v10 }
 0x109   :  { %14527 = vmatmul.mubr.msk.f32.vlgmr.msra.gmra.mrb[22].mxu1 %vm367_vm2, %v188_v44 }
 0x10a   :  { %14536 = vmatprep.mubr.msk.f32.mxu1 %vm15780_vm1, %v15779_v10  ;;  %14535 = vmatpush3.msra.mxu1 %v340_v53 }
 0x10b   :  { %14544 = vmatprep.subr.mxu1 %v15779_v10 }
 0x1c8   :  { %v440_v62 = vpop.f32.mrb[12].mxu1 }
 0x1c9   :  { %v976_v0 = vmul.f32 0.25, %v440_v62  ;;  %v14493_v1 = vpop.f32.mrb[13].mxu1 }
 0x1cb   :  { %v1032_v4 = vadd.f32 %v16012_v63, %v976_v0 }
 0x1cc   :  { %v516_v7 = vpop.f32.mrb[14].mxu1 }
 0x1cd   :  { %v977_v9 = vmul.f32 0.25, %v516_v7  ;;  %v14498_v11 = vpop.f32.mrb[15].mxu1  ;;  %v1041_v12 = vsel %vm1040_vm3, %v1032_v4, -inf }
 0x1ce   :  { %1042 = vmax.xlane.f32.xlu0 %v1041_v12 }
 0x1cf   :  { %v1033_v13 = vadd.f32 %v16018_v8, %v977_v9 }
 0x1d0   :  { %v592_v14 = vpop.f32.mrb[16].mxu1  ;;  %v744_v15 = vpop.f32.mrb[12].mxu0 }
 0x1d1   :  { %v978_v18 = vmul.f32 0.25, %v592_v14  ;;  %v980_v19 = vmul.f32 0.25, %v744_v15  ;;  %v14503_v20 = vpop.f32.mrb[17].mxu1  ;;  %v14513_v21 = vpop.f32.mrb[13].mxu0  ;;  %v1044_v22 = vsel %vm1040_vm3, %v1033_v13, -inf }
 0x1d2   :  { %1045 = vmax.xlane.f32.xlu0 %v1044_v22 }
 0x1d3   :  { %v1036_v23 = vadd.f32 %v16025_v16, %v980_v19  ;;  %v1034_v24 = vadd.f32 %v16030_v17, %v978_v18 }
 0x1d4   :  { %v668_v25 = vpop.f32.mrb[18].mxu1  ;;  %v896_v26 = vpop.f32.mrb[14].mxu0 }
 0x1d5   :  { %v979_v29 = vmul.f32 0.25, %v668_v25  ;;  %v982_v30 = vmul.f32 0.25, %v896_v26  ;;  %v14508_v31 = vpop.f32.mrb[19].mxu1  ;;  %v14523_v32 = vpop.f32.mrb[15].mxu0  ;;  %v1053_v33 = vsel %vm1040_vm3, %v1036_v23, -inf  ;;  %v1047_v34 = vsel %vm1040_vm3, %v1034_v24, -inf }
 0x1d6   :  { %1054 = vmax.xlane.f32.xlu0 %v1053_v33  ;;  %1048 = vmax.xlane.f32.xlu1 %v1047_v34 }
 0x1d7   :  { %v1038_v35 = vadd.f32 %v16038_v27, %v982_v30  ;;  %v1035_v36 = vadd.f32 %v16043_v28, %v979_v29 }
 0x1d8   :  { %v820_v37 = vpop.f32.mrb[20].mxu1 }
 0x1d9   :  { %v981_v39 = vmul.f32 0.25, %v820_v37  ;;  %v14518_v40 = vpop.f32.mrb[21].mxu1  ;;  %v1059_v41 = vsel %vm1040_vm3, %v1038_v35, -inf  ;;  %v1050_v42 = vsel %vm1040_vm3, %v1035_v36, -inf }
 0x1da   :  { %1060 = vmax.xlane.f32.xlu0 %v1059_v41  ;;  %1051 = vmax.xlane.f32.xlu1 %v1050_v42 }
 0x1db   :  { %v1037_v43 = vadd.f32 %v16052_v38, %v981_v39 }
 0x1dc   :  { %v972_v44 = vpop.f32.mrb[22].mxu1 }
 0x1dd   :  { %v983_v46 = vmul.f32 0.25, %v972_v44  ;;  %v14528_v48 = vpop.f32.mrb[23].mxu1  ;;  %v1056_v49 = vsel %vm1040_vm3, %v1037_v43, -inf }
 0x1de   :  { %1057 = vmax.xlane.f32.xlu1 %v1056_v49 }
 0x1df   :  { %v1039_v50 = vadd.f32 %v16060_v45, %v983_v46 }
 0x1e1   :  { %v1062_v52 = vsel %vm1040_vm3, %v1039_v50, -inf }
 0x1e2   :  { %1063 = vmax.xlane.f32.xlu1 %v1062_v52 }
 0x25b   :  { %v1043_v53 = vpop.xlane.xlu0 %1042 }
 0x25c   :  { %v1065_v54 = vsub.f32 %v1032_v4, %v1043_v53 }
 0x25e   :  { %v1073_v56 = vmul.f32 1.442695, %v1065_v54 }
 0x25f   :  { %v1046_v58 = vpop.xlane.xlu0 %1045 }
 0x260   :  { %15447 = vpow2.f32 %v1073_v56  ;;  %v1066_v60 = vsub.f32 %v1033_v13, %v1046_v58 }
 0x262   :  { %v1075_v62 = vmul.f32 1.442695, %v1066_v60 }
 0x263   :  { %v1055_v0 = vpop.xlane.xlu0 %1054  ;;  %v1049_v1 = vpop.xlane.xlu1 %1048 }
 0x264   :  { %15449 = vpow2.f32 %v1075_v62  ;;  %v1069_v7 = vsub.f32 %v1036_v23, %v1055_v0  ;;  %v1067_v9 = vsub.f32 %v1034_v24, %v1049_v1 }
 0x266   :  { %v1077_v11 = vmul.f32 1.442695, %v1067_v9  ;;  %v1081_v12 = vmul.f32 1.442695, %v1069_v7 }
 0x267   :  { %v1061_v14 = vpop.xlane.xlu0 %1060  ;;  %v1052_v15 = vpop.xlane.xlu1 %1051 }
 0x268   :  { %v1071_v18 = vsub.f32 %v1038_v35, %v1061_v14  ;;  %v1068_v19 = vsub.f32 %v1035_v36, %v1052_v15  ;;  %15451 = vpow2.f32 %v1077_v11 }
 0x269   :  { %15453 = vpow2.f32 %v1081_v12 }
 0x26a   :  { %v15448_v20 = vpop.eup %15447  ;;  %v1079_v21 = vmul.f32 1.442695, %v1068_v19  ;;  %v1085_v4 = vmul.f32 1.442695, %v1071_v18  ;;  %v15276_v19 = vld [vmem:[%s18440_s29 + $0x10] sm:$0xff]  }
 0x26b   :  { %v1058_v22 = vpop.xlane.xlu1 %1057  ;;  %v1089_v13 = vsel %vm1040_vm3, %v15448_v20, 0.0 }
 0x26c   :  { %v1070_v25 = vsub.f32 %v1037_v43, %v1058_v22  ;;  %1090 = vadd.xlane.f32.xlu0 %v1089_v13  ;;  %15455 = vpow2.f32 %v1079_v21  ;;  %v15280_v21 = vld [vmem:[%s18419_s4 + $0x10] sm:$0xff]  }
 0x26d   :  { %15457 = vpow2.f32 %v1085_v4  ;;  %v15281_v4 = vld [vmem:[%s18419_s4 + $0x18] sm:$0xff]  }
 0x26e   :  { %v15450_v26 = vpop.eup %15449  ;;  %v1083_v23 = vmul.f32 1.442695, %v1070_v25 }
 0x26f   :  { %v1064_v24 = vpop.xlane.xlu1 %1063  ;;  %v1092_v29 = vsel %vm1040_vm3, %v15450_v26, 0.0 }
 0x270   :  { %15459 = vpow2.f32 %v1083_v23  ;;  %v1072_v30 = vsub.f32 %v1039_v50, %v1064_v24  ;;  %1093 = vadd.xlane.f32.xlu1 %v1092_v29 }
 0x272   :  { %v1087_v31 = vmul.f32 1.442695, %v1072_v30  ;;  %v15452_v32 = vpop.eup %15451 }
 0x273   :  { %v1095_v33 = vsel %vm1040_vm3, %v15452_v32, 0.0  ;;  %v15454_v34 = vpop.eup %15453 }
 0x274   :  { %15461 = vpow2.f32 %v1087_v31  ;;  %1096 = vadd.xlane.f32.xlu0 %v1095_v33  ;;  %v1101_v36 = vsel %vm1040_vm3, %v15454_v34, 0.0 }
 0x276   :  { %v15456_v35 = vpop.eup %15455 }
 0x277   :  { %v1098_v37 = vsel %vm1040_vm3, %v15456_v35, 0.0  ;;  %v15458_v39 = vpop.eup %15457 }
 0x278   :  { %1102 = vadd.xlane.f32.xlu0 %v1101_v36  ;;  %1099 = vadd.xlane.f32.xlu1 %v1098_v37  ;;  %v1107_v42 = vsel %vm1040_vm3, %v15458_v39, 0.0 }
 0x27a   :  { %v15460_v40 = vpop.eup %15459 }
 0x27b   :  { %v1104_v41 = vsel %vm1040_vm3, %v15460_v40, 0.0 }
 0x27c   :  { %1108 = vadd.xlane.f32.xlu0 %v1107_v42  ;;  %1105 = vadd.xlane.f32.xlu1 %v1104_v41 }
 0x27e   :  { %v15462_v43 = vpop.eup %15461 }
 0x27f   :  { %v1110_v44 = vsel %vm1040_vm3, %v15462_v43, 0.0 }
 0x280   :  { %1111 = vadd.xlane.f32.xlu1 %v1110_v44 }
 0x2f9   :  { %v1091_v46 = vpop.xlane.xlu0 %1090 }
 0x2fa   :  { %15463 = vrcp.f32 %v1091_v46 }
 0x2fd   :  { %v1094_v48 = vpop.xlane.xlu1 %1093 }
 0x2fe   :  { %15465 = vrcp.f32 %v1094_v48 }
 0x301   :  { %v1097_v49 = vpop.xlane.xlu0 %1096 }
 0x302   :  { %15467 = vrcp.f32 %v1097_v49 }
 0x304   :  { %v15464_v50 = vpop.eup %15463 }
 0x305   :  { %v1121_v52 = vmul.f32 %v15464_v50, %v15448_v20  ;;  %v1103_v53 = vpop.xlane.xlu0 %1102  ;;  %v1100_v54 = vpop.xlane.xlu1 %1099  ;;  %v15278_v20 = vld [vmem:[%s18440_s29 + $0x18] sm:$0xff]  }
 0x306   :  { %15469 = vrcp.f32 %v1103_v53 }
 0x307   :  { %14532 = vmatmul.mubr.msk.f32.vlgmr.msra.gmra.mrb[16].mxu0 %vm1040_vm3, %v1121_v52  ;;  %15471 = vrcp.f32 %v1100_v54 }
 0x308   :  { %v15466_v56 = vpop.eup %15465  ;;  %14540 = vmatpush3.msra.mxu0 %v15995_v47  ;;  %14541 = vmatprep.mubr.msk.f32.mxu0 %vm15780_vm1, %v15779_v10 }
 0x309   :  { %v1122_v58 = vmul.f32 %v15466_v56, %v15450_v26  ;;  %14549 = vmatprep.subr.mxu0 %v15779_v10  ;;  %v1109_v60 = vpop.xlane.xlu0 %1108  ;;  %v1106_v62 = vpop.xlane.xlu1 %1105 }
 0x30a   :  { %15473 = vrcp.f32 %v1109_v60 }
 0x30b   :  { %14537 = vmatmul.mubr.msk.f32.vlgmr.msra.gmra.mrb[24].mxu1 %vm1040_vm3, %v1122_v58  ;;  %15475 = vrcp.f32 %v1106_v62 }
 0x30c   :  { %14545 = vmatpush3.msra.mxu1 %v15997_v51  ;;  %14546 = vmatprep.mubr.msk.f32.mxu1 %vm15780_vm1, %v15779_v10  ;;  %v15468_v0 = vpop.eup %15467 }
 0x30d   :  { %14554 = vmatprep.subr.mxu1 %v15779_v10  ;;  %v1112_v47 = vpop.xlane.xlu1 %1111  ;;  %v1123_v1 = vmul.f32 %v15468_v0, %v15452_v32 }
 0x30e   :  { %15477 = vrcp.f32 %v1112_v47 }
 0x30f   :  { %14542 = vmatmul.mubr.msk.f32.vlgmr.msra.gmra.mrb[18].mxu0 %vm1040_vm3, %v1123_v1 }
 0x310   :  { %v15470_v7 = vpop.eup %15469  ;;  %14550 = vmatpush3.msra.mxu0 %v16003_v57  ;;  %14551 = vmatprep.mubr.msk.f32.mxu0 %vm15780_vm1, %v15779_v10 }
 0x311   :  { %v15472_v9 = vpop.eup %15471  ;;  %14559 = vmatprep.subr.mxu0 %v15779_v10  ;;  %v1125_v51 = vmul.f32 %v15470_v7, %v15454_v34 }
 0x312   :  { %v1124_v11 = vmul.f32 %v15472_v9, %v15456_v35  ;;  %v15279_v35 = vld [vmem:[%s18418_s3 + $0x18] sm:$0xff]  }
 0x313   :  { %14552 = vmatmul.mubr.msk.f32.vlgmr.msra.gmra.mrb[20].mxu0 %vm1040_vm3, %v1125_v51 }
 0x314   :  { %v15474_v12 = vpop.eup %15473  ;;  %14547 = vmatmul.mubr.msk.f32.vlgmr.msra.gmra.mrb[26].mxu1 %vm1040_vm3, %v1124_v11  ;;  %14560 = vmatpush3.msra.mxu0 %v16001_v55 }
 0x315   :  { %v15476_v14 = vpop.eup %15475  ;;  %14555 = vmatpush3.msra.mxu1 %v16007_v61  ;;  %14556 = vmatprep.mubr.msk.f32.mxu1 %vm15780_vm1, %v15779_v10  ;;  %v1127_v57 = vmul.f32 %v15474_v12, %v15458_v39  ;;  %v15275_v61 = vld [vmem:[%s18423_s8] sm:$0xff]  }
 0x316   :  { %14561 = vmatprep.mubr.msk.f32.mxu0 %vm15780_vm1, %v15779_v10  ;;  %14564 = vmatprep.subr.mxu1 %v15779_v10  ;;  %v1126_v15 = vmul.f32 %v15476_v14, %v15460_v40  ;;  %v13246_v14 = vld [vmem:[%s18421_s6 + $0x1] ss:$0 sm:$0xff] }
 0x317   :  { %14562 = vmatmul.mubr.msk.f32.vlgmr.msra.gmra.mrb[22].mxu0 %vm1040_vm3, %v1127_v57  ;;  %14569 = vmatprep.subr.bf16.mxu0 %v15275_v61  ;;  %v13234_v57 = vld [vmem:[%s18420_s5 + $0x1] ss:$0 sm:$0xff] }
 0x318   :  { %v15478_v18 = vpop.eup %15477  ;;  %14557 = vmatmul.mubr.msk.f32.vlgmr.msra.gmra.mrb[28].mxu1 %vm1040_vm3, %v1126_v15  ;;  %14570 = vmatpush3.bf16.msra.mxu0 %v15275_v61 }
 0x319   :  { %14565 = vmatpush3.msra.mxu1 %v16005_v59  ;;  %14566 = vmatprep.mubr.msk.f32.mxu1 %vm15780_vm1, %v15779_v10  ;;  %v1128_v55 = vmul.f32 %v15478_v18, %v15462_v43  ;;  %v15277_v59 = vld [vmem:[%s18418_s3 + $0x10] sm:$0xff]  }
 0x31a   :  { %14579 = vmatprep.subr.bf16.mxu1 %v15276_v19  ;;  %14591 = vmatprep.subr.bf16.mxu0 %v15277_v59 }
 0x31c   :  { %14567 = vmatmul.mubr.msk.f32.vlgmr.msra.gmra.mrb[30].mxu1 %vm1040_vm3, %v1128_v55 }
 0x31d   :  { %14583 = vmatprep.mubr.msk.bf16.mxu1 %vm113_vm0, %v15900_v5  ;;  %14580 = vmatpush3.bf16.msra.mxu1 %v15276_v19 }
 0x31e   :  { %14581 = vmatprep.subr.bf16.mxu1 %v15278_v20 }
 0x321   :  { %14582 = vmatpush3.bf16.msra.mxu1 %v15278_v20 }
 0x322   :  { %14603 = vmatprep.subr.bf16.mxu1 %v15280_v21 }
 0x324   :  { %14584 = vmatmul.mubr.msk.bf16.vlgmr.msra.gmra.mrb[32].mxu1 %vm113_vm0, %v15907_v6 }
 0x325   :  { %14587 = vmatprep.mubr.msk.bf16.mxu1 %vm113_vm0, %v15887_v2  ;;  %14604 = vmatpush3.bf16.msra.mxu1 %v15280_v21 }
 0x326   :  { %14605 = vmatprep.subr.bf16.mxu1 %v15281_v4 }
 0x329   :  { %14606 = vmatpush3.bf16.msra.mxu1 %v15281_v4 }
 0x32a   :  { %14625 = vmatprep.subr.mxu1 %v15779_v10 }
 0x32c   :  { %14588 = vmatmul.mubr.msk.bf16.gmra.mrb[36].mxu1 %vm113_vm0, %v15892_v3 }
 0x32d   :  { %14607 = vmatprep.mubr.msk.bf16.mxu1 %vm113_vm0, %v15900_v5 }
 0x334   :  { %14608 = vmatmul.mubr.msk.bf16.vlgmr.msra.gmra.mrb[40].mxu1 %vm113_vm0, %v15907_v6 }
 0x335   :  { %14611 = vmatprep.mubr.msk.bf16.mxu1 %vm113_vm0, %v15887_v2 }
 0x33c   :  { %14612 = vmatmul.mubr.msk.bf16.gmra.mrb[44].mxu1 %vm113_vm0, %v15892_v3 }
 0x33d   :  { %14627 = vmatprep.mubr.msk.f32.mxu1 %vm15780_vm1, %v15779_v10 }
 0x3da   :  { %v1198_v22 = vpop.f32.mrb[16].mxu0 }
 0x3db   :  { %v14533_v13 = vpop.f32.mrb[17].mxu0 }
 0x3de   :  { %v1271_v25 = vpop.f32.mrb[24].mxu1 }
 0x3df   :  { %v1713_v26 = vpack.c.bf16 %v1271_v25, %v1198_v22  ;;  %v14538_v23 = vpop.f32.mrb[25].mxu1 }
 0x3e1   :  { %14571 = vmatprep.mubr.msk.bf16.mxu0 %vm367_vm2, %v1713_v26 }
 0x3e2   :  { %v1344_v24 = vpop.f32.mrb[18].mxu0 }
 0x3e3   :  { %v14543_v29 = vpop.f32.mrb[19].mxu0 }
 0x3e6   :  { %v1490_v30 = vpop.f32.mrb[20].mxu0 }
 0x3e7   :  { %v1417_v31 = vpop.f32.mrb[26].mxu1  ;;  %v14553_v32 = vpop.f32.mrb[21].mxu0 }
 0x3e8   :  { %v1714_v33 = vpack.c.bf16 %v1417_v31, %v1344_v24  ;;  %v14548_v34 = vpop.f32.mrb[27].mxu1 }
 0x3ea   :  { %14572 = vmatmul.mubr.msk.bf16.vlgmr.msra.gmra.mrb[24].mxu0 %vm367_vm2, %v1714_v33  ;;  %v1636_v36 = vpop.f32.mrb[22].mxu0 }
 0x3eb   :  { %v1563_v37 = vpop.f32.mrb[28].mxu1  ;;  %v14563_v39 = vpop.f32.mrb[23].mxu0  ;;  %14592 = vmatpush3.bf16.msra.mxu0 %v15277_v59 }
 0x3ec   :  { %v1715_v40 = vpack.c.bf16 %v1563_v37, %v1490_v30  ;;  %v14558_v41 = vpop.f32.mrb[29].mxu1  ;;  %14593 = vmatprep.subr.bf16.mxu0 %v15279_v35 }
 0x3ee   :  { %14575 = vmatprep.mubr.msk.bf16.mxu0 %vm367_vm2, %v1715_v40 }
 0x3ef   :  { %v1709_v42 = vpop.f32.mrb[30].mxu1  ;;  %14594 = vmatpush3.bf16.msra.mxu0 %v15279_v35 }
 0x3f0   :  { %v1716_v43 = vpack.c.bf16 %v1709_v42, %v1636_v36  ;;  %v14568_v44 = vpop.f32.mrb[31].mxu1  ;;  %14615 = vmatprep.subr.mxu0 %v15779_v10 }
 0x3f2   :  { %14576 = vmatmul.mubr.msk.bf16.gmra.mrb[28].mxu0 %vm367_vm2, %v1716_v43 }
 0x3f3   :  { %14595 = vmatprep.mubr.msk.bf16.mxu0 %vm113_vm0, %v15900_v5 }
 0x3f7   :  { %v14585_v46 = vpop.f32.mrb[32].mxu1 }
 0x3f8   :  { %v1875_v48 = vpop.f32.mrb[33].mxu1  ;;  %v1884_v61 = vadd.f32 %v14585_v46, %v13234_v57 }
 0x3f9   :  { %v14586_v49 = vpop.f32.mrb[34].mxu1  ;;  %v1876_v20 = vadd.f32 %v13234_v57, %v1875_v48 }
 0x3fa   :  { %14596 = vmatmul.mubr.msk.bf16.vlgmr.msra.gmra.mrb[32].mxu0 %vm113_vm0, %v15907_v6  ;;  %v1878_v50 = vpop.f32.mrb[35].mxu1  ;;  %v1887_v33 = vadd.f32 %v14586_v49, %v13234_v57 }
 0x3fb   :  { %14599 = vmatprep.mubr.msk.bf16.mxu0 %vm113_vm0, %v15887_v2  ;;  %v16163_v2 = vld [vmem:[%s18422_s7 + $0x1] ss:$0 sm:$0xff]  ;;  %v1879_v13 = vadd.f32 %v13234_v57, %v1878_v50 }
 0x3ff   :  { %v14589_v52 = vpop.f32.mrb[36].mxu1 }
 0x400   :  { %v1891_v53 = vpop.f32.mrb[37].mxu1  ;;  %v1900_v34 = vadd.f32 %v14589_v52, %v13234_v57 }
 0x401   :  { %v16158_v54 = vpop.f32.mrb[38].mxu1  ;;  %v1892_v29 = vadd.f32 %v13234_v57, %v1891_v53 }
 0x402   :  { %14600 = vmatmul.mubr.msk.bf16.gmra.mrb[36].mxu0 %vm113_vm0, %v15892_v3  ;;  %v1894_v5 = vpop.f32.mrb[39].mxu1  ;;  %v1903_v39 = vadd.f32 %v16158_v54, %v13234_v57 }
 0x403   :  { %14617 = vmatprep.mubr.msk.f32.mxu0 %vm15780_vm1, %v15779_v10  ;;  %v1895_v35 = vadd.f32 %v13234_v57, %v1894_v5 }
 0x407   :  { %v14609_v56 = vpop.f32.mrb[40].mxu1 }
 0x408   :  { %v16166_v3 = vadd.f32 %v14609_v56, %v16163_v2  ;;  %v2055_v6 = vpop.f32.mrb[41].mxu1 }
 0x409   :  { %v14610_v58 = vpop.f32.mrb[42].mxu1  ;;  %v2056_v37 = vadd.f32 %v16163_v2, %v2055_v6 }
 0x40a   :  { %v16169_v60 = vadd.f32 %v14610_v58, %v16163_v2  ;;  %v16171_v62 = vpop.f32.mrb[43].mxu1 }
 0x40b   :  { %v2059_v40 = vadd.f32 %v16163_v2, %v16171_v62 }
 0x40f   :  { %v14613_v0 = vpop.f32.mrb[44].mxu1 }
 0x410   :  { %v16174_v47 = vadd.f32 %v14613_v0, %v16163_v2  ;;  %v2071_v1 = vpop.f32.mrb[45].mxu1 }
 0x411   :  { %v16177_v7 = vadd.f32 %v16163_v2, %v2071_v1  ;;  %v14614_v9 = vpop.f32.mrb[46].mxu1 }
 0x412   :  { %v16180_v51 = vadd.f32 %v14614_v9, %v16163_v2  ;;  %v2074_v11 = vpop.f32.mrb[47].mxu1 }
 0x413   :  { %v16183_v12 = vadd.f32 %v16163_v2, %v2074_v11 }
 0x4cd   :  { %v14597_v15 = vpop.f32.mrb[32].mxu0 }
 0x4ce   :  { %v1974_v18 = vadd.f32 %v14597_v15, %v13246_v14  ;;  %v1965_v55 = vpop.f32.mrb[33].mxu0 }
 0x4cf   :  { %v1966_v19 = vadd.f32 %v13246_v14, %v1965_v55  ;;  %v14598_v59 = vpop.f32.mrb[34].mxu0 }
 0x4d0   :  { %v1968_v21 = vpop.f32.mrb[35].mxu0  ;;  %14626 = vmatpush3.xpose.msk.msra.mxu1 %vm367_vm2, %v1974_v18  ;;  %v1977_v26 = vadd.f32 %v14598_v59, %v13246_v14 }
 0x4d1   :  { %14616 = vmatpush3.xpose.msk.msra.mxu0 %vm367_vm2, %v1966_v19  ;;  %14635 = vmatprep.subr.mxu1 %v15779_v10  ;;  %v1969_v4 = vadd.f32 %v13246_v14, %v1968_v21 }
 0x4d2   :  { %14620 = vmatprep.subr.mxu0 %v15779_v10 }
 0x4d3   :  { %14628 = vmatmul.mubr.msk.f32.vlgmr.msra.gmra.mrb[48].mxu1 %vm367_vm2, %v1884_v61 }
 0x4d4   :  { %14618 = vmatmul.mubr.msk.f32.vlgmr.msra.gmra.mrb[40].mxu0 %vm367_vm2, %v1876_v20  ;;  %14637 = vmatprep.mubr.msk.f32.mxu1 %vm15780_vm1, %v15779_v10 }
 0x4d5   :  { %v14601_v22 = vpop.f32.mrb[36].mxu0  ;;  %14621 = vmatpush3.xpose.msk.msra.mxu0 %vm367_vm2, %v1969_v4  ;;  %14622 = vmatprep.mubr.msk.f32.mxu0 %vm15780_vm1, %v15779_v10 }
 0x4d6   :  { %v1981_v25 = vpop.f32.mrb[37].mxu0  ;;  %14630 = vmatprep.subr.mxu0 %v15779_v10  ;;  %v1990_v31 = vadd.f32 %v14601_v22, %v13246_v14 }
 0x4d7   :  { %v1982_v23 = vadd.f32 %v13246_v14, %v1981_v25  ;;  %v14602_v24 = vpop.f32.mrb[38].mxu0 }
 0x4d8   :  { %14623 = vmatmul.mubr.msk.f32.vlgmr.msra.gmra.mrb[42].mxu0 %vm367_vm2, %v1879_v13  ;;  %v1984_v30 = vpop.f32.mrb[39].mxu0  ;;  %v1993_v36 = vadd.f32 %v14602_v24, %v13246_v14 }
 0x4d9   :  { %14631 = vmatpush3.xpose.msk.msra.mxu0 %vm367_vm2, %v1977_v26  ;;  %14636 = vmatpush3.xpose.msk.msra.mxu1 %vm367_vm2, %v1982_v23  ;;  %v1985_v32 = vadd.f32 %v13246_v14, %v1984_v30 }
 0x4da   :  { %14632 = vmatprep.mubr.msk.f32.mxu0 %vm15780_vm1, %v15779_v10  ;;  %14640 = vmatprep.subr.mxu0 %v15779_v10 }
 0x4db   :  { %14645 = vmatprep.subr.mxu1 %v15779_v10 }
 0x4dc   :  { %14633 = vmatmul.mubr.msk.f32.vlgmr.msra.gmra.mrb[44].mxu0 %vm367_vm2, %v1887_v33  ;;  %14638 = vmatmul.mubr.msk.f32.vlgmr.msra.gmra.mrb[50].mxu1 %vm367_vm2, %v1892_v29 }
 0x4dd   :  { %14641 = vmatpush3.xpose.msk.msra.mxu0 %vm367_vm2, %v1985_v32  ;;  %14646 = vmatpush3.xpose.msk.msra.mxu1 %vm367_vm2, %v1990_v31 }
 0x4de   :  { %14642 = vmatprep.mubr.msk.f32.mxu0 %vm15780_vm1, %v15779_v10  ;;  %14647 = vmatprep.mubr.msk.f32.mxu1 %vm15780_vm1, %v15779_v10 }
 0x4df   :  { %14650 = vmatprep.subr.mxu0 %v15779_v10  ;;  %14655 = vmatprep.subr.mxu1 %v15779_v10 }
 0x4e0   :  { %14643 = vmatmul.mubr.msk.f32.vlgmr.msra.gmra.mrb[46].mxu0 %vm367_vm2, %v1895_v35  ;;  %14648 = vmatmul.mubr.msk.f32.vlgmr.msra.gmra.mrb[52].mxu1 %vm367_vm2, %v1900_v34 }
 0x4e1   :  { %14651 = vmatpush3.xpose.msk.msra.mxu0 %vm367_vm2, %v1993_v36  ;;  %14652 = vmatprep.mubr.msk.f32.mxu0 %vm15780_vm1, %v15779_v10 }
 0x4e2   :  { %14660 = vmatprep.subr.mxu0 %v15779_v10  ;;  %14656 = vmatpush3.msra.mxu1 %v2056_v37 }
 0x4e3   :  { %14657 = vmatprep.mubr.msk.f32.mxu1 %vm15780_vm1, %v15779_v10  ;;  %14665 = vmatprep.subr.mxu1 %v15779_v10 }
 0x4e4   :  { %14653 = vmatmul.mubr.msk.f32.vlgmr.msra.gmra.mrb[48].mxu0 %vm367_vm2, %v1903_v39 }
 0x4e5   :  { %14661 = vmatpush3.msra.mxu0 %v2059_v40  ;;  %14662 = vmatprep.mubr.msk.f32.mxu0 %vm15780_vm1, %v15779_v10 }
 0x4e6   :  { %14670 = vmatprep.subr.mxu0 %v15779_v10 }
 0x5a6   :  { %v2310_v41 = vpop.f32.mrb[48].mxu1 }
 0x5a7   :  { %v2158_v42 = vpop.f32.mrb[40].mxu0  ;;  %v14629_v43 = vpop.f32.mrb[49].mxu1  ;;  %v2696_v44 = vmul.f32 0.25, %v2310_v41 }
 0x5a8   :  { %v2694_v46 = vmul.f32 0.25, %v2158_v42  ;;  %v14619_v48 = vpop.f32.mrb[41].mxu0 }
 0x5a9   :  { %v2704_v5 = vadd.f32 %v16030_v17, %v2696_v44 }
 0x5aa   :  { %v2702_v49 = vadd.f32 %v16012_v63, %v2694_v46 }
 0x5ab   :  { %v2234_v50 = vpop.f32.mrb[42].mxu0  ;;  %v2716_v1 = vsel %vm1040_vm3, %v2704_v5, -inf }
 0x5ac   :  { %v2695_v52 = vmul.f32 0.25, %v2234_v50  ;;  %v14624_v53 = vpop.f32.mrb[43].mxu0  ;;  %v2710_v54 = vsel %vm1040_vm3, %v2702_v49, -inf }
 0x5ad   :  { %2711 = vmax.xlane.f32.xlu0 %v2710_v54 }
 0x5ae   :  { %v2703_v56 = vadd.f32 %v16018_v8, %v2695_v52 }
 0x5af   :  { %v2386_v2 = vpop.f32.mrb[44].mxu0  ;;  %v2462_v6 = vpop.f32.mrb[50].mxu1 }
 0x5b0   :  { %v2697_v58 = vmul.f32 0.25, %v2386_v2  ;;  %v2698_v62 = vmul.f32 0.25, %v2462_v6  ;;  %v14634_v0 = vpop.f32.mrb[45].mxu0  ;;  %v2713_v9 = vsel %vm1040_vm3, %v2703_v56, -inf  ;;  %v14639_v63 = vpop.f32.mrb[51].mxu1 }
 0x5b1   :  { %2717 = vmax.xlane.f32.xlu0 %v2716_v1  ;;  %2714 = vmax.xlane.f32.xlu1 %v2713_v9 }
 0x5b2   :  { %v2706_v11 = vadd.f32 %v16025_v16, %v2698_v62  ;;  %v2705_v14 = vadd.f32 %v16043_v28, %v2697_v58 }
 0x5b3   :  { %v2538_v17 = vpop.f32.mrb[46].mxu0  ;;  %v2614_v57 = vpop.f32.mrb[52].mxu1 }
 0x5b4   :  { %v2699_v15 = vmul.f32 0.25, %v2538_v17  ;;  %v2700_v8 = vmul.f32 0.25, %v2614_v57  ;;  %v2722_v18 = vsel %vm1040_vm3, %v2706_v11, -inf  ;;  %v2719_v55 = vsel %vm1040_vm3, %v2705_v14, -inf  ;;  %v14644_v61 = vpop.f32.mrb[47].mxu0  ;;  %v14649_v19 = vpop.f32.mrb[53].mxu1 }
 0x5b5   :  { %2723 = vmax.xlane.f32.xlu0 %v2722_v18  ;;  %2720 = vmax.xlane.f32.xlu1 %v2719_v55 }
 0x5b6   :  { %v2708_v59 = vadd.f32 %v16038_v27, %v2700_v8  ;;  %v2707_v20 = vadd.f32 %v16052_v38, %v2699_v15 }
 0x5b7   :  { %v2690_v21 = vpop.f32.mrb[48].mxu0 }
 0x5b8   :  { %v2701_v16 = vmul.f32 0.25, %v2690_v21  ;;  %v14654_v4 = vpop.f32.mrb[49].mxu0  ;;  %v2728_v28 = vsel %vm1040_vm3, %v2708_v59, -inf  ;;  %v2725_v22 = vsel %vm1040_vm3, %v2707_v20, -inf }
 0x5b9   :  { %2729 = vmax.xlane.f32.xlu0 %v2728_v28  ;;  %2726 = vmax.xlane.f32.xlu1 %v2725_v22 }
 0x5ba   :  { %v2709_v13 = vadd.f32 %v16060_v45, %v2701_v16 }
 0x5bc   :  { %v2731_v25 = vsel %vm1040_vm3, %v2709_v13, -inf }
 0x5bd   :  { %2732 = vmax.xlane.f32.xlu1 %v2731_v25 }
 0x63a   :  { %v2712_v26 = vpop.xlane.xlu0 %2711 }
 0x63b   :  { %v2734_v23 = vsub.f32 %v2702_v49, %v2712_v26 }
 0x63d   :  { %v2742_v24 = vmul.f32 1.442695, %v2734_v23 }
 0x63e   :  { %v2718_v27 = vpop.xlane.xlu0 %2717  ;;  %v2715_v29 = vpop.xlane.xlu1 %2714 }
 0x63f   :  { %15479 = vpow2.f32 %v2742_v24  ;;  %v2736_v38 = vsub.f32 %v2704_v5, %v2718_v27  ;;  %v2735_v30 = vsub.f32 %v2703_v56, %v2715_v29 }
 0x641   :  { %v2746_v31 = vmul.f32 1.442695, %v2736_v38  ;;  %v2744_v32 = vmul.f32 1.442695, %v2735_v30 }
 0x642   :  { %v2724_v33 = vpop.xlane.xlu0 %2723  ;;  %v2721_v34 = vpop.xlane.xlu1 %2720 }
 0x643   :  { %15481 = vpow2.f32 %v2746_v31  ;;  %v2738_v35 = vsub.f32 %v2706_v11, %v2724_v33  ;;  %v2737_v36 = vsub.f32 %v2705_v14, %v2721_v34 }
 0x644   :  { %15483 = vpow2.f32 %v2744_v32 }
 0x645   :  { %v2750_v45 = vmul.f32 1.442695, %v2738_v35  ;;  %v2748_v37 = vmul.f32 1.442695, %v2737_v36 }
 0x646   :  { %v2730_v39 = vpop.xlane.xlu0 %2729  ;;  %v2727_v40 = vpop.xlane.xlu1 %2726 }
 0x647   :  { %15485 = vpow2.f32 %v2750_v45  ;;  %v2740_v41 = vsub.f32 %v2708_v59, %v2730_v39  ;;  %v2739_v42 = vsub.f32 %v2707_v20, %v2727_v40 }
 0x648   :  { %15487 = vpow2.f32 %v2748_v37 }
 0x649   :  { %v15480_v43 = vpop.eup %15479  ;;  %v2754_v44 = vmul.f32 1.442695, %v2740_v41  ;;  %v2752_v46 = vmul.f32 1.442695, %v2739_v42 }
 0x64a   :  { %v2733_v48 = vpop.xlane.xlu1 %2732  ;;  %v2758_v49 = vsel %vm1040_vm3, %v15480_v43, 0.0 }
 0x64b   :  { %15489 = vpow2.f32 %v2754_v44  ;;  %v2741_v50 = vsub.f32 %v2709_v13, %v2733_v48  ;;  %2759 = vadd.xlane.f32.xlu0 %v2758_v49  ;;  %v13228_v48 = vld [vmem:[%s18424_s9] ss:$0 sm:$0xff] }
 0x64c   :  { %15491 = vpow2.f32 %v2752_v46 }
 0x64d   :  { %v15482_v52 = vpop.eup %15481  ;;  %v2756_v53 = vmul.f32 1.442695, %v2741_v50  ;;  %v15735_v50 = vld [vmem:[%s18441_s20] sm:$0xff]  }
 0x64e   :  { %v15484_v54 = vpop.eup %15483  ;;  %v2764_v5 = vsel %vm1040_vm3, %v15482_v52, 0.0 }
 0x64f   :  { %15493 = vpow2.f32 %v2756_v53  ;;  %2765 = vadd.xlane.f32.xlu0 %v2764_v5  ;;  %v2761_v56 = vsel %vm1040_vm3, %v15484_v54, 0.0 }
 0x650   :  { %2762 = vadd.xlane.f32.xlu1 %v2761_v56 }
 0x651   :  { %v15486_v2 = vpop.eup %15485 }
 0x652   :  { %v15488_v6 = vpop.eup %15487  ;;  %v2770_v58 = vsel %vm1040_vm3, %v15486_v2, 0.0 }
 0x653   :  { %2771 = vadd.xlane.f32.xlu0 %v2770_v58  ;;  %v2767_v62 = vsel %vm1040_vm3, %v15488_v6, 0.0 }
 0x654   :  { %2768 = vadd.xlane.f32.xlu1 %v2767_v62 }
 0x655   :  { %v15490_v0 = vpop.eup %15489 }
 0x656   :  { %v15492_v1 = vpop.eup %15491  ;;  %v2776_v9 = vsel %vm1040_vm3, %v15490_v0, 0.0 }
 0x657   :  { %2777 = vadd.xlane.f32.xlu0 %v2776_v9  ;;  %v2773_v63 = vsel %vm1040_vm3, %v15492_v1, 0.0 }
 0x658   :  { %2774 = vadd.xlane.f32.xlu1 %v2773_v63 }
 0x659   :  { %v15494_v11 = vpop.eup %15493 }
 0x65a   :  { %v2779_v14 = vsel %vm1040_vm3, %v15494_v11, 0.0 }
 0x65c   :  { %2780 = vadd.xlane.f32.xlu1 %v2779_v14 }
 0x6d8   :  { %v2760_v17 = vpop.xlane.xlu0 %2759 }
 0x6d9   :  { %15495 = vrcp.f32 %v2760_v17 }
 0x6dc   :  { %v2766_v57 = vpop.xlane.xlu0 %2765 }
 0x6dd   :  { %15497 = vrcp.f32 %v2766_v57  ;;  %v2763_v15 = vpop.xlane.xlu1 %2762 }
 0x6de   :  { %15499 = vrcp.f32 %v2763_v15 }
 0x6e0   :  { %v2772_v8 = vpop.xlane.xlu0 %2771 }
 0x6e1   :  { %15501 = vrcp.f32 %v2772_v8  ;;  %v2769_v18 = vpop.xlane.xlu1 %2768 }
 0x6e2   :  { %15503 = vrcp.f32 %v2769_v18  ;;  %v15737_v18 = vld [vmem:[%s18441_s20 + $0x10] sm:$0xff]  }
 0x6e3   :  { %v15496_v55 = vpop.eup %15495 }
 0x6e4   :  { %v2778_v61 = vpop.xlane.xlu0 %2777  ;;  %v2790_v19 = vmul.f32 %v15496_v55, %v15480_v43  ;;  %v73_v55 = vunpack.c.l.bf16 %v15737_v18 }
 0x6e5   :  { %15505 = vrcp.f32 %v2778_v61  ;;  %v2775_v59 = vpop.xlane.xlu1 %2774 }
 0x6e6   :  { %15507 = vrcp.f32 %v2775_v59  ;;  %14658 = vmatmul.mubr.msk.f32.vlgmr.msra.gmra.mrb[54].mxu1 %vm1040_vm3, %v2790_v19  ;;  %v15738_v19 = vld [vmem:[%s18441_s20 + $0x18] sm:$0xff]  }
 0x6e7   :  { %v15498_v20 = vpop.eup %15497  ;;  %14666 = vmatpush3.msra.mxu1 %v16166_v3  ;;  %14667 = vmatprep.mubr.msk.f32.mxu1 %vm15780_vm1, %v15779_v10  ;;  %v75_v59 = vunpack.c.l.bf16 %v15738_v19 }
 0x6e8   :  { %v15500_v21 = vpop.eup %15499  ;;  %14675 = vmatprep.subr.mxu1 %v15779_v10  ;;  %v2792_v16 = vmul.f32 %v15498_v20, %v15482_v52  ;;  %v69_v52 = vunpack.c.l.bf16 %v15735_v50 }
 0x6e9   :  { %v2781_v4 = vpop.xlane.xlu1 %2780  ;;  %v2791_v28 = vmul.f32 %v15500_v21, %v15484_v54 }
 0x6ea   :  { %15509 = vrcp.f32 %v2781_v4  ;;  %14668 = vmatmul.mubr.msk.f32.vlgmr.msra.gmra.mrb[56].mxu1 %vm1040_vm3, %v2792_v16 }
 0x6eb   :  { %v15502_v22 = vpop.eup %15501  ;;  %14663 = vmatmul.mubr.msk.f32.vlgmr.msra.gmra.mrb[50].mxu0 %vm1040_vm3, %v2791_v28  ;;  %14676 = vmatpush3.msra.mxu1 %v16177_v7  ;;  %v74_v28 = vunpack.c.h.bf16 %v15737_v18  ;;  %v15285_v18 = vld [vmem:[%s18425_s10 + $0x4] ss:$16 sps:$4 sm:$0xff]  }
 0x6ec   :  { %v15504_v13 = vpop.eup %15503  ;;  %14671 = vmatpush3.msra.mxu0 %v16169_v60  ;;  %14672 = vmatprep.mubr.msk.f32.mxu0 %vm15780_vm1, %v15779_v10  ;;  %v2794_v3 = vmul.f32 %v15502_v22, %v15486_v2  ;;  %v70_v2 = vunpack.c.h.bf16 %v15735_v50 }
 0x6ed   :  { %14677 = vmatprep.mubr.msk.f32.mxu1 %vm15780_vm1, %v15779_v10  ;;  %14680 = vmatprep.subr.mxu0 %v15779_v10  ;;  %v2793_v25 = vmul.f32 %v15504_v13, %v15488_v6  ;;  %v15736_v6 = vld [vmem:[%s18441_s20 + $0x8] sm:$0xff]   ;;  %v76_v13 = vunpack.c.h.bf16 %v15738_v19 }
 0x6ee   :  { %14685 = vmatprep.subr.mxu1 %v15779_v10  ;;  %14678 = vmatmul.mubr.msk.f32.vlgmr.msra.gmra.mrb[58].mxu1 %vm1040_vm3, %v2794_v3  ;;  %v71_v58 = vunpack.c.l.bf16 %v15736_v6  ;;  %v72_v63 = vunpack.c.h.bf16 %v15736_v6  ;;  %v15286_v19 = vld [vmem:[%s18425_s10 + $0x8] ss:$16 sps:$4 sm:$0xff]  }
 0x6ef   :  { %v15506_v26 = vpop.eup %15505  ;;  %14673 = vmatmul.mubr.msk.f32.vlgmr.msra.gmra.mrb[52].mxu0 %vm1040_vm3, %v2793_v25  ;;  %14686 = vmatpush3.msra.mxu1 %v16174_v47 }
 0x6f0   :  { %v15508_v60 = vpop.eup %15507  ;;  %14681 = vmatpush3.msra.mxu0 %v16183_v12  ;;  %14682 = vmatprep.mubr.msk.f32.mxu0 %vm15780_vm1, %v15779_v10  ;;  %v2796_v7 = vmul.f32 %v15506_v26, %v15490_v0  ;;  %v15282_v12 = vld [vmem:[%s18423_s8 + $0x8] sm:$0xff]  }
 0x6f1   :  { %14687 = vmatprep.mubr.msk.f32.mxu1 %vm15780_vm1, %v15779_v10  ;;  %14690 = vmatprep.subr.mxu0 %v15779_v10  ;;  %v2795_v23 = vmul.f32 %v15508_v60, %v15492_v1 }
 0x6f2   :  { %14688 = vmatmul.mubr.msk.f32.vlgmr.msra.gmra.mrb[60].mxu1 %vm1040_vm3, %v2796_v7  ;;  %3709 = vmatprep.subr.bf16.mxu1 %v15285_v18 }
 0x6f3   :  { %14683 = vmatmul.mubr.msk.f32.vlgmr.msra.gmra.mrb[54].mxu0 %vm1040_vm3, %v2795_v23 }
 0x6f4   :  { %v15510_v24 = vpop.eup %15509  ;;  %14691 = vmatpush3.msra.mxu0 %v16180_v51  ;;  %14692 = vmatprep.mubr.msk.f32.mxu0 %vm15780_vm1, %v15779_v10 }
 0x6f5   :  { %v2797_v47 = vmul.f32 %v15510_v24, %v15494_v11  ;;  %14695 = vmatprep.subr.bf16.mxu0 %v15282_v12 }
 0x6f7   :  { %14693 = vmatmul.mubr.msk.f32.vlgmr.msra.gmra.mrb[56].mxu0 %vm1040_vm3, %v2797_v47 }
 0x6f8   :  { %14696 = vmatpush3.bf16.msra.mxu0 %v15282_v12 }
 0x7b9   :  { %v2867_v27 = vpop.f32.mrb[54].mxu1 }
 0x7ba   :  { %v14659_v29 = vpop.f32.mrb[55].mxu1 }
 0x7bd   :  { %v3013_v38 = vpop.f32.mrb[56].mxu1 }
 0x7be   :  { %v2940_v30 = vpop.f32.mrb[50].mxu0  ;;  %v14669_v31 = vpop.f32.mrb[57].mxu1 }
 0x7bf   :  { %v3382_v32 = vpack.c.bf16 %v2940_v30, %v2867_v27  ;;  %v14664_v33 = vpop.f32.mrb[51].mxu0 }
 0x7c1   :  { %14697 = vmatprep.mubr.msk.bf16.mxu0 %vm367_vm2, %v3382_v32  ;;  %v3159_v51 = vpop.f32.mrb[58].mxu1 }
 0x7c2   :  { %v3086_v34 = vpop.f32.mrb[52].mxu0  ;;  %v14679_v35 = vpop.f32.mrb[59].mxu1 }
 0x7c3   :  { %v3383_v36 = vpack.c.bf16 %v3086_v34, %v3013_v38  ;;  %v14674_v45 = vpop.f32.mrb[53].mxu0 }
 0x7c5   :  { %14698 = vmatmul.mubr.msk.bf16.vlgmr.msra.gmra.mrb[24].mxu0 %vm367_vm2, %v3383_v36  ;;  %v3305_v37 = vpop.f32.mrb[60].mxu1 }
 0x7c6   :  { %v3232_v39 = vpop.f32.mrb[54].mxu0  ;;  %v14689_v40 = vpop.f32.mrb[61].mxu1 }
 0x7c7   :  { %v3384_v41 = vpack.c.bf16 %v3232_v39, %v3159_v51  ;;  %v14684_v42 = vpop.f32.mrb[55].mxu0 }
 0x7c9   :  { %14701 = vmatprep.mubr.msk.bf16.mxu0 %vm367_vm2, %v3384_v41 }
 0x7ca   :  { %v3378_v43 = vpop.f32.mrb[56].mxu0 }
 0x7cb   :  { %v3385_v44 = vpack.c.bf16 %v3378_v43, %v3305_v37  ;;  %v14694_v46 = vpop.f32.mrb[57].mxu0 }
 0x7cd   :  { %14702 = vmatmul.mubr.msk.bf16.gmra.mrb[28].mxu0 %vm367_vm2, %v3385_v44 }
 0x898   :  { %v14699_v49 = vpop.f32.mrb[24].mxu0 }
 0x899   :  { %v3441_v53 = vpop.f32.mrb[25].mxu0  ;;  %v15213_v54 = vadd.f32 %v14699_v49, %v13228_v48 }
 0x89a   :  { %v15214_v5 = vadd.f32 %v13228_v48, %v3441_v53  ;;  %v14700_v56 = vpop.f32.mrb[26].mxu0 }
 0x89b   :  { %v3444_v62 = vpop.f32.mrb[27].mxu0  ;;  %v15215_v0 = vadd.f32 %v14700_v56, %v13228_v48  ;;  %v3482_v17 = vadd.f32 %v15213_v54, %v71_v58 }
 0x89c   :  { %v15216_v1 = vadd.f32 %v13228_v48, %v3444_v62  ;;  %v3480_v9 = vadd.f32 %v15214_v5, %v69_v52 }
 0x89d   :  { %v3483_v8 = vadd.f32 %v15215_v0, %v72_v63  ;;  %v3496_v4 = vsel %vm113_vm0, %v3482_v17, 0.0 }
 0x89e   :  { %v3490_v11 = vsel %vm113_vm0, %v3480_v9, 0.0  ;;  %v3481_v14 = vadd.f32 %v15216_v1, %v70_v2 }
 0x89f   :  { %3491 = vadd.xlane.f32.xlu0 %v3490_v11  ;;  %v3499_v26 = vsel %vm113_vm0, %v3483_v8, 0.0 }
 0x8a0   :  { %v14703_v57 = vpop.f32.mrb[28].mxu0  ;;  %v3493_v15 = vsel %vm113_vm0, %v3481_v14, 0.0 }
 0x8a1   :  { %3494 = vadd.xlane.f32.xlu1 %v3493_v15  ;;  %v3457_v61 = vpop.f32.mrb[29].mxu0  ;;  %v15217_v20 = vadd.f32 %v14703_v57, %v13228_v48 }
 0x8a2   :  { %v15218_v21 = vadd.f32 %v13228_v48, %v3457_v61  ;;  %v14704_v16 = vpop.f32.mrb[30].mxu0  ;;  %v15283_v61 = vld [vmem:[%s18425_s10] ss:$16 sps:$4 sm:$0xff]  }
 0x8a3   :  { %v3460_v22 = vpop.f32.mrb[31].mxu0  ;;  %3497 = vadd.xlane.f32.xlu0 %v3496_v4  ;;  %v15219_v3 = vadd.f32 %v14704_v16, %v13228_v48  ;;  %v3486_v24 = vadd.f32 %v15217_v20, %v75_v59  ;;  %3710 = vmatpush1.bf16.msra.mxu1 %v15283_v61  ;;  %v15289_v59 = vld [vmem:[%s18425_s10 + $0x20] ss:$16 sps:$4 sm:$0xff]   ;;  %v15291_v20 = vld [vmem:[%s18425_s10 + $0x24] ss:$16 sps:$4 sm:$0xff]   ;;  %v15781_v4 = vmov 0  }
 0x8a4   :  { %v15220_v25 = vadd.f32 %v13228_v48, %v3460_v22  ;;  %v3484_v60 = vadd.f32 %v15218_v21, %v73_v55  ;;  %v15288_v55 = vld [vmem:[%s18425_s10 + $0xc] ss:$16 sps:$4 sm:$0xff]   ;;  %v15292_v21 = vld [vmem:[%s18425_s10 + $0x28] ss:$16 sps:$4 sm:$0xff]   ;;  %3711 = vmatprep.subr.bf16.mxu1 %v15291_v20  ;;  %3741 = vmatprep.mubr.bf16.mxu1 %v15781_v4  ;;  %v15296_v22 = vld [vmem:[%s18427_s12 + $0xc0] sm:$0xff]  }
 0x8a5   :  { %3500 = vadd.xlane.f32.xlu1 %v3499_v26  ;;  %v3487_v12 = vadd.f32 %v15219_v3, %v76_v13  ;;  %v3508_v27 = vsel %vm113_vm0, %v3486_v24, 0.0  ;;  %3782 = vmatprep.subr.bf16.mxu0 %v15288_v55  ;;  %v15294_v16 = vld [vmem:[%s18425_s10 + $0x2c] ss:$16 sps:$4 sm:$0xff]  }
 0x8a6   :  { %v3502_v7 = vsel %vm113_vm0, %v3484_v60, 0.0  ;;  %v3485_v23 = vadd.f32 %v15220_v25, %v74_v28  ;;  %3783 = vmatpush1.bf16.msra.mxu0 %v15286_v19  ;;  %3814 = vmatprep.mubr.bf16.mxu0 %v15781_v4  ;;  %v15295_v28 = vld [vmem:[%s18427_s12 + $0x40] sm:$0xff]   ;;  %v15301_v55 = vld [vmem:[%s18427_s12 + $0x8] sm:$0xff]   ;;  %v15303_v19 = vld [vmem:[%s18427_s12 + $0x50] sm:$0xff]  }
 0x8a7   :  { %3503 = vadd.xlane.f32.xlu0 %v3502_v7  ;;  %v3511_v29 = vsel %vm113_vm0, %v3487_v12, 0.0  ;;  %3784 = vmatprep.subr.bf16.mxu0 %v15294_v16  ;;  %v15302_v61 = vld [vmem:[%s18427_s12 + $0x88] sm:$0xff]   ;;  %v15304_v16 = vld [vmem:[%s18427_s12 + $0xd0] sm:$0xff]  }
 0x8a8   :  { %v3505_v47 = vsel %vm113_vm0, %v3485_v23, 0.0  ;;  %3712 = vmatpush1.bf16.msra.mxu1 %v15289_v59 }
 0x8a9   :  { %3506 = vadd.xlane.f32.xlu1 %v3505_v47  ;;  %13993 = vmatprep.subr.bf16.mxu1 %v15295_v28  ;;  %v15305_v28 = vld [vmem:[%s18427_s12 + $0x10] sm:$0xff]  }
 0x8aa   :  { %3785 = vmatpush1.bf16.msra.mxu0 %v15292_v21 }
 0x8ab   :  { %3509 = vadd.xlane.f32.xlu0 %v3508_v27  ;;  %14033 = vmatprep.subr.bf16.mxu0 %v15296_v22 }
 0x8ad   :  { %3512 = vadd.xlane.f32.xlu1 %v3511_v29 }
 0x92c   :  { %v3492_v38 = vpop.xlane.xlu0 %3491 }
 0x92d   :  { %v3515_v30 = vmul.f32 0.03125, %v3492_v38 }
 0x92e   :  { %v3495_v31 = vpop.xlane.xlu1 %3494 }
 0x92f   :  { %v16321_v32 = vsub.f32 %v3480_v9, %v3515_v30  ;;  %v3516_v33 = vmul.f32 0.03125, %v3495_v31 }
 0x930   :  { %v3498_v51 = vpop.xlane.xlu0 %3497 }
 0x931   :  { %v16323_v34 = vsub.f32 %v3481_v14, %v3516_v33  ;;  %v3517_v35 = vmul.f32 0.03125, %v3498_v51  ;;  %v3531_v36 = vmul.f32 %v16321_v32, %v16321_v32 }
 0x932   :  { %v3501_v45 = vpop.xlane.xlu1 %3500 }
 0x933   :  { %v16327_v37 = vsub.f32 %v3482_v17, %v3517_v35  ;;  %v3518_v39 = vmul.f32 0.03125, %v3501_v45  ;;  %v3539_v40 = vsel %vm113_vm0, %v3531_v36, 0.0  ;;  %v3532_v41 = vmul.f32 %v16323_v34, %v16323_v34 }
 0x934   :  { %3540 = vadd.xlane.f32.xlu0 %v3539_v40  ;;  %v3504_v42 = vpop.xlane.xlu0 %3503  ;;  %v16396_v40 = vld [vmem:[%s18429_s14] ss:$0 sm:$0xff] }
 0x935   :  { %v16332_v43 = vsub.f32 %v3483_v8, %v3518_v39  ;;  %v3519_v44 = vmul.f32 0.03125, %v3504_v42  ;;  %v3542_v46 = vsel %vm113_vm0, %v3532_v41, 0.0  ;;  %v3533_v48 = vmul.f32 %v16327_v37, %v16327_v37 }
 0x936   :  { %3543 = vadd.xlane.f32.xlu1 %v3542_v46  ;;  %v3507_v49 = vpop.xlane.xlu1 %3506 }
 0x937   :  { %v16337_v50 = vsub.f32 %v3484_v60, %v3519_v44  ;;  %v3520_v52 = vmul.f32 0.03125, %v3507_v49  ;;  %v3545_v53 = vsel %vm113_vm0, %v3533_v48, 0.0  ;;  %v3534_v54 = vmul.f32 %v16332_v43, %v16332_v43 }
 0x938   :  { %3546 = vadd.xlane.f32.xlu0 %v3545_v53  ;;  %v3510_v5 = vpop.xlane.xlu0 %3509 }
 0x939   :  { %v16342_v56 = vsub.f32 %v3485_v23, %v3520_v52  ;;  %v3521_v2 = vmul.f32 0.03125, %v3510_v5  ;;  %v3548_v6 = vsel %vm113_vm0, %v3534_v54, 0.0  ;;  %v3535_v58 = vmul.f32 %v16337_v50, %v16337_v50  ;;  %v16404_v54 = vld [vmem:[%s18430_s15] ss:$0 sm:$0xff] }
 0x93a   :  { %3549 = vadd.xlane.f32.xlu1 %v3548_v6  ;;  %v3513_v62 = vpop.xlane.xlu1 %3512 }
 0x93b   :  { %v16347_v0 = vsub.f32 %v3486_v24, %v3521_v2  ;;  %v3522_v1 = vmul.f32 0.03125, %v3513_v62  ;;  %v3551_v9 = vsel %vm113_vm0, %v3535_v58, 0.0  ;;  %v3536_v63 = vmul.f32 %v16342_v56, %v16342_v56 }
 0x93c   :  { %3552 = vadd.xlane.f32.xlu0 %v3551_v9 }
 0x93d   :  { %v16352_v11 = vsub.f32 %v3487_v12, %v3522_v1  ;;  %v3554_v14 = vsel %vm113_vm0, %v3536_v63, 0.0  ;;  %v3537_v17 = vmul.f32 %v16347_v0, %v16347_v0  ;;  %v15297_v63 = vld [vmem:[%s18427_s12] sm:$0xff]  }
 0x93e   :  { %3555 = vadd.xlane.f32.xlu1 %v3554_v14 }
 0x93f   :  { %v3557_v57 = vsel %vm113_vm0, %v3537_v17, 0.0  ;;  %v3538_v15 = vmul.f32 %v16352_v11, %v16352_v11  ;;  %v15298_v17 = vld [vmem:[%s18427_s12 + $0x80] sm:$0xff]  }
 0x940   :  { %3558 = vadd.xlane.f32.xlu0 %v3557_v57  ;;  %v15300_v57 = vld [vmem:[%s18427_s12 + $0xc8] sm:$0xff]  }
 0x941   :  { %v3560_v8 = vsel %vm113_vm0, %v3538_v15, 0.0 }
 0x942   :  { %3561 = vadd.xlane.f32.xlu1 %v3560_v8 }
 0x9c1   :  { %v3541_v13 = vpop.xlane.xlu0 %3540 }
 0x9c2   :  { %v3563_v3 = vmul.f32 0.03125, %v3541_v13  ;;  %v15307_v13 = vld [vmem:[%s18427_s12 + $0x58] sm:$0xff]  }
 0x9c3   :  { %v3544_v25 = vpop.xlane.xlu1 %3543 }
 0x9c4   :  { %v3571_v26 = vadd.f32 1e-05, %v3563_v3  ;;  %v3564_v60 = vmul.f32 0.03125, %v3544_v25  ;;  %v15308_v25 = vld [vmem:[%s18427_s12 + $0xd8] sm:$0xff]  }
 0x9c5   :  { %v3547_v7 = vpop.xlane.xlu0 %3546 }
 0x9c6   :  { %15511 = vrsqrt.f32 %v3571_v26  ;;  %v3572_v23 = vadd.f32 1e-05, %v3564_v60  ;;  %v3565_v24 = vmul.f32 0.03125, %v3547_v7 }
 0x9c7   :  { %v3550_v47 = vpop.xlane.xlu1 %3549 }
 0x9c8   :  { %15513 = vrsqrt.f32 %v3572_v23  ;;  %v3573_v12 = vadd.f32 1e-05, %v3565_v24  ;;  %v3566_v27 = vmul.f32 0.03125, %v3550_v47  ;;  %v15309_v23 = vld [vmem:[%s18427_s12 + $0x18] sm:$0xff]   ;;  %v15311_v47 = vld [vmem:[%s18427_s12 + $0x60] sm:$0xff]  }
 0x9c9   :  { %v3553_v29 = vpop.xlane.xlu0 %3552  ;;  %v15310_v24 = vld [vmem:[%s18427_s12 + $0x98] sm:$0xff]  }
 0x9ca   :  { %15515 = vrsqrt.f32 %v3573_v12  ;;  %v3574_v38 = vadd.f32 1e-05, %v3566_v27  ;;  %v3567_v30 = vmul.f32 0.03125, %v3553_v29 }
 0x9cb   :  { %v3556_v31 = vpop.xlane.xlu1 %3555 }
 0x9cc   :  { %15517 = vrsqrt.f32 %v3574_v38  ;;  %v3568_v33 = vmul.f32 0.03125, %v3556_v31  ;;  %v3575_v51 = vadd.f32 1e-05, %v3567_v30  ;;  %v15312_v38 = vld [vmem:[%s18427_s12 + $0xe0] sm:$0xff]   ;;  %v15315_v31 = vld [vmem:[%s18427_s12 + $0x68] sm:$0xff]  }
 0x9cd   :  { %v3559_v36 = vpop.xlane.xlu0 %3558  ;;  %v15313_v30 = vld [vmem:[%s18427_s12 + $0x20] sm:$0xff]  }
 0x9ce   :  { %v3576_v35 = vadd.f32 1e-05, %v3568_v33  ;;  %v3569_v46 = vmul.f32 0.03125, %v3559_v36 }
 0x9cf   :  { %v3562_v45 = vpop.xlane.xlu1 %3561 }
 0x9d0   :  { %v15512_v39 = vpop.eup %15511  ;;  %15519 = vrsqrt.f32 %v3576_v35  ;;  %v3570_v41 = vmul.f32 0.03125, %v3562_v45  ;;  %v3577_v6 = vadd.f32 1e-05, %v3569_v46  ;;  %v15322_v46 = vld [vmem:[%s18427_s12 + $0xb0] sm:$0xff]  }
 0x9d1   :  { %v3587_v42 = vmul.f32 %v15512_v39, %v16321_v32  ;;  %15521 = vrsqrt.f32 %v3575_v51  ;;  %v15316_v51 = vld [vmem:[%s18427_s12 + $0xe8] sm:$0xff]  }
 0x9d2   :  { %v15514_v44 = vpop.eup %15513  ;;  %v3578_v53 = vadd.f32 1e-05, %v3570_v41  ;;  %v15317_v39 = vld [vmem:[%s18427_s12 + $0x28] sm:$0xff]   ;;  %v15319_v41 = vld [vmem:[%s18427_s12 + $0x70] sm:$0xff]  }
 0x9d3   :  { %v3601_v48 = vmul.f32 %v16396_v40, %v3587_v42  ;;  %v3588_v49 = vmul.f32 %v15514_v44, %v16323_v34  ;;  %v15320_v42 = vld [vmem:[%s18427_s12 + $0xf0] sm:$0xff]  }
 0x9d4   :  { %v15516_v52 = vpop.eup %15515  ;;  %15523 = vrsqrt.f32 %v3578_v53  ;;  %v15321_v44 = vld [vmem:[%s18427_s12 + $0x30] sm:$0xff]   ;;  %v15326_v53 = vld [vmem:[%s18427_s12 + $0xb8] sm:$0xff]  }
 0x9d5   :  { %v3602_v5 = vmul.f32 %v16396_v40, %v3588_v49  ;;  %v16408_v32 = vadd.f32 %v16404_v54, %v3601_v48  ;;  %v3589_v62 = vmul.f32 %v15516_v52, %v16327_v37  ;;  %15525 = vrsqrt.f32 %v3577_v6  ;;  %v15299_v37 = vld [vmem:[%s18427_s12 + $0x48] sm:$0xff]   ;;  %v15323_v48 = vld [vmem:[%s18427_s12 + $0x78] sm:$0xff]  }
 0x9d6   :  { %v15518_v2 = vpop.eup %15517  ;;  %v15324_v49 = vld [vmem:[%s18427_s12 + $0xf8] sm:$0xff]  }
 0x9d7   :  { %v16411_v58 = vadd.f32 %v16404_v54, %v3602_v5  ;;  %v3590_v34 = vmul.f32 %v15518_v2, %v16332_v43  ;;  %v3603_v43 = vmul.f32 %v16396_v40, %v3589_v62  ;;  %v15325_v52 = vld [vmem:[%s18427_s12 + $0x38] sm:$0xff]   ;;  %v3635_v62 = vld [vmem:[%s18426_s11] sm:$0xf] }
 0x9d9   :  { %v3623_v1 = vpack.c.bf16 %v16411_v58, %v16408_v32  ;;  %v3604_v9 = vmul.f32 %v16396_v40, %v3590_v34  ;;  %v16449_v59 = vadd.f32 %v16404_v54, %v3603_v43 }
 0x9da   :  { %v15520_v14 = vpop.eup %15519 }
 0x9db   :  { %13306 = vmatmul.mubr.msk.bf16.vlgmr.msra.gmra.mrb[64].mxu1 %vm113_vm0, %v3623_v1  ;;  %13310 = vmatmul.mubr.msk.bf16.vlgmr.msra.gmra.mrb[60].mxu0 %vm113_vm0, %v3623_v1  ;;  %v15522_v15 = vpop.eup %15521  ;;  %v16436_v8 = vadd.f32 %v16404_v54, %v3604_v9  ;;  %v3592_v18 = vmul.f32 %v15520_v14, %v16342_v56 }
 0x9dc   :  { %3751 = vmatprep.mubr.bf16.mxu1 %v15781_v4  ;;  %3824 = vmatprep.mubr.bf16.mxu0 %v15781_v4  ;;  %v3591_v56 = vmul.f32 %v15522_v15, %v16337_v50  ;;  %v15306_v50 = vld [vmem:[%s18427_s12 + $0x90] sm:$0xff]  }
 0x9dd   :  { %13994 = vmatpush3.bf16.msra.mxu1 %v15297_v63  ;;  %14034 = vmatpush3.bf16.msra.mxu0 %v15298_v17  ;;  %v3624_v20 = vpack.c.bf16 %v16436_v8, %v16449_v59  ;;  %v3606_v21 = vmul.f32 %v16396_v40, %v3592_v18 }
 0x9de   :  { %13995 = vmatprep.subr.bf16.mxu1 %v15299_v37  ;;  %14035 = vmatprep.subr.bf16.mxu0 %v15300_v57  ;;  %v15524_v22 = vpop.eup %15523  ;;  %v3605_v3 = vmul.f32 %v16396_v40, %v3591_v56 }
 0x9df   :  { %v15526_v26 = vpop.eup %15525  ;;  %v16476_v60 = vadd.f32 %v16404_v54, %v3606_v21  ;;  %v3594_v7 = vmul.f32 %v15524_v22, %v16352_v11 }
 0x9e0   :  { %v16489_v12 = vadd.f32 %v16404_v54, %v3605_v3  ;;  %v3593_v11 = vmul.f32 %v15526_v26, %v16347_v0  ;;  %v15314_v0 = vld [vmem:[%s18427_s12 + $0xa0] sm:$0xff]  }
 0x9e1   :  { %13996 = vmatpush3.bf16.msra.mxu1 %v15301_v55  ;;  %14036 = vmatpush3.bf16.msra.mxu0 %v15302_v61  ;;  %v3608_v29 = vmul.f32 %v16396_v40, %v3594_v7 }
 0x9e2   :  { %13997 = vmatprep.subr.bf16.mxu1 %v15303_v19  ;;  %14037 = vmatprep.subr.bf16.mxu0 %v15304_v16  ;;  %v3625_v27 = vpack.c.bf16 %v16476_v60, %v16489_v12  ;;  %v3607_v33 = vmul.f32 %v16396_v40, %v3593_v11  ;;  %v15318_v40 = vld [vmem:[%s18427_s12 + $0xa8] sm:$0xff]  }
 0x9e3   :  { %13307 = vmatmul.mubr.msk.bf16.gmra.mrb[68].mxu1 %vm113_vm0, %v3624_v20  ;;  %13311 = vmatmul.mubr.msk.bf16.gmra.mrb[64].mxu0 %vm113_vm0, %v3624_v20  ;;  %v16516_v35 = vadd.f32 %v16404_v54, %v3608_v29 }
 0x9e4   :  { %3761 = vmatprep.mubr.bf16.mxu1 %v15781_v4  ;;  %3834 = vmatprep.mubr.bf16.mxu0 %v15781_v4  ;;  %v16519_v36 = vadd.f32 %v16404_v54, %v3607_v33  ;;  %v3637_v54 = vlaneseq }
 0x9e5   :  { %13998 = vmatpush3.bf16.msra.mxu1 %v15305_v28  ;;  %14038 = vmatpush3.bf16.msra.mxu0 %v15306_v50 }
 0x9e6   :  { %13999 = vmatprep.subr.bf16.mxu1 %v15307_v13  ;;  %14039 = vmatprep.subr.bf16.mxu0 %v15308_v25  ;;  %v3626_v45 = vpack.c.bf16 %v16516_v35, %v16519_v36  ;;  %v3638_v5 = vshrl.u32 %v3637_v54, 7 }
 0x9e8   :  { %v16555_v2 = vsub.s32 0, %v3638_v5  ;;  %v16557_v6 = vsub.s32 2, %v3638_v5  ;;  %v16562_v34 = vsub.s32 1, %v3638_v5  ;;  %v16564_v1 = vsub.s32 3, %v3638_v5 }
 0x9e9   :  { %14000 = vmatpush3.bf16.msra.mxu1 %v15309_v23  ;;  %14040 = vmatpush3.bf16.msra.mxu0 %v15310_v24 }
 0x9ea   :  { %14001 = vmatprep.subr.bf16.mxu1 %v15311_v47  ;;  %14041 = vmatprep.subr.bf16.mxu0 %v15312_v38  ;;  %v16567_v9 = vrot.slane %v3635_v62, %v16555_v2  ;;  %v16570_v63 = vrot.slane %v3635_v62, %v16557_v6  ;;  %v16573_v14 = vrot.slane %v3635_v62, %v16562_v34 }
 0x9eb   :  { %13308 = vmatmul.mubr.msk.bf16.gmra.mrb[72].mxu1 %vm113_vm0, %v3625_v27  ;;  %13312 = vmatmul.mubr.msk.bf16.gmra.mrb[68].mxu0 %vm113_vm0, %v3625_v27  ;;  %v16576_v17 = vrot.slane %v3635_v62, %v16564_v1 }
 0x9ec   :  { %3771 = vmatprep.mubr.bf16.mxu1 %v15781_v4  ;;  %3844 = vmatprep.mubr.bf16.mxu0 %v15781_v4 }
 0x9ed   :  { %14002 = vmatpush3.bf16.msra.mxu1 %v15313_v30  ;;  %14042 = vmatpush3.bf16.msra.mxu0 %v15314_v0 }
 0x9ee   :  { %14003 = vmatprep.subr.bf16.mxu1 %v15315_v31  ;;  %14043 = vmatprep.subr.bf16.mxu0 %v15316_v51 }
 0x9f1   :  { %14004 = vmatpush3.bf16.msra.mxu1 %v15317_v39  ;;  %14044 = vmatpush3.bf16.msra.mxu0 %v15318_v40 }
 0x9f2   :  { %14005 = vmatprep.subr.bf16.mxu1 %v15319_v41  ;;  %14045 = vmatprep.subr.bf16.mxu0 %v15320_v42 }
 0x9f3   :  { %13309 = vmatmul.mubr.msk.bf16.gmra.mrb[76].mxu1 %vm113_vm0, %v3626_v45  ;;  %13313 = vmatmul.mubr.msk.bf16.gmra.mrb[72].mxu0 %vm113_vm0, %v3626_v45 }
 0x9f5   :  { %14006 = vmatpush3.bf16.msra.mxu1 %v15321_v44  ;;  %14046 = vmatpush3.bf16.msra.mxu0 %v15322_v46 }
 0x9f6   :  { %14007 = vmatprep.subr.bf16.mxu1 %v15323_v48  ;;  %14047 = vmatprep.subr.bf16.mxu0 %v15324_v49 }
 0x9f9   :  { %14008 = vmatpush3.bf16.msra.mxu1 %v15325_v52  ;;  %14048 = vmatpush3.bf16.msra.mxu0 %v15326_v53 }
 0xaae   :  { %v3743_v37 = vpop.f32.mrb[64].mxu1  ;;  %v3816_v43 = vpop.f32.mrb[60].mxu0 }
 0xaaf   :  { %v3744_v57 = vadd.f32 %v3743_v37, %v16567_v9  ;;  %v3817_v15 = vadd.f32 %v3816_v43, %v16570_v63  ;;  %v3745_v18 = vpop.f32.mrb[65].mxu1  ;;  %v3818_v55 = vpop.f32.mrb[61].mxu0 }
 0xab0   :  { %v3746_v61 = vadd.f32 %v3745_v18, %v16573_v14  ;;  %v3819_v19 = vadd.f32 %v3818_v55, %v16576_v17  ;;  %v3747_v56 = vpop.f32.mrb[66].mxu1  ;;  %v3820_v20 = vpop.f32.mrb[62].mxu0 }
 0xab1   :  { %v3748_v21 = vadd.f32 %v3747_v56, %v16567_v9  ;;  %v3821_v16 = vadd.f32 %v3820_v20, %v16570_v63  ;;  %v3749_v28 = vpop.f32.mrb[67].mxu1  ;;  %v3822_v22 = vpop.f32.mrb[63].mxu0  ;;  %v3855_v3 = vmax.f32 %v3744_v57, 0.0  ;;  %v3857_v25 = vmax.f32 %v3817_v15, 0.0 }
 0xab2   :  { %v3750_v50 = vadd.f32 %v3749_v28, %v16573_v14  ;;  %v3823_v13 = vadd.f32 %v3822_v22, %v16576_v17  ;;  %v3856_v23 = vmax.f32 %v3746_v61, 0.0  ;;  %v3858_v24 = vmax.f32 %v3819_v19, 0.0 }
 0xab3   :  { %v3859_v26 = vmax.f32 %v3748_v21, 0.0  ;;  %v3861_v7 = vmax.f32 %v3821_v16, 0.0 }
 0xab4   :  { %v3860_v47 = vmax.f32 %v3750_v50, 0.0  ;;  %v3862_v11 = vmax.f32 %v3823_v13, 0.0 }
 0xab5   :  { %v3887_v27 = vpack.c.bf16 %v3859_v26, %v3855_v3  ;;  %v3889_v29 = vpack.c.bf16 %v3861_v7, %v3857_v25 }
 0xab6   :  { %v3888_v38 = vpack.c.bf16 %v3860_v47, %v3856_v23  ;;  %v3890_v30 = vpack.c.bf16 %v3862_v11, %v3858_v24  ;;  %v3753_v0 = vpop.f32.mrb[68].mxu1  ;;  %v3826_v31 = vpop.f32.mrb[64].mxu0 }
 0xab7   :  { %v3754_v33 = vadd.f32 %v3753_v0, %v16567_v9  ;;  %v3827_v51 = vadd.f32 %v3826_v31, %v16570_v63  ;;  %v3755_v45 = vpop.f32.mrb[69].mxu1  ;;  %v3828_v39 = vpop.f32.mrb[65].mxu0 }
 0xab8   :  { %v3756_v40 = vadd.f32 %v3755_v45, %v16573_v14  ;;  %v3829_v41 = vadd.f32 %v3828_v39, %v16576_v17  ;;  %v3757_v42 = vpop.f32.mrb[70].mxu1  ;;  %v3830_v44 = vpop.f32.mrb[66].mxu0  ;;  %4198 = vmatprep.mubr.bf16.mxu1 %v3888_v38  ;;  %4263 = vmatprep.mubr.bf16.mxu0 %v3890_v30 }
 0xab9   :  { %v3758_v46 = vadd.f32 %v3757_v42, %v16567_v9  ;;  %v3831_v48 = vadd.f32 %v3830_v44, %v16570_v63  ;;  %v3759_v49 = vpop.f32.mrb[71].mxu1  ;;  %v3832_v52 = vpop.f32.mrb[67].mxu0  ;;  %4199 = vmatmul.mubr.bf16.vlgmr.msra.gmra.mrb[80].mxu1 %v3887_v27  ;;  %4264 = vmatmul.mubr.bf16.vlgmr.msra.gmra.mrb[76].mxu0 %v3889_v29  ;;  %v3863_v5 = vmax.f32 %v3754_v33, 0.0  ;;  %v3865_v62 = vmax.f32 %v3827_v51, 0.0 }
 0xaba   :  { %v3760_v53 = vadd.f32 %v3759_v49, %v16573_v14  ;;  %v3833_v54 = vadd.f32 %v3832_v52, %v16576_v17  ;;  %v3864_v57 = vmax.f32 %v3756_v40, 0.0  ;;  %v3866_v15 = vmax.f32 %v3829_v41, 0.0 }
 0xabb   :  { %v3867_v37 = vmax.f32 %v3758_v46, 0.0  ;;  %v3869_v43 = vmax.f32 %v3831_v48, 0.0 }
 0xabc   :  { %v3868_v18 = vmax.f32 %v3760_v53, 0.0  ;;  %v3870_v55 = vmax.f32 %v3833_v54, 0.0 }
 0xabd   :  { %v3891_v61 = vpack.c.bf16 %v3867_v37, %v3863_v5  ;;  %v3893_v19 = vpack.c.bf16 %v3869_v43, %v3865_v62 }
 0xabe   :  { %v3892_v56 = vpack.c.bf16 %v3868_v18, %v3864_v57  ;;  %v3894_v20 = vpack.c.bf16 %v3870_v55, %v3866_v15  ;;  %v3763_v21 = vpop.f32.mrb[72].mxu1  ;;  %v3836_v16 = vpop.f32.mrb[68].mxu0 }
 0xabf   :  { %v3764_v28 = vadd.f32 %v3763_v21, %v16567_v9  ;;  %v3837_v22 = vadd.f32 %v3836_v16, %v16570_v63  ;;  %v3765_v50 = vpop.f32.mrb[73].mxu1  ;;  %v3838_v13 = vpop.f32.mrb[69].mxu0 }
 0xac0   :  { %v3766_v3 = vadd.f32 %v3765_v50, %v16573_v14  ;;  %v3839_v25 = vadd.f32 %v3838_v13, %v16576_v17  ;;  %v3767_v26 = vpop.f32.mrb[74].mxu1  ;;  %v3840_v7 = vpop.f32.mrb[70].mxu0  ;;  %4206 = vmatprep.mubr.bf16.mxu1 %v3892_v56  ;;  %4271 = vmatprep.mubr.bf16.mxu0 %v3894_v20 }
 0xac1   :  { %v3768_v23 = vadd.f32 %v3767_v26, %v16567_v9  ;;  %v3841_v24 = vadd.f32 %v3840_v7, %v16570_v63  ;;  %v3769_v47 = vpop.f32.mrb[75].mxu1  ;;  %v3842_v11 = vpop.f32.mrb[71].mxu0  ;;  %4207 = vmatmul.mubr.bf16.gmra.mrb[84].mxu1 %v3891_v61  ;;  %4272 = vmatmul.mubr.bf16.gmra.mrb[80].mxu0 %v3893_v19  ;;  %v3871_v38 = vmax.f32 %v3764_v28, 0.0  ;;  %v3873_v30 = vmax.f32 %v3837_v22, 0.0 }
 0xac2   :  { %v3770_v27 = vadd.f32 %v3769_v47, %v16573_v14  ;;  %v3843_v29 = vadd.f32 %v3842_v11, %v16576_v17  ;;  %v3872_v33 = vmax.f32 %v3766_v3, 0.0  ;;  %v3874_v51 = vmax.f32 %v3839_v25, 0.0 }
 0xac3   :  { %v3875_v0 = vmax.f32 %v3768_v23, 0.0  ;;  %v3877_v31 = vmax.f32 %v3841_v24, 0.0 }
 0xac4   :  { %v3876_v45 = vmax.f32 %v3770_v27, 0.0  ;;  %v3878_v39 = vmax.f32 %v3843_v29, 0.0 }
 0xac5   :  { %v3895_v40 = vpack.c.bf16 %v3875_v0, %v3871_v38  ;;  %v3897_v41 = vpack.c.bf16 %v3877_v31, %v3873_v30 }
 0xac6   :  { %v3896_v42 = vpack.c.bf16 %v3876_v45, %v3872_v33  ;;  %v3898_v44 = vpack.c.bf16 %v3878_v39, %v3874_v51  ;;  %v3773_v46 = vpop.f32.mrb[76].mxu1  ;;  %v3846_v48 = vpop.f32.mrb[72].mxu0 }
 0xac7   :  { %v3774_v49 = vadd.f32 %v3773_v46, %v16567_v9  ;;  %v3847_v52 = vadd.f32 %v3846_v48, %v16570_v63  ;;  %v3775_v53 = vpop.f32.mrb[77].mxu1  ;;  %v3848_v54 = vpop.f32.mrb[73].mxu0 }
 0xac8   :  { %v3776_v5 = vadd.f32 %v3775_v53, %v16573_v14  ;;  %v3849_v62 = vadd.f32 %v3848_v54, %v16576_v17  ;;  %v3777_v37 = vpop.f32.mrb[78].mxu1  ;;  %v3850_v43 = vpop.f32.mrb[74].mxu0  ;;  %4214 = vmatprep.mubr.bf16.mxu1 %v3896_v42  ;;  %4279 = vmatprep.mubr.bf16.mxu0 %v3898_v44 }
 0xac9   :  { %v3778_v57 = vadd.f32 %v3777_v37, %v16567_v9  ;;  %v3851_v15 = vadd.f32 %v3850_v43, %v16570_v63  ;;  %v3779_v18 = vpop.f32.mrb[79].mxu1  ;;  %v3852_v55 = vpop.f32.mrb[75].mxu0  ;;  %4215 = vmatmul.mubr.bf16.gmra.mrb[88].mxu1 %v3895_v40  ;;  %4280 = vmatmul.mubr.bf16.gmra.mrb[84].mxu0 %v3897_v41  ;;  %v3879_v56 = vmax.f32 %v3774_v49, 0.0  ;;  %v3881_v20 = vmax.f32 %v3847_v52, 0.0 }
 0xaca   :  { %v3780_v61 = vadd.f32 %v3779_v18, %v16573_v14  ;;  %v3853_v19 = vadd.f32 %v3852_v55, %v16576_v17  ;;  %v3880_v28 = vmax.f32 %v3776_v5, 0.0  ;;  %v3882_v22 = vmax.f32 %v3849_v62, 0.0  ;;  %v16613_v17 = vld [vmem:[%s18428_s13] ss:$0 sm:$0xff] }
 0xacb   :  { %v3883_v21 = vmax.f32 %v3778_v57, 0.0  ;;  %v3885_v16 = vmax.f32 %v3851_v15, 0.0 }
 0xacc   :  { %v3884_v50 = vmax.f32 %v3780_v61, 0.0  ;;  %v3886_v13 = vmax.f32 %v3853_v19, 0.0 }
 0xacd   :  { %v3899_v3 = vpack.c.bf16 %v3883_v21, %v3879_v56  ;;  %v3901_v9 = vpack.c.bf16 %v3885_v16, %v3881_v20 }
 0xace   :  { %v3900_v25 = vpack.c.bf16 %v3884_v50, %v3880_v28  ;;  %v3902_v63 = vpack.c.bf16 %v3886_v13, %v3882_v22 }
 0xad0   :  { %4222 = vmatprep.mubr.bf16.mxu1 %v3900_v25  ;;  %4287 = vmatprep.mubr.bf16.mxu0 %v3902_v63 }
 0xad1   :  { %4223 = vmatmul.mubr.bf16.gmra.mrb[92].mxu1 %v3899_v3  ;;  %4288 = vmatmul.mubr.bf16.gmra.mrb[88].mxu0 %v3901_v9 }
 0xb8c   :  { %v14009_v26 = vpop.f32.mrb[80].mxu1  ;;  %v14049_v14 = vpop.f32.mrb[76].mxu0 }
 0xb8d   :  { %v14010_v7 = vpop.f32.mrb[81].mxu1  ;;  %v14050_v23 = vpop.f32.mrb[77].mxu0 }
 0xb8e   :  { %v14011_v24 = vadd.f32 %v14010_v7, %v14009_v26  ;;  %v14051_v47 = vadd.f32 %v14050_v23, %v14049_v14  ;;  %v14012_v11 = vpop.f32.mrb[82].mxu1  ;;  %v14052_v27 = vpop.f32.mrb[78].mxu0 }
 0xb8f   :  { %v14013_v29 = vpop.f32.mrb[83].mxu1  ;;  %v14053_v38 = vpop.f32.mrb[79].mxu0 }
 0xb90   :  { %v4201_v30 = vadd.f32 %v14011_v24, %v16613_v17  ;;  %v14014_v0 = vadd.f32 %v14013_v29, %v14012_v11  ;;  %v14054_v31 = vadd.f32 %v14053_v38, %v14052_v27 }
 0xb92   :  { %v4266_v33 = vadd.f32 %v14051_v47, %v4201_v30  ;;  %v4204_v51 = vadd.f32 %v14014_v0, %v16613_v17 }
 0xb94   :  { %v4269_v45 = vadd.f32 %v14054_v31, %v4204_v51  ;;  %v14015_v39 = vpop.f32.mrb[84].mxu1  ;;  %v14055_v40 = vpop.f32.mrb[80].mxu0  ;;  %v16618_v41 = vadd.f32 %v4266_v33, %v16408_v32 }
 0xb95   :  { %v14016_v42 = vpop.f32.mrb[85].mxu1  ;;  %v14056_v44 = vpop.f32.mrb[81].mxu0 }
 0xb96   :  { %v14017_v46 = vadd.f32 %v14016_v42, %v14015_v39  ;;  %v14057_v48 = vadd.f32 %v14056_v44, %v14055_v40  ;;  %v14018_v49 = vpop.f32.mrb[86].mxu1  ;;  %v14058_v52 = vpop.f32.mrb[82].mxu0  ;;  %v4306_v53 = vsel %vm113_vm0, %v16618_v41, 0.0  ;;  %v16623_v54 = vadd.f32 %v4269_v45, %v16411_v58 }
 0xb97   :  { %v14019_v5 = vpop.f32.mrb[87].mxu1  ;;  %v14059_v62 = vpop.f32.mrb[83].mxu0  ;;  %4307 = vadd.xlane.f32.xlu0 %v4306_v53 }
 0xb98   :  { %v4209_v37 = vadd.f32 %v14017_v46, %v16613_v17  ;;  %v14020_v43 = vadd.f32 %v14019_v5, %v14018_v49  ;;  %v14060_v32 = vadd.f32 %v14059_v62, %v14058_v52  ;;  %v4309_v57 = vsel %vm113_vm0, %v16623_v54, 0.0 }
 0xb99   :  { %4310 = vadd.xlane.f32.xlu1 %v4309_v57 }
 0xb9a   :  { %v4274_v15 = vadd.f32 %v14057_v48, %v4209_v37  ;;  %v4212_v18 = vadd.f32 %v14020_v43, %v16613_v17 }
 0xb9c   :  { %v4277_v55 = vadd.f32 %v14060_v32, %v4212_v18  ;;  %v14021_v61 = vpop.f32.mrb[88].mxu1  ;;  %v14061_v19 = vpop.f32.mrb[84].mxu0  ;;  %v16630_v58 = vadd.f32 %v4274_v15, %v16449_v59 }
 0xb9d   :  { %v14022_v56 = vpop.f32.mrb[89].mxu1  ;;  %v14062_v20 = vpop.f32.mrb[85].mxu0 }
 0xb9e   :  { %v14023_v21 = vadd.f32 %v14022_v56, %v14021_v61  ;;  %v14063_v16 = vadd.f32 %v14062_v20, %v14061_v19  ;;  %v14024_v28 = vpop.f32.mrb[90].mxu1  ;;  %v14064_v22 = vpop.f32.mrb[86].mxu0  ;;  %v4312_v50 = vsel %vm113_vm0, %v16630_v58, 0.0  ;;  %v4299_v13 = vadd.f32 %v4277_v55, %v16436_v8 }
 0xb9f   :  { %v14025_v3 = vpop.f32.mrb[91].mxu1  ;;  %v14065_v9 = vpop.f32.mrb[87].mxu0  ;;  %4313 = vadd.xlane.f32.xlu0 %v4312_v50 }
 0xba0   :  { %v4217_v25 = vadd.f32 %v14023_v21, %v16613_v17  ;;  %v14026_v63 = vadd.f32 %v14025_v3, %v14024_v28  ;;  %v14066_v26 = vadd.f32 %v14065_v9, %v14064_v22  ;;  %v4315_v59 = vsel %vm113_vm0, %v4299_v13, 0.0 }
 0xba1   :  { %4316 = vadd.xlane.f32.xlu1 %v4315_v59 }
 0xba2   :  { %v4282_v14 = vadd.f32 %v14063_v16, %v4217_v25  ;;  %v4220_v7 = vadd.f32 %v14026_v63, %v16613_v17 }
 0xba4   :  { %v4285_v23 = vadd.f32 %v14066_v26, %v4220_v7  ;;  %v14027_v24 = vpop.f32.mrb[92].mxu1  ;;  %v14067_v47 = vpop.f32.mrb[88].mxu0  ;;  %v4300_v11 = vadd.f32 %v4282_v14, %v16489_v12 }
 0xba5   :  { %v14028_v27 = vpop.f32.mrb[93].mxu1  ;;  %v14068_v8 = vpop.f32.mrb[89].mxu0 }
 0xba6   :  { %v14029_v29 = vadd.f32 %v14028_v27, %v14027_v24  ;;  %v14069_v38 = vadd.f32 %v14068_v8, %v14067_v47  ;;  %v14030_v30 = vpop.f32.mrb[94].mxu1  ;;  %v14070_v0 = vpop.f32.mrb[90].mxu0  ;;  %v4318_v31 = vsel %vm113_vm0, %v4300_v11, 0.0  ;;  %v4301_v33 = vadd.f32 %v4285_v23, %v16476_v60 }
 0xba7   :  { %v14071_v51 = vpop.f32.mrb[91].mxu0  ;;  %4319 = vadd.xlane.f32.xlu0 %v4318_v31  ;;  %v14031_v45 = vpop.f32.mrb[95].mxu1  ;;  %v15330_v31 = vld [vmem:[%s18418_s3 + $0x28] sm:$0xff]  }
 0xba8   :  { %v4225_v39 = vadd.f32 %v14029_v29, %v16613_v17  ;;  %v14072_v40 = vadd.f32 %v14071_v51, %v14070_v0  ;;  %v14032_v42 = vadd.f32 %v14031_v45, %v14030_v30  ;;  %v4321_v44 = vsel %vm113_vm0, %v4301_v33, 0.0  ;;  %v15328_v30 = vld [vmem:[%s18440_s29 + $0x20] sm:$0xff]   ;;  %v15329_v0 = vld [vmem:[%s18440_s29 + $0x28] sm:$0xff]  }
 0xba9   :  { %4322 = vadd.xlane.f32.xlu1 %v4321_v44  ;;  %14705 = vmatprep.subr.bf16.mxu1 %v15328_v30 }
 0xbaa   :  { %v4290_v12 = vadd.f32 %v14069_v38, %v4225_v39  ;;  %v4228_v46 = vadd.f32 %v14032_v42, %v16613_v17  ;;  %v15327_v38 = vld [vmem:[%s18418_s3 + $0x20] sm:$0xff]   ;;  %14706 = vmatpush3.bf16.msra.mxu1 %v15328_v30 }
 0xbab   :  { %14717 = vmatprep.subr.bf16.mxu0 %v15327_v38  ;;  %14707 = vmatprep.subr.bf16.mxu1 %v15329_v0 }
 0xbac   :  { %v4302_v48 = vadd.f32 %v4290_v12, %v16519_v36  ;;  %v4293_v49 = vadd.f32 %v14072_v40, %v4228_v46  ;;  %14718 = vmatpush3.bf16.msra.mxu0 %v15327_v38 }
 0xbad   :  { %14719 = vmatprep.subr.bf16.mxu0 %v15330_v31 }
 0xbae   :  { %v4324_v52 = vsel %vm113_vm0, %v4302_v48, 0.0  ;;  %v4303_v60 = vadd.f32 %v4293_v49, %v16516_v35  ;;  %14708 = vmatpush3.bf16.msra.mxu1 %v15329_v0 }
 0xbaf   :  { %4325 = vadd.xlane.f32.xlu0 %v4324_v52 }
 0xbb0   :  { %v4327_v53 = vsel %vm113_vm0, %v4303_v60, 0.0  ;;  %14720 = vmatpush3.bf16.msra.mxu0 %v15330_v31 }
 0xbb1   :  { %4328 = vadd.xlane.f32.xlu1 %v4327_v53  ;;  %14741 = vmatprep.subr.mxu0 %v15779_v10 }
 0xc24   :  { %v4308_v5 = vpop.xlane.xlu0 %4307 }
 0xc25   :  { %v4330_v62 = vmul.f32 0.03125, %v4308_v5  ;;  %v13347_v5 = vld [vmem:[%s18431_s16] ss:$0 sm:$0xff] }
 0xc26   :  { %v4311_v37 = vpop.xlane.xlu1 %4310 }
 0xc27   :  { %v16649_v43 = vsub.f32 %v16618_v41, %v4330_v62  ;;  %v4331_v32 = vmul.f32 0.03125, %v4311_v37 }
 0xc29   :  { %v16652_v17 = vsub.f32 %v16623_v54, %v4331_v32  ;;  %v4346_v36 = vmul.f32 %v16649_v43, %v16649_v43 }
 0xc2b   :  { %v4354_v57 = vsel %vm113_vm0, %v4346_v36, 0.0  ;;  %v4347_v35 = vmul.f32 %v16652_v17, %v16652_v17 }
 0xc2c   :  { %v4314_v15 = vpop.xlane.xlu0 %4313  ;;  %4355 = vadd.xlane.f32.xlu0 %v4354_v57 }
 0xc2d   :  { %v4332_v18 = vmul.f32 0.03125, %v4314_v15  ;;  %v4357_v55 = vsel %vm113_vm0, %v4347_v35, 0.0 }
 0xc2e   :  { %v4317_v61 = vpop.xlane.xlu1 %4316  ;;  %4358 = vadd.xlane.f32.xlu1 %v4357_v55 }
 0xc2f   :  { %v16661_v41 = vsub.f32 %v16630_v58, %v4332_v18  ;;  %v4333_v54 = vmul.f32 0.03125, %v4317_v61  ;;  %v13348_v18 = vld [vmem:[%s18432_s17] ss:$0 sm:$0xff] }
 0xc31   :  { %v16663_v19 = vsub.f32 %v4299_v13, %v4333_v54  ;;  %v4348_v56 = vmul.f32 %v16661_v41, %v16661_v41 }
 0xc33   :  { %v4360_v20 = vsel %vm113_vm0, %v4348_v56, 0.0  ;;  %v4349_v21 = vmul.f32 %v16663_v19, %v16663_v19 }
 0xc34   :  { %v4320_v16 = vpop.xlane.xlu0 %4319  ;;  %4361 = vadd.xlane.f32.xlu0 %v4360_v20 }
 0xc35   :  { %v4334_v28 = vmul.f32 0.03125, %v4320_v16  ;;  %v4363_v22 = vsel %vm113_vm0, %v4349_v21, 0.0 }
 0xc36   :  { %v4323_v50 = vpop.xlane.xlu1 %4322  ;;  %4364 = vadd.xlane.f32.xlu1 %v4363_v22 }
 0xc37   :  { %v16671_v58 = vsub.f32 %v4300_v11, %v4334_v28  ;;  %v4335_v3 = vmul.f32 0.03125, %v4323_v50 }
 0xc39   :  { %v16673_v13 = vsub.f32 %v4301_v33, %v4335_v3  ;;  %v4350_v9 = vmul.f32 %v16671_v58, %v16671_v58  ;;  %v16707_v33 = vld [vmem:[%s18419_s4 + $0x20] sm:$0xff]  }
 0xc3a   :  { %14729 = vmatprep.subr.bf16.mxu1 %v16707_v33 }
 0xc3b   :  { %v4366_v25 = vsel %vm113_vm0, %v4350_v9, 0.0  ;;  %v4351_v63 = vmul.f32 %v16673_v13, %v16673_v13 }
 0xc3c   :  { %4367 = vadd.xlane.f32.xlu0 %v4366_v25  ;;  %v4326_v26 = vpop.xlane.xlu0 %4325 }
 0xc3d   :  { %v4336_v59 = vmul.f32 0.03125, %v4326_v26  ;;  %v4369_v14 = vsel %vm113_vm0, %v4351_v63, 0.0 }
 0xc3e   :  { %4370 = vadd.xlane.f32.xlu1 %v4369_v14  ;;  %v4329_v7 = vpop.xlane.xlu1 %4328 }
 0xc3f   :  { %v16681_v23 = vsub.f32 %v4302_v48, %v4336_v59  ;;  %v4337_v24 = vmul.f32 0.03125, %v4329_v7 }
 0xc41   :  { %v16683_v47 = vsub.f32 %v4303_v60, %v4337_v24  ;;  %v4352_v11 = vmul.f32 %v16681_v23, %v16681_v23 }
 0xc43   :  { %v4372_v27 = vsel %vm113_vm0, %v4352_v11, 0.0  ;;  %v4353_v8 = vmul.f32 %v16683_v47, %v16683_v47 }
 0xc44   :  { %4373 = vadd.xlane.f32.xlu0 %v4372_v27  ;;  %v15332_v27 = vld [vmem:[%s18419_s4 + $0x28] sm:$0xff]  }
 0xc45   :  { %v4375_v29 = vsel %vm113_vm0, %v4353_v8, 0.0 }
 0xc46   :  { %4376 = vadd.xlane.f32.xlu1 %v4375_v29 }
 0xcb9   :  { %v4356_v51 = vpop.xlane.xlu0 %4355 }
 0xcba   :  { %v4378_v45 = vmul.f32 0.03125, %v4356_v51 }
 0xcbb   :  { %v4359_v39 = vpop.xlane.xlu1 %4358 }
 0xcbc   :  { %v4386_v40 = vadd.f32 1e-05, %v4378_v45  ;;  %v4379_v42 = vmul.f32 0.03125, %v4359_v39 }
 0xcbe   :  { %15527 = vrsqrt.f32 %v4386_v40  ;;  %v4387_v44 = vadd.f32 1e-05, %v4379_v42 }
 0xcc0   :  { %15529 = vrsqrt.f32 %v4387_v44 }
 0xcc1   :  { %v4362_v12 = vpop.xlane.xlu0 %4361 }
 0xcc2   :  { %v4380_v46 = vmul.f32 0.03125, %v4362_v12 }
 0xcc3   :  { %v4365_v48 = vpop.xlane.xlu1 %4364 }
 0xcc4   :  { %v4388_v49 = vadd.f32 1e-05, %v4380_v46  ;;  %v4381_v52 = vmul.f32 0.03125, %v4365_v48 }
 0xcc6   :  { %15531 = vrsqrt.f32 %v4388_v49  ;;  %v4389_v60 = vadd.f32 1e-05, %v4381_v52  ;;  %v13355_v52 = vld [vmem:[%s18420_s5 + $0x2] ss:$0 sm:$0xff] }
 0xcc8   :  { %v15528_v53 = vpop.eup %15527  ;;  %15533 = vrsqrt.f32 %v4389_v60 }
 0xcc9   :  { %v4402_v62 = vmul.f32 %v15528_v53, %v16649_v43  ;;  %v4368_v37 = vpop.xlane.xlu0 %4367 }
 0xcca   :  { %v15530_v32 = vpop.eup %15529  ;;  %v4382_v36 = vmul.f32 0.03125, %v4368_v37 }
 0xccb   :  { %v4416_v57 = vmul.f32 %v13347_v5, %v4402_v62  ;;  %v4403_v35 = vmul.f32 %v15530_v32, %v16652_v17  ;;  %v4371_v15 = vpop.xlane.xlu1 %4370 }
 0xccc   :  { %v4390_v55 = vadd.f32 1e-05, %v4382_v36  ;;  %v4383_v61 = vmul.f32 0.03125, %v4371_v15 }
 0xccd   :  { %v4417_v54 = vmul.f32 %v13347_v5, %v4403_v35  ;;  %v16718_v20 = vadd.f32 %v13348_v18, %v4416_v57 }
 0xcce   :  { %15535 = vrsqrt.f32 %v4390_v55  ;;  %v4391_v56 = vadd.f32 1e-05, %v4383_v61 }
 0xccf   :  { %v16720_v21 = vadd.f32 %v13348_v18, %v4417_v54 }
 0xcd0   :  { %v15532_v43 = vpop.eup %15531  ;;  %15537 = vrsqrt.f32 %v4391_v56 }
 0xcd1   :  { %v4404_v16 = vmul.f32 %v15532_v43, %v16661_v41  ;;  %v4374_v28 = vpop.xlane.xlu0 %4373  ;;  %v16725_v17 = vpack.c.bf16 %v16720_v21, %v16718_v20 }
 0xcd2   :  { %v15534_v22 = vpop.eup %15533  ;;  %v4384_v50 = vmul.f32 0.03125, %v4374_v28 }
 0xcd3   :  { %v4418_v3 = vmul.f32 %v13347_v5, %v4404_v16  ;;  %v4405_v9 = vmul.f32 %v15534_v22, %v16663_v19  ;;  %v4377_v25 = vpop.xlane.xlu1 %4376  ;;  %14709 = vmatprep.mubr.msk.bf16.mxu1 %vm113_vm0, %v16725_v17  ;;  %14721 = vmatprep.mubr.msk.bf16.mxu0 %vm113_vm0, %v16725_v17 }
 0xcd4   :  { %v4392_v63 = vadd.f32 1e-05, %v4384_v50  ;;  %v4385_v26 = vmul.f32 0.03125, %v4377_v25 }
 0xcd5   :  { %v4419_v41 = vmul.f32 %v13347_v5, %v4405_v9  ;;  %v16732_v14 = vadd.f32 %v13348_v18, %v4418_v3 }
 0xcd6   :  { %15539 = vrsqrt.f32 %v4392_v63  ;;  %v4393_v59 = vadd.f32 1e-05, %v4385_v26  ;;  %v13379_v26 = vld [vmem:[%s18422_s7 + $0x2] ss:$0 sm:$0xff] }
 0xcd7   :  { %v16734_v7 = vadd.f32 %v13348_v18, %v4419_v41 }
 0xcd8   :  { %v15536_v24 = vpop.eup %15535  ;;  %15541 = vrsqrt.f32 %v4393_v59 }
 0xcd9   :  { %v4406_v19 = vmul.f32 %v15536_v24, %v16671_v58  ;;  %v16739_v11 = vpack.c.bf16 %v16734_v7, %v16732_v14 }
 0xcda   :  { %v15538_v8 = vpop.eup %15537 }
 0xcdb   :  { %v4420_v29 = vmul.f32 %v13347_v5, %v4406_v19  ;;  %v4407_v38 = vmul.f32 %v15538_v8, %v16673_v13  ;;  %14710 = vmatmul.mubr.msk.bf16.vlgmr.msra.gmra.mrb[96].mxu1 %vm113_vm0, %v16739_v11  ;;  %14722 = vmatmul.mubr.msk.bf16.vlgmr.msra.gmra.mrb[92].mxu0 %vm113_vm0, %v16739_v11 }
 0xcdc   :  { %14730 = vmatpush3.bf16.msra.mxu1 %v16707_v33 }
 0xcdd   :  { %v4421_v58 = vmul.f32 %v13347_v5, %v4407_v38  ;;  %14731 = vmatprep.subr.bf16.mxu1 %v15332_v27  ;;  %v16750_v30 = vadd.f32 %v13348_v18, %v4420_v29 }
 0xcdf   :  { %v16752_v0 = vadd.f32 %v13348_v18, %v4421_v58 }
 0xce0   :  { %v15540_v31 = vpop.eup %15539  ;;  %14732 = vmatpush3.bf16.msra.mxu1 %v15332_v27 }
 0xce1   :  { %v4408_v51 = vmul.f32 %v15540_v31, %v16681_v23  ;;  %v16757_v13 = vpack.c.bf16 %v16752_v0, %v16750_v30  ;;  %14746 = vmatprep.subr.mxu1 %v15779_v10 }
 0xce2   :  { %v15542_v45 = vpop.eup %15541 }
 0xce3   :  { %v4422_v39 = vmul.f32 %v13347_v5, %v4408_v51  ;;  %v4409_v33 = vmul.f32 %v15542_v45, %v16683_v47  ;;  %14713 = vmatprep.mubr.msk.bf16.mxu1 %vm113_vm0, %v16757_v13  ;;  %14725 = vmatprep.mubr.msk.bf16.mxu0 %vm113_vm0, %v16757_v13  ;;  %v13367_v47 = vld [vmem:[%s18421_s6 + $0x2] ss:$0 sm:$0xff] }
 0xce5   :  { %v4423_v40 = vmul.f32 %v13347_v5, %v4409_v33  ;;  %v16765_v42 = vadd.f32 %v13348_v18, %v4422_v39 }
 0xce7   :  { %v16767_v23 = vadd.f32 %v13348_v18, %v4423_v40 }
 0xce9   :  { %v16771_v44 = vpack.c.bf16 %v16767_v23, %v16765_v42 }
 0xceb   :  { %14714 = vmatmul.mubr.msk.bf16.gmra.mrb[100].mxu1 %vm113_vm0, %v16771_v44  ;;  %14726 = vmatmul.mubr.msk.bf16.gmra.mrb[96].mxu0 %vm113_vm0, %v16771_v44 }
 0xcec   :  { %14733 = vmatprep.mubr.msk.bf16.mxu1 %vm113_vm0, %v16725_v17  ;;  %14743 = vmatprep.mubr.msk.f32.mxu0 %vm15780_vm1, %v15779_v10 }
 0xcf3   :  { %14734 = vmatmul.mubr.msk.bf16.vlgmr.msra.gmra.mrb[104].mxu1 %vm113_vm0, %v16739_v11 }
 0xcf4   :  { %14737 = vmatprep.mubr.msk.bf16.mxu1 %vm113_vm0, %v16757_v13 }
 0xcfb   :  { %14738 = vmatmul.mubr.msk.bf16.gmra.mrb[108].mxu1 %vm113_vm0, %v16771_v44 }
 0xcfc   :  { %14748 = vmatprep.mubr.msk.f32.mxu1 %vm15780_vm1, %v15779_v10 }
 0xdae   :  { %v14711_v12 = vpop.f32.mrb[96].mxu1  ;;  %v14723_v46 = vpop.f32.mrb[92].mxu0 }
 0xdaf   :  { %v4515_v48 = vpop.f32.mrb[97].mxu1  ;;  %v4605_v49 = vpop.f32.mrb[93].mxu0  ;;  %v4614_v57 = vadd.f32 %v14723_v46, %v13367_v47  ;;  %v4524_v18 = vadd.f32 %v14711_v12, %v13355_v52 }
 0xdb0   :  { %v4606_v60 = vadd.f32 %v13367_v47, %v4605_v49  ;;  %v14712_v53 = vpop.f32.mrb[98].mxu1  ;;  %v14724_v5 = vpop.f32.mrb[94].mxu0  ;;  %v4516_v36 = vadd.f32 %v13355_v52, %v4515_v48 }
 0xdb1   :  { %v4518_v62 = vpop.f32.mrb[99].mxu1  ;;  %v4608_v37 = vpop.f32.mrb[95].mxu0  ;;  %v4617_v15 = vadd.f32 %v14724_v5, %v13367_v47  ;;  %v4527_v55 = vadd.f32 %v14712_v53, %v13355_v52 }
 0xdb2   :  { %v4609_v32 = vadd.f32 %v13367_v47, %v4608_v37  ;;  %14742 = vmatpush3.xpose.msk.msra.mxu0 %vm367_vm2, %v4606_v60  ;;  %v4519_v35 = vadd.f32 %v13355_v52, %v4518_v62 }
 0xdb3   :  { %14751 = vmatprep.subr.mxu0 %v15779_v10 }
 0xdb4   :  { %14747 = vmatpush3.xpose.msk.msra.mxu1 %vm367_vm2, %v4609_v32  ;;  %v16855_v32 = vld [vmem:[%s18442_s30] ss:$0 sm:$0xff] }
 0xdb5   :  { %14744 = vmatmul.mubr.msk.f32.vlgmr.msra.gmra.mrb[58].mxu0 %vm367_vm2, %v4516_v36  ;;  %14756 = vmatprep.subr.mxu1 %v15779_v10 }
 0xdb6   :  { %14752 = vmatpush3.xpose.msk.msra.mxu0 %vm367_vm2, %v4614_v57  ;;  %14753 = vmatprep.mubr.msk.f32.mxu0 %vm15780_vm1, %v15779_v10 }
 0xdb7   :  { %14749 = vmatmul.mubr.msk.f32.vlgmr.msra.gmra.mrb[62].mxu1 %vm367_vm2, %v4519_v35  ;;  %14761 = vmatprep.subr.mxu0 %v15779_v10 }
 0xdb8   :  { %14757 = vmatpush3.xpose.msk.msra.mxu1 %vm367_vm2, %v4617_v15  ;;  %14758 = vmatprep.mubr.msk.f32.mxu1 %vm15780_vm1, %v15779_v10 }
 0xdb9   :  { %14754 = vmatmul.mubr.msk.f32.vlgmr.msra.gmra.mrb[100].mxu0 %vm367_vm2, %v4524_v18  ;;  %14766 = vmatprep.subr.mxu1 %v15779_v10 }
 0xdba   :  { %14763 = vmatprep.mubr.msk.f32.mxu0 %vm15780_vm1, %v15779_v10 }
 0xdbb   :  { %14759 = vmatmul.mubr.msk.f32.vlgmr.msra.gmra.mrb[112].mxu1 %vm367_vm2, %v4527_v55  ;;  %v16862_v55 = vld [vmem:[%s18442_s30 + $0x1] ss:$0 sm:$0xff] }
 0xdbc   :  { %14768 = vmatprep.mubr.msk.f32.mxu1 %vm15780_vm1, %v15779_v10 }
 0xdbe   :  { %v14715_v61 = vpop.f32.mrb[100].mxu1  ;;  %v14727_v54 = vpop.f32.mrb[96].mxu0 }
 0xdbf   :  { %v4531_v56 = vpop.f32.mrb[101].mxu1  ;;  %v4621_v43 = vpop.f32.mrb[97].mxu0  ;;  %v4630_v63 = vadd.f32 %v14727_v54, %v13367_v47  ;;  %v4540_v19 = vadd.f32 %v14715_v61, %v13355_v52 }
 0xdc0   :  { %v4622_v16 = vadd.f32 %v13367_v47, %v4621_v43  ;;  %v14716_v28 = vpop.f32.mrb[102].mxu1  ;;  %v14728_v22 = vpop.f32.mrb[98].mxu0  ;;  %v4532_v25 = vadd.f32 %v13355_v52, %v4531_v56 }
 0xdc1   :  { %v4534_v50 = vpop.f32.mrb[103].mxu1  ;;  %v4624_v3 = vpop.f32.mrb[99].mxu0  ;;  %v4633_v59 = vadd.f32 %v14728_v22, %v13367_v47  ;;  %v4543_v58 = vadd.f32 %v14716_v28, %v13355_v52  ;;  %v16869_v28 = vld [vmem:[%s18442_s30 + $0x2] ss:$0 sm:$0xff] }
 0xdc2   :  { %v4625_v9 = vadd.f32 %v13367_v47, %v4624_v3  ;;  %14762 = vmatpush3.xpose.msk.msra.mxu0 %vm367_vm2, %v4622_v16  ;;  %v4535_v41 = vadd.f32 %v13355_v52, %v4534_v50  ;;  %v16876_v3 = vld [vmem:[%s18442_s30 + $0x3] ss:$0 sm:$0xff] }
 0xdc3   :  { %14771 = vmatprep.subr.mxu0 %v15779_v10 }
 0xdc4   :  { %14767 = vmatpush3.xpose.msk.msra.mxu1 %vm367_vm2, %v4625_v9 }
 0xdc5   :  { %14764 = vmatmul.mubr.msk.f32.vlgmr.msra.gmra.mrb[102].mxu0 %vm367_vm2, %v4532_v25  ;;  %14776 = vmatprep.subr.mxu1 %v15779_v10 }
 0xdc6   :  { %v14735_v24 = vpop.f32.mrb[104].mxu1  ;;  %14772 = vmatpush3.xpose.msk.msra.mxu0 %vm367_vm2, %v4630_v63  ;;  %14773 = vmatprep.mubr.msk.f32.mxu0 %vm15780_vm1, %v15779_v10 }
 0xdc7   :  { %v16826_v27 = vadd.f32 %v14735_v24, %v13379_v26  ;;  %v4695_v8 = vpop.f32.mrb[105].mxu1  ;;  %14769 = vmatmul.mubr.msk.f32.vlgmr.msra.gmra.mrb[114].mxu1 %vm367_vm2, %v4535_v41  ;;  %14781 = vmatprep.subr.mxu0 %v15779_v10 }
 0xdc8   :  { %v4696_v29 = vadd.f32 %v13379_v26, %v4695_v8  ;;  %v14736_v38 = vpop.f32.mrb[106].mxu1  ;;  %14777 = vmatpush3.xpose.msk.msra.mxu1 %vm367_vm2, %v4633_v59  ;;  %14778 = vmatprep.mubr.msk.f32.mxu1 %vm15780_vm1, %v15779_v10  ;;  %v16883_v8 = vld [vmem:[%s18442_s30 + $0x4] ss:$0 sm:$0xff] }
 0xdc9   :  { %v16833_v31 = vadd.f32 %v14736_v38, %v13379_v26  ;;  %v4698_v51 = vpop.f32.mrb[107].mxu1  ;;  %14774 = vmatmul.mubr.msk.f32.vlgmr.msra.gmra.mrb[104].mxu0 %vm367_vm2, %v4540_v19  ;;  %14786 = vmatprep.subr.mxu1 %v15779_v10 }
 0xdca   :  { %v4699_v45 = vadd.f32 %v13379_v26, %v4698_v51  ;;  %14782 = vmatpush3.msra.mxu0 %v4696_v29  ;;  %14783 = vmatprep.mubr.msk.f32.mxu0 %vm15780_vm1, %v15779_v10 }
 0xdcb   :  { %14779 = vmatmul.mubr.msk.f32.vlgmr.msra.gmra.mrb[116].mxu1 %vm367_vm2, %v4543_v58  ;;  %14791 = vmatprep.subr.mxu0 %v15779_v10 }
 0xdcc   :  { %14787 = vmatpush3.msra.mxu1 %v4699_v45  ;;  %14788 = vmatprep.mubr.msk.f32.mxu1 %vm15780_vm1, %v15779_v10 }
 0xdcd   :  { %14796 = vmatprep.subr.mxu1 %v15779_v10 }
 0xdce   :  { %v14739_v39 = vpop.f32.mrb[108].mxu1 }
 0xdcf   :  { %v16844_v33 = vadd.f32 %v14739_v39, %v13379_v26  ;;  %v4711_v40 = vpop.f32.mrb[109].mxu1  ;;  %v16890_v39 = vld [vmem:[%s18442_s30 + $0x5] ss:$0 sm:$0xff] }
 0xdd0   :  { %v16846_v47 = vadd.f32 %v13379_v26, %v4711_v40  ;;  %v14740_v12 = vpop.f32.mrb[110].mxu1 }
 0xdd1   :  { %v16848_v46 = vadd.f32 %v14740_v12, %v13379_v26  ;;  %v4714_v48 = vpop.f32.mrb[111].mxu1 }
 0xdd2   :  { %v16850_v49 = vadd.f32 %v13379_v26, %v4714_v48 }
 0xe88   :  { %v4798_v52 = vpop.f32.mrb[58].mxu0 }
 0xe89   :  { %v5334_v60 = vmul.f32 0.25, %v4798_v52  ;;  %v14745_v53 = vpop.f32.mrb[59].mxu0 }
 0xe8a   :  { %v4874_v5 = vpop.f32.mrb[62].mxu1  ;;  %v16897_v53 = vld [vmem:[%s18442_s30 + $0x6] ss:$0 sm:$0xff] }
 0xe8b   :  { %v5335_v62 = vmul.f32 0.25, %v4874_v5  ;;  %v14750_v37 = vpop.f32.mrb[63].mxu1  ;;  %v5342_v36 = vadd.f32 %v16855_v32, %v5334_v60 }
 0xe8c   :  { %v4950_v57 = vpop.f32.mrb[100].mxu0  ;;  %v16904_v37 = vld [vmem:[%s18442_s30 + $0x7] ss:$0 sm:$0xff] }
 0xe8d   :  { %v5336_v35 = vmul.f32 0.25, %v4950_v57  ;;  %v14755_v15 = vpop.f32.mrb[101].mxu0  ;;  %v5350_v18 = vsel %vm1040_vm3, %v5342_v36, -inf  ;;  %v5343_v61 = vadd.f32 %v16862_v55, %v5335_v62 }
 0xe8e   :  { %5351 = vmax.xlane.f32.xlu0 %v5350_v18  ;;  %v5026_v54 = vpop.f32.mrb[112].mxu1 }
 0xe8f   :  { %v5337_v56 = vmul.f32 0.25, %v5026_v54  ;;  %v14760_v43 = vpop.f32.mrb[113].mxu1  ;;  %v5353_v16 = vsel %vm1040_vm3, %v5343_v61, -inf  ;;  %v5344_v22 = vadd.f32 %v16869_v28, %v5336_v35 }
 0xe90   :  { %5354 = vmax.xlane.f32.xlu1 %v5353_v16 }
 0xe91   :  { %v5356_v50 = vsel %vm1040_vm3, %v5344_v22, -inf  ;;  %v5345_v9 = vadd.f32 %v16876_v3, %v5337_v56 }
 0xe92   :  { %5357 = vmax.xlane.f32.xlu0 %v5356_v50 }
 0xe93   :  { %v5359_v25 = vsel %vm1040_vm3, %v5345_v9, -inf }
 0xe94   :  { %5360 = vmax.xlane.f32.xlu1 %v5359_v25 }
 0xe98   :  { %v5102_v63 = vpop.f32.mrb[102].mxu0 }
 0xe99   :  { %v5338_v26 = vmul.f32 0.25, %v5102_v63  ;;  %v14765_v41 = vpop.f32.mrb[103].mxu0 }
 0xe9a   :  { %v5178_v59 = vpop.f32.mrb[114].mxu1 }
 0xe9b   :  { %v5339_v24 = vmul.f32 0.25, %v5178_v59  ;;  %v14770_v19 = vpop.f32.mrb[115].mxu1  ;;  %v5346_v29 = vadd.f32 %v16883_v8, %v5338_v26 }
 0xe9c   :  { %v5254_v38 = vpop.f32.mrb[104].mxu0 }
 0xe9d   :  { %v5340_v58 = vmul.f32 0.25, %v5254_v38  ;;  %v14775_v51 = vpop.f32.mrb[105].mxu0  ;;  %v5362_v45 = vsel %vm1040_vm3, %v5346_v29, -inf  ;;  %v5347_v40 = vadd.f32 %v16890_v39, %v5339_v24 }
 0xe9e   :  { %v5330_v12 = vpop.f32.mrb[116].mxu1  ;;  %5363 = vmax.xlane.f32.xlu0 %v5362_v45 }
 0xe9f   :  { %v5341_v48 = vmul.f32 0.25, %v5330_v12  ;;  %v14780_v52 = vpop.f32.mrb[117].mxu1  ;;  %v5365_v60 = vsel %vm1040_vm3, %v5347_v40, -inf  ;;  %v5348_v5 = vadd.f32 %v16897_v53, %v5340_v58 }
 0xea0   :  { %5366 = vmax.xlane.f32.xlu1 %v5365_v60 }
 0xea1   :  { %v5368_v62 = vsel %vm1040_vm3, %v5348_v5, -inf  ;;  %v5349_v57 = vadd.f32 %v16904_v37, %v5341_v48 }
 0xea2   :  { %5369 = vmax.xlane.f32.xlu0 %v5368_v62 }
 0xea3   :  { %v5371_v35 = vsel %vm1040_vm3, %v5349_v57, -inf }
 0xea4   :  { %5372 = vmax.xlane.f32.xlu1 %v5371_v35 }
 0xf1b   :  { %v5352_v15 = vpop.xlane.xlu0 %5351 }
 0xf1c   :  { %v5374_v18 = vsub.f32 %v5342_v36, %v5352_v15 }
 0xf1d   :  { %v5355_v54 = vpop.xlane.xlu1 %5354 }
 0xf1e   :  { %v5382_v56 = vmul.f32 1.442695, %v5374_v18  ;;  %v5375_v43 = vsub.f32 %v5343_v61, %v5355_v54 }
 0xf1f   :  { %v5358_v16 = vpop.xlane.xlu0 %5357 }
 0xf20   :  { %15543 = vpow2.f32 %v5382_v56  ;;  %v5384_v50 = vmul.f32 1.442695, %v5375_v43  ;;  %v5376_v25 = vsub.f32 %v5344_v22, %v5358_v16 }
 0xf21   :  { %v5361_v63 = vpop.xlane.xlu1 %5360 }
 0xf22   :  { %15545 = vpow2.f32 %v5384_v50  ;;  %v5386_v26 = vmul.f32 1.442695, %v5376_v25  ;;  %v5377_v41 = vsub.f32 %v5345_v9, %v5361_v63 }
 0xf24   :  { %15547 = vpow2.f32 %v5386_v26  ;;  %v5388_v59 = vmul.f32 1.442695, %v5377_v41 }
 0xf26   :  { %15549 = vpow2.f32 %v5388_v59 }
 0xf2a   :  { %v15544_v24 = vpop.eup %15543 }
 0xf2b   :  { %v5364_v19 = vpop.xlane.xlu0 %5363  ;;  %v5398_v38 = vsel %vm1040_vm3, %v15544_v24, 0.0 }
 0xf2c   :  { %v15546_v58 = vpop.eup %15545  ;;  %v5378_v36 = vsub.f32 %v5346_v29, %v5364_v19  ;;  %5399 = vadd.xlane.f32.xlu0 %v5398_v38 }
 0xf2d   :  { %v5367_v51 = vpop.xlane.xlu1 %5366  ;;  %v5401_v61 = vsel %vm1040_vm3, %v15546_v58, 0.0 }
 0xf2e   :  { %v15548_v45 = vpop.eup %15547  ;;  %v5390_v12 = vmul.f32 1.442695, %v5378_v36  ;;  %v5379_v22 = vsub.f32 %v5347_v40, %v5367_v51  ;;  %5402 = vadd.xlane.f32.xlu1 %v5401_v61 }
 0xf2f   :  { %v5370_v48 = vpop.xlane.xlu0 %5369  ;;  %v5404_v9 = vsel %vm1040_vm3, %v15548_v45, 0.0 }
 0xf30   :  { %v15550_v52 = vpop.eup %15549  ;;  %15551 = vpow2.f32 %v5390_v12  ;;  %v5392_v60 = vmul.f32 1.442695, %v5379_v22  ;;  %v5380_v62 = vsub.f32 %v5348_v5, %v5370_v48  ;;  %5405 = vadd.xlane.f32.xlu0 %v5404_v9 }
 0xf31   :  { %v5373_v35 = vpop.xlane.xlu1 %5372  ;;  %v5407_v15 = vsel %vm1040_vm3, %v15550_v52, 0.0 }
 0xf32   :  { %15553 = vpow2.f32 %v5392_v60  ;;  %v5394_v29 = vmul.f32 1.442695, %v5380_v62  ;;  %v5381_v18 = vsub.f32 %v5349_v57, %v5373_v35  ;;  %5408 = vadd.xlane.f32.xlu1 %v5407_v15  ;;  %v15333_v60 = vld [vmem:[%s18440_s29 + $0x30] sm:$0xff]  }
 0xf34   :  { %15555 = vpow2.f32 %v5394_v29  ;;  %v5396_v54 = vmul.f32 1.442695, %v5381_v18  ;;  %v15336_v29 = vld [vmem:[%s18419_s4 + $0x38] sm:$0xff]   ;;  %v15337_v18 = vld [vmem:[%s18423_s8 + $0x10] sm:$0xff]  }
 0xf36   :  { %15557 = vpow2.f32 %v5396_v54  ;;  %v15338_v54 = vld [vmem:[%s18418_s3 + $0x30] sm:$0xff]  }
 0xf3a   :  { %v15552_v40 = vpop.eup %15551 }
 0xf3b   :  { %v5410_v56 = vsel %vm1040_vm3, %v15552_v40, 0.0 }
 0xf3c   :  { %v15554_v43 = vpop.eup %15553  ;;  %5411 = vadd.xlane.f32.xlu0 %v5410_v56 }
 0xf3d   :  { %v5413_v16 = vsel %vm1040_vm3, %v15554_v43, 0.0 }
 0xf3e   :  { %v15556_v50 = vpop.eup %15555  ;;  %5414 = vadd.xlane.f32.xlu1 %v5413_v16 }
 0xf3f   :  { %v5416_v5 = vsel %vm1040_vm3, %v15556_v50, 0.0 }
 0xf40   :  { %v15558_v25 = vpop.eup %15557  ;;  %5417 = vadd.xlane.f32.xlu0 %v5416_v5 }
 0xf41   :  { %v5419_v63 = vsel %vm1040_vm3, %v15558_v25, 0.0 }
 0xf42   :  { %5420 = vadd.xlane.f32.xlu1 %v5419_v63 }
 0xfb9   :  { %v5400_v57 = vpop.xlane.xlu0 %5399 }
 0xfba   :  { %15559 = vrcp.f32 %v5400_v57 }
 0xfbb   :  { %v5403_v26 = vpop.xlane.xlu1 %5402 }
 0xfbc   :  { %15561 = vrcp.f32 %v5403_v26 }
 0xfbd   :  { %v5406_v41 = vpop.xlane.xlu0 %5405 }
 0xfbe   :  { %15563 = vrcp.f32 %v5406_v41  ;;  %v15339_v41 = vld [vmem:[%s18418_s3 + $0x38] sm:$0xff]  }
 0xfbf   :  { %v5409_v59 = vpop.xlane.xlu1 %5408 }
 0xfc0   :  { %15565 = vrcp.f32 %v5409_v59 }
 0xfc4   :  { %v15560_v19 = vpop.eup %15559 }
 0xfc5   :  { %v5430_v38 = vmul.f32 %v15560_v19, %v15544_v24 }
 0xfc6   :  { %v15562_v36 = vpop.eup %15561 }
 0xfc7   :  { %14784 = vmatmul.mubr.msk.f32.vlgmr.msra.gmra.mrb[106].mxu0 %vm1040_vm3, %v5430_v38  ;;  %v5431_v51 = vmul.f32 %v15562_v36, %v15546_v58 }
 0xfc8   :  { %v15564_v61 = vpop.eup %15563  ;;  %14792 = vmatpush3.msra.mxu0 %v16826_v27  ;;  %14793 = vmatprep.mubr.msk.f32.mxu0 %vm15780_vm1, %v15779_v10 }
 0xfc9   :  { %14789 = vmatmul.mubr.msk.f32.vlgmr.msra.gmra.mrb[118].mxu1 %vm1040_vm3, %v5431_v51  ;;  %v5412_v12 = vpop.xlane.xlu0 %5411  ;;  %14801 = vmatprep.subr.mxu0 %v15779_v10  ;;  %v5432_v22 = vmul.f32 %v15564_v61, %v15548_v45 }
 0xfca   :  { %v15566_v48 = vpop.eup %15565  ;;  %14797 = vmatpush3.msra.mxu1 %v16833_v31  ;;  %15567 = vrcp.f32 %v5412_v12  ;;  %14798 = vmatprep.mubr.msk.f32.mxu1 %vm15780_vm1, %v15779_v10 }
 0xfcb   :  { %v5415_v24 = vpop.xlane.xlu1 %5414  ;;  %14794 = vmatmul.mubr.msk.f32.vlgmr.msra.gmra.mrb[108].mxu0 %vm1040_vm3, %v5432_v22  ;;  %14806 = vmatprep.subr.mxu1 %v15779_v10  ;;  %v5433_v27 = vmul.f32 %v15566_v48, %v15550_v52 }
 0xfcc   :  { %15569 = vrcp.f32 %v5415_v24  ;;  %14802 = vmatpush3.msra.mxu0 %v16846_v47  ;;  %14803 = vmatprep.mubr.msk.f32.mxu0 %vm15780_vm1, %v15779_v10 }
 0xfcd   :  { %14799 = vmatmul.mubr.msk.f32.vlgmr.msra.gmra.mrb[120].mxu1 %vm1040_vm3, %v5433_v27  ;;  %v5418_v58 = vpop.xlane.xlu0 %5417  ;;  %14811 = vmatprep.subr.mxu0 %v15779_v10 }
 0xfce   :  { %14807 = vmatpush3.msra.mxu1 %v16850_v49  ;;  %15571 = vrcp.f32 %v5418_v58  ;;  %14808 = vmatprep.mubr.msk.f32.mxu1 %vm15780_vm1, %v15779_v10 }
 0xfcf   :  { %v5421_v31 = vpop.xlane.xlu1 %5420  ;;  %14816 = vmatprep.subr.mxu1 %v15779_v10 }
 0xfd0   :  { %15573 = vrcp.f32 %v5421_v31 }
 0xfd4   :  { %v15568_v45 = vpop.eup %15567 }
 0xfd5   :  { %v5434_v47 = vmul.f32 %v15568_v45, %v15552_v40 }
 0xfd6   :  { %v15570_v9 = vpop.eup %15569 }
 0xfd7   :  { %14804 = vmatmul.mubr.msk.f32.vlgmr.msra.gmra.mrb[110].mxu0 %vm1040_vm3, %v5434_v47  ;;  %v5435_v52 = vmul.f32 %v15570_v9, %v15554_v43 }
 0xfd8   :  { %v15572_v62 = vpop.eup %15571  ;;  %14812 = vmatpush3.msra.mxu0 %v16844_v33  ;;  %14813 = vmatprep.mubr.msk.f32.mxu0 %vm15780_vm1, %v15779_v10  ;;  %v15334_v33 = vld [vmem:[%s18440_s29 + $0x38] sm:$0xff]  }
 0xfd9   :  { %14809 = vmatmul.mubr.msk.f32.vlgmr.msra.gmra.mrb[122].mxu1 %vm1040_vm3, %v5435_v52  ;;  %v5436_v49 = vmul.f32 %v15572_v62, %v15556_v50  ;;  %14821 = vmatprep.subr.bf16.mxu0 %v15337_v18 }
 0xfda   :  { %v15574_v35 = vpop.eup %15573  ;;  %14817 = vmatpush3.msra.mxu1 %v16848_v46  ;;  %14818 = vmatprep.mubr.msk.f32.mxu1 %vm15780_vm1, %v15779_v10  ;;  %v15335_v46 = vld [vmem:[%s18419_s4 + $0x30] sm:$0xff]  }
 0xfdb   :  { %14814 = vmatmul.mubr.msk.f32.vlgmr.msra.gmra.mrb[112].mxu0 %vm1040_vm3, %v5436_v49  ;;  %14831 = vmatprep.subr.bf16.mxu1 %v15333_v60  ;;  %v5437_v15 = vmul.f32 %v15574_v35, %v15558_v25 }
 0xfdc   :  { %14822 = vmatpush3.bf16.msra.mxu0 %v15337_v18 }
 0xfdd   :  { %14819 = vmatmul.mubr.msk.f32.vlgmr.msra.gmra.mrb[124].mxu1 %vm1040_vm3, %v5437_v15  ;;  %14843 = vmatprep.subr.bf16.mxu0 %v15338_v54 }
 0xfde   :  { %14832 = vmatpush3.bf16.msra.mxu1 %v15333_v60  ;;  %14835 = vmatprep.mubr.msk.bf16.mxu1 %vm113_vm0, %v16725_v17 }
 0xfdf   :  { %14833 = vmatprep.subr.bf16.mxu1 %v15334_v33 }
 0xfe2   :  { %14834 = vmatpush3.bf16.msra.mxu1 %v15334_v33 }
 0xfe3   :  { %14855 = vmatprep.subr.bf16.mxu1 %v15335_v46 }
 0xfe5   :  { %14836 = vmatmul.mubr.msk.bf16.vlgmr.msra.gmra.mrb[128].mxu1 %vm113_vm0, %v16739_v11 }
 0xfe6   :  { %14839 = vmatprep.mubr.msk.bf16.mxu1 %vm113_vm0, %v16757_v13  ;;  %14856 = vmatpush3.bf16.msra.mxu1 %v15335_v46 }
 0xfe7   :  { %14857 = vmatprep.subr.bf16.mxu1 %v15336_v29 }
 0xfea   :  { %14858 = vmatpush3.bf16.msra.mxu1 %v15336_v29 }
 0xfeb   :  { %14877 = vmatprep.subr.mxu1 %v15779_v10 }
 0xfed   :  { %14840 = vmatmul.mubr.msk.bf16.gmra.mrb[132].mxu1 %vm113_vm0, %v16771_v44 }
 0xfee   :  { %14859 = vmatprep.mubr.msk.bf16.mxu1 %vm113_vm0, %v16725_v17 }
 0xff5   :  { %14860 = vmatmul.mubr.msk.bf16.vlgmr.msra.gmra.mrb[136].mxu1 %vm113_vm0, %v16739_v11 }
 0xff6   :  { %14863 = vmatprep.mubr.msk.bf16.mxu1 %vm113_vm0, %v16757_v13 }
 0xffd   :  { %14864 = vmatmul.mubr.msk.bf16.gmra.mrb[140].mxu1 %vm113_vm0, %v16771_v44 }
 0xffe   :  { %14879 = vmatprep.mubr.msk.f32.mxu1 %vm15780_vm1, %v15779_v10 }
0x109a   :  { %v5507_v40 = vpop.f32.mrb[106].mxu0 }
0x109b   :  { %v14785_v56 = vpop.f32.mrb[107].mxu0 }
0x109c   :  { %v5580_v43 = vpop.f32.mrb[118].mxu1 }
0x109d   :  { %v6022_v16 = vpack.c.bf16 %v5580_v43, %v5507_v40  ;;  %v14790_v50 = vpop.f32.mrb[119].mxu1  ;;  %v13435_v43 = vld [vmem:[%s18421_s6 + $0x3] ss:$0 sm:$0xff] }
0x109e   :  { %v5653_v5 = vpop.f32.mrb[108].mxu0  ;;  %v13423_v50 = vld [vmem:[%s18420_s5 + $0x3] ss:$0 sm:$0xff] }
0x109f   :  { %v14795_v25 = vpop.f32.mrb[109].mxu0  ;;  %14823 = vmatprep.mubr.msk.bf16.mxu0 %vm367_vm2, %v6022_v16 }
0x10a0   :  { %v5726_v63 = vpop.f32.mrb[120].mxu1 }
0x10a1   :  { %v6023_v57 = vpack.c.bf16 %v5726_v63, %v5653_v5  ;;  %v14800_v26 = vpop.f32.mrb[121].mxu1 }
0x10a3   :  { %14824 = vmatmul.mubr.msk.bf16.vlgmr.msra.gmra.mrb[116].mxu0 %vm367_vm2, %v6023_v57 }
0x10a4   :  { %14844 = vmatpush3.bf16.msra.mxu0 %v15338_v54 }
0x10a5   :  { %14845 = vmatprep.subr.bf16.mxu0 %v15339_v41 }
0x10a8   :  { %14846 = vmatpush3.bf16.msra.mxu0 %v15339_v41 }
0x10a9   :  { %14867 = vmatprep.subr.mxu0 %v15779_v10 }
0x10aa   :  { %v5799_v59 = vpop.f32.mrb[110].mxu0 }
0x10ab   :  { %v14805_v19 = vpop.f32.mrb[111].mxu0 }
0x10ac   :  { %v5872_v38 = vpop.f32.mrb[122].mxu1 }
0x10ad   :  { %v6024_v36 = vpack.c.bf16 %v5872_v38, %v5799_v59  ;;  %v14810_v51 = vpop.f32.mrb[123].mxu1 }
0x10ae   :  { %v5945_v61 = vpop.f32.mrb[112].mxu0 }
0x10af   :  { %v14815_v12 = vpop.f32.mrb[113].mxu0  ;;  %14827 = vmatprep.mubr.msk.bf16.mxu0 %vm367_vm2, %v6024_v36 }
0x10b0   :  { %v6018_v22 = vpop.f32.mrb[124].mxu1 }
0x10b1   :  { %v6025_v48 = vpack.c.bf16 %v6018_v22, %v5945_v61  ;;  %v14820_v24 = vpop.f32.mrb[125].mxu1 }
0x10b3   :  { %14828 = vmatmul.mubr.msk.bf16.gmra.mrb[120].mxu0 %vm367_vm2, %v6025_v48 }
0x10b4   :  { %14847 = vmatprep.mubr.msk.bf16.mxu0 %vm113_vm0, %v16725_v17  ;;  %v17008_v17 = vld [vmem:[%s18422_s7 + $0x3] ss:$0 sm:$0xff] }
0x10b8   :  { %v14837_v27 = vpop.f32.mrb[128].mxu1 }
0x10b9   :  { %v6185_v58 = vpop.f32.mrb[129].mxu1  ;;  %v6194_v41 = vadd.f32 %v14837_v27, %v13423_v50 }
0x10ba   :  { %v14838_v31 = vpop.f32.mrb[130].mxu1  ;;  %v6186_v59 = vadd.f32 %v13423_v50, %v6185_v58 }
0x10bb   :  { %v6188_v45 = vpop.f32.mrb[131].mxu1  ;;  %14848 = vmatmul.mubr.msk.bf16.vlgmr.msra.gmra.mrb[124].mxu0 %vm113_vm0, %v16739_v11  ;;  %v6197_v24 = vadd.f32 %v14838_v31, %v13423_v50 }
0x10bc   :  { %14851 = vmatprep.mubr.msk.bf16.mxu0 %vm113_vm0, %v16757_v13  ;;  %v6189_v36 = vadd.f32 %v13423_v50, %v6188_v45 }
0x10c0   :  { %v16997_v47 = vpop.f32.mrb[132].mxu1 }
0x10c1   :  { %v6201_v9 = vpop.f32.mrb[133].mxu1  ;;  %v6210_v31 = vadd.f32 %v16997_v47, %v13423_v50 }
0x10c2   :  { %v16999_v52 = vpop.f32.mrb[134].mxu1  ;;  %v6202_v27 = vadd.f32 %v13423_v50, %v6201_v9 }
0x10c3   :  { %v6204_v60 = vpop.f32.mrb[135].mxu1  ;;  %14852 = vmatmul.mubr.msk.bf16.gmra.mrb[128].mxu0 %vm113_vm0, %v16771_v44  ;;  %v6213_v47 = vadd.f32 %v16999_v52, %v13423_v50 }
0x10c4   :  { %14869 = vmatprep.mubr.msk.f32.mxu0 %vm15780_vm1, %v15779_v10  ;;  %v6205_v9 = vadd.f32 %v13423_v50, %v6204_v60 }
0x10c8   :  { %v14861_v11 = vpop.f32.mrb[136].mxu1 }
0x10c9   :  { %v17011_v13 = vadd.f32 %v14861_v11, %v17008_v17  ;;  %v6365_v62 = vpop.f32.mrb[137].mxu1 }
0x10ca   :  { %v14862_v49 = vpop.f32.mrb[138].mxu1  ;;  %v6366_v11 = vadd.f32 %v17008_v17, %v6365_v62 }
0x10cb   :  { %v17014_v35 = vadd.f32 %v14862_v49, %v17008_v17  ;;  %v17016_v15 = vpop.f32.mrb[139].mxu1 }
0x10cc   :  { %v6369_v60 = vadd.f32 %v17008_v17, %v17016_v15 }
0x10d0   :  { %v14865_v44 = vpop.f32.mrb[140].mxu1 }
0x10d1   :  { %v17019_v33 = vadd.f32 %v14865_v44, %v17008_v17  ;;  %v6381_v46 = vpop.f32.mrb[141].mxu1 }
0x10d2   :  { %v17022_v29 = vadd.f32 %v17008_v17, %v6381_v46  ;;  %v14866_v18 = vpop.f32.mrb[142].mxu1 }
0x10d3   :  { %v17025_v54 = vadd.f32 %v14866_v18, %v17008_v17  ;;  %v6384_v40 = vpop.f32.mrb[143].mxu1 }
0x10d4   :  { %v17028_v56 = vadd.f32 %v17008_v17, %v6384_v40 }
0x118e   :  { %v14849_v16 = vpop.f32.mrb[124].mxu0 }
0x118f   :  { %v6284_v5 = vadd.f32 %v14849_v16, %v13435_v43  ;;  %v6275_v25 = vpop.f32.mrb[125].mxu0 }
0x1190   :  { %v6276_v63 = vadd.f32 %v13435_v43, %v6275_v25  ;;  %v14850_v57 = vpop.f32.mrb[126].mxu0 }
0x1191   :  { %v6278_v26 = vpop.f32.mrb[127].mxu0  ;;  %14878 = vmatpush3.xpose.msk.msra.mxu1 %vm367_vm2, %v6284_v5  ;;  %v6287_v61 = vadd.f32 %v14850_v57, %v13435_v43 }
0x1192   :  { %14868 = vmatpush3.xpose.msk.msra.mxu0 %vm367_vm2, %v6276_v63  ;;  %14887 = vmatprep.subr.mxu1 %v15779_v10  ;;  %v6279_v19 = vadd.f32 %v13435_v43, %v6278_v26 }
0x1193   :  { %14872 = vmatprep.subr.mxu0 %v15779_v10 }
0x1194   :  { %14880 = vmatmul.mubr.msk.f32.vlgmr.msra.gmra.mrb[126].mxu1 %vm367_vm2, %v6194_v41 }
0x1195   :  { %14870 = vmatmul.mubr.msk.f32.vlgmr.msra.gmra.mrb[114].mxu0 %vm367_vm2, %v6186_v59  ;;  %14889 = vmatprep.mubr.msk.f32.mxu1 %vm15780_vm1, %v15779_v10 }
0x1196   :  { %v14853_v38 = vpop.f32.mrb[128].mxu0  ;;  %14873 = vmatpush3.xpose.msk.msra.mxu0 %vm367_vm2, %v6279_v19  ;;  %14874 = vmatprep.mubr.msk.f32.mxu0 %vm15780_vm1, %v15779_v10 }
0x1197   :  { %v6291_v51 = vpop.f32.mrb[129].mxu0  ;;  %14882 = vmatprep.subr.mxu0 %v15779_v10  ;;  %v6300_v58 = vadd.f32 %v14853_v38, %v13435_v43 }
0x1198   :  { %v6292_v12 = vadd.f32 %v13435_v43, %v6291_v51  ;;  %v14854_v22 = vpop.f32.mrb[130].mxu0 }
0x1199   :  { %v6294_v48 = vpop.f32.mrb[131].mxu0  ;;  %14875 = vmatmul.mubr.msk.f32.vlgmr.msra.gmra.mrb[132].mxu0 %vm367_vm2, %v6189_v36  ;;  %v6303_v49 = vadd.f32 %v14854_v22, %v13435_v43 }
0x119a   :  { %14883 = vmatpush3.xpose.msk.msra.mxu0 %vm367_vm2, %v6287_v61  ;;  %14888 = vmatpush3.xpose.msk.msra.mxu1 %vm367_vm2, %v6292_v12  ;;  %v6295_v45 = vadd.f32 %v13435_v43, %v6294_v48 }
0x119b   :  { %14884 = vmatprep.mubr.msk.f32.mxu0 %vm15780_vm1, %v15779_v10  ;;  %14892 = vmatprep.subr.mxu0 %v15779_v10 }
0x119c   :  { %14897 = vmatprep.subr.mxu1 %v15779_v10 }
0x119d   :  { %14885 = vmatmul.mubr.msk.f32.vlgmr.msra.gmra.mrb[134].mxu0 %vm367_vm2, %v6197_v24  ;;  %14890 = vmatmul.mubr.msk.f32.vlgmr.msra.gmra.mrb[144].mxu1 %vm367_vm2, %v6202_v27 }
0x119e   :  { %14893 = vmatpush3.xpose.msk.msra.mxu0 %vm367_vm2, %v6295_v45  ;;  %14898 = vmatpush3.xpose.msk.msra.mxu1 %vm367_vm2, %v6300_v58 }
0x119f   :  { %14894 = vmatprep.mubr.msk.f32.mxu0 %vm15780_vm1, %v15779_v10  ;;  %14899 = vmatprep.mubr.msk.f32.mxu1 %vm15780_vm1, %v15779_v10 }
0x11a0   :  { %14902 = vmatprep.subr.mxu0 %v15779_v10  ;;  %14907 = vmatprep.subr.mxu1 %v15779_v10 }
0x11a1   :  { %14895 = vmatmul.mubr.msk.f32.vlgmr.msra.gmra.mrb[136].mxu0 %vm367_vm2, %v6205_v9  ;;  %14900 = vmatmul.mubr.msk.f32.vlgmr.msra.gmra.mrb[146].mxu1 %vm367_vm2, %v6210_v31 }
0x11a2   :  { %14903 = vmatpush3.xpose.msk.msra.mxu0 %vm367_vm2, %v6303_v49  ;;  %14908 = vmatpush3.msra.mxu1 %v6366_v11 }
0x11a3   :  { %14904 = vmatprep.mubr.msk.f32.mxu0 %vm15780_vm1, %v15779_v10  ;;  %14912 = vmatprep.subr.mxu0 %v15779_v10 }
0x11a4   :  { %14909 = vmatprep.mubr.msk.f32.mxu1 %vm15780_vm1, %v15779_v10  ;;  %14917 = vmatprep.subr.mxu1 %v15779_v10 }
0x11a5   :  { %14905 = vmatmul.mubr.msk.f32.vlgmr.msra.gmra.mrb[138].mxu0 %vm367_vm2, %v6213_v47 }
0x11a6   :  { %14913 = vmatpush3.msra.mxu0 %v6369_v60  ;;  %14914 = vmatprep.mubr.msk.f32.mxu0 %vm15780_vm1, %v15779_v10 }
0x11a7   :  { %14922 = vmatprep.subr.mxu0 %v15779_v10 }
0x1267   :  { %v6620_v52 = vpop.f32.mrb[126].mxu1 }
0x1268   :  { %v6468_v62 = vpop.f32.mrb[114].mxu0  ;;  %v14881_v44 = vpop.f32.mrb[127].mxu1  ;;  %v7006_v46 = vmul.f32 0.25, %v6620_v52 }
0x1269   :  { %v7004_v18 = vmul.f32 0.25, %v6468_v62  ;;  %v14871_v40 = vpop.f32.mrb[115].mxu0 }
0x126a   :  { %v7014_v5 = vadd.f32 %v16869_v28, %v7006_v46 }
0x126b   :  { %v7012_v17 = vadd.f32 %v16855_v32, %v7004_v18 }
0x126c   :  { %v6544_v15 = vpop.f32.mrb[132].mxu0  ;;  %v7026_v38 = vsel %vm1040_vm3, %v7014_v5, -inf }
0x126d   :  { %v7005_v43 = vmul.f32 0.25, %v6544_v15  ;;  %v14876_v16 = vpop.f32.mrb[133].mxu0  ;;  %v7020_v50 = vsel %vm1040_vm3, %v7012_v17, -inf }
0x126e   :  { %7021 = vmax.xlane.f32.xlu0 %v7020_v50 }
0x126f   :  { %v7013_v25 = vadd.f32 %v16862_v55, %v7005_v43 }
0x1270   :  { %v6696_v63 = vpop.f32.mrb[134].mxu0  ;;  %v6772_v57 = vpop.f32.mrb[144].mxu1 }
0x1271   :  { %v7007_v26 = vmul.f32 0.25, %v6696_v63  ;;  %v7008_v41 = vmul.f32 0.25, %v6772_v57  ;;  %v14886_v59 = vpop.f32.mrb[135].mxu0  ;;  %v14891_v19 = vpop.f32.mrb[145].mxu1  ;;  %v7023_v32 = vsel %vm1040_vm3, %v7013_v25, -inf }
0x1272   :  { %7027 = vmax.xlane.f32.xlu0 %v7026_v38  ;;  %7024 = vmax.xlane.f32.xlu1 %v7023_v32 }
0x1273   :  { %v7016_v36 = vadd.f32 %v16883_v8, %v7008_v41  ;;  %v7015_v51 = vadd.f32 %v16876_v3, %v7007_v26 }
0x1274   :  { %v6848_v28 = vpop.f32.mrb[136].mxu0  ;;  %v6924_v61 = vpop.f32.mrb[146].mxu1 }
0x1275   :  { %v7009_v12 = vmul.f32 0.25, %v6848_v28  ;;  %v7010_v55 = vmul.f32 0.25, %v6924_v61  ;;  %v14896_v22 = vpop.f32.mrb[137].mxu0  ;;  %v14901_v48 = vpop.f32.mrb[147].mxu1  ;;  %v7032_v24 = vsel %vm1040_vm3, %v7016_v36, -inf  ;;  %v7029_v27 = vsel %vm1040_vm3, %v7015_v51, -inf }
0x1276   :  { %7033 = vmax.xlane.f32.xlu0 %v7032_v24  ;;  %7030 = vmax.xlane.f32.xlu1 %v7029_v27 }
0x1277   :  { %v7018_v58 = vadd.f32 %v16897_v53, %v7010_v55  ;;  %v7017_v45 = vadd.f32 %v16890_v39, %v7009_v12 }
0x1278   :  { %v7000_v31 = vpop.f32.mrb[138].mxu0 }
0x1279   :  { %v7011_v8 = vmul.f32 0.25, %v7000_v31  ;;  %v14906_v9 = vpop.f32.mrb[139].mxu0  ;;  %v7038_v3 = vsel %vm1040_vm3, %v7018_v58, -inf  ;;  %v7035_v11 = vsel %vm1040_vm3, %v7017_v45, -inf }
0x127a   :  { %7039 = vmax.xlane.f32.xlu0 %v7038_v3  ;;  %7036 = vmax.xlane.f32.xlu1 %v7035_v11 }
0x127b   :  { %v7019_v49 = vadd.f32 %v16904_v37, %v7011_v8 }
0x127d   :  { %v7041_v47 = vsel %vm1040_vm3, %v7019_v49, -inf }
0x127e   :  { %7042 = vmax.xlane.f32.xlu1 %v7041_v47 }
0x12fb   :  { %v7022_v60 = vpop.xlane.xlu0 %7021 }
0x12fc   :  { %v7044_v52 = vsub.f32 %v7012_v17, %v7022_v60 }
0x12fe   :  { %v7052_v62 = vmul.f32 1.442695, %v7044_v52 }
0x12ff   :  { %v7028_v53 = vpop.xlane.xlu0 %7027  ;;  %v7025_v44 = vpop.xlane.xlu1 %7024 }
0x1300   :  { %15575 = vpow2.f32 %v7052_v62  ;;  %v7046_v39 = vsub.f32 %v7014_v5, %v7028_v53  ;;  %v7045_v46 = vsub.f32 %v7013_v25, %v7025_v44 }
0x1302   :  { %v7056_v18 = vmul.f32 1.442695, %v7046_v39  ;;  %v7054_v40 = vmul.f32 1.442695, %v7045_v46 }
0x1303   :  { %v7034_v15 = vpop.xlane.xlu0 %7033  ;;  %v7031_v43 = vpop.xlane.xlu1 %7030 }
0x1304   :  { %15577 = vpow2.f32 %v7056_v18  ;;  %v7048_v16 = vsub.f32 %v7016_v36, %v7034_v15  ;;  %v7047_v50 = vsub.f32 %v7015_v51, %v7031_v43 }
0x1305   :  { %15579 = vpow2.f32 %v7054_v40 }
0x1306   :  { %v7060_v37 = vmul.f32 1.442695, %v7048_v16  ;;  %v7058_v63 = vmul.f32 1.442695, %v7047_v50 }
0x1307   :  { %v7040_v57 = vpop.xlane.xlu0 %7039  ;;  %v7037_v26 = vpop.xlane.xlu1 %7036 }
0x1308   :  { %15581 = vpow2.f32 %v7060_v37  ;;  %v7050_v17 = vsub.f32 %v7018_v58, %v7040_v57  ;;  %v7049_v41 = vsub.f32 %v7017_v45, %v7037_v26  ;;  %v15340_v57 = vld [vmem:[%s18423_s8 + $0x18] sm:$0xff]  }
0x1309   :  { %15583 = vpow2.f32 %v7058_v63 }
0x130a   :  { %v15576_v59 = vpop.eup %15575  ;;  %v7064_v19 = vmul.f32 1.442695, %v7050_v17  ;;  %v7062_v5 = vmul.f32 1.442695, %v7049_v41 }
0x130b   :  { %v7043_v25 = vpop.xlane.xlu1 %7042  ;;  %v7068_v38 = vsel %vm1040_vm3, %v15576_v59, 0.0 }
0x130c   :  { %15585 = vpow2.f32 %v7064_v19  ;;  %v7051_v32 = vsub.f32 %v7019_v49, %v7043_v25  ;;  %7069 = vadd.xlane.f32.xlu0 %v7068_v38 }
0x130d   :  { %15587 = vpow2.f32 %v7062_v5 }
0x130e   :  { %v15578_v36 = vpop.eup %15577  ;;  %v7066_v51 = vmul.f32 1.442695, %v7051_v32 }
0x130f   :  { %v15580_v28 = vpop.eup %15579  ;;  %v7074_v61 = vsel %vm1040_vm3, %v15578_v36, 0.0 }
0x1310   :  { %15589 = vpow2.f32 %v7066_v51  ;;  %7075 = vadd.xlane.f32.xlu0 %v7074_v61  ;;  %v7071_v12 = vsel %vm1040_vm3, %v15580_v28, 0.0 }
0x1311   :  { %7072 = vadd.xlane.f32.xlu1 %v7071_v12 }
0x1312   :  { %v15582_v55 = vpop.eup %15581 }
0x1313   :  { %v15584_v22 = vpop.eup %15583  ;;  %v7080_v48 = vsel %vm1040_vm3, %v15582_v55, 0.0 }
0x1314   :  { %7081 = vadd.xlane.f32.xlu0 %v7080_v48  ;;  %v7077_v24 = vsel %vm1040_vm3, %v15584_v22, 0.0 }
0x1315   :  { %7078 = vadd.xlane.f32.xlu1 %v7077_v24 }
0x1316   :  { %v15586_v27 = vpop.eup %15585 }
0x1317   :  { %v15588_v58 = vpop.eup %15587  ;;  %v7086_v45 = vsel %vm1040_vm3, %v15586_v27, 0.0 }
0x1318   :  { %7087 = vadd.xlane.f32.xlu0 %v7086_v45  ;;  %v7083_v31 = vsel %vm1040_vm3, %v15588_v58, 0.0 }
0x1319   :  { %7084 = vadd.xlane.f32.xlu1 %v7083_v31 }
0x131a   :  { %v15590_v8 = vpop.eup %15589 }
0x131b   :  { %v7089_v9 = vsel %vm1040_vm3, %v15590_v8, 0.0 }
0x131d   :  { %7090 = vadd.xlane.f32.xlu1 %v7089_v9 }
0x1399   :  { %v7070_v3 = vpop.xlane.xlu0 %7069 }
0x139a   :  { %15591 = vrcp.f32 %v7070_v3 }
0x139d   :  { %v7076_v11 = vpop.xlane.xlu0 %7075 }
0x139e   :  { %15593 = vrcp.f32 %v7076_v11  ;;  %v7073_v49 = vpop.xlane.xlu1 %7072 }
0x139f   :  { %15595 = vrcp.f32 %v7073_v49 }
0x13a1   :  { %v7082_v47 = vpop.xlane.xlu0 %7081 }
0x13a2   :  { %15597 = vrcp.f32 %v7082_v47  ;;  %v7079_v60 = vpop.xlane.xlu1 %7078 }
0x13a3   :  { %15599 = vrcp.f32 %v7079_v60 }
0x13a4   :  { %v15592_v52 = vpop.eup %15591 }
0x13a5   :  { %v7088_v62 = vpop.xlane.xlu0 %7087  ;;  %v7100_v53 = vmul.f32 %v15592_v52, %v15576_v59 }
0x13a6   :  { %15601 = vrcp.f32 %v7088_v62  ;;  %v7085_v44 = vpop.xlane.xlu1 %7084 }
0x13a7   :  { %15603 = vrcp.f32 %v7085_v44  ;;  %14910 = vmatmul.mubr.msk.f32.vlgmr.msra.gmra.mrb[148].mxu1 %vm1040_vm3, %v7100_v53 }
0x13a8   :  { %v15594_v39 = vpop.eup %15593  ;;  %14918 = vmatpush3.msra.mxu1 %v17011_v13  ;;  %14919 = vmatprep.mubr.msk.f32.mxu1 %vm15780_vm1, %v15779_v10 }
0x13a9   :  { %v15596_v46 = vpop.eup %15595  ;;  %14927 = vmatprep.subr.mxu1 %v15779_v10  ;;  %v7102_v18 = vmul.f32 %v15594_v39, %v15578_v36 }
0x13aa   :  { %v7091_v40 = vpop.xlane.xlu1 %7090  ;;  %v7101_v15 = vmul.f32 %v15596_v46, %v15580_v28 }
0x13ab   :  { %15605 = vrcp.f32 %v7091_v40  ;;  %14920 = vmatmul.mubr.msk.f32.vlgmr.msra.gmra.mrb[150].mxu1 %vm1040_vm3, %v7102_v18 }
0x13ac   :  { %v15598_v43 = vpop.eup %15597  ;;  %14915 = vmatmul.mubr.msk.f32.vlgmr.msra.gmra.mrb[140].mxu0 %vm1040_vm3, %v7101_v15  ;;  %14928 = vmatpush3.msra.mxu1 %v17022_v29 }
0x13ad   :  { %v15600_v16 = vpop.eup %15599  ;;  %14923 = vmatpush3.msra.mxu0 %v17014_v35  ;;  %14924 = vmatprep.mubr.msk.f32.mxu0 %vm15780_vm1, %v15779_v10  ;;  %v7104_v13 = vmul.f32 %v15598_v43, %v15582_v55 }
0x13ae   :  { %14929 = vmatprep.mubr.msk.f32.mxu1 %vm15780_vm1, %v15779_v10  ;;  %14932 = vmatprep.subr.mxu0 %v15779_v10  ;;  %v7103_v50 = vmul.f32 %v15600_v16, %v15584_v22 }
0x13af   :  { %14937 = vmatprep.subr.mxu1 %v15779_v10  ;;  %14930 = vmatmul.mubr.msk.f32.vlgmr.msra.gmra.mrb[152].mxu1 %vm1040_vm3, %v7104_v13 }
0x13b0   :  { %v15602_v37 = vpop.eup %15601  ;;  %14925 = vmatmul.mubr.msk.f32.vlgmr.msra.gmra.mrb[142].mxu0 %vm1040_vm3, %v7103_v50  ;;  %14938 = vmatpush3.msra.mxu1 %v17019_v33 }
0x13b1   :  { %v15604_v35 = vpop.eup %15603  ;;  %v7106_v29 = vmul.f32 %v15602_v37, %v15586_v27  ;;  %14933 = vmatpush3.msra.mxu0 %v17028_v56  ;;  %14934 = vmatprep.mubr.msk.f32.mxu0 %vm15780_vm1, %v15779_v10 }
0x13b2   :  { %14939 = vmatprep.mubr.msk.f32.mxu1 %vm15780_vm1, %v15779_v10  ;;  %14942 = vmatprep.subr.mxu0 %v15779_v10  ;;  %v7105_v63 = vmul.f32 %v15604_v35, %v15588_v58  ;;  %v13417_v58 = vld [vmem:[%s18424_s9 + $0x1] ss:$0 sm:$0xff] }
0x13b3   :  { %14940 = vmatmul.mubr.msk.f32.vlgmr.msra.gmra.mrb[154].mxu1 %vm1040_vm3, %v7106_v29 }
0x13b4   :  { %14935 = vmatmul.mubr.msk.f32.vlgmr.msra.gmra.mrb[144].mxu0 %vm1040_vm3, %v7105_v63  ;;  %8054 = vmatprep.mubr.bf16.mxu1 %v15781_v4 }
0x13b5   :  { %v15606_v33 = vpop.eup %15605  ;;  %14943 = vmatpush3.msra.mxu0 %v17025_v54  ;;  %14944 = vmatprep.mubr.msk.f32.mxu0 %vm15780_vm1, %v15779_v10 }
0x13b6   :  { %v7107_v56 = vmul.f32 %v15606_v33, %v15590_v8  ;;  %14947 = vmatprep.subr.bf16.mxu0 %v15340_v57 }
0x13b8   :  { %14945 = vmatmul.mubr.msk.f32.vlgmr.msra.gmra.mrb[146].mxu0 %vm1040_vm3, %v7107_v56 }
0x13b9   :  { %14948 = vmatpush3.bf16.msra.mxu0 %v15340_v57 }
0x147a   :  { %v7177_v26 = vpop.f32.mrb[148].mxu1 }
0x147b   :  { %v14911_v17 = vpop.f32.mrb[149].mxu1 }
0x147e   :  { %v7323_v41 = vpop.f32.mrb[150].mxu1 }
0x147f   :  { %v7250_v59 = vpop.f32.mrb[140].mxu0  ;;  %v14921_v19 = vpop.f32.mrb[151].mxu1 }
0x1480   :  { %v7692_v5 = vpack.c.bf16 %v7250_v59, %v7177_v26  ;;  %v14916_v25 = vpop.f32.mrb[141].mxu0 }
0x1482   :  { %14949 = vmatprep.mubr.msk.bf16.mxu0 %vm367_vm2, %v7692_v5  ;;  %v7469_v54 = vpop.f32.mrb[152].mxu1 }
0x1483   :  { %v7396_v38 = vpop.f32.mrb[142].mxu0  ;;  %v14931_v32 = vpop.f32.mrb[153].mxu1 }
0x1484   :  { %v7693_v36 = vpack.c.bf16 %v7396_v38, %v7323_v41  ;;  %v14926_v51 = vpop.f32.mrb[143].mxu0 }
0x1486   :  { %14950 = vmatmul.mubr.msk.bf16.vlgmr.msra.gmra.mrb[116].mxu0 %vm367_vm2, %v7693_v36  ;;  %v7615_v28 = vpop.f32.mrb[154].mxu1 }
0x1487   :  { %v7542_v61 = vpop.f32.mrb[144].mxu0  ;;  %v14941_v12 = vpop.f32.mrb[155].mxu1 }
0x1488   :  { %v7694_v55 = vpack.c.bf16 %v7542_v61, %v7469_v54  ;;  %v14936_v22 = vpop.f32.mrb[145].mxu0 }
0x148a   :  { %14953 = vmatprep.mubr.msk.bf16.mxu0 %vm367_vm2, %v7694_v55 }
0x148b   :  { %v7688_v48 = vpop.f32.mrb[146].mxu0 }
0x148c   :  { %v7695_v24 = vpack.c.bf16 %v7688_v48, %v7615_v28  ;;  %v14946_v27 = vpop.f32.mrb[147].mxu0 }
0x148e   :  { %14954 = vmatmul.mubr.msk.bf16.gmra.mrb[120].mxu0 %vm367_vm2, %v7695_v24 }
0x148f   :  { %8127 = vmatprep.mubr.bf16.mxu0 %v15781_v4 }
0x1559   :  { %v14951_v45 = vpop.f32.mrb[116].mxu0 }
0x155a   :  { %v7751_v31 = vpop.f32.mrb[117].mxu0  ;;  %v15221_v8 = vadd.f32 %v14951_v45, %v13417_v58 }
0x155b   :  { %v15222_v9 = vadd.f32 %v13417_v58, %v7751_v31  ;;  %v14952_v3 = vpop.f32.mrb[118].mxu0 }
0x155c   :  { %v7754_v11 = vpop.f32.mrb[119].mxu0  ;;  %v15223_v49 = vadd.f32 %v14952_v3, %v13417_v58  ;;  %v7792_v52 = vadd.f32 %v15221_v8, %v16732_v14 }
0x155d   :  { %v15224_v47 = vadd.f32 %v13417_v58, %v7754_v11  ;;  %v7790_v60 = vadd.f32 %v15222_v9, %v16718_v20 }
0x155e   :  { %v7793_v44 = vadd.f32 %v15223_v49, %v16734_v7  ;;  %v7808_v16 = vsel %vm113_vm0, %v7792_v52, 0.0 }
0x155f   :  { %v7802_v62 = vsel %vm113_vm0, %v7790_v60, 0.0  ;;  %v7791_v53 = vadd.f32 %v15224_v47, %v16720_v21 }
0x1560   :  { %7803 = vadd.xlane.f32.xlu0 %v7802_v62  ;;  %v7811_v21 = vsel %vm113_vm0, %v7793_v44, 0.0 }
0x1561   :  { %v14955_v39 = vpop.f32.mrb[120].mxu0  ;;  %v7805_v46 = vsel %vm113_vm0, %v7791_v53, 0.0 }
0x1562   :  { %7806 = vadd.xlane.f32.xlu1 %v7805_v46  ;;  %v7767_v18 = vpop.f32.mrb[121].mxu0  ;;  %v15225_v40 = vadd.f32 %v14955_v39, %v13417_v58  ;;  %v15343_v46 = vld [vmem:[%s18425_s10 + $0x44] ss:$16 sps:$4 sm:$0xff]  }
0x1563   :  { %v15226_v15 = vadd.f32 %v13417_v58, %v7767_v18  ;;  %v14956_v43 = vpop.f32.mrb[122].mxu0  ;;  %v15346_v18 = vld [vmem:[%s18425_s10 + $0x4c] ss:$16 sps:$4 sm:$0xff]   ;;  %8022 = vmatprep.subr.bf16.mxu1 %v15343_v46 }
0x1564   :  { %7809 = vadd.xlane.f32.xlu0 %v7808_v16  ;;  %v7770_v20 = vpop.f32.mrb[123].mxu0  ;;  %v15227_v13 = vadd.f32 %v14956_v43, %v13417_v58  ;;  %v7796_v7 = vadd.f32 %v15225_v40, %v16765_v42  ;;  %v15341_v40 = vld [vmem:[%s18425_s10 + $0x40] ss:$16 sps:$4 sm:$0xff]   ;;  %8095 = vmatprep.subr.bf16.mxu0 %v15346_v18  ;;  %v15349_v43 = vld [vmem:[%s18425_s10 + $0x64] ss:$16 sps:$4 sm:$0xff]   ;;  %v15358_v18 = vld [vmem:[%s18427_s12 + $0x1c8] sm:$0xff]  }
0x1565   :  { %v7794_v14 = vadd.f32 %v15226_v15, %v16750_v30  ;;  %v15228_v50 = vadd.f32 %v13417_v58, %v7770_v20  ;;  %v15344_v15 = vld [vmem:[%s18425_s10 + $0x48] ss:$16 sps:$4 sm:$0xff]   ;;  %8023 = vmatpush1.bf16.msra.mxu1 %v15341_v40  ;;  %v15352_v16 = vld [vmem:[%s18425_s10 + $0x6c] ss:$16 sps:$4 sm:$0xff]   ;;  %v15347_v20 = vld [vmem:[%s18425_s10 + $0x60] ss:$16 sps:$4 sm:$0xff]  }
0x1566   :  { %7812 = vadd.xlane.f32.xlu1 %v7811_v21  ;;  %v7797_v29 = vadd.f32 %v15227_v13, %v16767_v23  ;;  %v7820_v33 = vsel %vm113_vm0, %v7796_v7, 0.0  ;;  %8096 = vmatpush1.bf16.msra.mxu0 %v15344_v15  ;;  %v15353_v13 = vld [vmem:[%s18427_s12 + $0x140] sm:$0xff]  }
0x1567   :  { %v7795_v37 = vadd.f32 %v15228_v50, %v16752_v0  ;;  %v7814_v35 = vsel %vm113_vm0, %v7794_v14, 0.0  ;;  %8024 = vmatprep.subr.bf16.mxu1 %v15349_v43  ;;  %8097 = vmatprep.subr.bf16.mxu0 %v15352_v16  ;;  %v15354_v50 = vld [vmem:[%s18427_s12 + $0x1c0] sm:$0xff]   ;;  %v15359_v16 = vld [vmem:[%s18427_s12 + $0x108] sm:$0xff]  }
0x1568   :  { %7815 = vadd.xlane.f32.xlu0 %v7814_v35  ;;  %v7823_v30 = vsel %vm113_vm0, %v7797_v29, 0.0 }
0x1569   :  { %v7817_v63 = vsel %vm113_vm0, %v7795_v37, 0.0  ;;  %8025 = vmatpush1.bf16.msra.mxu1 %v15347_v20  ;;  %v15360_v20 = vld [vmem:[%s18427_s12 + $0x188] sm:$0xff]  }
0x156a   :  { %7818 = vadd.xlane.f32.xlu1 %v7817_v63  ;;  %14183 = vmatprep.subr.bf16.mxu1 %v15353_v13 }
0x156c   :  { %7821 = vadd.xlane.f32.xlu0 %v7820_v33 }
0x156e   :  { %7824 = vadd.xlane.f32.xlu1 %v7823_v30 }
0x15ed   :  { %v7804_v56 = vpop.xlane.xlu0 %7803 }
0x15ee   :  { %v7826_v57 = vmul.f32 0.03125, %v7804_v56 }
0x15ef   :  { %v7807_v26 = vpop.xlane.xlu1 %7806 }
0x15f0   :  { %v17165_v42 = vsub.f32 %v7790_v60, %v7826_v57  ;;  %v7827_v0 = vmul.f32 0.03125, %v7807_v26 }
0x15f1   :  { %v7810_v17 = vpop.xlane.xlu0 %7809 }
0x15f2   :  { %v17167_v41 = vsub.f32 %v7791_v53, %v7827_v0  ;;  %v7828_v59 = vmul.f32 0.03125, %v7810_v17  ;;  %v7842_v23 = vmul.f32 %v17165_v42, %v17165_v42 }
0x15f3   :  { %v7813_v19 = vpop.xlane.xlu1 %7812 }
0x15f4   :  { %v17171_v5 = vsub.f32 %v7792_v52, %v7828_v59  ;;  %v7829_v25 = vmul.f32 0.03125, %v7813_v19  ;;  %v7850_v54 = vsel %vm113_vm0, %v7842_v23, 0.0  ;;  %v7843_v38 = vmul.f32 %v17167_v41, %v17167_v41 }
0x15f5   :  { %7851 = vadd.xlane.f32.xlu0 %v7850_v54  ;;  %v7816_v32 = vpop.xlane.xlu0 %7815 }
0x15f6   :  { %v17176_v36 = vsub.f32 %v7793_v44, %v7829_v25  ;;  %v7830_v51 = vmul.f32 0.03125, %v7816_v32  ;;  %v7853_v28 = vsel %vm113_vm0, %v7843_v38, 0.0  ;;  %v7844_v61 = vmul.f32 %v17171_v5, %v17171_v5 }
0x15f7   :  { %7854 = vadd.xlane.f32.xlu1 %v7853_v28  ;;  %v7819_v12 = vpop.xlane.xlu1 %7818  ;;  %v17238_v28 = vld [vmem:[%s18429_s14 + $0x1] ss:$0 sm:$0xff] }
0x15f8   :  { %v17181_v55 = vsub.f32 %v7794_v14, %v7830_v51  ;;  %v7831_v22 = vmul.f32 0.03125, %v7819_v12  ;;  %v7856_v48 = vsel %vm113_vm0, %v7844_v61, 0.0  ;;  %v7845_v24 = vmul.f32 %v17176_v36, %v17176_v36  ;;  %v15350_v14 = vld [vmem:[%s18425_s10 + $0x68] ss:$16 sps:$4 sm:$0xff]  }
0x15f9   :  { %7857 = vadd.xlane.f32.xlu0 %v7856_v48  ;;  %v7822_v27 = vpop.xlane.xlu0 %7821  ;;  %8098 = vmatpush1.bf16.msra.mxu0 %v15350_v14  ;;  %v15361_v14 = vld [vmem:[%s18427_s12 + $0x150] sm:$0xff]  }
0x15fa   :  { %v17186_v58 = vsub.f32 %v7795_v37, %v7831_v22  ;;  %v7832_v45 = vmul.f32 0.03125, %v7822_v27  ;;  %v7859_v31 = vsel %vm113_vm0, %v7845_v24, 0.0  ;;  %v7846_v8 = vmul.f32 %v17181_v55, %v17181_v55  ;;  %14223 = vmatprep.subr.bf16.mxu0 %v15354_v50 }
0x15fb   :  { %7860 = vadd.xlane.f32.xlu1 %v7859_v31  ;;  %v7825_v9 = vpop.xlane.xlu1 %7824 }
0x15fc   :  { %v17191_v3 = vsub.f32 %v7796_v7, %v7832_v45  ;;  %v7833_v11 = vmul.f32 0.03125, %v7825_v9  ;;  %v7862_v49 = vsel %vm113_vm0, %v7846_v8, 0.0  ;;  %v7847_v47 = vmul.f32 %v17186_v58, %v17186_v58  ;;  %v17246_v8 = vld [vmem:[%s18430_s15 + $0x1] ss:$0 sm:$0xff] }
0x15fd   :  { %7863 = vadd.xlane.f32.xlu0 %v7862_v49 }
0x15fe   :  { %v17196_v60 = vsub.f32 %v7797_v29, %v7833_v11  ;;  %v7865_v52 = vsel %vm113_vm0, %v7847_v47, 0.0  ;;  %v7848_v62 = vmul.f32 %v17191_v3, %v17191_v3 }
0x15ff   :  { %7866 = vadd.xlane.f32.xlu1 %v7865_v52 }
0x1600   :  { %v7868_v53 = vsel %vm113_vm0, %v7848_v62, 0.0  ;;  %v7849_v44 = vmul.f32 %v17196_v60, %v17196_v60 }
0x1601   :  { %7869 = vadd.xlane.f32.xlu0 %v7868_v53 }
0x1602   :  { %v7871_v39 = vsel %vm113_vm0, %v7849_v44, 0.0  ;;  %v15355_v44 = vld [vmem:[%s18427_s12 + $0x100] sm:$0xff]  }
0x1603   :  { %7872 = vadd.xlane.f32.xlu1 %v7871_v39 }
0x1682   :  { %v7852_v21 = vpop.xlane.xlu0 %7851 }
0x1683   :  { %v7874_v7 = vmul.f32 0.03125, %v7852_v21 }
0x1684   :  { %v7855_v37 = vpop.xlane.xlu1 %7854 }
0x1685   :  { %v7882_v35 = vadd.f32 1e-05, %v7874_v7  ;;  %v7875_v29 = vmul.f32 0.03125, %v7855_v37  ;;  %v15362_v7 = vld [vmem:[%s18427_s12 + $0x1d0] sm:$0xff]  }
0x1686   :  { %v7858_v63 = vpop.xlane.xlu0 %7857  ;;  %v15363_v37 = vld [vmem:[%s18427_s12 + $0x110] sm:$0xff]  }
0x1687   :  { %15607 = vrsqrt.f32 %v7882_v35  ;;  %v7883_v33 = vadd.f32 1e-05, %v7875_v29  ;;  %v7876_v30 = vmul.f32 0.03125, %v7858_v63  ;;  %v15365_v29 = vld [vmem:[%s18427_s12 + $0x158] sm:$0xff]  }
0x1688   :  { %v7861_v56 = vpop.xlane.xlu1 %7860 }
0x1689   :  { %15609 = vrsqrt.f32 %v7883_v33  ;;  %v7884_v57 = vadd.f32 1e-05, %v7876_v30  ;;  %v7877_v26 = vmul.f32 0.03125, %v7861_v56  ;;  %v15366_v33 = vld [vmem:[%s18427_s12 + $0x1d8] sm:$0xff]  }
0x168a   :  { %v7864_v0 = vpop.xlane.xlu0 %7863 }
0x168b   :  { %15611 = vrsqrt.f32 %v7884_v57  ;;  %v7885_v17 = vadd.f32 1e-05, %v7877_v26  ;;  %v7878_v59 = vmul.f32 0.03125, %v7864_v0  ;;  %v15367_v26 = vld [vmem:[%s18427_s12 + $0x118] sm:$0xff]  }
0x168c   :  { %v7867_v23 = vpop.xlane.xlu1 %7866  ;;  %v15368_v0 = vld [vmem:[%s18427_s12 + $0x198] sm:$0xff]  }
0x168d   :  { %15613 = vrsqrt.f32 %v7885_v17  ;;  %v7879_v19 = vmul.f32 0.03125, %v7867_v23  ;;  %v7886_v25 = vadd.f32 1e-05, %v7878_v59  ;;  %v15369_v17 = vld [vmem:[%s18427_s12 + $0x160] sm:$0xff]  }
0x168e   :  { %v7870_v38 = vpop.xlane.xlu0 %7869 }
0x168f   :  { %v7887_v54 = vadd.f32 1e-05, %v7879_v19  ;;  %v7880_v48 = vmul.f32 0.03125, %v7870_v38  ;;  %v15373_v38 = vld [vmem:[%s18427_s12 + $0x168] sm:$0xff]  }
0x1690   :  { %v7873_v32 = vpop.xlane.xlu1 %7872 }
0x1691   :  { %v15608_v51 = vpop.eup %15607  ;;  %15615 = vrsqrt.f32 %v7887_v54  ;;  %v7881_v61 = vmul.f32 0.03125, %v7873_v32  ;;  %v7888_v49 = vadd.f32 1e-05, %v7880_v48  ;;  %v15371_v54 = vld [vmem:[%s18427_s12 + $0x120] sm:$0xff]   ;;  %v15376_v48 = vld [vmem:[%s18427_s12 + $0x1a8] sm:$0xff]  }
0x1692   :  { %v7898_v12 = vmul.f32 %v15608_v51, %v17165_v42  ;;  %15617 = vrsqrt.f32 %v7886_v25  ;;  %v15370_v25 = vld [vmem:[%s18427_s12 + $0x1e0] sm:$0xff]   ;;  %v15374_v51 = vld [vmem:[%s18427_s12 + $0x1e8] sm:$0xff]  }
0x1693   :  { %v15610_v22 = vpop.eup %15609  ;;  %v7889_v31 = vadd.f32 1e-05, %v7881_v61 }
0x1694   :  { %v7912_v24 = vmul.f32 %v17238_v28, %v7898_v12  ;;  %v7899_v27 = vmul.f32 %v15610_v22, %v17167_v41  ;;  %v15375_v22 = vld [vmem:[%s18427_s12 + $0x128] sm:$0xff]  }
0x1695   :  { %v15612_v45 = vpop.eup %15611  ;;  %15619 = vrsqrt.f32 %v7889_v31  ;;  %v15380_v31 = vld [vmem:[%s18427_s12 + $0x1b0] sm:$0xff]  }
0x1696   :  { %v7913_v9 = vmul.f32 %v17238_v28, %v7899_v27  ;;  %v7900_v42 = vmul.f32 %v15612_v45, %v17171_v5  ;;  %v17252_v52 = vadd.f32 %v17246_v8, %v7912_v24  ;;  %15621 = vrsqrt.f32 %v7888_v49  ;;  %v15356_v5 = vld [vmem:[%s18427_s12 + $0x180] sm:$0xff]   ;;  %v15377_v24 = vld [vmem:[%s18427_s12 + $0x170] sm:$0xff]   ;;  %v15384_v49 = vld [vmem:[%s18427_s12 + $0x1b8] sm:$0xff]  }
0x1697   :  { %v15614_v11 = vpop.eup %15613  ;;  %v15378_v27 = vld [vmem:[%s18427_s12 + $0x1f0] sm:$0xff]  }
0x1698   :  { %v7901_v47 = vmul.f32 %v15614_v11, %v17176_v36  ;;  %v17255_v41 = vadd.f32 %v17246_v8, %v7913_v9  ;;  %v15357_v36 = vld [vmem:[%s18427_s12 + $0x148] sm:$0xff]   ;;  %v7914_v46 = vmul.f32 %v17238_v28, %v7900_v42  ;;  %v15379_v45 = vld [vmem:[%s18427_s12 + $0x130] sm:$0xff]   ;;  %v15382_v9 = vld [vmem:[%s18427_s12 + $0x1f8] sm:$0xff]  }
0x1699   :  { %v15383_v11 = vld [vmem:[%s18427_s12 + $0x138] sm:$0xff]   ;;  %v13497_v42 = vld [vmem:[%s18426_s11 + $0x4] sm:$0xf] }
0x169a   :  { %v7934_v62 = vpack.c.bf16 %v17255_v41, %v17252_v52  ;;  %v7915_v53 = vmul.f32 %v17238_v28, %v7901_v47  ;;  %v17292_v13 = vadd.f32 %v17246_v8, %v7914_v46  ;;  %v17401_v47 = vrot.slane %v13497_v42, %v16555_v2 }
0x169b   :  { %v15616_v39 = vpop.eup %15615 }
0x169c   :  { %13506 = vmatmul.mubr.msk.bf16.vlgmr.msra.gmra.mrb[156].mxu1 %vm113_vm0, %v7934_v62  ;;  %13510 = vmatmul.mubr.msk.bf16.vlgmr.msra.gmra.mrb[148].mxu0 %vm113_vm0, %v7934_v62  ;;  %v15618_v40 = vpop.eup %15617  ;;  %v7903_v15 = vmul.f32 %v15616_v39, %v17186_v58  ;;  %v17279_v43 = vadd.f32 %v17246_v8, %v7915_v53  ;;  %v17404_v62 = vrot.slane %v13497_v42, %v16557_v6 }
0x169d   :  { %8064 = vmatprep.mubr.bf16.mxu1 %v15781_v4  ;;  %8137 = vmatprep.mubr.bf16.mxu0 %v15781_v4  ;;  %v7902_v58 = vmul.f32 %v15618_v40, %v17181_v55  ;;  %v15364_v55 = vld [vmem:[%s18427_s12 + $0x190] sm:$0xff]   ;;  %v17407_v53 = vrot.slane %v13497_v42, %v16562_v34 }
0x169e   :  { %14184 = vmatpush3.bf16.msra.mxu1 %v15355_v44  ;;  %14224 = vmatpush3.bf16.msra.mxu0 %v15356_v5  ;;  %v7935_v50 = vpack.c.bf16 %v17279_v43, %v17292_v13  ;;  %v7917_v21 = vmul.f32 %v17238_v28, %v7903_v15  ;;  %v17410_v44 = vrot.slane %v13497_v42, %v16564_v1 }
0x169f   :  { %14185 = vmatprep.subr.bf16.mxu1 %v15357_v36  ;;  %14225 = vmatprep.subr.bf16.mxu0 %v15358_v18  ;;  %v15620_v35 = vpop.eup %15619  ;;  %v7916_v63 = vmul.f32 %v17238_v28, %v7902_v58 }
0x16a0   :  { %v15622_v30 = vpop.eup %15621  ;;  %v7905_v56 = vmul.f32 %v15620_v35, %v17196_v60  ;;  %v17319_v57 = vadd.f32 %v17246_v8, %v7917_v21 }
0x16a1   :  { %v7904_v60 = vmul.f32 %v15622_v30, %v17191_v3  ;;  %v17332_v59 = vadd.f32 %v17246_v8, %v7916_v63  ;;  %v15372_v3 = vld [vmem:[%s18427_s12 + $0x1a0] sm:$0xff]  }
0x16a2   :  { %14186 = vmatpush3.bf16.msra.mxu1 %v15359_v16  ;;  %14226 = vmatpush3.bf16.msra.mxu0 %v15360_v20  ;;  %v7919_v19 = vmul.f32 %v17238_v28, %v7905_v56 }
0x16a3   :  { %14187 = vmatprep.subr.bf16.mxu1 %v15361_v14  ;;  %14227 = vmatprep.subr.bf16.mxu0 %v15362_v7  ;;  %v7936_v23 = vpack.c.bf16 %v17319_v57, %v17332_v59  ;;  %v7918_v32 = vmul.f32 %v17238_v28, %v7904_v60 }
0x16a4   :  { %13507 = vmatmul.mubr.msk.bf16.gmra.mrb[160].mxu1 %vm113_vm0, %v7935_v50  ;;  %13511 = vmatmul.mubr.msk.bf16.gmra.mrb[152].mxu0 %vm113_vm0, %v7935_v50  ;;  %v17358_v61 = vadd.f32 %v17246_v8, %v7919_v19 }
0x16a5   :  { %8074 = vmatprep.mubr.bf16.mxu1 %v15781_v4  ;;  %8147 = vmatprep.mubr.bf16.mxu0 %v15781_v4  ;;  %v17361_v12 = vadd.f32 %v17246_v8, %v7918_v32  ;;  %v15381_v8 = vld [vmem:[%s18427_s12 + $0x178] sm:$0xff]  }
0x16a6   :  { %14188 = vmatpush3.bf16.msra.mxu1 %v15363_v37  ;;  %14228 = vmatpush3.bf16.msra.mxu0 %v15364_v55 }
0x16a7   :  { %14189 = vmatprep.subr.bf16.mxu1 %v15365_v29  ;;  %14229 = vmatprep.subr.bf16.mxu0 %v15366_v33  ;;  %v7937_v28 = vpack.c.bf16 %v17358_v61, %v17361_v12 }
0x16aa   :  { %14190 = vmatpush3.bf16.msra.mxu1 %v15367_v26  ;;  %14230 = vmatpush3.bf16.msra.mxu0 %v15368_v0 }
0x16ab   :  { %14191 = vmatprep.subr.bf16.mxu1 %v15369_v17  ;;  %14231 = vmatprep.subr.bf16.mxu0 %v15370_v25 }
0x16ac   :  { %13508 = vmatmul.mubr.msk.bf16.gmra.mrb[164].mxu1 %vm113_vm0, %v7936_v23  ;;  %13512 = vmatmul.mubr.msk.bf16.gmra.mrb[156].mxu0 %vm113_vm0, %v7936_v23 }
0x16ad   :  { %8084 = vmatprep.mubr.bf16.mxu1 %v15781_v4  ;;  %8157 = vmatprep.mubr.bf16.mxu0 %v15781_v4 }
0x16ae   :  { %14192 = vmatpush3.bf16.msra.mxu1 %v15371_v54  ;;  %14232 = vmatpush3.bf16.msra.mxu0 %v15372_v3 }
0x16af   :  { %14193 = vmatprep.subr.bf16.mxu1 %v15373_v38  ;;  %14233 = vmatprep.subr.bf16.mxu0 %v15374_v51 }
0x16b2   :  { %14194 = vmatpush3.bf16.msra.mxu1 %v15375_v22  ;;  %14234 = vmatpush3.bf16.msra.mxu0 %v15376_v48 }
0x16b3   :  { %14195 = vmatprep.subr.bf16.mxu1 %v15377_v24  ;;  %14235 = vmatprep.subr.bf16.mxu0 %v15378_v27 }
0x16b4   :  { %13509 = vmatmul.mubr.msk.bf16.gmra.mrb[168].mxu1 %vm113_vm0, %v7937_v28  ;;  %13513 = vmatmul.mubr.msk.bf16.gmra.mrb[160].mxu0 %vm113_vm0, %v7937_v28 }
0x16b6   :  { %14196 = vmatpush3.bf16.msra.mxu1 %v15379_v45  ;;  %14236 = vmatpush3.bf16.msra.mxu0 %v15380_v31 }
0x16b7   :  { %14197 = vmatprep.subr.bf16.mxu1 %v15381_v8  ;;  %14237 = vmatprep.subr.bf16.mxu0 %v15382_v9 }
0x16ba   :  { %14198 = vmatpush3.bf16.msra.mxu1 %v15383_v11  ;;  %14238 = vmatpush3.bf16.msra.mxu0 %v15384_v49 }
0x176f   :  { %v8056_v39 = vpop.f32.mrb[156].mxu1  ;;  %v8129_v5 = vpop.f32.mrb[148].mxu0 }
0x1770   :  { %v8057_v36 = vadd.f32 %v8056_v39, %v17401_v47  ;;  %v8130_v46 = vadd.f32 %v8129_v5, %v17404_v62  ;;  %v8058_v18 = vpop.f32.mrb[157].mxu1  ;;  %v8131_v40 = vpop.f32.mrb[149].mxu0 }
0x1771   :  { %v8059_v15 = vadd.f32 %v8058_v18, %v17407_v53  ;;  %v8132_v16 = vadd.f32 %v8131_v40, %v17410_v44  ;;  %v8060_v20 = vpop.f32.mrb[158].mxu1  ;;  %v8133_v14 = vpop.f32.mrb[150].mxu0 }
0x1772   :  { %v8061_v58 = vadd.f32 %v8060_v20, %v17401_v47  ;;  %v8134_v50 = vadd.f32 %v8133_v14, %v17404_v62  ;;  %v8062_v21 = vpop.f32.mrb[159].mxu1  ;;  %v8135_v7 = vpop.f32.mrb[151].mxu0  ;;  %v8168_v55 = vmax.f32 %v8057_v36, 0.0  ;;  %v8170_v29 = vmax.f32 %v8130_v46, 0.0 }
0x1773   :  { %v8063_v37 = vadd.f32 %v8062_v21, %v17407_v53  ;;  %v8136_v35 = vadd.f32 %v8135_v7, %v17410_v44  ;;  %v8169_v30 = vmax.f32 %v8059_v15, 0.0  ;;  %v8171_v56 = vmax.f32 %v8132_v16, 0.0 }
0x1774   :  { %v8172_v63 = vmax.f32 %v8061_v58, 0.0  ;;  %v8174_v33 = vmax.f32 %v8134_v50, 0.0 }
0x1775   :  { %v8173_v26 = vmax.f32 %v8063_v37, 0.0  ;;  %v8175_v0 = vmax.f32 %v8136_v35, 0.0 }
0x1776   :  { %v8200_v17 = vpack.c.bf16 %v8172_v63, %v8168_v55  ;;  %v8202_v60 = vpack.c.bf16 %v8174_v33, %v8170_v29 }
0x1777   :  { %v8201_v23 = vpack.c.bf16 %v8173_v26, %v8169_v30  ;;  %v8203_v19 = vpack.c.bf16 %v8175_v0, %v8171_v56  ;;  %v8066_v25 = vpop.f32.mrb[160].mxu1  ;;  %v8139_v54 = vpop.f32.mrb[152].mxu0 }
0x1778   :  { %v8067_v3 = vadd.f32 %v8066_v25, %v17401_v47  ;;  %v8140_v38 = vadd.f32 %v8139_v54, %v17404_v62  ;;  %v8068_v32 = vpop.f32.mrb[161].mxu1  ;;  %v8141_v51 = vpop.f32.mrb[153].mxu0 }
0x1779   :  { %v8069_v28 = vadd.f32 %v8068_v32, %v17407_v53  ;;  %v8142_v22 = vadd.f32 %v8141_v51, %v17410_v44  ;;  %v8070_v48 = vpop.f32.mrb[162].mxu1  ;;  %v8143_v24 = vpop.f32.mrb[154].mxu0  ;;  %8513 = vmatprep.mubr.bf16.mxu1 %v8201_v23  ;;  %8578 = vmatprep.mubr.bf16.mxu0 %v8203_v19 }
0x177a   :  { %v8071_v27 = vadd.f32 %v8070_v48, %v17401_v47  ;;  %v8144_v45 = vadd.f32 %v8143_v24, %v17404_v62  ;;  %v8072_v31 = vpop.f32.mrb[163].mxu1  ;;  %v8145_v8 = vpop.f32.mrb[155].mxu0  ;;  %8514 = vmatmul.mubr.bf16.vlgmr.msra.gmra.mrb[172].mxu1 %v8200_v17  ;;  %8579 = vmatmul.mubr.bf16.vlgmr.msra.gmra.mrb[164].mxu0 %v8202_v60  ;;  %v8176_v49 = vmax.f32 %v8067_v3, 0.0  ;;  %v8178_v42 = vmax.f32 %v8140_v38, 0.0 }
0x177b   :  { %v8073_v9 = vadd.f32 %v8072_v31, %v17407_v53  ;;  %v8146_v11 = vadd.f32 %v8145_v8, %v17410_v44  ;;  %v8177_v36 = vmax.f32 %v8069_v28, 0.0  ;;  %v8179_v46 = vmax.f32 %v8142_v22, 0.0 }
0x177c   :  { %v8180_v39 = vmax.f32 %v8071_v27, 0.0  ;;  %v8182_v5 = vmax.f32 %v8144_v45, 0.0 }
0x177d   :  { %v8181_v18 = vmax.f32 %v8073_v9, 0.0  ;;  %v8183_v40 = vmax.f32 %v8146_v11, 0.0 }
0x177e   :  { %v8204_v15 = vpack.c.bf16 %v8180_v39, %v8176_v49  ;;  %v8206_v16 = vpack.c.bf16 %v8182_v5, %v8178_v42 }
0x177f   :  { %v8205_v20 = vpack.c.bf16 %v8181_v18, %v8177_v36  ;;  %v8207_v14 = vpack.c.bf16 %v8183_v40, %v8179_v46  ;;  %v8076_v58 = vpop.f32.mrb[164].mxu1  ;;  %v8149_v50 = vpop.f32.mrb[156].mxu0 }
0x1780   :  { %v8077_v21 = vadd.f32 %v8076_v58, %v17401_v47  ;;  %v8150_v7 = vadd.f32 %v8149_v50, %v17404_v62  ;;  %v8078_v37 = vpop.f32.mrb[165].mxu1  ;;  %v8151_v35 = vpop.f32.mrb[157].mxu0 }
0x1781   :  { %v8079_v55 = vadd.f32 %v8078_v37, %v17407_v53  ;;  %v8152_v29 = vadd.f32 %v8151_v35, %v17410_v44  ;;  %v8080_v63 = vpop.f32.mrb[166].mxu1  ;;  %v8153_v33 = vpop.f32.mrb[158].mxu0  ;;  %8521 = vmatprep.mubr.bf16.mxu1 %v8205_v20  ;;  %8586 = vmatprep.mubr.bf16.mxu0 %v8207_v14 }
0x1782   :  { %v8081_v30 = vadd.f32 %v8080_v63, %v17401_v47  ;;  %v8154_v56 = vadd.f32 %v8153_v33, %v17404_v62  ;;  %v8082_v26 = vpop.f32.mrb[167].mxu1  ;;  %v8155_v0 = vpop.f32.mrb[159].mxu0  ;;  %8522 = vmatmul.mubr.bf16.gmra.mrb[176].mxu1 %v8204_v15  ;;  %8587 = vmatmul.mubr.bf16.gmra.mrb[168].mxu0 %v8206_v16  ;;  %v8184_v23 = vmax.f32 %v8077_v21, 0.0  ;;  %v8186_v19 = vmax.f32 %v8150_v7, 0.0 }
0x1783   :  { %v8083_v17 = vadd.f32 %v8082_v26, %v17407_v53  ;;  %v8156_v60 = vadd.f32 %v8155_v0, %v17410_v44  ;;  %v8185_v3 = vmax.f32 %v8079_v55, 0.0  ;;  %v8187_v38 = vmax.f32 %v8152_v29, 0.0 }
0x1784   :  { %v8188_v25 = vmax.f32 %v8081_v30, 0.0  ;;  %v8190_v54 = vmax.f32 %v8154_v56, 0.0 }
0x1785   :  { %v8189_v32 = vmax.f32 %v8083_v17, 0.0  ;;  %v8191_v51 = vmax.f32 %v8156_v60, 0.0 }
0x1786   :  { %v8208_v28 = vpack.c.bf16 %v8188_v25, %v8184_v23  ;;  %v8210_v22 = vpack.c.bf16 %v8190_v54, %v8186_v19 }
0x1787   :  { %v8209_v48 = vpack.c.bf16 %v8189_v32, %v8185_v3  ;;  %v8211_v24 = vpack.c.bf16 %v8191_v51, %v8187_v38  ;;  %v8086_v27 = vpop.f32.mrb[168].mxu1  ;;  %v8159_v45 = vpop.f32.mrb[160].mxu0 }
0x1788   :  { %v8087_v31 = vadd.f32 %v8086_v27, %v17401_v47  ;;  %v8160_v8 = vadd.f32 %v8159_v45, %v17404_v62  ;;  %v8088_v9 = vpop.f32.mrb[169].mxu1  ;;  %v8161_v11 = vpop.f32.mrb[161].mxu0 }
0x1789   :  { %v8089_v49 = vadd.f32 %v8088_v9, %v17407_v53  ;;  %v8162_v42 = vadd.f32 %v8161_v11, %v17410_v44  ;;  %v8090_v39 = vpop.f32.mrb[170].mxu1  ;;  %v8163_v5 = vpop.f32.mrb[162].mxu0  ;;  %8529 = vmatprep.mubr.bf16.mxu1 %v8209_v48  ;;  %8594 = vmatprep.mubr.bf16.mxu0 %v8211_v24 }
0x178a   :  { %v8091_v36 = vadd.f32 %v8090_v39, %v17401_v47  ;;  %v8164_v46 = vadd.f32 %v8163_v5, %v17404_v62  ;;  %v8092_v18 = vpop.f32.mrb[171].mxu1  ;;  %v8165_v40 = vpop.f32.mrb[163].mxu0  ;;  %8530 = vmatmul.mubr.bf16.gmra.mrb[180].mxu1 %v8208_v28  ;;  %8595 = vmatmul.mubr.bf16.gmra.mrb[172].mxu0 %v8210_v22  ;;  %v8192_v20 = vmax.f32 %v8087_v31, 0.0  ;;  %v8194_v14 = vmax.f32 %v8160_v8, 0.0 }
0x178b   :  { %v8093_v15 = vadd.f32 %v8092_v18, %v17407_v53  ;;  %v8166_v16 = vadd.f32 %v8165_v40, %v17410_v44  ;;  %v8193_v21 = vmax.f32 %v8089_v49, 0.0  ;;  %v8195_v7 = vmax.f32 %v8162_v42, 0.0  ;;  %v17447_v44 = vld [vmem:[%s18428_s13 + $0x1] ss:$0 sm:$0xff] }
0x178c   :  { %v8196_v58 = vmax.f32 %v8091_v36, 0.0  ;;  %v8198_v50 = vmax.f32 %v8164_v46, 0.0 }
0x178d   :  { %v8197_v37 = vmax.f32 %v8093_v15, 0.0  ;;  %v8199_v35 = vmax.f32 %v8166_v16, 0.0 }
0x178e   :  { %v8212_v55 = vpack.c.bf16 %v8196_v58, %v8192_v20  ;;  %v8214_v47 = vpack.c.bf16 %v8198_v50, %v8194_v14 }
0x178f   :  { %v8213_v29 = vpack.c.bf16 %v8197_v37, %v8193_v21  ;;  %v8215_v62 = vpack.c.bf16 %v8199_v35, %v8195_v7 }
0x1791   :  { %8537 = vmatprep.mubr.bf16.mxu1 %v8213_v29  ;;  %8602 = vmatprep.mubr.bf16.mxu0 %v8215_v62 }
0x1792   :  { %8538 = vmatmul.mubr.bf16.gmra.mrb[184].mxu1 %v8212_v55  ;;  %8603 = vmatmul.mubr.bf16.gmra.mrb[176].mxu0 %v8214_v47 }
0x184d   :  { %v14199_v63 = vpop.f32.mrb[172].mxu1  ;;  %v14239_v53 = vpop.f32.mrb[164].mxu0 }
0x184e   :  { %v14200_v33 = vpop.f32.mrb[173].mxu1  ;;  %v14240_v30 = vpop.f32.mrb[165].mxu0 }
0x184f   :  { %v14201_v56 = vadd.f32 %v14200_v33, %v14199_v63  ;;  %v14241_v26 = vadd.f32 %v14240_v30, %v14239_v53  ;;  %v14202_v0 = vpop.f32.mrb[174].mxu1  ;;  %v14242_v17 = vpop.f32.mrb[166].mxu0 }
0x1850   :  { %v14203_v60 = vpop.f32.mrb[175].mxu1  ;;  %v14243_v23 = vpop.f32.mrb[167].mxu0 }
0x1851   :  { %v8516_v19 = vadd.f32 %v14201_v56, %v17447_v44  ;;  %v14204_v25 = vadd.f32 %v14203_v60, %v14202_v0  ;;  %v14244_v54 = vadd.f32 %v14243_v23, %v14242_v17 }
0x1853   :  { %v8581_v3 = vadd.f32 %v14241_v26, %v8516_v19  ;;  %v8519_v38 = vadd.f32 %v14204_v25, %v17447_v44 }
0x1855   :  { %v8584_v32 = vadd.f32 %v14244_v54, %v8519_v38  ;;  %v14205_v51 = vpop.f32.mrb[176].mxu1  ;;  %v14245_v28 = vpop.f32.mrb[168].mxu0  ;;  %v17452_v22 = vadd.f32 %v8581_v3, %v17252_v52 }
0x1856   :  { %v14206_v48 = vpop.f32.mrb[177].mxu1  ;;  %v14246_v24 = vpop.f32.mrb[169].mxu0 }
0x1857   :  { %v14207_v27 = vadd.f32 %v14206_v48, %v14205_v51  ;;  %v14247_v45 = vadd.f32 %v14246_v24, %v14245_v28  ;;  %v14208_v31 = vpop.f32.mrb[178].mxu1  ;;  %v14248_v8 = vpop.f32.mrb[170].mxu0  ;;  %v8623_v9 = vsel %vm113_vm0, %v17452_v22, 0.0  ;;  %v17457_v11 = vadd.f32 %v8584_v32, %v17255_v41 }
0x1858   :  { %v14209_v49 = vpop.f32.mrb[179].mxu1  ;;  %v14249_v42 = vpop.f32.mrb[171].mxu0  ;;  %8624 = vadd.xlane.f32.xlu0 %v8623_v9 }
0x1859   :  { %v8524_v39 = vadd.f32 %v14207_v27, %v17447_v44  ;;  %v14210_v5 = vadd.f32 %v14209_v49, %v14208_v31  ;;  %v14250_v52 = vadd.f32 %v14249_v42, %v14248_v8  ;;  %v8626_v36 = vsel %vm113_vm0, %v17457_v11, 0.0 }
0x185a   :  { %8627 = vadd.xlane.f32.xlu1 %v8626_v36 }
0x185b   :  { %v8589_v46 = vadd.f32 %v14247_v45, %v8524_v39  ;;  %v8527_v18 = vadd.f32 %v14210_v5, %v17447_v44 }
0x185d   :  { %v8592_v40 = vadd.f32 %v14250_v52, %v8527_v18  ;;  %v14211_v15 = vpop.f32.mrb[180].mxu1  ;;  %v14251_v16 = vpop.f32.mrb[172].mxu0  ;;  %v17464_v41 = vadd.f32 %v8589_v46, %v17292_v13 }
0x185e   :  { %v14212_v20 = vpop.f32.mrb[181].mxu1  ;;  %v14252_v14 = vpop.f32.mrb[173].mxu0 }
0x185f   :  { %v14213_v58 = vadd.f32 %v14212_v20, %v14211_v15  ;;  %v14253_v50 = vadd.f32 %v14252_v14, %v14251_v16  ;;  %v14214_v21 = vpop.f32.mrb[182].mxu1  ;;  %v14254_v7 = vpop.f32.mrb[174].mxu0  ;;  %v8629_v37 = vsel %vm113_vm0, %v17464_v41, 0.0  ;;  %v8614_v35 = vadd.f32 %v8592_v40, %v17279_v43 }
0x1860   :  { %v14215_v55 = vpop.f32.mrb[183].mxu1  ;;  %v14255_v47 = vpop.f32.mrb[175].mxu0  ;;  %8630 = vadd.xlane.f32.xlu0 %v8629_v37 }
0x1861   :  { %v8532_v29 = vadd.f32 %v14213_v58, %v17447_v44  ;;  %v14216_v62 = vadd.f32 %v14215_v55, %v14214_v21  ;;  %v14256_v63 = vadd.f32 %v14255_v47, %v14254_v7  ;;  %v8632_v13 = vsel %vm113_vm0, %v8614_v35, 0.0 }
0x1862   :  { %8633 = vadd.xlane.f32.xlu1 %v8632_v13 }
0x1863   :  { %v8597_v53 = vadd.f32 %v14253_v50, %v8532_v29  ;;  %v8535_v33 = vadd.f32 %v14216_v62, %v17447_v44 }
0x1865   :  { %v8600_v30 = vadd.f32 %v14256_v63, %v8535_v33  ;;  %v14217_v56 = vpop.f32.mrb[184].mxu1  ;;  %v14257_v26 = vpop.f32.mrb[176].mxu0  ;;  %v8615_v0 = vadd.f32 %v8597_v53, %v17332_v59 }
0x1866   :  { %v14218_v17 = vpop.f32.mrb[185].mxu1  ;;  %v14258_v43 = vpop.f32.mrb[177].mxu0 }
0x1867   :  { %v14219_v60 = vadd.f32 %v14218_v17, %v14217_v56  ;;  %v14259_v23 = vadd.f32 %v14258_v43, %v14257_v26  ;;  %v14220_v19 = vpop.f32.mrb[186].mxu1  ;;  %v14260_v25 = vpop.f32.mrb[178].mxu0  ;;  %v8635_v54 = vsel %vm113_vm0, %v8615_v0, 0.0  ;;  %v8616_v3 = vadd.f32 %v8600_v30, %v17319_v57 }
0x1868   :  { %v14261_v38 = vpop.f32.mrb[179].mxu0  ;;  %8636 = vadd.xlane.f32.xlu0 %v8635_v54  ;;  %v14221_v32 = vpop.f32.mrb[187].mxu1  ;;  %v15388_v54 = vld [vmem:[%s18418_s3 + $0x48] sm:$0xff]  }
0x1869   :  { %v8540_v51 = vadd.f32 %v14219_v60, %v17447_v44  ;;  %v14262_v28 = vadd.f32 %v14261_v38, %v14260_v25  ;;  %v14222_v48 = vadd.f32 %v14221_v32, %v14220_v19  ;;  %v8638_v24 = vsel %vm113_vm0, %v8616_v3, 0.0  ;;  %v15386_v19 = vld [vmem:[%s18440_s29 + $0x40] sm:$0xff]   ;;  %v15387_v25 = vld [vmem:[%s18440_s29 + $0x48] sm:$0xff]  }
0x186a   :  { %8639 = vadd.xlane.f32.xlu1 %v8638_v24  ;;  %14957 = vmatprep.subr.bf16.mxu1 %v15386_v19 }
0x186b   :  { %v8605_v59 = vadd.f32 %v14259_v23, %v8540_v51  ;;  %v8543_v27 = vadd.f32 %v14222_v48, %v17447_v44  ;;  %v15385_v23 = vld [vmem:[%s18418_s3 + $0x40] sm:$0xff]   ;;  %14958 = vmatpush3.bf16.msra.mxu1 %v15386_v19 }
0x186c   :  { %14969 = vmatprep.subr.bf16.mxu0 %v15385_v23  ;;  %14959 = vmatprep.subr.bf16.mxu1 %v15387_v25 }
0x186d   :  { %v8608_v45 = vadd.f32 %v14262_v28, %v8543_v27  ;;  %v8617_v31 = vadd.f32 %v8605_v59, %v17361_v12  ;;  %14970 = vmatpush3.bf16.msra.mxu0 %v15385_v23 }
0x186e   :  { %14971 = vmatprep.subr.bf16.mxu0 %v15388_v54 }
0x186f   :  { %v8641_v8 = vsel %vm113_vm0, %v8617_v31, 0.0  ;;  %v8618_v57 = vadd.f32 %v8608_v45, %v17358_v61  ;;  %14960 = vmatpush3.bf16.msra.mxu1 %v15387_v25 }
0x1870   :  { %8642 = vadd.xlane.f32.xlu0 %v8641_v8 }
0x1871   :  { %v8644_v9 = vsel %vm113_vm0, %v8618_v57, 0.0  ;;  %14972 = vmatpush3.bf16.msra.mxu0 %v15388_v54 }
0x1872   :  { %8645 = vadd.xlane.f32.xlu1 %v8644_v9  ;;  %14993 = vmatprep.subr.mxu0 %v15779_v10 }
0x18e5   :  { %v8625_v49 = vpop.xlane.xlu0 %8624 }
0x18e6   :  { %v8647_v42 = vmul.f32 0.03125, %v8625_v49  ;;  %v13614_v49 = vld [vmem:[%s18431_s16 + $0x1] ss:$0 sm:$0xff] }
0x18e7   :  { %v8628_v39 = vpop.xlane.xlu1 %8627 }
0x18e8   :  { %v17483_v5 = vsub.f32 %v17452_v22, %v8647_v42  ;;  %v8648_v52 = vmul.f32 0.03125, %v8628_v39 }
0x18ea   :  { %v17486_v44 = vsub.f32 %v17457_v11, %v8648_v52  ;;  %v8663_v12 = vmul.f32 %v17483_v5, %v17483_v5 }
0x18ec   :  { %v8671_v36 = vsel %vm113_vm0, %v8663_v12, 0.0  ;;  %v8664_v61 = vmul.f32 %v17486_v44, %v17486_v44 }
0x18ed   :  { %v8631_v46 = vpop.xlane.xlu0 %8630  ;;  %8672 = vadd.xlane.f32.xlu0 %v8671_v36 }
0x18ee   :  { %v8649_v18 = vmul.f32 0.03125, %v8631_v46  ;;  %v8674_v40 = vsel %vm113_vm0, %v8664_v61, 0.0 }
0x18ef   :  { %v8634_v15 = vpop.xlane.xlu1 %8633  ;;  %8675 = vadd.xlane.f32.xlu1 %v8674_v40 }
0x18f0   :  { %v17495_v22 = vsub.f32 %v17464_v41, %v8649_v18  ;;  %v8650_v11 = vmul.f32 0.03125, %v8634_v15  ;;  %v13615_v18 = vld [vmem:[%s18432_s17 + $0x1] ss:$0 sm:$0xff] }
0x18f2   :  { %v17497_v16 = vsub.f32 %v8614_v35, %v8650_v11  ;;  %v8665_v20 = vmul.f32 %v17495_v22, %v17495_v22 }
0x18f4   :  { %v8677_v14 = vsel %vm113_vm0, %v8665_v20, 0.0  ;;  %v8666_v58 = vmul.f32 %v17497_v16, %v17497_v16 }
0x18f5   :  { %v8637_v50 = vpop.xlane.xlu0 %8636  ;;  %8678 = vadd.xlane.f32.xlu0 %v8677_v14 }
0x18f6   :  { %v8651_v21 = vmul.f32 0.03125, %v8637_v50  ;;  %v8680_v7 = vsel %vm113_vm0, %v8666_v58, 0.0 }
0x18f7   :  { %v8640_v37 = vpop.xlane.xlu1 %8639  ;;  %8681 = vadd.xlane.f32.xlu1 %v8680_v7 }
0x18f8   :  { %v17505_v41 = vsub.f32 %v8615_v0, %v8651_v21  ;;  %v8652_v55 = vmul.f32 0.03125, %v8640_v37 }
0x18fa   :  { %v17507_v35 = vsub.f32 %v8616_v3, %v8652_v55  ;;  %v8667_v47 = vmul.f32 %v17505_v41, %v17505_v41  ;;  %v17541_v3 = vld [vmem:[%s18419_s4 + $0x40] sm:$0xff]  }
0x18fb   :  { %14981 = vmatprep.subr.bf16.mxu1 %v17541_v3 }
0x18fc   :  { %v8683_v29 = vsel %vm113_vm0, %v8667_v47, 0.0  ;;  %v8668_v62 = vmul.f32 %v17507_v35, %v17507_v35 }
0x18fd   :  { %8684 = vadd.xlane.f32.xlu0 %v8683_v29  ;;  %v8643_v63 = vpop.xlane.xlu0 %8642 }
0x18fe   :  { %v8653_v13 = vmul.f32 0.03125, %v8643_v63  ;;  %v8686_v53 = vsel %vm113_vm0, %v8668_v62, 0.0 }
0x18ff   :  { %8687 = vadd.xlane.f32.xlu1 %v8686_v53  ;;  %v8646_v33 = vpop.xlane.xlu1 %8645 }
0x1900   :  { %v17515_v30 = vsub.f32 %v8617_v31, %v8653_v13  ;;  %v8654_v56 = vmul.f32 0.03125, %v8646_v33 }
0x1902   :  { %v17517_v26 = vsub.f32 %v8618_v57, %v8654_v56  ;;  %v8669_v0 = vmul.f32 %v17515_v30, %v17515_v30 }
0x1904   :  { %v8689_v17 = vsel %vm113_vm0, %v8669_v0, 0.0  ;;  %v8670_v43 = vmul.f32 %v17517_v26, %v17517_v26 }
0x1905   :  { %8690 = vadd.xlane.f32.xlu0 %v8689_v17  ;;  %v15390_v17 = vld [vmem:[%s18419_s4 + $0x48] sm:$0xff]  }
0x1906   :  { %v8692_v60 = vsel %vm113_vm0, %v8670_v43, 0.0 }
0x1907   :  { %8693 = vadd.xlane.f32.xlu1 %v8692_v60 }
0x197a   :  { %v8673_v38 = vpop.xlane.xlu0 %8672 }
0x197b   :  { %v8695_v32 = vmul.f32 0.03125, %v8673_v38 }
0x197c   :  { %v8676_v51 = vpop.xlane.xlu1 %8675 }
0x197d   :  { %v8703_v28 = vadd.f32 1e-05, %v8695_v32  ;;  %v8696_v48 = vmul.f32 0.03125, %v8676_v51 }
0x197f   :  { %15623 = vrsqrt.f32 %v8703_v28  ;;  %v8704_v24 = vadd.f32 1e-05, %v8696_v48 }
0x1981   :  { %15625 = vrsqrt.f32 %v8704_v24 }
0x1982   :  { %v8679_v59 = vpop.xlane.xlu0 %8678 }
0x1983   :  { %v8697_v27 = vmul.f32 0.03125, %v8679_v59 }
0x1984   :  { %v8682_v45 = vpop.xlane.xlu1 %8681 }
0x1985   :  { %v8705_v31 = vadd.f32 1e-05, %v8697_v27  ;;  %v8698_v8 = vmul.f32 0.03125, %v8682_v45 }
0x1987   :  { %15627 = vrsqrt.f32 %v8705_v31  ;;  %v8706_v57 = vadd.f32 1e-05, %v8698_v8  ;;  %v13622_v8 = vld [vmem:[%s18420_s5 + $0x4] ss:$0 sm:$0xff] }
0x1989   :  { %v15624_v9 = vpop.eup %15623  ;;  %15629 = vrsqrt.f32 %v8706_v57 }
0x198a   :  { %v8719_v42 = vmul.f32 %v15624_v9, %v17483_v5  ;;  %v8685_v39 = vpop.xlane.xlu0 %8684 }
0x198b   :  { %v15626_v52 = vpop.eup %15625  ;;  %v8699_v12 = vmul.f32 0.03125, %v8685_v39 }
0x198c   :  { %v8733_v36 = vmul.f32 %v13614_v49, %v8719_v42  ;;  %v8720_v61 = vmul.f32 %v15626_v52, %v17486_v44  ;;  %v8688_v46 = vpop.xlane.xlu1 %8687 }
0x198d   :  { %v8707_v40 = vadd.f32 1e-05, %v8699_v12  ;;  %v8700_v15 = vmul.f32 0.03125, %v8688_v46 }
0x198e   :  { %v8734_v11 = vmul.f32 %v13614_v49, %v8720_v61  ;;  %v17552_v14 = vadd.f32 %v13615_v18, %v8733_v36 }
0x198f   :  { %15631 = vrsqrt.f32 %v8707_v40  ;;  %v8708_v20 = vadd.f32 1e-05, %v8700_v15 }
0x1990   :  { %v17554_v58 = vadd.f32 %v13615_v18, %v8734_v11 }
0x1991   :  { %v15628_v5 = vpop.eup %15627  ;;  %15633 = vrsqrt.f32 %v8708_v20 }
0x1992   :  { %v8721_v50 = vmul.f32 %v15628_v5, %v17495_v22  ;;  %v8691_v21 = vpop.xlane.xlu0 %8690  ;;  %v17559_v44 = vpack.c.bf16 %v17554_v58, %v17552_v14 }
0x1993   :  { %v15630_v7 = vpop.eup %15629  ;;  %v8701_v37 = vmul.f32 0.03125, %v8691_v21 }
0x1994   :  { %v8735_v55 = vmul.f32 %v13614_v49, %v8721_v50  ;;  %v8722_v47 = vmul.f32 %v15630_v7, %v17497_v16  ;;  %v8694_v29 = vpop.xlane.xlu1 %8693  ;;  %14961 = vmatprep.mubr.msk.bf16.mxu1 %vm113_vm0, %v17559_v44  ;;  %14973 = vmatprep.mubr.msk.bf16.mxu0 %vm113_vm0, %v17559_v44 }
0x1995   :  { %v8709_v62 = vadd.f32 1e-05, %v8701_v37  ;;  %v8702_v63 = vmul.f32 0.03125, %v8694_v29 }
0x1996   :  { %v8736_v22 = vmul.f32 %v13614_v49, %v8722_v47  ;;  %v17566_v53 = vadd.f32 %v13615_v18, %v8735_v55 }
0x1997   :  { %15635 = vrsqrt.f32 %v8709_v62  ;;  %v8710_v13 = vadd.f32 1e-05, %v8702_v63  ;;  %v13646_v63 = vld [vmem:[%s18422_s7 + $0x4] ss:$0 sm:$0xff] }
0x1998   :  { %v17568_v33 = vadd.f32 %v13615_v18, %v8736_v22 }
0x1999   :  { %v15632_v56 = vpop.eup %15631  ;;  %15637 = vrsqrt.f32 %v8710_v13 }
0x199a   :  { %v8723_v16 = vmul.f32 %v15632_v56, %v17505_v41  ;;  %v17573_v0 = vpack.c.bf16 %v17568_v33, %v17566_v53 }
0x199b   :  { %v15634_v43 = vpop.eup %15633 }
0x199c   :  { %v8737_v60 = vmul.f32 %v13614_v49, %v8723_v16  ;;  %v8724_v23 = vmul.f32 %v15634_v43, %v17507_v35  ;;  %14962 = vmatmul.mubr.msk.bf16.vlgmr.msra.gmra.mrb[188].mxu1 %vm113_vm0, %v17573_v0  ;;  %14974 = vmatmul.mubr.msk.bf16.vlgmr.msra.gmra.mrb[180].mxu0 %vm113_vm0, %v17573_v0 }
0x199d   :  { %14982 = vmatpush3.bf16.msra.mxu1 %v17541_v3 }
0x199e   :  { %v8738_v41 = vmul.f32 %v13614_v49, %v8724_v23  ;;  %14983 = vmatprep.subr.bf16.mxu1 %v15390_v17  ;;  %v17584_v19 = vadd.f32 %v13615_v18, %v8737_v60 }
0x19a0   :  { %v17586_v25 = vadd.f32 %v13615_v18, %v8738_v41 }
0x19a1   :  { %v15636_v54 = vpop.eup %15635  ;;  %14984 = vmatpush3.bf16.msra.mxu1 %v15390_v17 }
0x19a2   :  { %v8725_v38 = vmul.f32 %v15636_v54, %v17515_v30  ;;  %v17591_v35 = vpack.c.bf16 %v17586_v25, %v17584_v19  ;;  %14998 = vmatprep.subr.mxu1 %v15779_v10 }
0x19a3   :  { %v15638_v32 = vpop.eup %15637 }
0x19a4   :  { %v8739_v51 = vmul.f32 %v13614_v49, %v8725_v38  ;;  %v8726_v3 = vmul.f32 %v15638_v32, %v17517_v26  ;;  %14965 = vmatprep.mubr.msk.bf16.mxu1 %vm113_vm0, %v17591_v35  ;;  %14977 = vmatprep.mubr.msk.bf16.mxu0 %vm113_vm0, %v17591_v35  ;;  %v13634_v26 = vld [vmem:[%s18421_s6 + $0x4] ss:$0 sm:$0xff] }
0x19a6   :  { %v8740_v28 = vmul.f32 %v13614_v49, %v8726_v3  ;;  %v17599_v48 = vadd.f32 %v13615_v18, %v8739_v51 }
0x19a8   :  { %v17601_v30 = vadd.f32 %v13615_v18, %v8740_v28 }
0x19aa   :  { %v17605_v24 = vpack.c.bf16 %v17601_v30, %v17599_v48 }
0x19ac   :  { %14966 = vmatmul.mubr.msk.bf16.gmra.mrb[192].mxu1 %vm113_vm0, %v17605_v24  ;;  %14978 = vmatmul.mubr.msk.bf16.gmra.mrb[184].mxu0 %vm113_vm0, %v17605_v24 }
0x19ad   :  { %14985 = vmatprep.mubr.msk.bf16.mxu1 %vm113_vm0, %v17559_v44  ;;  %14995 = vmatprep.mubr.msk.f32.mxu0 %vm15780_vm1, %v15779_v10 }
0x19b4   :  { %14986 = vmatmul.mubr.msk.bf16.vlgmr.msra.gmra.mrb[196].mxu1 %vm113_vm0, %v17573_v0 }
0x19b5   :  { %14989 = vmatprep.mubr.msk.bf16.mxu1 %vm113_vm0, %v17591_v35 }
0x19bc   :  { %14990 = vmatmul.mubr.msk.bf16.gmra.mrb[200].mxu1 %vm113_vm0, %v17605_v24 }
0x19bd   :  { %15000 = vmatprep.mubr.msk.f32.mxu1 %vm15780_vm1, %v15779_v10 }
0x1a6f   :  { %v14963_v59 = vpop.f32.mrb[188].mxu1  ;;  %v14975_v27 = vpop.f32.mrb[180].mxu0 }
0x1a70   :  { %v8832_v45 = vpop.f32.mrb[189].mxu1  ;;  %v8922_v31 = vpop.f32.mrb[181].mxu0  ;;  %v8931_v36 = vadd.f32 %v14975_v27, %v13634_v26  ;;  %v8841_v18 = vadd.f32 %v14963_v59, %v13622_v8 }
0x1a71   :  { %v8923_v57 = vadd.f32 %v13634_v26, %v8922_v31  ;;  %v14964_v9 = vpop.f32.mrb[190].mxu1  ;;  %v14976_v49 = vpop.f32.mrb[182].mxu0  ;;  %v8833_v12 = vadd.f32 %v13622_v8, %v8832_v45 }
0x1a72   :  { %v8835_v42 = vpop.f32.mrb[191].mxu1  ;;  %v8925_v39 = vpop.f32.mrb[183].mxu0  ;;  %v8934_v46 = vadd.f32 %v14976_v49, %v13634_v26  ;;  %v8844_v40 = vadd.f32 %v14964_v9, %v13622_v8 }
0x1a73   :  { %v8926_v52 = vadd.f32 %v13634_v26, %v8925_v39  ;;  %14994 = vmatpush3.xpose.msk.msra.mxu0 %vm367_vm2, %v8923_v57  ;;  %v8836_v61 = vadd.f32 %v13622_v8, %v8835_v42  ;;  %v17689_v42 = vld [vmem:[%s18442_s30] ss:$0 sm:$0xff] }
0x1a74   :  { %15003 = vmatprep.subr.mxu0 %v15779_v10 }
0x1a75   :  { %14999 = vmatpush3.xpose.msk.msra.mxu1 %vm367_vm2, %v8926_v52 }
0x1a76   :  { %14996 = vmatmul.mubr.msk.f32.vlgmr.msra.gmra.mrb[188].mxu0 %vm367_vm2, %v8833_v12  ;;  %15008 = vmatprep.subr.mxu1 %v15779_v10 }
0x1a77   :  { %15004 = vmatpush3.xpose.msk.msra.mxu0 %vm367_vm2, %v8931_v36  ;;  %15005 = vmatprep.mubr.msk.f32.mxu0 %vm15780_vm1, %v15779_v10 }
0x1a78   :  { %15001 = vmatmul.mubr.msk.f32.vlgmr.msra.gmra.mrb[204].mxu1 %vm367_vm2, %v8836_v61  ;;  %15013 = vmatprep.subr.mxu0 %v15779_v10  ;;  %v17695_v61 = vld [vmem:[%s18442_s30 + $0x1] ss:$0 sm:$0xff] }
0x1a79   :  { %15009 = vmatpush3.xpose.msk.msra.mxu1 %vm367_vm2, %v8934_v46  ;;  %15010 = vmatprep.mubr.msk.f32.mxu1 %vm15780_vm1, %v15779_v10 }
0x1a7a   :  { %15006 = vmatmul.mubr.msk.f32.vlgmr.msra.gmra.mrb[190].mxu0 %vm367_vm2, %v8841_v18  ;;  %15018 = vmatprep.subr.mxu1 %v15779_v10 }
0x1a7b   :  { %15015 = vmatprep.mubr.msk.f32.mxu0 %vm15780_vm1, %v15779_v10 }
0x1a7c   :  { %15011 = vmatmul.mubr.msk.f32.vlgmr.msra.gmra.mrb[206].mxu1 %vm367_vm2, %v8844_v40 }
0x1a7d   :  { %15020 = vmatprep.mubr.msk.f32.mxu1 %vm15780_vm1, %v15779_v10 }
0x1a7f   :  { %v14967_v15 = vpop.f32.mrb[192].mxu1  ;;  %v14979_v11 = vpop.f32.mrb[184].mxu0 }
0x1a80   :  { %v8848_v20 = vpop.f32.mrb[193].mxu1  ;;  %v8938_v5 = vpop.f32.mrb[185].mxu0  ;;  %v8947_v62 = vadd.f32 %v14979_v11, %v13634_v26  ;;  %v8857_v16 = vadd.f32 %v14967_v15, %v13622_v8 }
0x1a81   :  { %v8939_v50 = vadd.f32 %v13634_v26, %v8938_v5  ;;  %v14968_v21 = vpop.f32.mrb[194].mxu1  ;;  %v14980_v7 = vpop.f32.mrb[186].mxu0  ;;  %v8849_v29 = vadd.f32 %v13622_v8, %v8848_v20  ;;  %v17702_v20 = vld [vmem:[%s18442_s30 + $0x2] ss:$0 sm:$0xff] }
0x1a82   :  { %v8851_v37 = vpop.f32.mrb[195].mxu1  ;;  %v8941_v55 = vpop.f32.mrb[187].mxu0  ;;  %v8950_v13 = vadd.f32 %v14980_v7, %v13634_v26  ;;  %v8860_v41 = vadd.f32 %v14968_v21, %v13622_v8 }
0x1a83   :  { %v8942_v47 = vadd.f32 %v13634_v26, %v8941_v55  ;;  %15014 = vmatpush3.xpose.msk.msra.mxu0 %vm367_vm2, %v8939_v50  ;;  %v8852_v22 = vadd.f32 %v13622_v8, %v8851_v37  ;;  %v17709_v37 = vld [vmem:[%s18442_s30 + $0x3] ss:$0 sm:$0xff] }
0x1a84   :  { %15023 = vmatprep.subr.mxu0 %v15779_v10 }
0x1a85   :  { %15019 = vmatpush3.xpose.msk.msra.mxu1 %vm367_vm2, %v8942_v47 }
0x1a86   :  { %15016 = vmatmul.mubr.msk.f32.vlgmr.msra.gmra.mrb[192].mxu0 %vm367_vm2, %v8849_v29  ;;  %15028 = vmatprep.subr.mxu1 %v15779_v10 }
0x1a87   :  { %v14987_v56 = vpop.f32.mrb[196].mxu1  ;;  %15024 = vmatpush3.xpose.msk.msra.mxu0 %vm367_vm2, %v8947_v62  ;;  %15025 = vmatprep.mubr.msk.f32.mxu0 %vm15780_vm1, %v15779_v10 }
0x1a88   :  { %v17660_v17 = vadd.f32 %v14987_v56, %v13646_v63  ;;  %v9012_v43 = vpop.f32.mrb[197].mxu1  ;;  %15021 = vmatmul.mubr.msk.f32.vlgmr.msra.gmra.mrb[208].mxu1 %vm367_vm2, %v8852_v22  ;;  %15033 = vmatprep.subr.mxu0 %v15779_v10  ;;  %v17717_v56 = vld [vmem:[%s18442_s30 + $0x4] ss:$0 sm:$0xff] }
0x1a89   :  { %v9013_v60 = vadd.f32 %v13646_v63, %v9012_v43  ;;  %v14988_v23 = vpop.f32.mrb[198].mxu1  ;;  %15029 = vmatpush3.xpose.msk.msra.mxu1 %vm367_vm2, %v8950_v13  ;;  %15030 = vmatprep.mubr.msk.f32.mxu1 %vm15780_vm1, %v15779_v10 }
0x1a8a   :  { %v17667_v54 = vadd.f32 %v14988_v23, %v13646_v63  ;;  %v9015_v38 = vpop.f32.mrb[199].mxu1  ;;  %15026 = vmatmul.mubr.msk.f32.vlgmr.msra.gmra.mrb[194].mxu0 %vm367_vm2, %v8857_v16  ;;  %15038 = vmatprep.subr.mxu1 %v15779_v10 }
0x1a8b   :  { %v9016_v32 = vadd.f32 %v13646_v63, %v9015_v38  ;;  %15034 = vmatpush3.msra.mxu0 %v9013_v60  ;;  %15035 = vmatprep.mubr.msk.f32.mxu0 %vm15780_vm1, %v15779_v10 }
0x1a8c   :  { %15031 = vmatmul.mubr.msk.f32.vlgmr.msra.gmra.mrb[210].mxu1 %vm367_vm2, %v8860_v41  ;;  %15043 = vmatprep.subr.mxu0 %v15779_v10  ;;  %v17723_v41 = vld [vmem:[%s18442_s30 + $0x5] ss:$0 sm:$0xff] }
0x1a8d   :  { %15039 = vmatpush3.msra.mxu1 %v9016_v32  ;;  %15040 = vmatprep.mubr.msk.f32.mxu1 %vm15780_vm1, %v15779_v10 }
0x1a8e   :  { %15048 = vmatprep.subr.mxu1 %v15779_v10 }
0x1a8f   :  { %v14991_v51 = vpop.f32.mrb[200].mxu1 }
0x1a90   :  { %v17678_v3 = vadd.f32 %v14991_v51, %v13646_v63  ;;  %v9028_v28 = vpop.f32.mrb[201].mxu1 }
0x1a91   :  { %v17680_v26 = vadd.f32 %v13646_v63, %v9028_v28  ;;  %v14992_v59 = vpop.f32.mrb[202].mxu1 }
0x1a92   :  { %v17682_v27 = vadd.f32 %v14992_v59, %v13646_v63  ;;  %v9031_v45 = vpop.f32.mrb[203].mxu1 }
0x1a93   :  { %v17684_v31 = vadd.f32 %v13646_v63, %v9031_v45  ;;  %v17730_v45 = vld [vmem:[%s18442_s30 + $0x6] ss:$0 sm:$0xff] }
0x1b49   :  { %v9115_v8 = vpop.f32.mrb[188].mxu0 }
0x1b4a   :  { %v9651_v57 = vmul.f32 0.25, %v9115_v8  ;;  %v14997_v9 = vpop.f32.mrb[189].mxu0 }
0x1b4b   :  { %v9191_v49 = vpop.f32.mrb[204].mxu1 }
0x1b4c   :  { %v9659_v39 = vadd.f32 %v17689_v42, %v9651_v57  ;;  %v9652_v52 = vmul.f32 0.25, %v9191_v49  ;;  %v15002_v12 = vpop.f32.mrb[205].mxu1 }
0x1b4d   :  { %v9267_v36 = vpop.f32.mrb[190].mxu0 }
0x1b4e   :  { %v9660_v46 = vadd.f32 %v17695_v61, %v9652_v52  ;;  %v9653_v18 = vmul.f32 0.25, %v9267_v36  ;;  %v15007_v40 = vpop.f32.mrb[191].mxu0  ;;  %v9667_v15 = vsel %vm1040_vm3, %v9659_v39, -inf  ;;  %v17737_v52 = vld [vmem:[%s18442_s30 + $0x7] ss:$0 sm:$0xff] }
0x1b4f   :  { %9668 = vmax.xlane.f32.xlu0 %v9667_v15  ;;  %v9343_v11 = vpop.f32.mrb[206].mxu1 }
0x1b50   :  { %v9661_v5 = vadd.f32 %v17702_v20, %v9653_v18  ;;  %v9654_v50 = vmul.f32 0.25, %v9343_v11  ;;  %v15012_v21 = vpop.f32.mrb[207].mxu1  ;;  %v9670_v7 = vsel %vm1040_vm3, %v9660_v46, -inf }
0x1b51   :  { %9671 = vmax.xlane.f32.xlu1 %v9670_v7 }
0x1b52   :  { %v9662_v55 = vadd.f32 %v17709_v37, %v9654_v50  ;;  %v9673_v47 = vsel %vm1040_vm3, %v9661_v5, -inf }
0x1b53   :  { %9674 = vmax.xlane.f32.xlu0 %v9673_v47 }
0x1b54   :  { %v9676_v29 = vsel %vm1040_vm3, %v9662_v55, -inf }
0x1b55   :  { %9677 = vmax.xlane.f32.xlu1 %v9676_v29 }
0x1b59   :  { %v9419_v62 = vpop.f32.mrb[192].mxu0 }
0x1b5a   :  { %v9655_v63 = vmul.f32 0.25, %v9419_v62  ;;  %v15017_v22 = vpop.f32.mrb[193].mxu0 }
0x1b5b   :  { %v9495_v13 = vpop.f32.mrb[208].mxu1 }
0x1b5c   :  { %v9663_v16 = vadd.f32 %v17717_v56, %v9655_v63  ;;  %v9656_v43 = vmul.f32 0.25, %v9495_v13  ;;  %v15022_v60 = vpop.f32.mrb[209].mxu1 }
0x1b5d   :  { %v9571_v23 = vpop.f32.mrb[194].mxu0 }
0x1b5e   :  { %v9664_v38 = vadd.f32 %v17723_v41, %v9656_v43  ;;  %v9657_v32 = vmul.f32 0.25, %v9571_v23  ;;  %v15027_v51 = vpop.f32.mrb[195].mxu0  ;;  %v9679_v28 = vsel %vm1040_vm3, %v9663_v16, -inf }
0x1b5f   :  { %v9647_v59 = vpop.f32.mrb[210].mxu1  ;;  %9680 = vmax.xlane.f32.xlu0 %v9679_v28 }
0x1b60   :  { %v9665_v8 = vadd.f32 %v17730_v45, %v9657_v32  ;;  %v9658_v57 = vmul.f32 0.25, %v9647_v59  ;;  %v15032_v9 = vpop.f32.mrb[211].mxu1  ;;  %v9682_v49 = vsel %vm1040_vm3, %v9664_v38, -inf }
0x1b61   :  { %9683 = vmax.xlane.f32.xlu1 %v9682_v49 }
0x1b62   :  { %v9666_v12 = vadd.f32 %v17737_v52, %v9658_v57  ;;  %v9685_v36 = vsel %vm1040_vm3, %v9665_v8, -inf }
0x1b63   :  { %9686 = vmax.xlane.f32.xlu0 %v9685_v36 }
0x1b64   :  { %v9688_v18 = vsel %vm1040_vm3, %v9666_v12, -inf }
0x1b65   :  { %9689 = vmax.xlane.f32.xlu1 %v9688_v18 }
0x1bdc   :  { %v9669_v40 = vpop.xlane.xlu0 %9668 }
0x1bdd   :  { %v9691_v15 = vsub.f32 %v9659_v39, %v9669_v40 }
0x1bde   :  { %v9672_v11 = vpop.xlane.xlu1 %9671 }
0x1bdf   :  { %v9699_v50 = vmul.f32 1.442695, %v9691_v15  ;;  %v9692_v21 = vsub.f32 %v9660_v46, %v9672_v11 }
0x1be0   :  { %v9675_v7 = vpop.xlane.xlu0 %9674 }
0x1be1   :  { %15639 = vpow2.f32 %v9699_v50  ;;  %v9701_v47 = vmul.f32 1.442695, %v9692_v21  ;;  %v9693_v29 = vsub.f32 %v9661_v5, %v9675_v7 }
0x1be2   :  { %v9678_v62 = vpop.xlane.xlu1 %9677 }
0x1be3   :  { %15641 = vpow2.f32 %v9701_v47  ;;  %v9703_v63 = vmul.f32 1.442695, %v9693_v29  ;;  %v9694_v22 = vsub.f32 %v9662_v55, %v9678_v62 }
0x1be5   :  { %15643 = vpow2.f32 %v9703_v63  ;;  %v9705_v13 = vmul.f32 1.442695, %v9694_v22 }
0x1be7   :  { %15645 = vpow2.f32 %v9705_v13 }
0x1beb   :  { %v15640_v43 = vpop.eup %15639 }
0x1bec   :  { %v9681_v60 = vpop.xlane.xlu0 %9680  ;;  %v9715_v23 = vsel %vm1040_vm3, %v15640_v43, 0.0 }
0x1bed   :  { %v15642_v32 = vpop.eup %15641  ;;  %v9695_v39 = vsub.f32 %v9663_v16, %v9681_v60  ;;  %9716 = vadd.xlane.f32.xlu0 %v9715_v23 }
0x1bee   :  { %v9684_v51 = vpop.xlane.xlu1 %9683  ;;  %v9718_v46 = vsel %vm1040_vm3, %v15642_v32, 0.0 }
0x1bef   :  { %v15644_v28 = vpop.eup %15643  ;;  %v9707_v59 = vmul.f32 1.442695, %v9695_v39  ;;  %v9696_v5 = vsub.f32 %v9664_v38, %v9684_v51  ;;  %9719 = vadd.xlane.f32.xlu1 %v9718_v46 }
0x1bf0   :  { %v9687_v57 = vpop.xlane.xlu0 %9686  ;;  %v9721_v55 = vsel %vm1040_vm3, %v15644_v28, 0.0 }
0x1bf1   :  { %v15646_v9 = vpop.eup %15645  ;;  %15647 = vpow2.f32 %v9707_v59  ;;  %v9709_v49 = vmul.f32 1.442695, %v9696_v5  ;;  %v9697_v36 = vsub.f32 %v9665_v8, %v9687_v57  ;;  %9722 = vadd.xlane.f32.xlu0 %v9721_v55 }
0x1bf2   :  { %v9690_v18 = vpop.xlane.xlu1 %9689  ;;  %v9724_v40 = vsel %vm1040_vm3, %v15646_v9, 0.0 }
0x1bf3   :  { %15649 = vpow2.f32 %v9709_v49  ;;  %v9711_v16 = vmul.f32 1.442695, %v9697_v36  ;;  %v9698_v15 = vsub.f32 %v9666_v12, %v9690_v18  ;;  %9725 = vadd.xlane.f32.xlu1 %v9724_v40  ;;  %v15391_v49 = vld [vmem:[%s18440_s29 + $0x50] sm:$0xff]  }
0x1bf5   :  { %15651 = vpow2.f32 %v9711_v16  ;;  %v9713_v11 = vmul.f32 1.442695, %v9698_v15  ;;  %v15394_v16 = vld [vmem:[%s18419_s4 + $0x58] sm:$0xff]   ;;  %v15395_v15 = vld [vmem:[%s18423_s8 + $0x20] sm:$0xff]  }
0x1bf7   :  { %15653 = vpow2.f32 %v9713_v11  ;;  %v15396_v11 = vld [vmem:[%s18418_s3 + $0x50] sm:$0xff]  }
0x1bfb   :  { %v15648_v38 = vpop.eup %15647 }
0x1bfc   :  { %v9727_v50 = vsel %vm1040_vm3, %v15648_v38, 0.0 }
0x1bfd   :  { %v15650_v21 = vpop.eup %15649  ;;  %9728 = vadd.xlane.f32.xlu0 %v9727_v50 }
0x1bfe   :  { %v9730_v7 = vsel %vm1040_vm3, %v15650_v21, 0.0 }
0x1bff   :  { %v15652_v47 = vpop.eup %15651  ;;  %9731 = vadd.xlane.f32.xlu1 %v9730_v7 }
0x1c00   :  { %v9733_v8 = vsel %vm1040_vm3, %v15652_v47, 0.0 }
0x1c01   :  { %v15654_v29 = vpop.eup %15653  ;;  %9734 = vadd.xlane.f32.xlu0 %v9733_v8 }
0x1c02   :  { %v9736_v62 = vsel %vm1040_vm3, %v15654_v29, 0.0 }
0x1c03   :  { %9737 = vadd.xlane.f32.xlu1 %v9736_v62 }
0x1c7a   :  { %v9717_v12 = vpop.xlane.xlu0 %9716 }
0x1c7b   :  { %15655 = vrcp.f32 %v9717_v12 }
0x1c7c   :  { %v9720_v63 = vpop.xlane.xlu1 %9719 }
0x1c7d   :  { %15657 = vrcp.f32 %v9720_v63 }
0x1c7e   :  { %v9723_v22 = vpop.xlane.xlu0 %9722 }
0x1c7f   :  { %15659 = vrcp.f32 %v9723_v22  ;;  %v15397_v22 = vld [vmem:[%s18418_s3 + $0x58] sm:$0xff]  }
0x1c80   :  { %v9726_v13 = vpop.xlane.xlu1 %9725 }
0x1c81   :  { %15661 = vrcp.f32 %v9726_v13 }
0x1c85   :  { %v15656_v60 = vpop.eup %15655 }
0x1c86   :  { %v9747_v23 = vmul.f32 %v15656_v60, %v15640_v43 }
0x1c87   :  { %v15658_v39 = vpop.eup %15657 }
0x1c88   :  { %v9748_v51 = vmul.f32 %v15658_v39, %v15642_v32  ;;  %15036 = vmatmul.mubr.msk.f32.vlgmr.msra.gmra.mrb[196].mxu0 %vm1040_vm3, %v9747_v23 }
0x1c89   :  { %v15660_v46 = vpop.eup %15659  ;;  %15044 = vmatpush3.msra.mxu0 %v17660_v17  ;;  %15045 = vmatprep.mubr.msk.f32.mxu0 %vm15780_vm1, %v15779_v10 }
0x1c8a   :  { %v9749_v59 = vmul.f32 %v15660_v46, %v15644_v28  ;;  %15041 = vmatmul.mubr.msk.f32.vlgmr.msra.gmra.mrb[212].mxu1 %vm1040_vm3, %v9748_v51  ;;  %v9729_v5 = vpop.xlane.xlu0 %9728  ;;  %15053 = vmatprep.subr.mxu0 %v15779_v10 }
0x1c8b   :  { %v15662_v57 = vpop.eup %15661  ;;  %15049 = vmatpush3.msra.mxu1 %v17667_v54  ;;  %15663 = vrcp.f32 %v9729_v5  ;;  %15050 = vmatprep.mubr.msk.f32.mxu1 %vm15780_vm1, %v15779_v10 }
0x1c8c   :  { %v9750_v43 = vmul.f32 %v15662_v57, %v15646_v9  ;;  %v9732_v32 = vpop.xlane.xlu1 %9731  ;;  %15046 = vmatmul.mubr.msk.f32.vlgmr.msra.gmra.mrb[198].mxu0 %vm1040_vm3, %v9749_v59  ;;  %15058 = vmatprep.subr.mxu1 %v15779_v10 }
0x1c8d   :  { %15665 = vrcp.f32 %v9732_v32  ;;  %15054 = vmatpush3.msra.mxu0 %v17680_v26  ;;  %15055 = vmatprep.mubr.msk.f32.mxu0 %vm15780_vm1, %v15779_v10 }
0x1c8e   :  { %15051 = vmatmul.mubr.msk.f32.vlgmr.msra.gmra.mrb[214].mxu1 %vm1040_vm3, %v9750_v43  ;;  %v9735_v17 = vpop.xlane.xlu0 %9734  ;;  %15063 = vmatprep.subr.mxu0 %v15779_v10 }
0x1c8f   :  { %15059 = vmatpush3.msra.mxu1 %v17684_v31  ;;  %15667 = vrcp.f32 %v9735_v17  ;;  %15060 = vmatprep.mubr.msk.f32.mxu1 %vm15780_vm1, %v15779_v10 }
0x1c90   :  { %v9738_v54 = vpop.xlane.xlu1 %9737  ;;  %15068 = vmatprep.subr.mxu1 %v15779_v10 }
0x1c91   :  { %15669 = vrcp.f32 %v9738_v54 }
0x1c95   :  { %v15664_v28 = vpop.eup %15663 }
0x1c96   :  { %v9751_v26 = vmul.f32 %v15664_v28, %v15648_v38 }
0x1c97   :  { %v15666_v55 = vpop.eup %15665 }
0x1c98   :  { %v9752_v9 = vmul.f32 %v15666_v55, %v15650_v21  ;;  %15056 = vmatmul.mubr.msk.f32.vlgmr.msra.gmra.mrb[200].mxu0 %vm1040_vm3, %v9751_v26 }
0x1c99   :  { %v15668_v36 = vpop.eup %15667  ;;  %15064 = vmatpush3.msra.mxu0 %v17678_v3  ;;  %15065 = vmatprep.mubr.msk.f32.mxu0 %vm15780_vm1, %v15779_v10  ;;  %v15392_v3 = vld [vmem:[%s18440_s29 + $0x58] sm:$0xff]  }
0x1c9a   :  { %v9753_v31 = vmul.f32 %v15668_v36, %v15652_v47  ;;  %15061 = vmatmul.mubr.msk.f32.vlgmr.msra.gmra.mrb[216].mxu1 %vm1040_vm3, %v9752_v9  ;;  %15073 = vmatprep.subr.bf16.mxu0 %v15395_v15 }
0x1c9b   :  { %v15670_v18 = vpop.eup %15669  ;;  %15069 = vmatpush3.msra.mxu1 %v17682_v27  ;;  %15070 = vmatprep.mubr.msk.f32.mxu1 %vm15780_vm1, %v15779_v10  ;;  %v15393_v27 = vld [vmem:[%s18419_s4 + $0x50] sm:$0xff]  }
0x1c9c   :  { %v9754_v40 = vmul.f32 %v15670_v18, %v15654_v29  ;;  %15066 = vmatmul.mubr.msk.f32.vlgmr.msra.gmra.mrb[202].mxu0 %vm1040_vm3, %v9753_v31  ;;  %15083 = vmatprep.subr.bf16.mxu1 %v15391_v49 }
0x1c9d   :  { %15074 = vmatpush3.bf16.msra.mxu0 %v15395_v15 }
0x1c9e   :  { %15071 = vmatmul.mubr.msk.f32.vlgmr.msra.gmra.mrb[218].mxu1 %vm1040_vm3, %v9754_v40  ;;  %15095 = vmatprep.subr.bf16.mxu0 %v15396_v11 }
0x1c9f   :  { %15084 = vmatpush3.bf16.msra.mxu1 %v15391_v49  ;;  %15087 = vmatprep.mubr.msk.bf16.mxu1 %vm113_vm0, %v17559_v44 }
0x1ca0   :  { %15085 = vmatprep.subr.bf16.mxu1 %v15392_v3 }
0x1ca3   :  { %15086 = vmatpush3.bf16.msra.mxu1 %v15392_v3 }
0x1ca4   :  { %15107 = vmatprep.subr.bf16.mxu1 %v15393_v27 }
0x1ca6   :  { %15088 = vmatmul.mubr.msk.bf16.vlgmr.msra.gmra.mrb[220].mxu1 %vm113_vm0, %v17573_v0 }
0x1ca7   :  { %15091 = vmatprep.mubr.msk.bf16.mxu1 %vm113_vm0, %v17591_v35  ;;  %15108 = vmatpush3.bf16.msra.mxu1 %v15393_v27 }
0x1ca8   :  { %15109 = vmatprep.subr.bf16.mxu1 %v15394_v16 }
0x1cab   :  { %15110 = vmatpush3.bf16.msra.mxu1 %v15394_v16 }
0x1cac   :  { %15129 = vmatprep.subr.mxu1 %v15779_v10 }
0x1cae   :  { %15092 = vmatmul.mubr.msk.bf16.gmra.mrb[224].mxu1 %vm113_vm0, %v17605_v24 }
0x1caf   :  { %15111 = vmatprep.mubr.msk.bf16.mxu1 %vm113_vm0, %v17559_v44 }
0x1cb6   :  { %15112 = vmatmul.mubr.msk.bf16.vlgmr.msra.gmra.mrb[228].mxu1 %vm113_vm0, %v17573_v0 }
0x1cb7   :  { %15115 = vmatprep.mubr.msk.bf16.mxu1 %vm113_vm0, %v17591_v35 }
0x1cbe   :  { %15116 = vmatmul.mubr.msk.bf16.gmra.mrb[232].mxu1 %vm113_vm0, %v17605_v24 }
0x1cbf   :  { %15131 = vmatprep.mubr.msk.f32.mxu1 %vm15780_vm1, %v15779_v10 }
0x1d5b   :  { %v9824_v38 = vpop.f32.mrb[196].mxu0 }
0x1d5c   :  { %v15037_v50 = vpop.f32.mrb[197].mxu0 }
0x1d5d   :  { %v9897_v21 = vpop.f32.mrb[212].mxu1 }
0x1d5e   :  { %v10339_v7 = vpack.c.bf16 %v9897_v21, %v9824_v38  ;;  %v15042_v47 = vpop.f32.mrb[213].mxu1  ;;  %v13702_v21 = vld [vmem:[%s18421_s6 + $0x5] ss:$0 sm:$0xff] }
0x1d5f   :  { %v9970_v8 = vpop.f32.mrb[198].mxu0  ;;  %v13690_v47 = vld [vmem:[%s18420_s5 + $0x5] ss:$0 sm:$0xff] }
0x1d60   :  { %v15047_v29 = vpop.f32.mrb[199].mxu0  ;;  %15075 = vmatprep.mubr.msk.bf16.mxu0 %vm367_vm2, %v10339_v7 }
0x1d61   :  { %v10043_v62 = vpop.f32.mrb[214].mxu1 }
0x1d62   :  { %v10340_v12 = vpack.c.bf16 %v10043_v62, %v9970_v8  ;;  %v15052_v63 = vpop.f32.mrb[215].mxu1 }
0x1d64   :  { %15076 = vmatmul.mubr.msk.bf16.vlgmr.msra.gmra.mrb[204].mxu0 %vm367_vm2, %v10340_v12 }
0x1d65   :  { %15096 = vmatpush3.bf16.msra.mxu0 %v15396_v11 }
0x1d66   :  { %15097 = vmatprep.subr.bf16.mxu0 %v15397_v22 }
0x1d69   :  { %15098 = vmatpush3.bf16.msra.mxu0 %v15397_v22 }
0x1d6a   :  { %15119 = vmatprep.subr.mxu0 %v15779_v10 }
0x1d6b   :  { %v10116_v13 = vpop.f32.mrb[200].mxu0 }
0x1d6c   :  { %v15057_v60 = vpop.f32.mrb[201].mxu0 }
0x1d6d   :  { %v10189_v23 = vpop.f32.mrb[216].mxu1 }
0x1d6e   :  { %v10341_v39 = vpack.c.bf16 %v10189_v23, %v10116_v13  ;;  %v15062_v51 = vpop.f32.mrb[217].mxu1 }
0x1d6f   :  { %v10262_v46 = vpop.f32.mrb[202].mxu0 }
0x1d70   :  { %v15067_v59 = vpop.f32.mrb[203].mxu0  ;;  %15079 = vmatprep.mubr.msk.bf16.mxu0 %vm367_vm2, %v10341_v39 }
0x1d71   :  { %v10335_v5 = vpop.f32.mrb[218].mxu1 }
0x1d72   :  { %v10342_v57 = vpack.c.bf16 %v10335_v5, %v10262_v46  ;;  %v15072_v43 = vpop.f32.mrb[219].mxu1 }
0x1d74   :  { %15080 = vmatmul.mubr.msk.bf16.gmra.mrb[208].mxu0 %vm367_vm2, %v10342_v57 }
0x1d75   :  { %15099 = vmatprep.mubr.msk.bf16.mxu0 %vm113_vm0, %v17559_v44  ;;  %v17842_v44 = vld [vmem:[%s18422_s7 + $0x5] ss:$0 sm:$0xff] }
0x1d79   :  { %v15089_v32 = vpop.f32.mrb[220].mxu1 }
0x1d7a   :  { %v10502_v17 = vpop.f32.mrb[221].mxu1  ;;  %v10511_v22 = vadd.f32 %v15089_v32, %v13690_v47 }
0x1d7b   :  { %v15090_v54 = vpop.f32.mrb[222].mxu1  ;;  %v10503_v13 = vadd.f32 %v13690_v47, %v10502_v17 }
0x1d7c   :  { %v10505_v28 = vpop.f32.mrb[223].mxu1  ;;  %15100 = vmatmul.mubr.msk.bf16.vlgmr.msra.gmra.mrb[212].mxu0 %vm113_vm0, %v17573_v0  ;;  %v10514_v43 = vadd.f32 %v15090_v54, %v13690_v47 }
0x1d7d   :  { %15103 = vmatprep.mubr.msk.bf16.mxu0 %vm113_vm0, %v17591_v35  ;;  %v10506_v39 = vadd.f32 %v13690_v47, %v10505_v28 }
0x1d81   :  { %v17831_v26 = vpop.f32.mrb[224].mxu1 }
0x1d82   :  { %v10518_v55 = vpop.f32.mrb[225].mxu1  ;;  %v10527_v54 = vadd.f32 %v17831_v26, %v13690_v47 }
0x1d83   :  { %v17833_v9 = vpop.f32.mrb[226].mxu1  ;;  %v10519_v32 = vadd.f32 %v13690_v47, %v10518_v55 }
0x1d84   :  { %v10521_v49 = vpop.f32.mrb[227].mxu1  ;;  %15104 = vmatmul.mubr.msk.bf16.gmra.mrb[216].mxu0 %vm113_vm0, %v17605_v24  ;;  %v10530_v26 = vadd.f32 %v17833_v9, %v13690_v47 }
0x1d85   :  { %15121 = vmatprep.mubr.msk.f32.mxu0 %vm15780_vm1, %v15779_v10  ;;  %v10522_v55 = vadd.f32 %v13690_v47, %v10521_v49 }
0x1d89   :  { %v15113_v0 = vpop.f32.mrb[228].mxu1 }
0x1d8a   :  { %v17845_v35 = vadd.f32 %v15113_v0, %v17842_v44  ;;  %v10682_v36 = vpop.f32.mrb[229].mxu1 }
0x1d8b   :  { %v15114_v31 = vpop.f32.mrb[230].mxu1  ;;  %v10683_v0 = vadd.f32 %v17842_v44, %v10682_v36 }
0x1d8c   :  { %v17848_v18 = vadd.f32 %v15114_v31, %v17842_v44  ;;  %v17850_v40 = vpop.f32.mrb[231].mxu1 }
0x1d8d   :  { %v10686_v49 = vadd.f32 %v17842_v44, %v17850_v40 }
0x1d91   :  { %v15117_v24 = vpop.f32.mrb[232].mxu1 }
0x1d92   :  { %v17853_v3 = vadd.f32 %v15117_v24, %v17842_v44  ;;  %v10698_v27 = vpop.f32.mrb[233].mxu1 }
0x1d93   :  { %v17856_v16 = vadd.f32 %v17842_v44, %v10698_v27  ;;  %v15118_v15 = vpop.f32.mrb[234].mxu1 }
0x1d94   :  { %v17859_v11 = vadd.f32 %v15118_v15, %v17842_v44  ;;  %v10701_v38 = vpop.f32.mrb[235].mxu1 }
0x1d95   :  { %v17862_v50 = vadd.f32 %v17842_v44, %v10701_v38 }
0x1e4f   :  { %v15101_v7 = vpop.f32.mrb[212].mxu0 }
0x1e50   :  { %v10601_v8 = vadd.f32 %v15101_v7, %v13702_v21  ;;  %v10592_v29 = vpop.f32.mrb[213].mxu0 }
0x1e51   :  { %v10593_v62 = vadd.f32 %v13702_v21, %v10592_v29  ;;  %v15102_v12 = vpop.f32.mrb[214].mxu0 }
0x1e52   :  { %v10595_v63 = vpop.f32.mrb[215].mxu0  ;;  %15130 = vmatpush3.xpose.msk.msra.mxu1 %vm367_vm2, %v10601_v8  ;;  %v10604_v46 = vadd.f32 %v15102_v12, %v13702_v21 }
0x1e53   :  { %15120 = vmatpush3.xpose.msk.msra.mxu0 %vm367_vm2, %v10593_v62  ;;  %15139 = vmatprep.subr.mxu1 %v15779_v10  ;;  %v10596_v60 = vadd.f32 %v13702_v21, %v10595_v63 }
0x1e54   :  { %15124 = vmatprep.subr.mxu0 %v15779_v10 }
0x1e55   :  { %15132 = vmatmul.mubr.msk.f32.vlgmr.msra.gmra.mrb[236].mxu1 %vm367_vm2, %v10511_v22 }
0x1e56   :  { %15122 = vmatmul.mubr.msk.f32.vlgmr.msra.gmra.mrb[220].mxu0 %vm367_vm2, %v10503_v13  ;;  %15141 = vmatprep.mubr.msk.f32.mxu1 %vm15780_vm1, %v15779_v10 }
0x1e57   :  { %v15105_v23 = vpop.f32.mrb[216].mxu0  ;;  %15125 = vmatpush3.xpose.msk.msra.mxu0 %vm367_vm2, %v10596_v60  ;;  %15126 = vmatprep.mubr.msk.f32.mxu0 %vm15780_vm1, %v15779_v10 }
0x1e58   :  { %v10608_v51 = vpop.f32.mrb[217].mxu0  ;;  %15134 = vmatprep.subr.mxu0 %v15779_v10  ;;  %v10617_v17 = vadd.f32 %v15105_v23, %v13702_v21 }
0x1e59   :  { %v10609_v59 = vadd.f32 %v13702_v21, %v10608_v51  ;;  %v15106_v5 = vpop.f32.mrb[218].mxu0 }
0x1e5a   :  { %v10611_v57 = vpop.f32.mrb[219].mxu0  ;;  %15127 = vmatmul.mubr.msk.f32.vlgmr.msra.gmra.mrb[222].mxu0 %vm367_vm2, %v10506_v39  ;;  %v10620_v31 = vadd.f32 %v15106_v5, %v13702_v21 }
0x1e5b   :  { %15135 = vmatpush3.xpose.msk.msra.mxu0 %vm367_vm2, %v10604_v46  ;;  %15140 = vmatpush3.xpose.msk.msra.mxu1 %vm367_vm2, %v10609_v59  ;;  %v10612_v28 = vadd.f32 %v13702_v21, %v10611_v57 }
0x1e5c   :  { %15136 = vmatprep.mubr.msk.f32.mxu0 %vm15780_vm1, %v15779_v10  ;;  %15144 = vmatprep.subr.mxu0 %v15779_v10 }
0x1e5d   :  { %15149 = vmatprep.subr.mxu1 %v15779_v10 }
0x1e5e   :  { %15137 = vmatmul.mubr.msk.f32.vlgmr.msra.gmra.mrb[224].mxu0 %vm367_vm2, %v10514_v43  ;;  %15142 = vmatmul.mubr.msk.f32.vlgmr.msra.gmra.mrb[238].mxu1 %vm367_vm2, %v10519_v32 }
0x1e5f   :  { %15145 = vmatpush3.xpose.msk.msra.mxu0 %vm367_vm2, %v10612_v28  ;;  %15150 = vmatpush3.xpose.msk.msra.mxu1 %vm367_vm2, %v10617_v17 }
0x1e60   :  { %15146 = vmatprep.mubr.msk.f32.mxu0 %vm15780_vm1, %v15779_v10  ;;  %15151 = vmatprep.mubr.msk.f32.mxu1 %vm15780_vm1, %v15779_v10 }
0x1e61   :  { %15154 = vmatprep.subr.mxu0 %v15779_v10  ;;  %15159 = vmatprep.subr.mxu1 %v15779_v10 }
0x1e62   :  { %15147 = vmatmul.mubr.msk.f32.vlgmr.msra.gmra.mrb[226].mxu0 %vm367_vm2, %v10522_v55  ;;  %15152 = vmatmul.mubr.msk.f32.vlgmr.msra.gmra.mrb[240].mxu1 %vm367_vm2, %v10527_v54 }
0x1e63   :  { %15155 = vmatpush3.xpose.msk.msra.mxu0 %vm367_vm2, %v10620_v31  ;;  %15160 = vmatpush3.msra.mxu1 %v10683_v0 }
0x1e64   :  { %15156 = vmatprep.mubr.msk.f32.mxu0 %vm15780_vm1, %v15779_v10  ;;  %15164 = vmatprep.subr.mxu0 %v15779_v10 }
0x1e65   :  { %15161 = vmatprep.mubr.msk.f32.mxu1 %vm15780_vm1, %v15779_v10  ;;  %15169 = vmatprep.subr.mxu1 %v15779_v10 }
0x1e66   :  { %15157 = vmatmul.mubr.msk.f32.vlgmr.msra.gmra.mrb[228].mxu0 %vm367_vm2, %v10530_v26 }
0x1e67   :  { %15165 = vmatpush3.msra.mxu0 %v10686_v49  ;;  %15166 = vmatprep.mubr.msk.f32.mxu0 %vm15780_vm1, %v15779_v10 }
0x1e68   :  { %15174 = vmatprep.subr.mxu0 %v15779_v10 }
0x1f28   :  { %v10937_v9 = vpop.f32.mrb[236].mxu1 }
0x1f29   :  { %v10785_v36 = vpop.f32.mrb[220].mxu0  ;;  %v15133_v24 = vpop.f32.mrb[237].mxu1  ;;  %v11323_v27 = vmul.f32 0.25, %v10937_v9 }
0x1f2a   :  { %v11321_v15 = vmul.f32 0.25, %v10785_v36  ;;  %v15123_v38 = vpop.f32.mrb[221].mxu0 }
0x1f2b   :  { %v11331_v21 = vadd.f32 %v17702_v20, %v11323_v27 }
0x1f2c   :  { %v11329_v44 = vadd.f32 %v17689_v42, %v11321_v15 }
0x1f2d   :  { %v10861_v40 = vpop.f32.mrb[222].mxu0  ;;  %v11343_v23 = vsel %vm1040_vm3, %v11331_v21, -inf }
0x1f2e   :  { %v11322_v7 = vmul.f32 0.25, %v10861_v40  ;;  %v15128_v47 = vpop.f32.mrb[223].mxu0  ;;  %v11337_v8 = vsel %vm1040_vm3, %v11329_v44, -inf }
0x1f2f   :  { %11338 = vmax.xlane.f32.xlu0 %v11337_v8 }
0x1f30   :  { %v11330_v29 = vadd.f32 %v17695_v61, %v11322_v7 }
0x1f31   :  { %v11013_v62 = vpop.f32.mrb[224].mxu0  ;;  %v11089_v12 = vpop.f32.mrb[238].mxu1 }
0x1f32   :  { %v11324_v63 = vmul.f32 0.25, %v11013_v62  ;;  %v11325_v22 = vmul.f32 0.25, %v11089_v12  ;;  %v15138_v13 = vpop.f32.mrb[225].mxu0  ;;  %v15143_v60 = vpop.f32.mrb[239].mxu1  ;;  %v11340_v42 = vsel %vm1040_vm3, %v11330_v29, -inf }
0x1f33   :  { %11344 = vmax.xlane.f32.xlu0 %v11343_v23  ;;  %11341 = vmax.xlane.f32.xlu1 %v11340_v42 }
0x1f34   :  { %v11332_v20 = vadd.f32 %v17709_v37, %v11324_v63  ;;  %v11333_v39 = vadd.f32 %v17717_v56, %v11325_v22 }
0x1f35   :  { %v11165_v51 = vpop.f32.mrb[226].mxu0  ;;  %v11241_v46 = vpop.f32.mrb[240].mxu1 }
0x1f36   :  { %v11326_v59 = vmul.f32 0.25, %v11165_v51  ;;  %v11327_v61 = vmul.f32 0.25, %v11241_v46  ;;  %v15148_v5 = vpop.f32.mrb[227].mxu0  ;;  %v15153_v57 = vpop.f32.mrb[241].mxu1  ;;  %v11349_v43 = vsel %vm1040_vm3, %v11333_v39, -inf  ;;  %v11346_v32 = vsel %vm1040_vm3, %v11332_v20, -inf }
0x1f37   :  { %11350 = vmax.xlane.f32.xlu0 %v11349_v43  ;;  %11347 = vmax.xlane.f32.xlu1 %v11346_v32 }
0x1f38   :  { %v11334_v17 = vadd.f32 %v17723_v41, %v11326_v59  ;;  %v11335_v28 = vadd.f32 %v17730_v45, %v11327_v61 }
0x1f39   :  { %v11317_v54 = vpop.f32.mrb[228].mxu0 }
0x1f3a   :  { %v11328_v37 = vmul.f32 0.25, %v11317_v54  ;;  %v15158_v55 = vpop.f32.mrb[229].mxu0  ;;  %v11355_v56 = vsel %vm1040_vm3, %v11335_v28, -inf  ;;  %v11352_v0 = vsel %vm1040_vm3, %v11334_v17, -inf }
0x1f3b   :  { %11356 = vmax.xlane.f32.xlu0 %v11355_v56  ;;  %11353 = vmax.xlane.f32.xlu1 %v11352_v0 }
0x1f3c   :  { %v11336_v31 = vadd.f32 %v17737_v52, %v11328_v37 }
0x1f3e   :  { %v11358_v26 = vsel %vm1040_vm3, %v11336_v31, -inf }
0x1f3f   :  { %11359 = vmax.xlane.f32.xlu1 %v11358_v26 }
0x1fbc   :  { %v11339_v49 = vpop.xlane.xlu0 %11338 }
0x1fbd   :  { %v11361_v9 = vsub.f32 %v11329_v44, %v11339_v49 }
0x1fbf   :  { %v11369_v36 = vmul.f32 1.442695, %v11361_v9 }
0x1fc0   :  { %v11345_v41 = vpop.xlane.xlu0 %11344  ;;  %v11342_v24 = vpop.xlane.xlu1 %11341 }
0x1fc1   :  { %15671 = vpow2.f32 %v11369_v36  ;;  %v11363_v45 = vsub.f32 %v11331_v21, %v11345_v41  ;;  %v11362_v27 = vsub.f32 %v11330_v29, %v11342_v24 }
0x1fc3   :  { %v11373_v15 = vmul.f32 1.442695, %v11363_v45  ;;  %v11371_v38 = vmul.f32 1.442695, %v11362_v27 }
0x1fc4   :  { %v11351_v40 = vpop.xlane.xlu0 %11350  ;;  %v11348_v7 = vpop.xlane.xlu1 %11347 }
0x1fc5   :  { %15673 = vpow2.f32 %v11373_v15  ;;  %v11365_v47 = vsub.f32 %v11333_v39, %v11351_v40  ;;  %v11364_v8 = vsub.f32 %v11332_v20, %v11348_v7 }
0x1fc6   :  { %15675 = vpow2.f32 %v11371_v38 }
0x1fc7   :  { %v11377_v52 = vmul.f32 1.442695, %v11365_v47  ;;  %v11375_v62 = vmul.f32 1.442695, %v11364_v8 }
0x1fc8   :  { %v11357_v12 = vpop.xlane.xlu0 %11356  ;;  %v11354_v63 = vpop.xlane.xlu1 %11353 }
0x1fc9   :  { %15677 = vpow2.f32 %v11377_v52  ;;  %v11367_v44 = vsub.f32 %v11335_v28, %v11357_v12  ;;  %v11366_v22 = vsub.f32 %v11334_v17, %v11354_v63  ;;  %v15398_v12 = vld [vmem:[%s18423_s8 + $0x28] sm:$0xff]  }
0x1fca   :  { %15679 = vpow2.f32 %v11375_v62 }
0x1fcb   :  { %v15672_v13 = vpop.eup %15671  ;;  %v11381_v60 = vmul.f32 1.442695, %v11367_v44  ;;  %v11379_v21 = vmul.f32 1.442695, %v11366_v22 }
0x1fcc   :  { %v11360_v29 = vpop.xlane.xlu1 %11359  ;;  %v11385_v23 = vsel %vm1040_vm3, %v15672_v13, 0.0 }
0x1fcd   :  { %15681 = vpow2.f32 %v11381_v60  ;;  %v11368_v42 = vsub.f32 %v11336_v31, %v11360_v29  ;;  %11386 = vadd.xlane.f32.xlu0 %v11385_v23 }
0x1fce   :  { %15683 = vpow2.f32 %v11379_v21 }
0x1fcf   :  { %v15674_v20 = vpop.eup %15673  ;;  %v11383_v39 = vmul.f32 1.442695, %v11368_v42 }
0x1fd0   :  { %v15676_v51 = vpop.eup %15675  ;;  %v11391_v46 = vsel %vm1040_vm3, %v15674_v20, 0.0 }
0x1fd1   :  { %15685 = vpow2.f32 %v11383_v39  ;;  %11392 = vadd.xlane.f32.xlu0 %v11391_v46  ;;  %v11388_v59 = vsel %vm1040_vm3, %v15676_v51, 0.0 }
0x1fd2   :  { %11389 = vadd.xlane.f32.xlu1 %v11388_v59 }
0x1fd3   :  { %v15678_v61 = vpop.eup %15677 }
0x1fd4   :  { %v15680_v5 = vpop.eup %15679  ;;  %v11397_v57 = vsel %vm1040_vm3, %v15678_v61, 0.0 }
0x1fd5   :  { %11398 = vadd.xlane.f32.xlu0 %v11397_v57  ;;  %v11394_v43 = vsel %vm1040_vm3, %v15680_v5, 0.0 }
0x1fd6   :  { %11395 = vadd.xlane.f32.xlu1 %v11394_v43 }
0x1fd7   :  { %v15682_v32 = vpop.eup %15681 }
0x1fd8   :  { %v15684_v17 = vpop.eup %15683  ;;  %v11403_v28 = vsel %vm1040_vm3, %v15682_v32, 0.0 }
0x1fd9   :  { %11404 = vadd.xlane.f32.xlu0 %v11403_v28  ;;  %v11400_v54 = vsel %vm1040_vm3, %v15684_v17, 0.0 }
0x1fda   :  { %11401 = vadd.xlane.f32.xlu1 %v11400_v54 }
0x1fdb   :  { %v15686_v37 = vpop.eup %15685 }
0x1fdc   :  { %v11406_v55 = vsel %vm1040_vm3, %v15686_v37, 0.0 }
0x1fde   :  { %11407 = vadd.xlane.f32.xlu1 %v11406_v55 }
0x205a   :  { %v11387_v56 = vpop.xlane.xlu0 %11386 }
0x205b   :  { %15687 = vrcp.f32 %v11387_v56 }
0x205e   :  { %v11393_v0 = vpop.xlane.xlu0 %11392 }
0x205f   :  { %15689 = vrcp.f32 %v11393_v0  ;;  %v11390_v31 = vpop.xlane.xlu1 %11389 }
0x2060   :  { %15691 = vrcp.f32 %v11390_v31 }
0x2062   :  { %v11399_v26 = vpop.xlane.xlu0 %11398 }
0x2063   :  { %15693 = vrcp.f32 %v11399_v26  ;;  %v11396_v49 = vpop.xlane.xlu1 %11395 }
0x2064   :  { %15695 = vrcp.f32 %v11396_v49 }
0x2065   :  { %v15688_v9 = vpop.eup %15687 }
0x2066   :  { %v11417_v36 = vmul.f32 %v15688_v9, %v15672_v13  ;;  %v11405_v41 = vpop.xlane.xlu0 %11404 }
0x2067   :  { %15697 = vrcp.f32 %v11405_v41  ;;  %v11402_v24 = vpop.xlane.xlu1 %11401 }
0x2068   :  { %15699 = vrcp.f32 %v11402_v24  ;;  %15162 = vmatmul.mubr.msk.f32.vlgmr.msra.gmra.mrb[242].mxu1 %vm1040_vm3, %v11417_v36 }
0x2069   :  { %v15690_v45 = vpop.eup %15689  ;;  %15170 = vmatpush3.msra.mxu1 %v17845_v35  ;;  %15171 = vmatprep.mubr.msk.f32.mxu1 %vm15780_vm1, %v15779_v10 }
0x206a   :  { %v15692_v27 = vpop.eup %15691  ;;  %v11419_v15 = vmul.f32 %v15690_v45, %v15674_v20  ;;  %15179 = vmatprep.subr.mxu1 %v15779_v10 }
0x206b   :  { %v11418_v38 = vmul.f32 %v15692_v27, %v15676_v51  ;;  %v11408_v40 = vpop.xlane.xlu1 %11407 }
0x206c   :  { %15701 = vrcp.f32 %v11408_v40  ;;  %15172 = vmatmul.mubr.msk.f32.vlgmr.msra.gmra.mrb[244].mxu1 %vm1040_vm3, %v11419_v15 }
0x206d   :  { %v15694_v7 = vpop.eup %15693  ;;  %15167 = vmatmul.mubr.msk.f32.vlgmr.msra.gmra.mrb[230].mxu0 %vm1040_vm3, %v11418_v38  ;;  %15180 = vmatpush3.msra.mxu1 %v17856_v16 }
0x206e   :  { %v15696_v47 = vpop.eup %15695  ;;  %v11421_v8 = vmul.f32 %v15694_v7, %v15678_v61  ;;  %15175 = vmatpush3.msra.mxu0 %v17848_v18  ;;  %15176 = vmatprep.mubr.msk.f32.mxu0 %vm15780_vm1, %v15779_v10 }
0x206f   :  { %v11420_v35 = vmul.f32 %v15696_v47, %v15680_v5  ;;  %15181 = vmatprep.mubr.msk.f32.mxu1 %vm15780_vm1, %v15779_v10  ;;  %15184 = vmatprep.subr.mxu0 %v15779_v10 }
0x2070   :  { %15189 = vmatprep.subr.mxu1 %v15779_v10  ;;  %15182 = vmatmul.mubr.msk.f32.vlgmr.msra.gmra.mrb[246].mxu1 %vm1040_vm3, %v11421_v8 }
0x2071   :  { %v15698_v52 = vpop.eup %15697  ;;  %15177 = vmatmul.mubr.msk.f32.vlgmr.msra.gmra.mrb[232].mxu0 %vm1040_vm3, %v11420_v35  ;;  %15190 = vmatpush3.msra.mxu1 %v17853_v3 }
0x2072   :  { %v15700_v16 = vpop.eup %15699  ;;  %v11423_v18 = vmul.f32 %v15698_v52, %v15682_v32  ;;  %15185 = vmatpush3.msra.mxu0 %v17862_v50  ;;  %15186 = vmatprep.mubr.msk.f32.mxu0 %vm15780_vm1, %v15779_v10  ;;  %v13684_v32 = vld [vmem:[%s18424_s9 + $0x2] ss:$0 sm:$0xff] }
0x2073   :  { %v11422_v62 = vmul.f32 %v15700_v16, %v15684_v17  ;;  %15191 = vmatprep.mubr.msk.f32.mxu1 %vm15780_vm1, %v15779_v10  ;;  %15194 = vmatprep.subr.mxu0 %v15779_v10 }
0x2074   :  { %15192 = vmatmul.mubr.msk.f32.vlgmr.msra.gmra.mrb[248].mxu1 %vm1040_vm3, %v11423_v18 }
0x2075   :  { %15187 = vmatmul.mubr.msk.f32.vlgmr.msra.gmra.mrb[234].mxu0 %vm1040_vm3, %v11422_v62  ;;  %12371 = vmatprep.mubr.bf16.mxu1 %v15781_v4 }
0x2076   :  { %v15702_v3 = vpop.eup %15701  ;;  %15195 = vmatpush3.msra.mxu0 %v17859_v11  ;;  %15196 = vmatprep.mubr.msk.f32.mxu0 %vm15780_vm1, %v15779_v10 }
0x2077   :  { %v11424_v50 = vmul.f32 %v15702_v3, %v15686_v37  ;;  %15199 = vmatprep.subr.bf16.mxu0 %v15398_v12 }
0x2079   :  { %15197 = vmatmul.mubr.msk.f32.vlgmr.msra.gmra.mrb[236].mxu0 %vm1040_vm3, %v11424_v50 }
0x207a   :  { %15200 = vmatpush3.bf16.msra.mxu0 %v15398_v12 }
0x213b   :  { %v11494_v63 = vpop.f32.mrb[242].mxu1 }
0x213c   :  { %v15163_v44 = vpop.f32.mrb[243].mxu1 }
0x213f   :  { %v11640_v22 = vpop.f32.mrb[244].mxu1 }
0x2140   :  { %v11567_v13 = vpop.f32.mrb[230].mxu0  ;;  %v15173_v60 = vpop.f32.mrb[245].mxu1 }
0x2141   :  { %v12009_v21 = vpack.c.bf16 %v11567_v13, %v11494_v63  ;;  %v15168_v29 = vpop.f32.mrb[231].mxu0 }
0x2143   :  { %15201 = vmatprep.mubr.msk.bf16.mxu0 %vm367_vm2, %v12009_v21  ;;  %v11786_v11 = vpop.f32.mrb[246].mxu1 }
0x2144   :  { %v11713_v10 = vpop.f32.mrb[232].mxu0  ;;  %v15183_v23 = vpop.f32.mrb[247].mxu1 }
0x2145   :  { %v12010_v42 = vpack.c.bf16 %v11713_v10, %v11640_v22  ;;  %v15178_v20 = vpop.f32.mrb[233].mxu0 }
0x2147   :  { %15202 = vmatmul.mubr.msk.bf16.vlgmr.msra.gmra.mrb[204].mxu0 %vm367_vm2, %v12010_v42  ;;  %v11932_v39 = vpop.f32.mrb[248].mxu1 }
0x2148   :  { %v11859_v51 = vpop.f32.mrb[234].mxu0  ;;  %v15193_v46 = vpop.f32.mrb[249].mxu1 }
0x2149   :  { %v12011_v59 = vpack.c.bf16 %v11859_v51, %v11786_v11  ;;  %v15188_v61 = vpop.f32.mrb[235].mxu0 }
0x214b   :  { %15205 = vmatprep.mubr.msk.bf16.mxu0 %vm367_vm2, %v12011_v59 }
0x214c   :  { %v12005_v5 = vpop.f32.mrb[236].mxu0 }
0x214d   :  { %v12012_v57 = vpack.c.bf16 %v12005_v5, %v11932_v39  ;;  %v15198_v43 = vpop.f32.mrb[237].mxu0 }
0x214f   :  { %15206 = vmatmul.mubr.msk.bf16.gmra.mrb[208].mxu0 %vm367_vm2, %v12012_v57 }
0x2150   :  { %12444 = vmatprep.mubr.bf16.mxu0 %v15781_v4 }
0x221a   :  { %v15203_v17 = vpop.f32.mrb[204].mxu0 }
0x221b   :  { %v12068_v28 = vpop.f32.mrb[205].mxu0  ;;  %v15229_v54 = vadd.f32 %v15203_v17, %v13684_v32 }
0x221c   :  { %v15230_v37 = vadd.f32 %v13684_v32, %v12068_v28  ;;  %v15204_v55 = vpop.f32.mrb[206].mxu0 }
0x221d   :  { %v12071_v56 = vpop.f32.mrb[207].mxu0  ;;  %v15231_v31 = vadd.f32 %v15204_v55, %v13684_v32  ;;  %v12109_v49 = vadd.f32 %v15229_v54, %v17566_v53 }
0x221e   :  { %v12107_v0 = vadd.f32 %v15230_v37, %v17552_v14  ;;  %v15232_v26 = vadd.f32 %v13684_v32, %v12071_v56 }
0x221f   :  { %v12110_v41 = vadd.f32 %v15231_v31, %v17568_v33  ;;  %v12125_v14 = vsel %vm113_vm0, %v12109_v49, 0.0 }
0x2220   :  { %v12108_v9 = vadd.f32 %v15232_v26, %v17554_v58  ;;  %v12119_v36 = vsel %vm113_vm0, %v12107_v0, 0.0 }
0x2221   :  { %12120 = vadd.xlane.f32.xlu0 %v12119_v36  ;;  %v12128_v8 = vsel %vm113_vm0, %v12110_v41, 0.0 }
0x2222   :  { %v15207_v24 = vpop.f32.mrb[208].mxu0  ;;  %v12122_v45 = vsel %vm113_vm0, %v12108_v9, 0.0 }
0x2223   :  { %12123 = vadd.xlane.f32.xlu1 %v12122_v45  ;;  %v12084_v27 = vpop.f32.mrb[209].mxu0  ;;  %v15233_v15 = vadd.f32 %v15207_v24, %v13684_v32  ;;  %v15401_v24 = vld [vmem:[%s18425_s10 + $0x84] ss:$16 sps:$4 sm:$0xff]   ;;  %v15404_v45 = vld [vmem:[%s18425_s10 + $0x8c] ss:$16 sps:$4 sm:$0xff]  }
0x2224   :  { %v15234_v38 = vadd.f32 %v13684_v32, %v12084_v27  ;;  %v15208_v40 = vpop.f32.mrb[210].mxu0  ;;  %v15399_v27 = vld [vmem:[%s18425_s10 + $0x80] ss:$16 sps:$4 sm:$0xff]   ;;  %12339 = vmatprep.subr.bf16.mxu1 %v15401_v24  ;;  %12412 = vmatprep.subr.bf16.mxu0 %v15404_v45  ;;  %v15416_v24 = vld [vmem:[%s18427_s12 + $0x2c8] sm:$0xff]  }
0x2225   :  { %12126 = vadd.xlane.f32.xlu0 %v12125_v14  ;;  %v12087_v7 = vpop.f32.mrb[211].mxu0  ;;  %v15235_v58 = vadd.f32 %v15208_v40, %v13684_v32  ;;  %v12113_v33 = vadd.f32 %v15233_v15, %v17599_v48  ;;  %v15402_v15 = vld [vmem:[%s18425_s10 + $0x88] ss:$16 sps:$4 sm:$0xff]   ;;  %12340 = vmatpush1.bf16.msra.mxu1 %v15399_v27  ;;  %v15410_v40 = vld [vmem:[%s18425_s10 + $0xac] ss:$16 sps:$4 sm:$0xff]  }
0x2226   :  { %v12111_v53 = vadd.f32 %v15234_v38, %v17584_v19  ;;  %v15236_v47 = vadd.f32 %v13684_v32, %v12087_v7  ;;  %12413 = vmatpush1.bf16.msra.mxu0 %v15402_v15  ;;  %v15407_v38 = vld [vmem:[%s18425_s10 + $0xa4] ss:$16 sps:$4 sm:$0xff]   ;;  %v15405_v14 = vld [vmem:[%s18425_s10 + $0xa0] ss:$16 sps:$4 sm:$0xff]   ;;  %v15408_v7 = vld [vmem:[%s18425_s10 + $0xa8] ss:$16 sps:$4 sm:$0xff]  }
0x2227   :  { %12129 = vadd.xlane.f32.xlu1 %v12128_v8  ;;  %v12114_v16 = vadd.f32 %v15235_v58, %v17601_v30  ;;  %v12137_v62 = vsel %vm113_vm0, %v12113_v33, 0.0  ;;  %12341 = vmatprep.subr.bf16.mxu1 %v15407_v38  ;;  %v15412_v58 = vld [vmem:[%s18427_s12 + $0x2c0] sm:$0xff]   ;;  %v15417_v38 = vld [vmem:[%s18427_s12 + $0x208] sm:$0xff]  }
0x2228   :  { %v12112_v35 = vadd.f32 %v15236_v47, %v17586_v25  ;;  %v12131_v52 = vsel %vm113_vm0, %v12111_v53, 0.0  ;;  %12414 = vmatprep.subr.bf16.mxu0 %v15410_v40  ;;  %v15418_v40 = vld [vmem:[%s18427_s12 + $0x288] sm:$0xff]  }
0x2229   :  { %12132 = vadd.xlane.f32.xlu0 %v12131_v52  ;;  %v12140_v19 = vsel %vm113_vm0, %v12114_v16, 0.0  ;;  %12342 = vmatpush1.bf16.msra.mxu1 %v15405_v14  ;;  %v15419_v14 = vld [vmem:[%s18427_s12 + $0x250] sm:$0xff]  }
0x222a   :  { %v12134_v18 = vsel %vm113_vm0, %v12112_v35, 0.0  ;;  %12415 = vmatpush1.bf16.msra.mxu0 %v15408_v7 }
0x222b   :  { %12135 = vadd.xlane.f32.xlu1 %v12134_v18  ;;  %14413 = vmatprep.subr.bf16.mxu0 %v15412_v58 }
0x222d   :  { %12138 = vadd.xlane.f32.xlu0 %v12137_v62 }
0x222f   :  { %12141 = vadd.xlane.f32.xlu1 %v12140_v19 }
0x22ae   :  { %v12121_v3 = vpop.xlane.xlu0 %12120 }
0x22af   :  { %v12143_v50 = vmul.f32 0.03125, %v12121_v3 }
0x22b0   :  { %v12124_v12 = vpop.xlane.xlu1 %12123 }
0x22b1   :  { %v17999_v48 = vsub.f32 %v12107_v0, %v12143_v50  ;;  %v12144_v25 = vmul.f32 0.03125, %v12124_v12 }
0x22b2   :  { %v12127_v63 = vpop.xlane.xlu0 %12126 }
0x22b3   :  { %v18001_v44 = vsub.f32 %v12108_v9, %v12144_v25  ;;  %v12145_v22 = vmul.f32 0.03125, %v12127_v63  ;;  %v12159_v30 = vmul.f32 %v17999_v48, %v17999_v48 }
0x22b4   :  { %v12130_v13 = vpop.xlane.xlu1 %12129 }
0x22b5   :  { %v18005_v60 = vsub.f32 %v12109_v49, %v12145_v22  ;;  %v12146_v21 = vmul.f32 0.03125, %v12130_v13  ;;  %v12167_v29 = vsel %vm113_vm0, %v12159_v30, 0.0  ;;  %v12160_v11 = vmul.f32 %v18001_v44, %v18001_v44 }
0x22b6   :  { %12168 = vadd.xlane.f32.xlu0 %v12167_v29  ;;  %v12133_v10 = vpop.xlane.xlu0 %12132 }
0x22b7   :  { %v18010_v23 = vsub.f32 %v12110_v41, %v12146_v21  ;;  %v12147_v42 = vmul.f32 0.03125, %v12133_v10  ;;  %v12170_v20 = vsel %vm113_vm0, %v12160_v11, 0.0  ;;  %v12161_v39 = vmul.f32 %v18005_v60, %v18005_v60 }
0x22b8   :  { %12171 = vadd.xlane.f32.xlu1 %v12170_v20  ;;  %v12136_v51 = vpop.xlane.xlu1 %12135 }
0x22b9   :  { %v18015_v46 = vsub.f32 %v12111_v53, %v12147_v42  ;;  %v12148_v59 = vmul.f32 0.03125, %v12136_v51  ;;  %v12173_v61 = vsel %vm113_vm0, %v12161_v39, 0.0  ;;  %v12162_v5 = vmul.f32 %v18010_v23, %v18010_v23  ;;  %v15411_v53 = vld [vmem:[%s18427_s12 + $0x240] sm:$0xff]  }
0x22ba   :  { %12174 = vadd.xlane.f32.xlu0 %v12173_v61  ;;  %v12139_v57 = vpop.xlane.xlu0 %12138  ;;  %14373 = vmatprep.subr.bf16.mxu1 %v15411_v53  ;;  %v18072_v42 = vld [vmem:[%s18429_s14 + $0x2] ss:$0 sm:$0xff] }
0x22bb   :  { %v18020_v43 = vsub.f32 %v12112_v35, %v12148_v59  ;;  %v12149_v32 = vmul.f32 0.03125, %v12139_v57  ;;  %v12176_v17 = vsel %vm113_vm0, %v12162_v5, 0.0  ;;  %v12163_v28 = vmul.f32 %v18015_v46, %v18015_v46 }
0x22bc   :  { %12177 = vadd.xlane.f32.xlu1 %v12176_v17  ;;  %v12142_v54 = vpop.xlane.xlu1 %12141 }
0x22bd   :  { %v18025_v37 = vsub.f32 %v12113_v33, %v12149_v32  ;;  %v12150_v55 = vmul.f32 0.03125, %v12142_v54  ;;  %v12179_v56 = vsel %vm113_vm0, %v12163_v28, 0.0  ;;  %v12164_v0 = vmul.f32 %v18020_v43, %v18020_v43  ;;  %v18080_v32 = vld [vmem:[%s18430_s15 + $0x2] ss:$0 sm:$0xff] }
0x22be   :  { %12180 = vadd.xlane.f32.xlu0 %v12179_v56 }
0x22bf   :  { %v18030_v31 = vsub.f32 %v12114_v16, %v12150_v55  ;;  %v12182_v26 = vsel %vm113_vm0, %v12164_v0, 0.0  ;;  %v12165_v49 = vmul.f32 %v18025_v37, %v18025_v37 }
0x22c0   :  { %12183 = vadd.xlane.f32.xlu1 %v12182_v26 }
0x22c1   :  { %v12185_v9 = vsel %vm113_vm0, %v12165_v49, 0.0  ;;  %v12166_v36 = vmul.f32 %v18030_v31, %v18030_v31 }
0x22c2   :  { %12186 = vadd.xlane.f32.xlu0 %v12185_v9  ;;  %v15413_v9 = vld [vmem:[%s18427_s12 + $0x200] sm:$0xff]  }
0x22c3   :  { %v12188_v41 = vsel %vm113_vm0, %v12166_v36, 0.0 }
0x22c4   :  { %12189 = vadd.xlane.f32.xlu1 %v12188_v41 }
0x2343   :  { %v12169_v47 = vpop.xlane.xlu0 %12168 }
0x2344   :  { %v12191_v8 = vmul.f32 0.03125, %v12169_v47  ;;  %v15420_v47 = vld [vmem:[%s18427_s12 + $0x2d0] sm:$0xff]  }
0x2345   :  { %v12172_v33 = vpop.xlane.xlu1 %12171 }
0x2346   :  { %v12199_v35 = vadd.f32 1e-05, %v12191_v8  ;;  %v12192_v52 = vmul.f32 0.03125, %v12172_v33  ;;  %v15421_v8 = vld [vmem:[%s18427_s12 + $0x210] sm:$0xff]  }
0x2347   :  { %v12175_v16 = vpop.xlane.xlu0 %12174 }
0x2348   :  { %15703 = vrsqrt.f32 %v12199_v35  ;;  %v12200_v18 = vadd.f32 1e-05, %v12192_v52  ;;  %v12193_v62 = vmul.f32 0.03125, %v12175_v16  ;;  %v15423_v35 = vld [vmem:[%s18427_s12 + $0x258] sm:$0xff]  }
0x2349   :  { %v12178_v19 = vpop.xlane.xlu1 %12177  ;;  %v15424_v16 = vld [vmem:[%s18427_s12 + $0x2d8] sm:$0xff]  }
0x234a   :  { %15705 = vrsqrt.f32 %v12200_v18  ;;  %v12201_v3 = vadd.f32 1e-05, %v12193_v62  ;;  %v12194_v50 = vmul.f32 0.03125, %v12178_v19 }
0x234b   :  { %v12181_v12 = vpop.xlane.xlu0 %12180 }
0x234c   :  { %15707 = vrsqrt.f32 %v12201_v3  ;;  %v12202_v25 = vadd.f32 1e-05, %v12194_v50  ;;  %v12195_v63 = vmul.f32 0.03125, %v12181_v12  ;;  %v15425_v3 = vld [vmem:[%s18427_s12 + $0x218] sm:$0xff]   ;;  %v15427_v12 = vld [vmem:[%s18427_s12 + $0x260] sm:$0xff]  }
0x234d   :  { %v12184_v22 = vpop.xlane.xlu1 %12183  ;;  %v15426_v50 = vld [vmem:[%s18427_s12 + $0x298] sm:$0xff]  }
0x234e   :  { %15709 = vrsqrt.f32 %v12202_v25  ;;  %v12196_v30 = vmul.f32 0.03125, %v12184_v22  ;;  %v12203_v13 = vadd.f32 1e-05, %v12195_v63 }
0x234f   :  { %v12187_v29 = vpop.xlane.xlu0 %12186 }
0x2350   :  { %v12204_v21 = vadd.f32 1e-05, %v12196_v30  ;;  %v12197_v59 = vmul.f32 0.03125, %v12187_v29  ;;  %v15428_v30 = vld [vmem:[%s18427_s12 + $0x2e0] sm:$0xff]  }
0x2351   :  { %v12190_v11 = vpop.xlane.xlu1 %12189 }
0x2352   :  { %v15704_v10 = vpop.eup %15703  ;;  %15711 = vrsqrt.f32 %v12204_v21  ;;  %v12198_v20 = vmul.f32 0.03125, %v12190_v11  ;;  %v12205_v55 = vadd.f32 1e-05, %v12197_v59  ;;  %v15431_v21 = vld [vmem:[%s18427_s12 + $0x268] sm:$0xff]   ;;  %v15436_v59 = vld [vmem:[%s18427_s12 + $0x2f0] sm:$0xff]  }
0x2353   :  { %v12215_v39 = vmul.f32 %v15704_v10, %v17999_v48  ;;  %15713 = vrsqrt.f32 %v12203_v13  ;;  %v15429_v13 = vld [vmem:[%s18427_s12 + $0x220] sm:$0xff]   ;;  %v15432_v11 = vld [vmem:[%s18427_s12 + $0x2e8] sm:$0xff]  }
0x2354   :  { %v15706_v51 = vpop.eup %15705  ;;  %v12206_v17 = vadd.f32 1e-05, %v12198_v20 }
0x2355   :  { %v12229_v61 = vmul.f32 %v18072_v42, %v12215_v39  ;;  %v12216_v5 = vmul.f32 %v15706_v51, %v18001_v44  ;;  %v15434_v39 = vld [vmem:[%s18427_s12 + $0x2a8] sm:$0xff]   ;;  %v15435_v51 = vld [vmem:[%s18427_s12 + $0x270] sm:$0xff]  }
0x2356   :  { %v15708_v57 = vpop.eup %15707  ;;  %15715 = vrsqrt.f32 %v12206_v17  ;;  %v15441_v17 = vld [vmem:[%s18427_s12 + $0x238] sm:$0xff]  }
0x2357   :  { %v12230_v28 = vmul.f32 %v18072_v42, %v12216_v5  ;;  %v12217_v48 = vmul.f32 %v15708_v57, %v18005_v60  ;;  %v18086_v0 = vadd.f32 %v18080_v32, %v12229_v61  ;;  %15717 = vrsqrt.f32 %v12205_v55  ;;  %v15414_v60 = vld [vmem:[%s18427_s12 + $0x280] sm:$0xff]   ;;  %v15437_v61 = vld [vmem:[%s18427_s12 + $0x230] sm:$0xff]   ;;  %v15439_v57 = vld [vmem:[%s18427_s12 + $0x278] sm:$0xff]  }
0x2358   :  { %v15710_v54 = vpop.eup %15709  ;;  %v15438_v5 = vld [vmem:[%s18427_s12 + $0x2b0] sm:$0xff]  }
0x2359   :  { %v12218_v56 = vmul.f32 %v15710_v54, %v18010_v23  ;;  %v18089_v44 = vadd.f32 %v18080_v32, %v12230_v28  ;;  %v15415_v23 = vld [vmem:[%s18427_s12 + $0x248] sm:$0xff]   ;;  %v12231_v41 = vmul.f32 %v18072_v42, %v12217_v48  ;;  %v15442_v28 = vld [vmem:[%s18427_s12 + $0x2b8] sm:$0xff]  }
0x235a   :  { %v13764_v54 = vld [vmem:[%s18426_s11 + $0x8] sm:$0xf] }
0x235b   :  { %v12232_v26 = vmul.f32 %v18072_v42, %v12218_v56  ;;  %v12251_v49 = vpack.c.bf16 %v18089_v44, %v18086_v0  ;;  %v18125_v7 = vadd.f32 %v18080_v32, %v12231_v41  ;;  %v18235_v55 = vrot.slane %v13764_v54, %v16555_v2 }
0x235c   :  { %v15712_v36 = vpop.eup %15711  ;;  %v18238_v48 = vrot.slane %v13764_v54, %v16557_v6  ;;  %v18241_v56 = vrot.slane %v13764_v54, %v16562_v34 }
0x235d   :  { %13773 = vmatmul.mubr.msk.bf16.vlgmr.msra.gmra.mrb[252].mxu1 %vm113_vm0, %v12251_v49  ;;  %13777 = vmatmul.mubr.msk.bf16.vlgmr.msra.gmra.mrb[240].mxu0 %vm113_vm0, %v12251_v49  ;;  %v15714_v45 = vpop.eup %15713  ;;  %v18112_v27 = vadd.f32 %v18080_v32, %v12232_v26  ;;  %v12220_v15 = vmul.f32 %v15712_v36, %v18020_v43  ;;  %v18244_v26 = vrot.slane %v13764_v54, %v16564_v1 }
0x235e   :  { %12381 = vmatprep.mubr.bf16.mxu1 %v15781_v4  ;;  %12454 = vmatprep.mubr.bf16.mxu0 %v15781_v4  ;;  %v12219_v43 = vmul.f32 %v15714_v45, %v18015_v46  ;;  %v15422_v46 = vld [vmem:[%s18427_s12 + $0x290] sm:$0xff]  }
0x235f   :  { %14374 = vmatpush3.bf16.msra.mxu1 %v15413_v9  ;;  %14414 = vmatpush3.bf16.msra.mxu0 %v15414_v60  ;;  %v12252_v53 = vpack.c.bf16 %v18112_v27, %v18125_v7  ;;  %v12234_v58 = vmul.f32 %v18072_v42, %v12220_v15 }
0x2360   :  { %14375 = vmatprep.subr.bf16.mxu1 %v15415_v23  ;;  %14415 = vmatprep.subr.bf16.mxu0 %v15416_v24  ;;  %v15716_v33 = vpop.eup %15715  ;;  %v12233_v52 = vmul.f32 %v18072_v42, %v12219_v43 }
0x2361   :  { %v15718_v18 = vpop.eup %15717  ;;  %v18152_v62 = vadd.f32 %v18080_v32, %v12234_v58  ;;  %v12222_v19 = vmul.f32 %v15716_v33, %v18030_v31 }
0x2362   :  { %v18165_v25 = vadd.f32 %v18080_v32, %v12233_v52  ;;  %v12221_v31 = vmul.f32 %v15718_v18, %v18025_v37  ;;  %v15430_v37 = vld [vmem:[%s18427_s12 + $0x2a0] sm:$0xff]  }
0x2363   :  { %14376 = vmatpush3.bf16.msra.mxu1 %v15417_v38  ;;  %14416 = vmatpush3.bf16.msra.mxu0 %v15418_v40  ;;  %v12236_v22 = vmul.f32 %v18072_v42, %v12222_v19 }
0x2364   :  { %14377 = vmatprep.subr.bf16.mxu1 %v15419_v14  ;;  %14417 = vmatprep.subr.bf16.mxu0 %v15420_v47  ;;  %v12253_v63 = vpack.c.bf16 %v18152_v62, %v18165_v25  ;;  %v12235_v29 = vmul.f32 %v18072_v42, %v12221_v31 }
0x2365   :  { %13774 = vmatmul.mubr.msk.bf16.gmra.mrb[0].mxu1 %vm113_vm0, %v12252_v53  ;;  %13778 = vmatmul.mubr.msk.bf16.gmra.mrb[244].mxu0 %vm113_vm0, %v12252_v53  ;;  %v18192_v10 = vadd.f32 %v18080_v32, %v12236_v22 }
0x2366   :  { %12391 = vmatprep.mubr.bf16.mxu1 %v15781_v4  ;;  %12464 = vmatprep.mubr.bf16.mxu0 %v15781_v4  ;;  %v18195_v42 = vadd.f32 %v18080_v32, %v12235_v29  ;;  %v15440_v32 = vld [vmem:[%s18427_s12 + $0x2f8] sm:$0xff]  }
0x2367   :  { %14378 = vmatpush3.bf16.msra.mxu1 %v15421_v8  ;;  %14418 = vmatpush3.bf16.msra.mxu0 %v15422_v46 }
0x2368   :  { %14379 = vmatprep.subr.bf16.mxu1 %v15423_v35  ;;  %14419 = vmatprep.subr.bf16.mxu0 %v15424_v16  ;;  %v12254_v20 = vpack.c.bf16 %v18192_v10, %v18195_v42 }
0x236b   :  { %14380 = vmatpush3.bf16.msra.mxu1 %v15425_v3  ;;  %14420 = vmatpush3.bf16.msra.mxu0 %v15426_v50 }
0x236c   :  { %14381 = vmatprep.subr.bf16.mxu1 %v15427_v12  ;;  %14421 = vmatprep.subr.bf16.mxu0 %v15428_v30 }
0x236d   :  { %13775 = vmatmul.mubr.msk.bf16.gmra.mrb[4].mxu1 %vm113_vm0, %v12253_v63  ;;  %13779 = vmatmul.mubr.msk.bf16.gmra.mrb[248].mxu0 %vm113_vm0, %v12253_v63 }
0x236e   :  { %12401 = vmatprep.mubr.bf16.mxu1 %v15781_v4  ;;  %12474 = vmatprep.mubr.bf16.mxu0 %v15781_v4  ;;  %v15433_v4 = vld [vmem:[%s18427_s12 + $0x228] sm:$0xff]  }
0x236f   :  { %14382 = vmatpush3.bf16.msra.mxu1 %v15429_v13  ;;  %14422 = vmatpush3.bf16.msra.mxu0 %v15430_v37 }
0x2370   :  { %14383 = vmatprep.subr.bf16.mxu1 %v15431_v21  ;;  %14423 = vmatprep.subr.bf16.mxu0 %v15432_v11 }
0x2373   :  { %14384 = vmatpush3.bf16.msra.mxu1 %v15433_v4  ;;  %14424 = vmatpush3.bf16.msra.mxu0 %v15434_v39 }
0x2374   :  { %14385 = vmatprep.subr.bf16.mxu1 %v15435_v51  ;;  %14425 = vmatprep.subr.bf16.mxu0 %v15436_v59 }
0x2375   :  { %13776 = vmatmul.mubr.msk.bf16.gmra.mrb[8].mxu1 %vm113_vm0, %v12254_v20  ;;  %13780 = vmatmul.mubr.msk.bf16.gmra.mrb[252].mxu0 %vm113_vm0, %v12254_v20 }
0x2377   :  { %14386 = vmatpush3.bf16.msra.mxu1 %v15437_v61  ;;  %14426 = vmatpush3.bf16.msra.mxu0 %v15438_v5 }
0x2378   :  { %14387 = vmatprep.subr.bf16.mxu1 %v15439_v57  ;;  %14427 = vmatprep.subr.bf16.mxu0 %v15440_v32 }
0x237b   :  { %14388 = vmatpush3.bf16.msra.mxu1 %v15441_v17  ;;  %14428 = vmatpush3.bf16.msra.mxu0 %v15442_v28 }
0x2430   :  { %v12373_v49 = vpop.f32.mrb[252].mxu1  ;;  %v12446_v9 = vpop.f32.mrb[240].mxu0 }
0x2431   :  { %v12374_v36 = vadd.f32 %v12373_v49, %v18235_v55  ;;  %v12447_v60 = vadd.f32 %v12446_v9, %v18238_v48  ;;  %v12375_v23 = vpop.f32.mrb[253].mxu1  ;;  %v12448_v41 = vpop.f32.mrb[241].mxu0 }
0x2432   :  { %v12376_v2 = vadd.f32 %v12375_v23, %v18241_v56  ;;  %v12449_v24 = vadd.f32 %v12448_v41, %v18244_v26  ;;  %v12377_v6 = vpop.f32.mrb[254].mxu1  ;;  %v12450_v45 = vpop.f32.mrb[242].mxu0 }
0x2433   :  { %v12378_v34 = vadd.f32 %v12377_v6, %v18235_v55  ;;  %v12451_v15 = vadd.f32 %v12450_v45, %v18238_v48  ;;  %v12379_v1 = vpop.f32.mrb[255].mxu1  ;;  %v12452_v38 = vpop.f32.mrb[243].mxu0  ;;  %v12485_v43 = vmax.f32 %v12374_v36, 0.0  ;;  %v12487_v53 = vmax.f32 %v12447_v60, 0.0 }
0x2434   :  { %v12380_v40 = vadd.f32 %v12379_v1, %v18241_v56  ;;  %v12453_v14 = vadd.f32 %v12452_v38, %v18244_v26  ;;  %v12486_v8 = vmax.f32 %v12376_v2, 0.0  ;;  %v12488_v33 = vmax.f32 %v12449_v24, 0.0 }
0x2435   :  { %v12489_v58 = vmax.f32 %v12378_v34, 0.0  ;;  %v12491_v47 = vmax.f32 %v12451_v15, 0.0 }
0x2436   :  { %v12490_v46 = vmax.f32 %v12380_v40, 0.0  ;;  %v12492_v35 = vmax.f32 %v12453_v14, 0.0 }
0x2437   :  { %v12517_v52 = vpack.c.bf16 %v12489_v58, %v12485_v43  ;;  %v12519_v16 = vpack.c.bf16 %v12491_v47, %v12487_v53 }
0x2438   :  { %v12518_v18 = vpack.c.bf16 %v12490_v46, %v12486_v8  ;;  %v12520_v19 = vpack.c.bf16 %v12492_v35, %v12488_v33  ;;  %v12383_v3 = vpop.f32.mrb[0].mxu1  ;;  %v12456_v50 = vpop.f32.mrb[244].mxu0 }
0x2439   :  { %v12384_v12 = vadd.f32 %v12383_v3, %v18235_v55  ;;  %v12457_v31 = vadd.f32 %v12456_v50, %v18238_v48  ;;  %v12385_v63 = vpop.f32.mrb[1].mxu1  ;;  %v12458_v22 = vpop.f32.mrb[245].mxu0 }
0x243a   :  { %v12386_v30 = vadd.f32 %v12385_v63, %v18241_v56  ;;  %v12459_v13 = vadd.f32 %v12458_v22, %v18244_v26  ;;  %v12387_v37 = vpop.f32.mrb[2].mxu1  ;;  %v12460_v21 = vpop.f32.mrb[246].mxu0  ;;  %12830 = vmatprep.mubr.bf16.mxu1 %v12518_v18  ;;  %12895 = vmatprep.mubr.bf16.mxu0 %v12520_v19 }
0x243b   :  { %v12388_v29 = vadd.f32 %v12387_v37, %v18235_v55  ;;  %v12461_v11 = vadd.f32 %v12460_v21, %v18238_v48  ;;  %v12389_v20 = vpop.f32.mrb[3].mxu1  ;;  %v12462_v4 = vpop.f32.mrb[247].mxu0  ;;  %12831 = vmatmul.mubr.bf16.vlgmr.msra.gmra.mrb[12].mxu1 %v12517_v52  ;;  %12896 = vmatmul.mubr.bf16.vlgmr.msra.gmra.mrb[0].mxu0 %v12519_v16  ;;  %v12493_v59 = vmax.f32 %v12384_v12, 0.0  ;;  %v12495_v61 = vmax.f32 %v12457_v31, 0.0 }
0x243c   :  { %v12390_v39 = vadd.f32 %v12389_v20, %v18241_v56  ;;  %v12463_v51 = vadd.f32 %v12462_v4, %v18244_v26  ;;  %v12494_v32 = vmax.f32 %v12386_v30, 0.0  ;;  %v12496_v17 = vmax.f32 %v12459_v13, 0.0 }
0x243d   :  { %v12497_v5 = vmax.f32 %v12388_v29, 0.0  ;;  %v12499_v57 = vmax.f32 %v12461_v11, 0.0 }
0x243e   :  { %v12498_v28 = vmax.f32 %v12390_v39, 0.0  ;;  %v12500_v54 = vmax.f32 %v12463_v51, 0.0 }
0x243f   :  { %v12521_v49 = vpack.c.bf16 %v12497_v5, %v12493_v59  ;;  %v12523_v9 = vpack.c.bf16 %v12499_v57, %v12495_v61 }
0x2440   :  { %v12522_v36 = vpack.c.bf16 %v12498_v28, %v12494_v32  ;;  %v12524_v60 = vpack.c.bf16 %v12500_v54, %v12496_v17  ;;  %v12393_v23 = vpop.f32.mrb[4].mxu1  ;;  %v12466_v41 = vpop.f32.mrb[248].mxu0 }
0x2441   :  { %v12394_v2 = vadd.f32 %v12393_v23, %v18235_v55  ;;  %v12467_v24 = vadd.f32 %v12466_v41, %v18238_v48  ;;  %v12395_v6 = vpop.f32.mrb[5].mxu1  ;;  %v12468_v45 = vpop.f32.mrb[249].mxu0 }
0x2442   :  { %v12396_v34 = vadd.f32 %v12395_v6, %v18241_v56  ;;  %v12469_v15 = vadd.f32 %v12468_v45, %v18244_v26  ;;  %v12397_v1 = vpop.f32.mrb[6].mxu1  ;;  %v12470_v38 = vpop.f32.mrb[250].mxu0  ;;  %12838 = vmatprep.mubr.bf16.mxu1 %v12522_v36  ;;  %12903 = vmatprep.mubr.bf16.mxu0 %v12524_v60 }
0x2443   :  { %v12398_v40 = vadd.f32 %v12397_v1, %v18235_v55  ;;  %v12471_v14 = vadd.f32 %v12470_v38, %v18238_v48  ;;  %v12399_v43 = vpop.f32.mrb[7].mxu1  ;;  %v12472_v53 = vpop.f32.mrb[251].mxu0  ;;  %12839 = vmatmul.mubr.bf16.gmra.mrb[16].mxu1 %v12521_v49  ;;  %12904 = vmatmul.mubr.bf16.gmra.mrb[4].mxu0 %v12523_v9  ;;  %v12501_v8 = vmax.f32 %v12394_v2, 0.0  ;;  %v12503_v33 = vmax.f32 %v12467_v24, 0.0 }
0x2444   :  { %v12400_v58 = vadd.f32 %v12399_v43, %v18241_v56  ;;  %v12473_v47 = vadd.f32 %v12472_v53, %v18244_v26  ;;  %v12502_v52 = vmax.f32 %v12396_v34, 0.0  ;;  %v12504_v16 = vmax.f32 %v12469_v15, 0.0 }
0x2445   :  { %v12505_v46 = vmax.f32 %v12398_v40, 0.0  ;;  %v12507_v35 = vmax.f32 %v12471_v14, 0.0 }
0x2446   :  { %v12506_v18 = vmax.f32 %v12400_v58, 0.0  ;;  %v12508_v19 = vmax.f32 %v12473_v47, 0.0 }
0x2447   :  { %v12525_v3 = vpack.c.bf16 %v12505_v46, %v12501_v8  ;;  %v12527_v50 = vpack.c.bf16 %v12507_v35, %v12503_v33 }
0x2448   :  { %v12526_v12 = vpack.c.bf16 %v12506_v18, %v12502_v52  ;;  %v12528_v31 = vpack.c.bf16 %v12508_v19, %v12504_v16  ;;  %v12403_v63 = vpop.f32.mrb[8].mxu1  ;;  %v12476_v22 = vpop.f32.mrb[252].mxu0 }
0x2449   :  { %v12404_v30 = vadd.f32 %v12403_v63, %v18235_v55  ;;  %v12477_v13 = vadd.f32 %v12476_v22, %v18238_v48  ;;  %v12405_v37 = vpop.f32.mrb[9].mxu1  ;;  %v12478_v21 = vpop.f32.mrb[253].mxu0 }
0x244a   :  { %v12406_v29 = vadd.f32 %v12405_v37, %v18241_v56  ;;  %v12479_v11 = vadd.f32 %v12478_v21, %v18244_v26  ;;  %v12407_v20 = vpop.f32.mrb[10].mxu1  ;;  %v12480_v4 = vpop.f32.mrb[254].mxu0  ;;  %12846 = vmatprep.mubr.bf16.mxu1 %v12526_v12  ;;  %12911 = vmatprep.mubr.bf16.mxu0 %v12528_v31 }
0x244b   :  { %v12408_v39 = vadd.f32 %v12407_v20, %v18235_v55  ;;  %v12481_v51 = vadd.f32 %v12480_v4, %v18238_v48  ;;  %v12409_v59 = vpop.f32.mrb[11].mxu1  ;;  %v12482_v61 = vpop.f32.mrb[255].mxu0  ;;  %12847 = vmatmul.mubr.bf16.gmra.mrb[20].mxu1 %v12525_v3  ;;  %12912 = vmatmul.mubr.bf16.gmra.mrb[8].mxu0 %v12527_v50  ;;  %v12509_v32 = vmax.f32 %v12404_v30, 0.0  ;;  %v12511_v17 = vmax.f32 %v12477_v13, 0.0 }
0x244c   :  { %v12410_v5 = vadd.f32 %v12409_v59, %v18241_v56  ;;  %v12483_v57 = vadd.f32 %v12482_v61, %v18244_v26  ;;  %v12510_v49 = vmax.f32 %v12406_v29, 0.0  ;;  %v12512_v9 = vmax.f32 %v12479_v11, 0.0  ;;  %v18281_v26 = vld [vmem:[%s18428_s13 + $0x2] ss:$0 sm:$0xff] }
0x244d   :  { %v12513_v28 = vmax.f32 %v12408_v39, 0.0  ;;  %v12515_v54 = vmax.f32 %v12481_v51, 0.0 }
0x244e   :  { %v12514_v36 = vmax.f32 %v12410_v5, 0.0  ;;  %v12516_v60 = vmax.f32 %v12483_v57, 0.0 }
0x244f   :  { %v12529_v23 = vpack.c.bf16 %v12513_v28, %v12509_v32  ;;  %v12531_v55 = vpack.c.bf16 %v12515_v54, %v12511_v17 }
0x2450   :  { %v12530_v41 = vpack.c.bf16 %v12514_v36, %v12510_v49  ;;  %v12532_v48 = vpack.c.bf16 %v12516_v60, %v12512_v9 }
0x2452   :  { %12854 = vmatprep.mubr.bf16.mxu1 %v12530_v41  ;;  %12919 = vmatprep.mubr.bf16.mxu0 %v12532_v48 }
0x2453   :  { %12855 = vmatmul.mubr.bf16.gmra.mrb[24].mxu1 %v12529_v23  ;;  %12920 = vmatmul.mubr.bf16.gmra.mrb[12].mxu0 %v12531_v55 }
0x250e   :  { %v14389_v2 = vpop.f32.mrb[12].mxu1  ;;  %v14429_v56 = vpop.f32.mrb[0].mxu0 }
0x250f   :  { %v14390_v24 = vpop.f32.mrb[13].mxu1  ;;  %v14430_v6 = vpop.f32.mrb[1].mxu0 }
0x2510   :  { %v14391_v45 = vadd.f32 %v14390_v24, %v14389_v2  ;;  %v14431_v34 = vadd.f32 %v14430_v6, %v14429_v56  ;;  %v14392_v15 = vpop.f32.mrb[14].mxu1  ;;  %v14432_v1 = vpop.f32.mrb[2].mxu0 }
0x2511   :  { %v14393_v38 = vpop.f32.mrb[15].mxu1  ;;  %v14433_v40 = vpop.f32.mrb[3].mxu0 }
0x2512   :  { %v12833_v14 = vadd.f32 %v14391_v45, %v18281_v26  ;;  %v14394_v43 = vadd.f32 %v14393_v38, %v14392_v15  ;;  %v14434_v53 = vadd.f32 %v14433_v40, %v14432_v1 }
0x2514   :  { %v12898_v58 = vadd.f32 %v14431_v34, %v12833_v14  ;;  %v12836_v47 = vadd.f32 %v14394_v43, %v18281_v26 }
0x2516   :  { %v12901_v8 = vadd.f32 %v14434_v53, %v12836_v47  ;;  %v14395_v33 = vpop.f32.mrb[16].mxu1  ;;  %v14435_v46 = vpop.f32.mrb[4].mxu0  ;;  %v18286_v35 = vadd.f32 %v12898_v58, %v18086_v0 }
0x2517   :  { %v14396_v52 = vpop.f32.mrb[17].mxu1  ;;  %v14436_v16 = vpop.f32.mrb[5].mxu0 }
0x2518   :  { %v14397_v18 = vadd.f32 %v14396_v52, %v14395_v33  ;;  %v14437_v19 = vadd.f32 %v14436_v16, %v14435_v46  ;;  %v14398_v3 = vpop.f32.mrb[18].mxu1  ;;  %v14438_v50 = vpop.f32.mrb[6].mxu0  ;;  %v12940_v12 = vsel %vm113_vm0, %v18286_v35, 0.0  ;;  %v18291_v31 = vadd.f32 %v12901_v8, %v18089_v44 }
0x2519   :  { %v14399_v63 = vpop.f32.mrb[19].mxu1  ;;  %v14439_v22 = vpop.f32.mrb[7].mxu0  ;;  %12941 = vadd.xlane.f32.xlu0 %v12940_v12 }
0x251a   :  { %v12841_v30 = vadd.f32 %v14397_v18, %v18281_v26  ;;  %v14400_v13 = vadd.f32 %v14399_v63, %v14398_v3  ;;  %v14440_v0 = vadd.f32 %v14439_v22, %v14438_v50  ;;  %v12943_v37 = vsel %vm113_vm0, %v18291_v31, 0.0 }
0x251b   :  { %12944 = vadd.xlane.f32.xlu1 %v12943_v37 }
0x251c   :  { %v12906_v21 = vadd.f32 %v14437_v19, %v12841_v30  ;;  %v12844_v29 = vadd.f32 %v14400_v13, %v18281_v26 }
0x251e   :  { %v12909_v11 = vadd.f32 %v14440_v0, %v12844_v29  ;;  %v14401_v20 = vpop.f32.mrb[20].mxu1  ;;  %v14441_v4 = vpop.f32.mrb[8].mxu0  ;;  %v18298_v44 = vadd.f32 %v12906_v21, %v18125_v7 }
0x251f   :  { %v14402_v39 = vpop.f32.mrb[21].mxu1  ;;  %v14442_v51 = vpop.f32.mrb[9].mxu0 }
0x2520   :  { %v14403_v59 = vadd.f32 %v14402_v39, %v14401_v20  ;;  %v14443_v61 = vadd.f32 %v14442_v51, %v14441_v4  ;;  %v14404_v5 = vpop.f32.mrb[22].mxu1  ;;  %v14444_v57 = vpop.f32.mrb[10].mxu0  ;;  %v12946_v32 = vsel %vm113_vm0, %v18298_v44, 0.0  ;;  %v12931_v17 = vadd.f32 %v12909_v11, %v18112_v27 }
0x2521   :  { %v14405_v28 = vpop.f32.mrb[23].mxu1  ;;  %v14445_v54 = vpop.f32.mrb[11].mxu0  ;;  %12947 = vadd.xlane.f32.xlu0 %v12946_v32 }
0x2522   :  { %v12849_v49 = vadd.f32 %v14403_v59, %v18281_v26  ;;  %v14406_v9 = vadd.f32 %v14405_v28, %v14404_v5  ;;  %v14446_v36 = vadd.f32 %v14445_v54, %v14444_v57  ;;  %v12949_v7 = vsel %vm113_vm0, %v12931_v17, 0.0 }
0x2523   :  { %12950 = vadd.xlane.f32.xlu1 %v12949_v7 }
0x2524   :  { %v12914_v60 = vadd.f32 %v14443_v61, %v12849_v49  ;;  %v12852_v23 = vadd.f32 %v14406_v9, %v18281_v26 }
0x2526   :  { %v12917_v55 = vadd.f32 %v14446_v36, %v12852_v23  ;;  %v14407_v41 = vpop.f32.mrb[24].mxu1  ;;  %v14447_v48 = vpop.f32.mrb[12].mxu0  ;;  %v12932_v2 = vadd.f32 %v12914_v60, %v18165_v25 }
0x2527   :  { %v14408_v56 = vpop.f32.mrb[25].mxu1  ;;  %v14448_v27 = vpop.f32.mrb[13].mxu0 }
0x2528   :  { %v14409_v24 = vadd.f32 %v14408_v56, %v14407_v41  ;;  %v14449_v6 = vadd.f32 %v14448_v27, %v14447_v48  ;;  %v14410_v45 = vpop.f32.mrb[26].mxu1  ;;  %v14450_v34 = vpop.f32.mrb[14].mxu0  ;;  %v12952_v15 = vsel %vm113_vm0, %v12932_v2, 0.0  ;;  %v12933_v1 = vadd.f32 %v12917_v55, %v18152_v62 }
0x2529   :  { %v14451_v38 = vpop.f32.mrb[15].mxu0  ;;  %12953 = vadd.xlane.f32.xlu0 %v12952_v15  ;;  %v14411_v40 = vpop.f32.mrb[27].mxu1 }
0x252a   :  { %v12857_v14 = vadd.f32 %v14409_v24, %v18281_v26  ;;  %v14452_v43 = vadd.f32 %v14451_v38, %v14450_v34  ;;  %v14412_v53 = vadd.f32 %v14411_v40, %v14410_v45  ;;  %v12955_v58 = vsel %vm113_vm0, %v12933_v1, 0.0 }
0x252b   :  { %12956 = vadd.xlane.f32.xlu1 %v12955_v58 }
0x252c   :  { %v12922_v25 = vadd.f32 %v14449_v6, %v12857_v14  ;;  %v12860_v47 = vadd.f32 %v14412_v53, %v18281_v26  ;;  %v18362_v14 = vld [vmem:[%s18431_s16 + $0x2] ss:$0 sm:$0xff]  ;;  %s15782_s16 = smov [#allocation2]  }
0x252e   :  { %v12925_v8 = vadd.f32 %v14452_v43, %v12860_v47  ;;  %v12934_v33 = vadd.f32 %v12922_v25, %v18195_v42  ;;  %v18368_v47 = vld [vmem:[%s18432_s17 + $0x2] ss:$0 sm:$0xff]  ;;  %s13158_s17 = sshll.u32 %s15782_s16, 4  ;;  %s13159_s17 = int_to_ptr.vmem [resolvable:$true] %s13158_s17 }
0x252f   :  { %s15755_s7 = scalar_lea.vmem %s13159_s17, 128  ;;  %p15760_p1 = scmp.lt.s32.totalorder %s13159_s17, %s13159_s17 }
0x2530   :  { %v12958_v46 = vsel %vm113_vm0, %v12934_v33, 0.0  ;;  %v12935_v62 = vadd.f32 %v12925_v8, %v18192_v10  ;;  %p15756_p0 = scmp.ne.s32.totalorder %s13159_s17, %s15755_s7  ;;  %p15761_p2 = scmp.lt.s32.totalorder %s15755_s7, %s15755_s7 }
0x2531   :  { %12959 = vadd.xlane.f32.xlu0 %v12958_v46 }
0x2532   :  { %v12961_v52 = vsel %vm113_vm0, %v12935_v62, 0.0  ;;  %p15762_p3 = por %p15761_p2, %p15760_p1 }
0x2533   :  { %12962 = vadd.xlane.f32.xlu1 %v12961_v52 }
0x2534   :  { %p15763_p4 = pnand %p15762_p3, %p15756_p0 }
0x25a6   :  { %v12942_v16 = vpop.xlane.xlu0 %12941 }
0x25a7   :  { %v12964_v18 = vmul.f32 0.03125, %v12942_v16 }
0x25a8   :  { %v12945_v19 = vpop.xlane.xlu1 %12944 }
0x25a9   :  { %v18317_v3 = vsub.f32 %v18286_v35, %v12964_v18  ;;  %v12965_v50 = vmul.f32 0.03125, %v12945_v19 }
0x25ab   :  { %v18320_v26 = vsub.f32 %v18291_v31, %v12965_v50  ;;  %v12980_v42 = vmul.f32 %v18317_v3, %v18317_v3 }
0x25ad   :  { %v12988_v12 = vsel %vm113_vm0, %v12980_v42, 0.0  ;;  %v12981_v10 = vmul.f32 %v18320_v26, %v18320_v26 }
0x25ae   :  { %v12948_v63 = vpop.xlane.xlu0 %12947  ;;  %12989 = vadd.xlane.f32.xlu0 %v12988_v12 }
0x25af   :  { %v12966_v22 = vmul.f32 0.03125, %v12948_v63  ;;  %v12991_v30 = vsel %vm113_vm0, %v12981_v10, 0.0 }
0x25b0   :  { %v12951_v13 = vpop.xlane.xlu1 %12950  ;;  %12992 = vadd.xlane.f32.xlu1 %v12991_v30 }
0x25b1   :  { %v18329_v35 = vsub.f32 %v18298_v44, %v12966_v22  ;;  %v12967_v31 = vmul.f32 0.03125, %v12951_v13 }
0x25b3   :  { %v18331_v0 = vsub.f32 %v12931_v17, %v12967_v31  ;;  %v12982_v37 = vmul.f32 %v18329_v35, %v18329_v35 }
0x25b5   :  { %v12994_v21 = vsel %vm113_vm0, %v12982_v37, 0.0  ;;  %v12983_v29 = vmul.f32 %v18331_v0, %v18331_v0 }
0x25b6   :  { %v12954_v11 = vpop.xlane.xlu0 %12953  ;;  %12995 = vadd.xlane.f32.xlu0 %v12994_v21 }
0x25b7   :  { %v12968_v20 = vmul.f32 0.03125, %v12954_v11  ;;  %v12997_v4 = vsel %vm113_vm0, %v12983_v29, 0.0 }
0x25b8   :  { %v12957_v39 = vpop.xlane.xlu1 %12956  ;;  %12998 = vadd.xlane.f32.xlu1 %v12997_v4 }
0x25b9   :  { %v18339_v44 = vsub.f32 %v12932_v2, %v12968_v20  ;;  %v12969_v51 = vmul.f32 0.03125, %v12957_v39 }
0x25bb   :  { %v18341_v59 = vsub.f32 %v12933_v1, %v12969_v51  ;;  %v12984_v61 = vmul.f32 %v18339_v44, %v18339_v44 }
0x25bd   :  { %v13000_v5 = vsel %vm113_vm0, %v12984_v61, 0.0  ;;  %v12985_v57 = vmul.f32 %v18341_v59, %v18341_v59 }
0x25be   :  { %13001 = vadd.xlane.f32.xlu0 %v13000_v5  ;;  %v12960_v32 = vpop.xlane.xlu0 %12959 }
0x25bf   :  { %v12970_v17 = vmul.f32 0.03125, %v12960_v32  ;;  %v13003_v28 = vsel %vm113_vm0, %v12985_v57, 0.0 }
0x25c0   :  { %13004 = vadd.xlane.f32.xlu1 %v13003_v28  ;;  %v12963_v54 = vpop.xlane.xlu1 %12962 }
0x25c1   :  { %v18349_v49 = vsub.f32 %v12934_v33, %v12970_v17  ;;  %v12971_v9 = vmul.f32 0.03125, %v12963_v54 }
0x25c3   :  { %v18351_v36 = vsub.f32 %v12935_v62, %v12971_v9  ;;  %v12986_v7 = vmul.f32 %v18349_v49, %v18349_v49 }
0x25c5   :  { %v13006_v60 = vsel %vm113_vm0, %v12986_v7, 0.0  ;;  %v12987_v23 = vmul.f32 %v18351_v36, %v18351_v36 }
0x25c6   :  { %13007 = vadd.xlane.f32.xlu0 %v13006_v60 }
0x25c7   :  { %v13009_v55 = vsel %vm113_vm0, %v12987_v23, 0.0 }
0x25c8   :  { %13010 = vadd.xlane.f32.xlu1 %v13009_v55 }
0x263b   :  { %v12990_v41 = vpop.xlane.xlu0 %12989 }
0x263c   :  { %v13012_v48 = vmul.f32 0.03125, %v12990_v41 }
0x263d   :  { %v12993_v2 = vpop.xlane.xlu1 %12992 }
0x263e   :  { %v13020_v56 = vadd.f32 1e-05, %v13012_v48  ;;  %v13013_v27 = vmul.f32 0.03125, %v12993_v2 }
0x2640   :  { %15719 = vrsqrt.f32 %v13020_v56  ;;  %v13021_v24 = vadd.f32 1e-05, %v13013_v27 }
0x2642   :  { %15721 = vrsqrt.f32 %v13021_v24 }
0x2643   :  { %v12996_v6 = vpop.xlane.xlu0 %12995 }
0x2644   :  { %v13014_v45 = vmul.f32 0.03125, %v12996_v6 }
0x2645   :  { %v12999_v34 = vpop.xlane.xlu1 %12998 }
0x2646   :  { %v13022_v15 = vadd.f32 1e-05, %v13014_v45  ;;  %v13015_v1 = vmul.f32 0.03125, %v12999_v34 }
0x2648   :  { %15723 = vrsqrt.f32 %v13022_v15  ;;  %v13023_v38 = vadd.f32 1e-05, %v13015_v1 }
0x264a   :  { %v15720_v40 = vpop.eup %15719  ;;  %15725 = vrsqrt.f32 %v13023_v38 }
0x264b   :  { %v13036_v43 = vmul.f32 %v15720_v40, %v18317_v3  ;;  %v13002_v53 = vpop.xlane.xlu0 %13001 }
0x264c   :  { %v15722_v58 = vpop.eup %15721  ;;  %v13016_v25 = vmul.f32 0.03125, %v13002_v53 }
0x264d   :  { %v13050_v8 = vmul.f32 %v18362_v14, %v13036_v43  ;;  %v13037_v33 = vmul.f32 %v15722_v58, %v18320_v26  ;;  %v13005_v46 = vpop.xlane.xlu1 %13004 }
0x264e   :  { %v13024_v62 = vadd.f32 1e-05, %v13016_v25  ;;  %v13017_v52 = vmul.f32 0.03125, %v13005_v46 }
0x264f   :  { %v13051_v16 = vmul.f32 %v18362_v14, %v13037_v33  ;;  %v13064_v18 = vadd.f32 %v18368_v47, %v13050_v8 }
0x2650   :  { %15727 = vrsqrt.f32 %v13024_v62  ;;  %v13025_v19 = vadd.f32 1e-05, %v13017_v52 }
0x2651   :  { %v13065_v3 = vadd.f32 %v18368_v47, %v13051_v16  ;;  %v13072_v26 = vsel %vm113_vm0, %v13064_v18, -inf }
0x2652   :  { %v15724_v50 = vpop.eup %15723  ;;  %15729 = vrsqrt.f32 %v13025_v19  ;;  %v13073_v11 = vrot.slane %v13072_v26, 4 }
0x2653   :  { %v13079_v42 = vsel %vm113_vm0, %v13065_v3, -inf  ;;  %v13038_v12 = vmul.f32 %v15724_v50, %v18329_v35  ;;  %v13008_v10 = vpop.xlane.xlu0 %13007 }
0x2654   :  { %v15726_v63 = vpop.eup %15725  ;;  %v13018_v22 = vmul.f32 0.03125, %v13008_v10  ;;  %v13080_v30 = vrot.slane %v13079_v42, 4  ;;  %v13074_v32 = vmax.f32 %v13072_v26, %v13073_v11 }
0x2655   :  { %v13052_v13 = vmul.f32 %v18362_v14, %v13038_v12  ;;  %v13039_v31 = vmul.f32 %v15726_v63, %v18331_v0  ;;  %v13011_v37 = vpop.xlane.xlu1 %13010 }
0x2656   :  { %v13026_v21 = vadd.f32 1e-05, %v13018_v22  ;;  %v13019_v29 = vmul.f32 0.03125, %v13011_v37  ;;  %v13081_v39 = vmax.f32 %v13079_v42, %v13080_v30  ;;  %v13075_v48 = vrot.slane %v13074_v32, 2 }
0x2657   :  { %v13066_v20 = vadd.f32 %v18368_v47, %v13052_v13  ;;  %v13053_v4 = vmul.f32 %v18362_v14, %v13039_v31 }
0x2658   :  { %15731 = vrsqrt.f32 %v13026_v21  ;;  %v13027_v35 = vadd.f32 1e-05, %v13019_v29  ;;  %v13082_v7 = vrot.slane %v13081_v39, 2  ;;  %v13076_v1 = vmax.f32 %v13074_v32, %v13075_v48 }
0x2659   :  { %v13086_v51 = vsel %vm113_vm0, %v13066_v20, -inf  ;;  %v13067_v61 = vadd.f32 %v18368_v47, %v13053_v4 }
0x265a   :  { %v15728_v5 = vpop.eup %15727  ;;  %v13087_v57 = vrot.slane %v13086_v51, 4  ;;  %15733 = vrsqrt.f32 %v13027_v35  ;;  %v13083_v27 = vmax.f32 %v13081_v39, %v13082_v7  ;;  %v13077_v19 = vrot.slane %v13076_v1, 1 }
0x265b   :  { %v13093_v0 = vsel %vm113_vm0, %v13067_v61, -inf  ;;  %v13040_v17 = vmul.f32 %v15728_v5, %v18339_v44 }
0x265c   :  { %v15730_v28 = vpop.eup %15729  ;;  %v13088_v54 = vmax.f32 %v13086_v51, %v13087_v57  ;;  %v13094_v9 = vrot.slane %v13093_v0, 4  ;;  %v13084_v8 = vrot.slane %v13083_v27, 1  ;;  %v13078_v30 = vmax.f32 %v13076_v1, %v13077_v19 }
0x265d   :  { %v13054_v60 = vmul.f32 %v18362_v14, %v13040_v17  ;;  %v13041_v23 = vmul.f32 %v15730_v28, %v18341_v59 }
0x265e   :  { %v13089_v55 = vrot.slane %v13088_v54, 2  ;;  %v13095_v41 = vmax.f32 %v13093_v0, %v13094_v9  ;;  %v13085_v42 = vmax.f32 %v13083_v27, %v13084_v8 }
0x265f   :  { %v13068_v2 = vadd.f32 %v18368_v47, %v13054_v60  ;;  %v13055_v56 = vmul.f32 %v18362_v14, %v13041_v23 }
0x2660   :  { %v13096_v6 = vrot.slane %v13095_v41, 2  ;;  %v13090_v15 = vmax.f32 %v13088_v54, %v13089_v55  ;;  %v13137_v29 = vsel %vm13136_vm4, %v13085_v42, %v13078_v30 }
0x2661   :  { %v13100_v24 = vsel %vm113_vm0, %v13068_v2, -inf  ;;  %v13069_v44 = vadd.f32 %v18368_v47, %v13055_v56 }
0x2662   :  { %v15732_v45 = vpop.eup %15731  ;;  %v13101_v34 = vrot.slane %v13100_v24, 4  ;;  %v13097_v33 = vmax.f32 %v13095_v41, %v13096_v6  ;;  %v13091_v46 = vrot.slane %v13090_v15, 1 }
0x2663   :  { %v13042_v38 = vmul.f32 %v15732_v45, %v18349_v49  ;;  %v13107_v59 = vsel %vm113_vm0, %v13069_v44, -inf }
0x2664   :  { %v15734_v40 = vpop.eup %15733  ;;  %v13102_v43 = vmax.f32 %v13100_v24, %v13101_v34  ;;  %v13108_v53 = vrot.slane %v13107_v59, 4  ;;  %v13098_v12 = vrot.slane %v13097_v33, 1 }
0x2665   :  { %v13056_v58 = vmul.f32 %v18362_v14, %v13042_v38  ;;  %v13043_v25 = vmul.f32 %v15734_v40, %v18351_v36  ;;  %v13092_v36 = vmax.f32 %v13090_v15, %v13091_v46 }
0x2666   :  { %v13103_v62 = vrot.slane %v13102_v43, 2  ;;  %v13109_v52 = vmax.f32 %v13107_v59, %v13108_v53  ;;  %v13099_v37 = vmax.f32 %v13097_v33, %v13098_v12 }
0x2667   :  { %v13070_v16 = vadd.f32 %v18368_v47, %v13056_v58  ;;  %v13057_v18 = vmul.f32 %v18362_v14, %v13043_v25  ;;  %v13139_v4 = vsel %vm13138_vm5, %v13092_v36, %v13137_v29 }
0x2668   :  { %v13104_v49 = vmax.f32 %v13102_v43, %v13103_v62  ;;  %v13110_v3 = vrot.slane %v13109_v52, 2  ;;  %v13141_v61 = vsel %vm13140_vm6, %v13099_v37, %v13139_v4 }
0x2669   :  { %v13071_v50 = vadd.f32 %v18368_v47, %v13057_v18  ;;  %v13114_v10 = vsel %vm113_vm0, %v13070_v16, -inf }
0x266a   :  { %v13105_v63 = vrot.slane %v13104_v49, 1  ;;  %v13111_v26 = vmax.f32 %v13109_v52, %v13110_v3  ;;  %v13115_v22 = vrot.slane %v13114_v10, 4 }
0x266b   :  { %v13121_v13 = vsel %vm113_vm0, %v13071_v50, -inf }
0x266c   :  { %v13116_v31 = vmax.f32 %v13114_v10, %v13115_v22  ;;  %v13122_v14 = vrot.slane %v13121_v13, 4  ;;  %v13112_v21 = vrot.slane %v13111_v26, 1  ;;  %v13106_v47 = vmax.f32 %v13104_v49, %v13105_v63 }
0x266e   :  { %v13117_v11 = vrot.slane %v13116_v31, 2  ;;  %v13123_v20 = vmax.f32 %v13121_v13, %v13122_v14  ;;  %v13113_v51 = vmax.f32 %v13111_v26, %v13112_v21  ;;  %v13143_v32 = vsel %vm13142_vm7, %v13106_v47, %v13141_v61 }
0x2670   :  { %v13118_v35 = vmax.f32 %v13116_v31, %v13117_v11  ;;  %v13124_v39 = vrot.slane %v13123_v20, 2  ;;  %v13145_v28 = vsel %vm13144_vm8, %v13113_v51, %v13143_v32 }
0x2672   :  { %v13119_v5 = vrot.slane %v13118_v35, 1  ;;  %v13125_v57 = vmax.f32 %v13123_v20, %v13124_v39 }
0x2674   :  { %v13120_v0 = vmax.f32 %v13118_v35, %v13119_v5  ;;  %v13126_v17 = vrot.slane %v13125_v57, 1 }
0x2676   :  { %v13127_v54 = vmax.f32 %v13125_v57, %v13126_v17  ;;  %v13147_v9 = vsel %vm13146_vm9, %v13120_v0, %v13145_v28 }
0x2678   :  { %v13149_v7 = vsel %vm13148_vm10, %v13127_v54, %v13147_v9 }
0x2679   :  { %13151 = vst.msk [vmem:[#allocation2] sm:$0xff] %vm113_vm0, %v13149_v7 }
0x267a   :  { %15766 = shalt.err (!%p15763_p4)
}
0x267b   :  { %s15767_s0 = scalar_lea.hbm %s18433_s18, 128 }
0x267c   :  { %p15768_p5 = scmp.ne.s32.totalorder %s18433_s18, %s15767_s0  ;;  %p15771_p6 = scmp.lt.u32.totalorder %s15767_s0, %s18433_s18 }
0x267e   :  { %p15773_p7 = pnand %p15771_p6, %p15768_p5 }
0x2680   :  { %15776 = shalt.err (!%p15773_p7)
}
0x2681   :  { %13161 = dma.vmem_to_hbm [thread:$0]  %s13159_s17, 128, %s18433_s18, [#allocation3]  }
0x2682   :  { %15777 = dma.done.wait [#allocation3], 128  }
0x2683   :  { %15778 = vsyncadd [#allocation3], 4294967168 }
0x2684   :  { %13165 = vsyncpa [#allocation3], 1 }

</bundles_post_ra>
